<compile_context>
chip_gen: v6e
topology: v6e:2x2x1
jax: 0.10.0
libtpu: 0.0.40
codegen_flags: <defaults>
</compile_context>

<pallas_src>
import functools

import jax
import jax.numpy as jnp
from jax import lax
from jax.experimental import pallas as pl
from jax.experimental.pallas import tpu as pltpu

EPS = 1e-5


def _relu6(x):
    return jnp.minimum(jnp.maximum(x, 0.0), 6.0)


# ---------------------------------------------------------------------------
# In-kernel building blocks (operate on VMEM-resident values).
# ---------------------------------------------------------------------------
def _dw_conv_bn_relu6(x, pad_ref, w_ref, s_ref, b_ref, *, K, stride, Ho, Wo):
    """Depthwise KxK conv + folded BN + ReLU6 on an (H, W, C) value.

    Halo padding is built inside a zeroed VMEM scratch buffer (no HBM traffic).
    """
    H, W, C = x.shape
    pad = K // 2
    pad_ref[...] = jnp.zeros_like(pad_ref)
    pad_ref[pad:pad + H, pad:pad + W, :] = x
    xp = pad_ref[...]

    acc = jnp.zeros((Ho, Wo, C), jnp.float32)
    for kh in range(K):
        for kw in range(K):
            tap = lax.slice(
                xp,
                (kh, kw, 0),
                (kh + (Ho - 1) * stride + 1, kw + (Wo - 1) * stride + 1, C),
                (stride, stride, 1),
            )
            w_tap = w_ref[kh * K + kw : kh * K + kw + 1, :]  # (1, C) broadcast
            acc = acc + tap * w_tap
    return _relu6(acc * s_ref[...] + b_ref[...])


def _pw_conv_bn(x, w_ref, s_ref, b_ref, *, relu6, residual=None):
    """1x1 conv as (M, Cin) @ (Cin, Cout) MXU matmul + folded BN (+ReLU6, +res)."""
    y = jnp.dot(x, w_ref[...], preferred_element_type=jnp.float32)
    y = y * s_ref[...] + b_ref[...]
    if relu6:
        y = _relu6(y)
    if residual is not None:
        y = y + residual
    return y


# ---------------------------------------------------------------------------
# Fused whole-block kernel: one grid step = one batch image, everything in VMEM.
# ---------------------------------------------------------------------------
def _fused_block_kernel(*refs, K, stride, Ho, Wo, repeats):
    x_ref = refs[0]
    sep_dw_w, sep_dw_s, sep_dw_b, sep_pw_w, sep_pw_s, sep_pw_b = refs[1:7]
    n_blk = 9 * repeats
    blk = refs[7:7 + n_blk]
    o_ref = refs[7 + n_blk]
    pad_in_ref = refs[7 + n_blk + 1]
    pad_exp_ref = refs[7 + n_blk + 2]

    x = x_ref[0].astype(jnp.float32)          # (H, W, Cin)
    Cin = x.shape[-1]
    Cout = o_ref.shape[-1]
    M = Ho * Wo

    # SepConv2d: depthwise (stride) -> BN -> ReLU6 -> 1x1 -> BN, then block relu0.
    h = _dw_conv_bn_relu6(x, pad_in_ref, sep_dw_w, sep_dw_s, sep_dw_b,
                          K=K, stride=stride, Ho=Ho, Wo=Wo)
    out = _pw_conv_bn(h.reshape(M, Cin), sep_pw_w, sep_pw_s, sep_pw_b, relu6=True)

    # repeats x RMBConv2d bottlenecks, all intermediates VMEM-resident.
    for r in range(repeats):
        (exp_w, exp_s, exp_b,
         dw_w, dw_s, dw_b,
         shr_w, shr_s, shr_b) = blk[9 * r: 9 * r + 9]
        res = out
        e = _pw_conv_bn(out, exp_w, exp_s, exp_b, relu6=True)            # (M, Cexp)
        Cexp = e.shape[-1]
        d = _dw_conv_bn_relu6(e.reshape(Ho, Wo, Cexp), pad_exp_ref,
                              dw_w, dw_s, dw_b, K=K, stride=1, Ho=Ho, Wo=Wo)
        out = _pw_conv_bn(d.reshape(M, Cexp), shr_w, shr_s, shr_b,
                          relu6=False, residual=res)

    o_ref[...] = out.reshape(1, Ho, Wo, Cout).astype(o_ref.dtype)


def mnasnet_block_forward(x, params, *, K, stride, repeats):
    """x: (N, H, W, Cin) -> (N, Ho, Wo, Cout), whole MNasNetBlock in one pallas_call."""
    N, H, W, Cin = x.shape
    pad = K // 2
    Ho = (H + 2 * pad - K) // stride + 1
    Wo = (W + 2 * pad - K) // stride + 1
    Cout = params["sep_pw_w"].shape[1]
    Cexp = params["btl"][0]["exp_w"].shape[1] if repeats > 0 else Cout

    # Flatten weights in the kernel's positional order.
    weight_args = [
        params["sep_dw_w"], params["sep_dw_scale"], params["sep_dw_bias"],
        params["sep_pw_w"], params["sep_pw_scale"], params["sep_pw_bias"],
    ]
    for blk in params["btl"]:
        weight_args += [
            blk["exp_w"], blk["exp_scale"], blk["exp_bias"],
            blk["dw_w"], blk["dw_scale"], blk["dw_bias"],
            blk["shr_w"], blk["shr_scale"], blk["shr_bias"],
        ]

    in_specs = [pl.BlockSpec((1, H, W, Cin), lambda n: (n, 0, 0, 0))]
    for w in weight_args:
        in_specs.append(pl.BlockSpec(w.shape, lambda n, _nd=w.ndim: (0,) * _nd))

    kern = functools.partial(_fused_block_kernel, K=K, stride=stride,
                             Ho=Ho, Wo=Wo, repeats=repeats)
    return pl.pallas_call(
        kern,
        out_shape=jax.ShapeDtypeStruct((N, Ho, Wo, Cout), x.dtype),
        grid=(N,),
        in_specs=in_specs,
        out_specs=pl.BlockSpec((1, Ho, Wo, Cout), lambda n: (n, 0, 0, 0)),
        scratch_shapes=[
            pltpu.VMEM((H + 2 * pad, W + 2 * pad, Cin), jnp.float32),     # input halo pad
            pltpu.VMEM((Ho + 2 * pad, Wo + 2 * pad, Cexp), jnp.float32),  # expanded halo pad
        ],
        compiler_params=pltpu.CompilerParams(
            dimension_semantics=("parallel",)),
    )(x, *weight_args)


# ---------------------------------------------------------------------------
# Parameter construction (deterministic, mirrors the PyTorch __init__ shapes).
# ---------------------------------------------------------------------------
def _kaiming_uniform(key, shape, fan_in):
    # kaiming_uniform_(mode='fan_in', nonlinearity='relu'): bound = sqrt(2)*sqrt(3/fan_in)
    bound = float(jnp.sqrt(2.0) * jnp.sqrt(3.0 / fan_in))
    return jax.random.uniform(key, shape, jnp.float32, -bound, bound)


def _bn_fold(C):
    # BN init: gamma=1, beta=0, running_mean=0, running_var=1; conv bias init = 0.
    gamma = jnp.ones((C,), jnp.float32)
    beta = jnp.zeros((C,), jnp.float32)
    mean = jnp.zeros((C,), jnp.float32)
    var = jnp.ones((C,), jnp.float32)
    conv_bias = jnp.zeros((C,), jnp.float32)
    scale = gamma / jnp.sqrt(var + EPS)
    bias = beta + (conv_bias - mean) * scale
    return scale.reshape(1, C), bias.reshape(1, C)


def init_params(key, Cin, Cout, K, repeats, expansion):
    Cexp = expansion * Cout
    keys = jax.random.split(key, 2 + 3 * repeats)
    ki = iter(range(len(keys)))

    params = {}
    # SepConv2d: depthwise KxK on Cin (fan_in = K*K), then 1x1 Cin->Cout (fan_in = Cin)
    params["sep_dw_w"] = _kaiming_uniform(keys[next(ki)], (K, K, Cin), K * K).reshape(K * K, Cin)
    params["sep_dw_scale"], params["sep_dw_bias"] = _bn_fold(Cin)
    params["sep_pw_w"] = _kaiming_uniform(keys[next(ki)], (Cin, Cout), Cin)
    params["sep_pw_scale"], params["sep_pw_bias"] = _bn_fold(Cout)

    blocks = []
    for _ in range(repeats):
        blk = {}
        blk["exp_w"] = _kaiming_uniform(keys[next(ki)], (Cout, Cexp), Cout)
        blk["exp_scale"], blk["exp_bias"] = _bn_fold(Cexp)
        blk["dw_w"] = _kaiming_uniform(keys[next(ki)], (K, K, Cexp), K * K).reshape(K * K, Cexp)
        blk["dw_scale"], blk["dw_bias"] = _bn_fold(Cexp)
        blk["shr_w"] = _kaiming_uniform(keys[next(ki)], (Cexp, Cout), Cexp)
        blk["shr_scale"], blk["shr_bias"] = _bn_fold(Cout)
        blocks.append(blk)
    params["btl"] = blocks
    return params


# ---------------------------------------------------------------------------
# Pure-JAX reference (correctness check only).
# ---------------------------------------------------------------------------
def _ref_forward(x, params, K, stride):
    def dw(xx, w_kkc, scale, bias, s, relu6):
        C = xx.shape[-1]
        w = w_kkc.reshape(K, K, 1, C)
        y = lax.conv_general_dilated(
            xx, w, (s, s), [(K // 2, K // 2)] * 2,
            dimension_numbers=("NHWC", "HWIO", "NHWC"), feature_group_count=C)
        y = y * scale + bias
        return _relu6(y) if relu6 else y

    def pw(xx, w, scale, bias, relu6, residual=None):
        y = jnp.einsum("nhwc,cd->nhwd", xx, w) * scale + bias
        if relu6:
            y = _relu6(y)
        if residual is not None:
            y = y + residual
        return y

    p = params
    out = dw(x, p["sep_dw_w"], p["sep_dw_scale"], p["sep_dw_bias"], stride, True)
    out = pw(out, p["sep_pw_w"], p["sep_pw_scale"], p["sep_pw_bias"], True)
    for blk in p["btl"]:
        res = out
        h = pw(out, blk["exp_w"], blk["exp_scale"], blk["exp_bias"], True)
        h = dw(h, blk["dw_w"], blk["dw_scale"], blk["dw_bias"], 1, True)
        out = pw(h, blk["shr_w"], blk["shr_scale"], blk["shr_bias"], False, residual=res)
    return out


if __name__ == "__main__":
    # Small config: MNasNetBlock(in_channels=8, out_channels=16, kernel_size=3,
    #                            repeats=2, stride=1, expansion=6, se_ratio=0)
    N, H, W = 2, 16, 16
    Cin, Cout, K, repeats, stride, expansion = 8, 16, 3, 2, 1, 6

    key = jax.random.PRNGKey(0)
    kx, kp = jax.random.split(key)
    x = jax.random.normal(kx, (N, H, W, Cin), jnp.float32)  # NHWC (torch NCHW = [2,8,16,16])
    params = init_params(kp, Cin, Cout, K, repeats, expansion)

    fwd = jax.jit(functools.partial(mnasnet_block_forward, K=K, stride=stride, repeats=repeats))
    out = fwd(x, params)
    jax.block_until_ready(out)

    assert out.shape == (N, H, W, Cout)
    ref = _ref_forward(x, params, K, stride)
    assert jnp.allclose(out, ref, atol=1e-3, rtol=1e-3), "mismatch vs JAX reference"

    print("KERNEL_OK")
</pallas_src>

<mosaic_0001>
module attributes {stable_mosaic.version = 11 : i64} {
  func.func @_fused_block_kernel(%arg0: i32, %arg1: memref<1x16x16x8xf32, #tpu.memory_space<vmem>>, %arg2: memref<9x8xf32, #tpu.memory_space<vmem>>, %arg3: memref<1x8xf32, #tpu.memory_space<vmem>>, %arg4: memref<1x8xf32, #tpu.memory_space<vmem>>, %arg5: memref<8x16xf32, #tpu.memory_space<vmem>>, %arg6: memref<1x16xf32, #tpu.memory_space<vmem>>, %arg7: memref<1x16xf32, #tpu.memory_space<vmem>>, %arg8: memref<16x96xf32, #tpu.memory_space<vmem>>, %arg9: memref<1x96xf32, #tpu.memory_space<vmem>>, %arg10: memref<1x96xf32, #tpu.memory_space<vmem>>, %arg11: memref<9x96xf32, #tpu.memory_space<vmem>>, %arg12: memref<1x96xf32, #tpu.memory_space<vmem>>, %arg13: memref<1x96xf32, #tpu.memory_space<vmem>>, %arg14: memref<96x16xf32, #tpu.memory_space<vmem>>, %arg15: memref<1x16xf32, #tpu.memory_space<vmem>>, %arg16: memref<1x16xf32, #tpu.memory_space<vmem>>, %arg17: memref<16x96xf32, #tpu.memory_space<vmem>>, %arg18: memref<1x96xf32, #tpu.memory_space<vmem>>, %arg19: memref<1x96xf32, #tpu.memory_space<vmem>>, %arg20: memref<9x96xf32, #tpu.memory_space<vmem>>, %arg21: memref<1x96xf32, #tpu.memory_space<vmem>>, %arg22: memref<1x96xf32, #tpu.memory_space<vmem>>, %arg23: memref<96x16xf32, #tpu.memory_space<vmem>>, %arg24: memref<1x16xf32, #tpu.memory_space<vmem>>, %arg25: memref<1x16xf32, #tpu.memory_space<vmem>>, %arg26: memref<1x16x16x16xf32, #tpu.memory_space<vmem>>, %arg27: memref<18x18x8xf32, #tpu.memory_space<vmem>>, %arg28: memref<18x18x96xf32, #tpu.memory_space<vmem>>) attributes {dimension_semantics = [#tpu.dimension_semantics<parallel>], iteration_bounds = array<i64: 2>, scalar_prefetch = 0 : i64, scratch_operands = 2 : i64, tpu.core_type = #tpu.core_type<tc>, window_params = [{transform_indices = @transform_0, window_bounds = array<i64: 1, 16, 16, 8>}, {pipeline_mode = #tpu.pipeline_mode<synchronous>, transform_indices = @transform_1, window_bounds = array<i64: 9, 8>}, {pipeline_mode = #tpu.pipeline_mode<synchronous>, transform_indices = @transform_2, window_bounds = array<i64: 1, 8>}, {pipeline_mode = #tpu.pipeline_mode<synchronous>, transform_indices = @transform_3, window_bounds = array<i64: 1, 8>}, {pipeline_mode = #tpu.pipeline_mode<synchronous>, transform_indices = @transform_4, window_bounds = array<i64: 8, 16>}, {pipeline_mode = #tpu.pipeline_mode<synchronous>, transform_indices = @transform_5, window_bounds = array<i64: 1, 16>}, {pipeline_mode = #tpu.pipeline_mode<synchronous>, transform_indices = @transform_6, window_bounds = array<i64: 1, 16>}, {pipeline_mode = #tpu.pipeline_mode<synchronous>, transform_indices = @transform_7, window_bounds = array<i64: 16, 96>}, {pipeline_mode = #tpu.pipeline_mode<synchronous>, transform_indices = @transform_8, window_bounds = array<i64: 1, 96>}, {pipeline_mode = #tpu.pipeline_mode<synchronous>, transform_indices = @transform_9, window_bounds = array<i64: 1, 96>}, {pipeline_mode = #tpu.pipeline_mode<synchronous>, transform_indices = @transform_10, window_bounds = array<i64: 9, 96>}, {pipeline_mode = #tpu.pipeline_mode<synchronous>, transform_indices = @transform_11, window_bounds = array<i64: 1, 96>}, {pipeline_mode = #tpu.pipeline_mode<synchronous>, transform_indices = @transform_12, window_bounds = array<i64: 1, 96>}, {pipeline_mode = #tpu.pipeline_mode<synchronous>, transform_indices = @transform_13, window_bounds = array<i64: 96, 16>}, {pipeline_mode = #tpu.pipeline_mode<synchronous>, transform_indices = @transform_14, window_bounds = array<i64: 1, 16>}, {pipeline_mode = #tpu.pipeline_mode<synchronous>, transform_indices = @transform_15, window_bounds = array<i64: 1, 16>}, {pipeline_mode = #tpu.pipeline_mode<synchronous>, transform_indices = @transform_16, window_bounds = array<i64: 16, 96>}, {pipeline_mode = #tpu.pipeline_mode<synchronous>, transform_indices = @transform_17, window_bounds = array<i64: 1, 96>}, {pipeline_mode = #tpu.pipeline_mode<synchronous>, transform_indices = @transform_18, window_bounds = array<i64: 1, 96>}, {pipeline_mode = #tpu.pipeline_mode<synchronous>, transform_indices = @transform_19, window_bounds = array<i64: 9, 96>}, {pipeline_mode = #tpu.pipeline_mode<synchronous>, transform_indices = @transform_20, window_bounds = array<i64: 1, 96>}, {pipeline_mode = #tpu.pipeline_mode<synchronous>, transform_indices = @transform_21, window_bounds = array<i64: 1, 96>}, {pipeline_mode = #tpu.pipeline_mode<synchronous>, transform_indices = @transform_22, window_bounds = array<i64: 96, 16>}, {pipeline_mode = #tpu.pipeline_mode<synchronous>, transform_indices = @transform_23, window_bounds = array<i64: 1, 16>}, {pipeline_mode = #tpu.pipeline_mode<synchronous>, transform_indices = @transform_24, window_bounds = array<i64: 1, 16>}, {transform_indices = @transform_25, window_bounds = array<i64: 1, 16, 16, 16>}]} {
    %c0 = arith.constant 0 : index
    %c0_0 = arith.constant 0 : index
    %c0_1 = arith.constant 0 : index
    %c0_2 = arith.constant 0 : index
    %0 = vector.load %arg1[%c0, %c0_0, %c0_1, %c0_2] : memref<1x16x16x8xf32, #tpu.memory_space<vmem>>, vector<1x16x16x8xf32>
    %1 = vector.shape_cast %0 : vector<1x16x16x8xf32> to vector<16x16x8xf32>
    %cst = arith.constant 0.000000e+00 : f32
    %2 = vector.broadcast %cst : f32 to vector<18x18x8xf32>
    %c0_3 = arith.constant 0 : index
    %c0_4 = arith.constant 0 : index
    %c0_5 = arith.constant 0 : index
    %3 = vector.load %arg27[%c0_3, %c0_4, %c0_5] : memref<18x18x8xf32, #tpu.memory_space<vmem>>, vector<18x18x8xf32>
    tpu.vector_store %arg27[%c0_3, %c0_4, %c0_5], %2 {strides = array<i32>} : memref<18x18x8xf32, #tpu.memory_space<vmem>>, vector<18x18x8xf32>,
    %c1 = arith.constant 1 : index
    %c1_6 = arith.constant 1 : index
    %c0_7 = arith.constant 0 : index
    %4 = vector.load %arg27[%c1, %c1_6, %c0_7] : memref<18x18x8xf32, #tpu.memory_space<vmem>>, vector<16x16x8xf32>
    tpu.vector_store %arg27[%c1, %c1_6, %c0_7], %1 {strides = array<i32>} : memref<18x18x8xf32, #tpu.memory_space<vmem>>, vector<16x16x8xf32>,
    %c0_8 = arith.constant 0 : index
    %c0_9 = arith.constant 0 : index
    %c0_10 = arith.constant 0 : index
    %5 = vector.load %arg27[%c0_8, %c0_9, %c0_10] : memref<18x18x8xf32, #tpu.memory_space<vmem>>, vector<18x18x8xf32>
    %cst_11 = arith.constant 0.000000e+00 : f32
    %6 = vector.broadcast %cst_11 : f32 to vector<16x16x8xf32>
    %7 = vector.extract_strided_slice %5 {offsets = [0, 0, 0], sizes = [16, 16, 8], strides = [1, 1, 1]} : vector<18x18x8xf32> to vector<16x16x8xf32>
    %c0_12 = arith.constant 0 : index
    %c0_13 = arith.constant 0 : index
    %8 = vector.load %arg2[%c0_12, %c0_13] : memref<9x8xf32, #tpu.memory_space<vmem>>, vector<1x8xf32>
    %9 = vector.shape_cast %8 : vector<1x8xf32> to vector<1x1x8xf32>
    %10 = vector.broadcast %9 : vector<1x1x8xf32> to vector<16x16x8xf32>
    %11 = arith.mulf %7, %10 : vector<16x16x8xf32>
    %12 = arith.addf %6, %11 : vector<16x16x8xf32>
    %13 = vector.extract_strided_slice %5 {offsets = [0, 1, 0], sizes = [16, 16, 8], strides = [1, 1, 1]} : vector<18x18x8xf32> to vector<16x16x8xf32>
    %c1_14 = arith.constant 1 : index
    %c0_15 = arith.constant 0 : index
    %14 = vector.load %arg2[%c1_14, %c0_15] : memref<9x8xf32, #tpu.memory_space<vmem>>, vector<1x8xf32>
    %15 = vector.shape_cast %14 : vector<1x8xf32> to vector<1x1x8xf32>
    %16 = vector.broadcast %15 : vector<1x1x8xf32> to vector<16x16x8xf32>
    %17 = arith.mulf %13, %16 : vector<16x16x8xf32>
    %18 = arith.addf %12, %17 : vector<16x16x8xf32>
    %19 = vector.extract_strided_slice %5 {offsets = [0, 2, 0], sizes = [16, 16, 8], strides = [1, 1, 1]} : vector<18x18x8xf32> to vector<16x16x8xf32>
    %c2 = arith.constant 2 : index
    %c0_16 = arith.constant 0 : index
    %20 = vector.load %arg2[%c2, %c0_16] : memref<9x8xf32, #tpu.memory_space<vmem>>, vector<1x8xf32>
    %21 = vector.shape_cast %20 : vector<1x8xf32> to vector<1x1x8xf32>
    %22 = vector.broadcast %21 : vector<1x1x8xf32> to vector<16x16x8xf32>
    %23 = arith.mulf %19, %22 : vector<16x16x8xf32>
    %24 = arith.addf %18, %23 : vector<16x16x8xf32>
    %25 = vector.extract_strided_slice %5 {offsets = [1, 0, 0], sizes = [16, 16, 8], strides = [1, 1, 1]} : vector<18x18x8xf32> to vector<16x16x8xf32>
    %c3 = arith.constant 3 : index
    %c0_17 = arith.constant 0 : index
    %26 = vector.load %arg2[%c3, %c0_17] : memref<9x8xf32, #tpu.memory_space<vmem>>, vector<1x8xf32>
    %27 = vector.shape_cast %26 : vector<1x8xf32> to vector<1x1x8xf32>
    %28 = vector.broadcast %27 : vector<1x1x8xf32> to vector<16x16x8xf32>
    %29 = arith.mulf %25, %28 : vector<16x16x8xf32>
    %30 = arith.addf %24, %29 : vector<16x16x8xf32>
    %31 = vector.extract_strided_slice %5 {offsets = [1, 1, 0], sizes = [16, 16, 8], strides = [1, 1, 1]} : vector<18x18x8xf32> to vector<16x16x8xf32>
    %c4 = arith.constant 4 : index
    %c0_18 = arith.constant 0 : index
    %32 = vector.load %arg2[%c4, %c0_18] : memref<9x8xf32, #tpu.memory_space<vmem>>, vector<1x8xf32>
    %33 = vector.shape_cast %32 : vector<1x8xf32> to vector<1x1x8xf32>
    %34 = vector.broadcast %33 : vector<1x1x8xf32> to vector<16x16x8xf32>
    %35 = arith.mulf %31, %34 : vector<16x16x8xf32>
    %36 = arith.addf %30, %35 : vector<16x16x8xf32>
    %37 = vector.extract_strided_slice %5 {offsets = [1, 2, 0], sizes = [16, 16, 8], strides = [1, 1, 1]} : vector<18x18x8xf32> to vector<16x16x8xf32>
    %c5 = arith.constant 5 : index
    %c0_19 = arith.constant 0 : index
    %38 = vector.load %arg2[%c5, %c0_19] : memref<9x8xf32, #tpu.memory_space<vmem>>, vector<1x8xf32>
    %39 = vector.shape_cast %38 : vector<1x8xf32> to vector<1x1x8xf32>
    %40 = vector.broadcast %39 : vector<1x1x8xf32> to vector<16x16x8xf32>
    %41 = arith.mulf %37, %40 : vector<16x16x8xf32>
    %42 = arith.addf %36, %41 : vector<16x16x8xf32>
    %43 = vector.extract_strided_slice %5 {offsets = [2, 0, 0], sizes = [16, 16, 8], strides = [1, 1, 1]} : vector<18x18x8xf32> to vector<16x16x8xf32>
    %c6 = arith.constant 6 : index
    %c0_20 = arith.constant 0 : index
    %44 = vector.load %arg2[%c6, %c0_20] : memref<9x8xf32, #tpu.memory_space<vmem>>, vector<1x8xf32>
    %45 = vector.shape_cast %44 : vector<1x8xf32> to vector<1x1x8xf32>
    %46 = vector.broadcast %45 : vector<1x1x8xf32> to vector<16x16x8xf32>
    %47 = arith.mulf %43, %46 : vector<16x16x8xf32>
    %48 = arith.addf %42, %47 : vector<16x16x8xf32>
    %49 = vector.extract_strided_slice %5 {offsets = [2, 1, 0], sizes = [16, 16, 8], strides = [1, 1, 1]} : vector<18x18x8xf32> to vector<16x16x8xf32>
    %c7 = arith.constant 7 : index
    %c0_21 = arith.constant 0 : index
    %50 = vector.load %arg2[%c7, %c0_21] : memref<9x8xf32, #tpu.memory_space<vmem>>, vector<1x8xf32>
    %51 = vector.shape_cast %50 : vector<1x8xf32> to vector<1x1x8xf32>
    %52 = vector.broadcast %51 : vector<1x1x8xf32> to vector<16x16x8xf32>
    %53 = arith.mulf %49, %52 : vector<16x16x8xf32>
    %54 = arith.addf %48, %53 : vector<16x16x8xf32>
    %55 = vector.extract_strided_slice %5 {offsets = [2, 2, 0], sizes = [16, 16, 8], strides = [1, 1, 1]} : vector<18x18x8xf32> to vector<16x16x8xf32>
    %c8 = arith.constant 8 : index
    %c0_22 = arith.constant 0 : index
    %56 = vector.load %arg2[%c8, %c0_22] : memref<9x8xf32, #tpu.memory_space<vmem>>, vector<1x8xf32>
    %57 = vector.shape_cast %56 : vector<1x8xf32> to vector<1x1x8xf32>
    %58 = vector.broadcast %57 : vector<1x1x8xf32> to vector<16x16x8xf32>
    %59 = arith.mulf %55, %58 : vector<16x16x8xf32>
    %60 = arith.addf %54, %59 : vector<16x16x8xf32>
    %c0_23 = arith.constant 0 : index
    %c0_24 = arith.constant 0 : index
    %61 = vector.load %arg3[%c0_23, %c0_24] : memref<1x8xf32, #tpu.memory_space<vmem>>, vector<1x8xf32>
    %62 = vector.shape_cast %61 : vector<1x8xf32> to vector<1x1x8xf32>
    %63 = vector.broadcast %62 : vector<1x1x8xf32> to vector<16x16x8xf32>
    %64 = arith.mulf %60, %63 : vector<16x16x8xf32>
    %c0_25 = arith.constant 0 : index
    %c0_26 = arith.constant 0 : index
    %65 = vector.load %arg4[%c0_25, %c0_26] : memref<1x8xf32, #tpu.memory_space<vmem>>, vector<1x8xf32>
    %66 = vector.shape_cast %65 : vector<1x8xf32> to vector<1x1x8xf32>
    %67 = vector.broadcast %66 : vector<1x1x8xf32> to vector<16x16x8xf32>
    %68 = arith.addf %64, %67 : vector<16x16x8xf32>
    %cst_27 = arith.constant 0.000000e+00 : f32
    %69 = vector.broadcast %cst_27 : f32 to vector<16x16x8xf32>
    %70 = arith.maximumf %68, %69 : vector<16x16x8xf32>
    %cst_28 = arith.constant 6.000000e+00 : f32
    %71 = vector.broadcast %cst_28 : f32 to vector<16x16x8xf32>
    %72 = arith.minimumf %70, %71 : vector<16x16x8xf32>
    %73 = vector.shape_cast %72 : vector<16x16x8xf32> to vector<256x8xf32>
    %c0_29 = arith.constant 0 : index
    %c0_30 = arith.constant 0 : index
    %74 = vector.load %arg5[%c0_29, %c0_30] : memref<8x16xf32, #tpu.memory_space<vmem>>, vector<8x16xf32>
    %cst_31 = arith.constant dense<0.000000e+00> : vector<256x16xf32>
    %75 = tpu.matmul %73, %74, %cst_31 {dimension_numbers = #tpu.dot_dimension_numbers<[1], [0], [0], [1], [0, 0, 1, 1], [], []>} : vector<256x8xf32>, vector<8x16xf32>, vector<256x16xf32> -> vector<256x16xf32>
    %c0_32 = arith.constant 0 : index
    %c0_33 = arith.constant 0 : index
    %76 = vector.load %arg6[%c0_32, %c0_33] : memref<1x16xf32, #tpu.memory_space<vmem>>, vector<1x16xf32>
    %77 = vector.broadcast %76 : vector<1x16xf32> to vector<256x16xf32>
    %78 = arith.mulf %75, %77 : vector<256x16xf32>
    %c0_34 = arith.constant 0 : index
    %c0_35 = arith.constant 0 : index
    %79 = vector.load %arg7[%c0_34, %c0_35] : memref<1x16xf32, #tpu.memory_space<vmem>>, vector<1x16xf32>
    %80 = vector.broadcast %79 : vector<1x16xf32> to vector<256x16xf32>
    %81 = arith.addf %78, %80 : vector<256x16xf32>
    %cst_36 = arith.constant 0.000000e+00 : f32
    %82 = vector.broadcast %cst_36 : f32 to vector<256x16xf32>
    %83 = arith.maximumf %81, %82 : vector<256x16xf32>
    %cst_37 = arith.constant 6.000000e+00 : f32
    %84 = vector.broadcast %cst_37 : f32 to vector<256x16xf32>
    %85 = arith.minimumf %83, %84 : vector<256x16xf32>
    %c0_38 = arith.constant 0 : index
    %c0_39 = arith.constant 0 : index
    %86 = vector.load %arg8[%c0_38, %c0_39] : memref<16x96xf32, #tpu.memory_space<vmem>>, vector<16x96xf32>
    %cst_40 = arith.constant dense<0.000000e+00> : vector<256x96xf32>
    %87 = tpu.matmul %85, %86, %cst_40 {dimension_numbers = #tpu.dot_dimension_numbers<[1], [0], [0], [1], [0, 0, 1, 1], [], []>} : vector<256x16xf32>, vector<16x96xf32>, vector<256x96xf32> -> vector<256x96xf32>
    %c0_41 = arith.constant 0 : index
    %c0_42 = arith.constant 0 : index
    %88 = vector.load %arg9[%c0_41, %c0_42] : memref<1x96xf32, #tpu.memory_space<vmem>>, vector<1x96xf32>
    %89 = vector.broadcast %88 : vector<1x96xf32> to vector<256x96xf32>
    %90 = arith.mulf %87, %89 : vector<256x96xf32>
    %c0_43 = arith.constant 0 : index
    %c0_44 = arith.constant 0 : index
    %91 = vector.load %arg10[%c0_43, %c0_44] : memref<1x96xf32, #tpu.memory_space<vmem>>, vector<1x96xf32>
    %92 = vector.broadcast %91 : vector<1x96xf32> to vector<256x96xf32>
    %93 = arith.addf %90, %92 : vector<256x96xf32>
    %cst_45 = arith.constant 0.000000e+00 : f32
    %94 = vector.broadcast %cst_45 : f32 to vector<256x96xf32>
    %95 = arith.maximumf %93, %94 : vector<256x96xf32>
    %cst_46 = arith.constant 6.000000e+00 : f32
    %96 = vector.broadcast %cst_46 : f32 to vector<256x96xf32>
    %97 = arith.minimumf %95, %96 : vector<256x96xf32>
    %98 = vector.shape_cast %97 : vector<256x96xf32> to vector<16x16x96xf32>
    %cst_47 = arith.constant 0.000000e+00 : f32
    %99 = vector.broadcast %cst_47 : f32 to vector<18x18x96xf32>
    %c0_48 = arith.constant 0 : index
    %c0_49 = arith.constant 0 : index
    %c0_50 = arith.constant 0 : index
    %100 = vector.load %arg28[%c0_48, %c0_49, %c0_50] : memref<18x18x96xf32, #tpu.memory_space<vmem>>, vector<18x18x96xf32>
    tpu.vector_store %arg28[%c0_48, %c0_49, %c0_50], %99 {strides = array<i32>} : memref<18x18x96xf32, #tpu.memory_space<vmem>>, vector<18x18x96xf32>,
    %c1_51 = arith.constant 1 : index
    %c1_52 = arith.constant 1 : index
    %c0_53 = arith.constant 0 : index
    %101 = vector.load %arg28[%c1_51, %c1_52, %c0_53] : memref<18x18x96xf32, #tpu.memory_space<vmem>>, vector<16x16x96xf32>
    tpu.vector_store %arg28[%c1_51, %c1_52, %c0_53], %98 {strides = array<i32>} : memref<18x18x96xf32, #tpu.memory_space<vmem>>, vector<16x16x96xf32>,
    %c0_54 = arith.constant 0 : index
    %c0_55 = arith.constant 0 : index
    %c0_56 = arith.constant 0 : index
    %102 = vector.load %arg28[%c0_54, %c0_55, %c0_56] : memref<18x18x96xf32, #tpu.memory_space<vmem>>, vector<18x18x96xf32>
    %cst_57 = arith.constant 0.000000e+00 : f32
    %103 = vector.broadcast %cst_57 : f32 to vector<16x16x96xf32>
    %104 = vector.extract_strided_slice %102 {offsets = [0, 0, 0], sizes = [16, 16, 96], strides = [1, 1, 1]} : vector<18x18x96xf32> to vector<16x16x96xf32>
    %c0_58 = arith.constant 0 : index
    %c0_59 = arith.constant 0 : index
    %105 = vector.load %arg11[%c0_58, %c0_59] : memref<9x96xf32, #tpu.memory_space<vmem>>, vector<1x96xf32>
    %106 = vector.shape_cast %105 : vector<1x96xf32> to vector<1x1x96xf32>
    %107 = vector.broadcast %106 : vector<1x1x96xf32> to vector<16x16x96xf32>
    %108 = arith.mulf %104, %107 : vector<16x16x96xf32>
    %109 = arith.addf %103, %108 : vector<16x16x96xf32>
    %110 = vector.extract_strided_slice %102 {offsets = [0, 1, 0], sizes = [16, 16, 96], strides = [1, 1, 1]} : vector<18x18x96xf32> to vector<16x16x96xf32>
    %c1_60 = arith.constant 1 : index
    %c0_61 = arith.constant 0 : index
    %111 = vector.load %arg11[%c1_60, %c0_61] : memref<9x96xf32, #tpu.memory_space<vmem>>, vector<1x96xf32>
    %112 = vector.shape_cast %111 : vector<1x96xf32> to vector<1x1x96xf32>
    %113 = vector.broadcast %112 : vector<1x1x96xf32> to vector<16x16x96xf32>
    %114 = arith.mulf %110, %113 : vector<16x16x96xf32>
    %115 = arith.addf %109, %114 : vector<16x16x96xf32>
    %116 = vector.extract_strided_slice %102 {offsets = [0, 2, 0], sizes = [16, 16, 96], strides = [1, 1, 1]} : vector<18x18x96xf32> to vector<16x16x96xf32>
    %c2_62 = arith.constant 2 : index
    %c0_63 = arith.constant 0 : index
    %117 = vector.load %arg11[%c2_62, %c0_63] : memref<9x96xf32, #tpu.memory_space<vmem>>, vector<1x96xf32>
    %118 = vector.shape_cast %117 : vector<1x96xf32> to vector<1x1x96xf32>
    %119 = vector.broadcast %118 : vector<1x1x96xf32> to vector<16x16x96xf32>
    %120 = arith.mulf %116, %119 : vector<16x16x96xf32>
    %121 = arith.addf %115, %120 : vector<16x16x96xf32>
    %122 = vector.extract_strided_slice %102 {offsets = [1, 0, 0], sizes = [16, 16, 96], strides = [1, 1, 1]} : vector<18x18x96xf32> to vector<16x16x96xf32>
    %c3_64 = arith.constant 3 : index
    %c0_65 = arith.constant 0 : index
    %123 = vector.load %arg11[%c3_64, %c0_65] : memref<9x96xf32, #tpu.memory_space<vmem>>, vector<1x96xf32>
    %124 = vector.shape_cast %123 : vector<1x96xf32> to vector<1x1x96xf32>
    %125 = vector.broadcast %124 : vector<1x1x96xf32> to vector<16x16x96xf32>
    %126 = arith.mulf %122, %125 : vector<16x16x96xf32>
    %127 = arith.addf %121, %126 : vector<16x16x96xf32>
    %128 = vector.extract_strided_slice %102 {offsets = [1, 1, 0], sizes = [16, 16, 96], strides = [1, 1, 1]} : vector<18x18x96xf32> to vector<16x16x96xf32>
    %c4_66 = arith.constant 4 : index
    %c0_67 = arith.constant 0 : index
    %129 = vector.load %arg11[%c4_66, %c0_67] : memref<9x96xf32, #tpu.memory_space<vmem>>, vector<1x96xf32>
    %130 = vector.shape_cast %129 : vector<1x96xf32> to vector<1x1x96xf32>
    %131 = vector.broadcast %130 : vector<1x1x96xf32> to vector<16x16x96xf32>
    %132 = arith.mulf %128, %131 : vector<16x16x96xf32>
    %133 = arith.addf %127, %132 : vector<16x16x96xf32>
    %134 = vector.extract_strided_slice %102 {offsets = [1, 2, 0], sizes = [16, 16, 96], strides = [1, 1, 1]} : vector<18x18x96xf32> to vector<16x16x96xf32>
    %c5_68 = arith.constant 5 : index
    %c0_69 = arith.constant 0 : index
    %135 = vector.load %arg11[%c5_68, %c0_69] : memref<9x96xf32, #tpu.memory_space<vmem>>, vector<1x96xf32>
    %136 = vector.shape_cast %135 : vector<1x96xf32> to vector<1x1x96xf32>
    %137 = vector.broadcast %136 : vector<1x1x96xf32> to vector<16x16x96xf32>
    %138 = arith.mulf %134, %137 : vector<16x16x96xf32>
    %139 = arith.addf %133, %138 : vector<16x16x96xf32>
    %140 = vector.extract_strided_slice %102 {offsets = [2, 0, 0], sizes = [16, 16, 96], strides = [1, 1, 1]} : vector<18x18x96xf32> to vector<16x16x96xf32>
    %c6_70 = arith.constant 6 : index
    %c0_71 = arith.constant 0 : index
    %141 = vector.load %arg11[%c6_70, %c0_71] : memref<9x96xf32, #tpu.memory_space<vmem>>, vector<1x96xf32>
    %142 = vector.shape_cast %141 : vector<1x96xf32> to vector<1x1x96xf32>
    %143 = vector.broadcast %142 : vector<1x1x96xf32> to vector<16x16x96xf32>
    %144 = arith.mulf %140, %143 : vector<16x16x96xf32>
    %145 = arith.addf %139, %144 : vector<16x16x96xf32>
    %146 = vector.extract_strided_slice %102 {offsets = [2, 1, 0], sizes = [16, 16, 96], strides = [1, 1, 1]} : vector<18x18x96xf32> to vector<16x16x96xf32>
    %c7_72 = arith.constant 7 : index
    %c0_73 = arith.constant 0 : index
    %147 = vector.load %arg11[%c7_72, %c0_73] : memref<9x96xf32, #tpu.memory_space<vmem>>, vector<1x96xf32>
    %148 = vector.shape_cast %147 : vector<1x96xf32> to vector<1x1x96xf32>
    %149 = vector.broadcast %148 : vector<1x1x96xf32> to vector<16x16x96xf32>
    %150 = arith.mulf %146, %149 : vector<16x16x96xf32>
    %151 = arith.addf %145, %150 : vector<16x16x96xf32>
    %152 = vector.extract_strided_slice %102 {offsets = [2, 2, 0], sizes = [16, 16, 96], strides = [1, 1, 1]} : vector<18x18x96xf32> to vector<16x16x96xf32>
    %c8_74 = arith.constant 8 : index
    %c0_75 = arith.constant 0 : index
    %153 = vector.load %arg11[%c8_74, %c0_75] : memref<9x96xf32, #tpu.memory_space<vmem>>, vector<1x96xf32>
    %154 = vector.shape_cast %153 : vector<1x96xf32> to vector<1x1x96xf32>
    %155 = vector.broadcast %154 : vector<1x1x96xf32> to vector<16x16x96xf32>
    %156 = arith.mulf %152, %155 : vector<16x16x96xf32>
    %157 = arith.addf %151, %156 : vector<16x16x96xf32>
    %c0_76 = arith.constant 0 : index
    %c0_77 = arith.constant 0 : index
    %158 = vector.load %arg12[%c0_76, %c0_77] : memref<1x96xf32, #tpu.memory_space<vmem>>, vector<1x96xf32>
    %159 = vector.shape_cast %158 : vector<1x96xf32> to vector<1x1x96xf32>
    %160 = vector.broadcast %159 : vector<1x1x96xf32> to vector<16x16x96xf32>
    %161 = arith.mulf %157, %160 : vector<16x16x96xf32>
    %c0_78 = arith.constant 0 : index
    %c0_79 = arith.constant 0 : index
    %162 = vector.load %arg13[%c0_78, %c0_79] : memref<1x96xf32, #tpu.memory_space<vmem>>, vector<1x96xf32>
    %163 = vector.shape_cast %162 : vector<1x96xf32> to vector<1x1x96xf32>
    %164 = vector.broadcast %163 : vector<1x1x96xf32> to vector<16x16x96xf32>
    %165 = arith.addf %161, %164 : vector<16x16x96xf32>
    %cst_80 = arith.constant 0.000000e+00 : f32
    %166 = vector.broadcast %cst_80 : f32 to vector<16x16x96xf32>
    %167 = arith.maximumf %165, %166 : vector<16x16x96xf32>
    %cst_81 = arith.constant 6.000000e+00 : f32
    %168 = vector.broadcast %cst_81 : f32 to vector<16x16x96xf32>
    %169 = arith.minimumf %167, %168 : vector<16x16x96xf32>
    %170 = vector.shape_cast %169 : vector<16x16x96xf32> to vector<256x96xf32>
    %c0_82 = arith.constant 0 : index
    %c0_83 = arith.constant 0 : index
    %171 = vector.load %arg14[%c0_82, %c0_83] : memref<96x16xf32, #tpu.memory_space<vmem>>, vector<96x16xf32>
    %cst_84 = arith.constant dense<0.000000e+00> : vector<256x16xf32>
    %172 = tpu.matmul %170, %171, %cst_84 {dimension_numbers = #tpu.dot_dimension_numbers<[1], [0], [0], [1], [0, 0, 1, 1], [], []>} : vector<256x96xf32>, vector<96x16xf32>, vector<256x16xf32> -> vector<256x16xf32>
    %c0_85 = arith.constant 0 : index
    %c0_86 = arith.constant 0 : index
    %173 = vector.load %arg15[%c0_85, %c0_86] : memref<1x16xf32, #tpu.memory_space<vmem>>, vector<1x16xf32>
    %174 = vector.broadcast %173 : vector<1x16xf32> to vector<256x16xf32>
    %175 = arith.mulf %172, %174 : vector<256x16xf32>
    %c0_87 = arith.constant 0 : index
    %c0_88 = arith.constant 0 : index
    %176 = vector.load %arg16[%c0_87, %c0_88] : memref<1x16xf32, #tpu.memory_space<vmem>>, vector<1x16xf32>
    %177 = vector.broadcast %176 : vector<1x16xf32> to vector<256x16xf32>
    %178 = arith.addf %175, %177 : vector<256x16xf32>
    %179 = arith.addf %178, %85 : vector<256x16xf32>
    %c0_89 = arith.constant 0 : index
    %c0_90 = arith.constant 0 : index
    %180 = vector.load %arg17[%c0_89, %c0_90] : memref<16x96xf32, #tpu.memory_space<vmem>>, vector<16x96xf32>
    %cst_91 = arith.constant dense<0.000000e+00> : vector<256x96xf32>
    %181 = tpu.matmul %179, %180, %cst_91 {dimension_numbers = #tpu.dot_dimension_numbers<[1], [0], [0], [1], [0, 0, 1, 1], [], []>} : vector<256x16xf32>, vector<16x96xf32>, vector<256x96xf32> -> vector<256x96xf32>
    %c0_92 = arith.constant 0 : index
    %c0_93 = arith.constant 0 : index
    %182 = vector.load %arg18[%c0_92, %c0_93] : memref<1x96xf32, #tpu.memory_space<vmem>>, vector<1x96xf32>
    %183 = vector.broadcast %182 : vector<1x96xf32> to vector<256x96xf32>
    %184 = arith.mulf %181, %183 : vector<256x96xf32>
    %c0_94 = arith.constant 0 : index
    %c0_95 = arith.constant 0 : index
    %185 = vector.load %arg19[%c0_94, %c0_95] : memref<1x96xf32, #tpu.memory_space<vmem>>, vector<1x96xf32>
    %186 = vector.broadcast %185 : vector<1x96xf32> to vector<256x96xf32>
    %187 = arith.addf %184, %186 : vector<256x96xf32>
    %cst_96 = arith.constant 0.000000e+00 : f32
    %188 = vector.broadcast %cst_96 : f32 to vector<256x96xf32>
    %189 = arith.maximumf %187, %188 : vector<256x96xf32>
    %cst_97 = arith.constant 6.000000e+00 : f32
    %190 = vector.broadcast %cst_97 : f32 to vector<256x96xf32>
    %191 = arith.minimumf %189, %190 : vector<256x96xf32>
    %192 = vector.shape_cast %191 : vector<256x96xf32> to vector<16x16x96xf32>
    %cst_98 = arith.constant 0.000000e+00 : f32
    %193 = vector.broadcast %cst_98 : f32 to vector<18x18x96xf32>
    %c0_99 = arith.constant 0 : index
    %c0_100 = arith.constant 0 : index
    %c0_101 = arith.constant 0 : index
    %194 = vector.load %arg28[%c0_99, %c0_100, %c0_101] : memref<18x18x96xf32, #tpu.memory_space<vmem>>, vector<18x18x96xf32>
    tpu.vector_store %arg28[%c0_99, %c0_100, %c0_101], %193 {strides = array<i32>} : memref<18x18x96xf32, #tpu.memory_space<vmem>>, vector<18x18x96xf32>,
    %c1_102 = arith.constant 1 : index
    %c1_103 = arith.constant 1 : index
    %c0_104 = arith.constant 0 : index
    %195 = vector.load %arg28[%c1_102, %c1_103, %c0_104] : memref<18x18x96xf32, #tpu.memory_space<vmem>>, vector<16x16x96xf32>
    tpu.vector_store %arg28[%c1_102, %c1_103, %c0_104], %192 {strides = array<i32>} : memref<18x18x96xf32, #tpu.memory_space<vmem>>, vector<16x16x96xf32>,
    %c0_105 = arith.constant 0 : index
    %c0_106 = arith.constant 0 : index
    %c0_107 = arith.constant 0 : index
    %196 = vector.load %arg28[%c0_105, %c0_106, %c0_107] : memref<18x18x96xf32, #tpu.memory_space<vmem>>, vector<18x18x96xf32>
    %cst_108 = arith.constant 0.000000e+00 : f32
    %197 = vector.broadcast %cst_108 : f32 to vector<16x16x96xf32>
    %198 = vector.extract_strided_slice %196 {offsets = [0, 0, 0], sizes = [16, 16, 96], strides = [1, 1, 1]} : vector<18x18x96xf32> to vector<16x16x96xf32>
    %c0_109 = arith.constant 0 : index
    %c0_110 = arith.constant 0 : index
    %199 = vector.load %arg20[%c0_109, %c0_110] : memref<9x96xf32, #tpu.memory_space<vmem>>, vector<1x96xf32>
    %200 = vector.shape_cast %199 : vector<1x96xf32> to vector<1x1x96xf32>
    %201 = vector.broadcast %200 : vector<1x1x96xf32> to vector<16x16x96xf32>
    %202 = arith.mulf %198, %201 : vector<16x16x96xf32>
    %203 = arith.addf %197, %202 : vector<16x16x96xf32>
    %204 = vector.extract_strided_slice %196 {offsets = [0, 1, 0], sizes = [16, 16, 96], strides = [1, 1, 1]} : vector<18x18x96xf32> to vector<16x16x96xf32>
    %c1_111 = arith.constant 1 : index
    %c0_112 = arith.constant 0 : index
    %205 = vector.load %arg20[%c1_111, %c0_112] : memref<9x96xf32, #tpu.memory_space<vmem>>, vector<1x96xf32>
    %206 = vector.shape_cast %205 : vector<1x96xf32> to vector<1x1x96xf32>
    %207 = vector.broadcast %206 : vector<1x1x96xf32> to vector<16x16x96xf32>
    %208 = arith.mulf %204, %207 : vector<16x16x96xf32>
    %209 = arith.addf %203, %208 : vector<16x16x96xf32>
    %210 = vector.extract_strided_slice %196 {offsets = [0, 2, 0], sizes = [16, 16, 96], strides = [1, 1, 1]} : vector<18x18x96xf32> to vector<16x16x96xf32>
    %c2_113 = arith.constant 2 : index
    %c0_114 = arith.constant 0 : index
    %211 = vector.load %arg20[%c2_113, %c0_114] : memref<9x96xf32, #tpu.memory_space<vmem>>, vector<1x96xf32>
    %212 = vector.shape_cast %211 : vector<1x96xf32> to vector<1x1x96xf32>
    %213 = vector.broadcast %212 : vector<1x1x96xf32> to vector<16x16x96xf32>
    %214 = arith.mulf %210, %213 : vector<16x16x96xf32>
    %215 = arith.addf %209, %214 : vector<16x16x96xf32>
    %216 = vector.extract_strided_slice %196 {offsets = [1, 0, 0], sizes = [16, 16, 96], strides = [1, 1, 1]} : vector<18x18x96xf32> to vector<16x16x96xf32>
    %c3_115 = arith.constant 3 : index
    %c0_116 = arith.constant 0 : index
    %217 = vector.load %arg20[%c3_115, %c0_116] : memref<9x96xf32, #tpu.memory_space<vmem>>, vector<1x96xf32>
    %218 = vector.shape_cast %217 : vector<1x96xf32> to vector<1x1x96xf32>
    %219 = vector.broadcast %218 : vector<1x1x96xf32> to vector<16x16x96xf32>
    %220 = arith.mulf %216, %219 : vector<16x16x96xf32>
    %221 = arith.addf %215, %220 : vector<16x16x96xf32>
    %222 = vector.extract_strided_slice %196 {offsets = [1, 1, 0], sizes = [16, 16, 96], strides = [1, 1, 1]} : vector<18x18x96xf32> to vector<16x16x96xf32>
    %c4_117 = arith.constant 4 : index
    %c0_118 = arith.constant 0 : index
    %223 = vector.load %arg20[%c4_117, %c0_118] : memref<9x96xf32, #tpu.memory_space<vmem>>, vector<1x96xf32>
    %224 = vector.shape_cast %223 : vector<1x96xf32> to vector<1x1x96xf32>
    %225 = vector.broadcast %224 : vector<1x1x96xf32> to vector<16x16x96xf32>
    %226 = arith.mulf %222, %225 : vector<16x16x96xf32>
    %227 = arith.addf %221, %226 : vector<16x16x96xf32>
    %228 = vector.extract_strided_slice %196 {offsets = [1, 2, 0], sizes = [16, 16, 96], strides = [1, 1, 1]} : vector<18x18x96xf32> to vector<16x16x96xf32>
    %c5_119 = arith.constant 5 : index
    %c0_120 = arith.constant 0 : index
    %229 = vector.load %arg20[%c5_119, %c0_120] : memref<9x96xf32, #tpu.memory_space<vmem>>, vector<1x96xf32>
    %230 = vector.shape_cast %229 : vector<1x96xf32> to vector<1x1x96xf32>
    %231 = vector.broadcast %230 : vector<1x1x96xf32> to vector<16x16x96xf32>
    %232 = arith.mulf %228, %231 : vector<16x16x96xf32>
    %233 = arith.addf %227, %232 : vector<16x16x96xf32>
    %234 = vector.extract_strided_slice %196 {offsets = [2, 0, 0], sizes = [16, 16, 96], strides = [1, 1, 1]} : vector<18x18x96xf32> to vector<16x16x96xf32>
    %c6_121 = arith.constant 6 : index
    %c0_122 = arith.constant 0 : index
    %235 = vector.load %arg20[%c6_121, %c0_122] : memref<9x96xf32, #tpu.memory_space<vmem>>, vector<1x96xf32>
    %236 = vector.shape_cast %235 : vector<1x96xf32> to vector<1x1x96xf32>
    %237 = vector.broadcast %236 : vector<1x1x96xf32> to vector<16x16x96xf32>
    %238 = arith.mulf %234, %237 : vector<16x16x96xf32>
    %239 = arith.addf %233, %238 : vector<16x16x96xf32>
    %240 = vector.extract_strided_slice %196 {offsets = [2, 1, 0], sizes = [16, 16, 96], strides = [1, 1, 1]} : vector<18x18x96xf32> to vector<16x16x96xf32>
    %c7_123 = arith.constant 7 : index
    %c0_124 = arith.constant 0 : index
    %241 = vector.load %arg20[%c7_123, %c0_124] : memref<9x96xf32, #tpu.memory_space<vmem>>, vector<1x96xf32>
    %242 = vector.shape_cast %241 : vector<1x96xf32> to vector<1x1x96xf32>
    %243 = vector.broadcast %242 : vector<1x1x96xf32> to vector<16x16x96xf32>
    %244 = arith.mulf %240, %243 : vector<16x16x96xf32>
    %245 = arith.addf %239, %244 : vector<16x16x96xf32>
    %246 = vector.extract_strided_slice %196 {offsets = [2, 2, 0], sizes = [16, 16, 96], strides = [1, 1, 1]} : vector<18x18x96xf32> to vector<16x16x96xf32>
    %c8_125 = arith.constant 8 : index
    %c0_126 = arith.constant 0 : index
    %247 = vector.load %arg20[%c8_125, %c0_126] : memref<9x96xf32, #tpu.memory_space<vmem>>, vector<1x96xf32>
    %248 = vector.shape_cast %247 : vector<1x96xf32> to vector<1x1x96xf32>
    %249 = vector.broadcast %248 : vector<1x1x96xf32> to vector<16x16x96xf32>
    %250 = arith.mulf %246, %249 : vector<16x16x96xf32>
    %251 = arith.addf %245, %250 : vector<16x16x96xf32>
    %c0_127 = arith.constant 0 : index
    %c0_128 = arith.constant 0 : index
    %252 = vector.load %arg21[%c0_127, %c0_128] : memref<1x96xf32, #tpu.memory_space<vmem>>, vector<1x96xf32>
    %253 = vector.shape_cast %252 : vector<1x96xf32> to vector<1x1x96xf32>
    %254 = vector.broadcast %253 : vector<1x1x96xf32> to vector<16x16x96xf32>
    %255 = arith.mulf %251, %254 : vector<16x16x96xf32>
    %c0_129 = arith.constant 0 : index
    %c0_130 = arith.constant 0 : index
    %256 = vector.load %arg22[%c0_129, %c0_130] : memref<1x96xf32, #tpu.memory_space<vmem>>, vector<1x96xf32>
    %257 = vector.shape_cast %256 : vector<1x96xf32> to vector<1x1x96xf32>
    %258 = vector.broadcast %257 : vector<1x1x96xf32> to vector<16x16x96xf32>
    %259 = arith.addf %255, %258 : vector<16x16x96xf32>
    %cst_131 = arith.constant 0.000000e+00 : f32
    %260 = vector.broadcast %cst_131 : f32 to vector<16x16x96xf32>
    %261 = arith.maximumf %259, %260 : vector<16x16x96xf32>
    %cst_132 = arith.constant 6.000000e+00 : f32
    %262 = vector.broadcast %cst_132 : f32 to vector<16x16x96xf32>
    %263 = arith.minimumf %261, %262 : vector<16x16x96xf32>
    %264 = vector.shape_cast %263 : vector<16x16x96xf32> to vector<256x96xf32>
    %c0_133 = arith.constant 0 : index
    %c0_134 = arith.constant 0 : index
    %265 = vector.load %arg23[%c0_133, %c0_134] : memref<96x16xf32, #tpu.memory_space<vmem>>, vector<96x16xf32>
    %cst_135 = arith.constant dense<0.000000e+00> : vector<256x16xf32>
    %266 = tpu.matmul %264, %265, %cst_135 {dimension_numbers = #tpu.dot_dimension_numbers<[1], [0], [0], [1], [0, 0, 1, 1], [], []>} : vector<256x96xf32>, vector<96x16xf32>, vector<256x16xf32> -> vector<256x16xf32>
    %c0_136 = arith.constant 0 : index
    %c0_137 = arith.constant 0 : index
    %267 = vector.load %arg24[%c0_136, %c0_137] : memref<1x16xf32, #tpu.memory_space<vmem>>, vector<1x16xf32>
    %268 = vector.broadcast %267 : vector<1x16xf32> to vector<256x16xf32>
    %269 = arith.mulf %266, %268 : vector<256x16xf32>
    %c0_138 = arith.constant 0 : index
    %c0_139 = arith.constant 0 : index
    %270 = vector.load %arg25[%c0_138, %c0_139] : memref<1x16xf32, #tpu.memory_space<vmem>>, vector<1x16xf32>
    %271 = vector.broadcast %270 : vector<1x16xf32> to vector<256x16xf32>
    %272 = arith.addf %269, %271 : vector<256x16xf32>
    %273 = arith.addf %272, %179 : vector<256x16xf32>
    %274 = vector.shape_cast %273 : vector<256x16xf32> to vector<1x16x16x16xf32>
    %c0_140 = arith.constant 0 : index
    %c0_141 = arith.constant 0 : index
    %c0_142 = arith.constant 0 : index
    %c0_143 = arith.constant 0 : index
    %275 = vector.load %arg26[%c0_140, %c0_141, %c0_142, %c0_143] : memref<1x16x16x16xf32, #tpu.memory_space<vmem>>, vector<1x16x16x16xf32>
    tpu.vector_store %arg26[%c0_140, %c0_141, %c0_142, %c0_143], %274 {strides = array<i32>} : memref<1x16x16x16xf32, #tpu.memory_space<vmem>>, vector<1x16x16x16xf32>,
    return
  }
  func.func @transform_0(%arg0: i32) -> (i32, i32, i32, i32) {
    %c0_i32 = arith.constant 0 : i32
    %c0_i32_0 = arith.constant 0 : i32
    %c0_i32_1 = arith.constant 0 : i32
    %c0_i32_2 = arith.constant 0 : i32
    return %arg0, %c0_i32, %c0_i32_0, %c0_i32_1 : i32, i32, i32, i32
  }
  func.func @transform_1(%arg0: i32) -> (i32, i32) {
    %c0_i32 = arith.constant 0 : i32
    %c0_i32_0 = arith.constant 0 : i32
    %c0_i32_1 = arith.constant 0 : i32
    return %c0_i32, %c0_i32_0 : i32, i32
  }
  func.func @transform_2(%arg0: i32) -> (i32, i32) {
    %c0_i32 = arith.constant 0 : i32
    %c0_i32_0 = arith.constant 0 : i32
    %c0_i32_1 = arith.constant 0 : i32
    return %c0_i32, %c0_i32_0 : i32, i32
  }
  func.func @transform_3(%arg0: i32) -> (i32, i32) {
    %c0_i32 = arith.constant 0 : i32
    %c0_i32_0 = arith.constant 0 : i32
    %c0_i32_1 = arith.constant 0 : i32
    return %c0_i32, %c0_i32_0 : i32, i32
  }
  func.func @transform_4(%arg0: i32) -> (i32, i32) {
    %c0_i32 = arith.constant 0 : i32
    %c0_i32_0 = arith.constant 0 : i32
    %c0_i32_1 = arith.constant 0 : i32
    return %c0_i32, %c0_i32_0 : i32, i32
  }
  func.func @transform_5(%arg0: i32) -> (i32, i32) {
    %c0_i32 = arith.constant 0 : i32
    %c0_i32_0 = arith.constant 0 : i32
    %c0_i32_1 = arith.constant 0 : i32
    return %c0_i32, %c0_i32_0 : i32, i32
  }
  func.func @transform_6(%arg0: i32) -> (i32, i32) {
    %c0_i32 = arith.constant 0 : i32
    %c0_i32_0 = arith.constant 0 : i32
    %c0_i32_1 = arith.constant 0 : i32
    return %c0_i32, %c0_i32_0 : i32, i32
  }
  func.func @transform_7(%arg0: i32) -> (i32, i32) {
    %c0_i32 = arith.constant 0 : i32
    %c0_i32_0 = arith.constant 0 : i32
    %c0_i32_1 = arith.constant 0 : i32
    return %c0_i32, %c0_i32_0 : i32, i32
  }
  func.func @transform_8(%arg0: i32) -> (i32, i32) {
    %c0_i32 = arith.constant 0 : i32
    %c0_i32_0 = arith.constant 0 : i32
    %c0_i32_1 = arith.constant 0 : i32
    return %c0_i32, %c0_i32_0 : i32, i32
  }
  func.func @transform_9(%arg0: i32) -> (i32, i32) {
    %c0_i32 = arith.constant 0 : i32
    %c0_i32_0 = arith.constant 0 : i32
    %c0_i32_1 = arith.constant 0 : i32
    return %c0_i32, %c0_i32_0 : i32, i32
  }
  func.func @transform_10(%arg0: i32) -> (i32, i32) {
    %c0_i32 = arith.constant 0 : i32
    %c0_i32_0 = arith.constant 0 : i32
    %c0_i32_1 = arith.constant 0 : i32
    return %c0_i32, %c0_i32_0 : i32, i32
  }
  func.func @transform_11(%arg0: i32) -> (i32, i32) {
    %c0_i32 = arith.constant 0 : i32
    %c0_i32_0 = arith.constant 0 : i32
    %c0_i32_1 = arith.constant 0 : i32
    return %c0_i32, %c0_i32_0 : i32, i32
  }
  func.func @transform_12(%arg0: i32) -> (i32, i32) {
    %c0_i32 = arith.constant 0 : i32
    %c0_i32_0 = arith.constant 0 : i32
    %c0_i32_1 = arith.constant 0 : i32
    return %c0_i32, %c0_i32_0 : i32, i32
  }
  func.func @transform_13(%arg0: i32) -> (i32, i32) {
    %c0_i32 = arith.constant 0 : i32
    %c0_i32_0 = arith.constant 0 : i32
    %c0_i32_1 = arith.constant 0 : i32
    return %c0_i32, %c0_i32_0 : i32, i32
  }
  func.func @transform_14(%arg0: i32) -> (i32, i32) {
    %c0_i32 = arith.constant 0 : i32
    %c0_i32_0 = arith.constant 0 : i32
    %c0_i32_1 = arith.constant 0 : i32
    return %c0_i32, %c0_i32_0 : i32, i32
  }
  func.func @transform_15(%arg0: i32) -> (i32, i32) {
    %c0_i32 = arith.constant 0 : i32
    %c0_i32_0 = arith.constant 0 : i32
    %c0_i32_1 = arith.constant 0 : i32
    return %c0_i32, %c0_i32_0 : i32, i32
  }
  func.func @transform_16(%arg0: i32) -> (i32, i32) {
    %c0_i32 = arith.constant 0 : i32
    %c0_i32_0 = arith.constant 0 : i32
    %c0_i32_1 = arith.constant 0 : i32
    return %c0_i32, %c0_i32_0 : i32, i32
  }
  func.func @transform_17(%arg0: i32) -> (i32, i32) {
    %c0_i32 = arith.constant 0 : i32
    %c0_i32_0 = arith.constant 0 : i32
    %c0_i32_1 = arith.constant 0 : i32
    return %c0_i32, %c0_i32_0 : i32, i32
  }
  func.func @transform_18(%arg0: i32) -> (i32, i32) {
    %c0_i32 = arith.constant 0 : i32
    %c0_i32_0 = arith.constant 0 : i32
    %c0_i32_1 = arith.constant 0 : i32
    return %c0_i32, %c0_i32_0 : i32, i32
  }
  func.func @transform_19(%arg0: i32) -> (i32, i32) {
    %c0_i32 = arith.constant 0 : i32
    %c0_i32_0 = arith.constant 0 : i32
    %c0_i32_1 = arith.constant 0 : i32
    return %c0_i32, %c0_i32_0 : i32, i32
  }
  func.func @transform_20(%arg0: i32) -> (i32, i32) {
    %c0_i32 = arith.constant 0 : i32
    %c0_i32_0 = arith.constant 0 : i32
    %c0_i32_1 = arith.constant 0 : i32
    return %c0_i32, %c0_i32_0 : i32, i32
  }
  func.func @transform_21(%arg0: i32) -> (i32, i32) {
    %c0_i32 = arith.constant 0 : i32
    %c0_i32_0 = arith.constant 0 : i32
    %c0_i32_1 = arith.constant 0 : i32
    return %c0_i32, %c0_i32_0 : i32, i32
  }
  func.func @transform_22(%arg0: i32) -> (i32, i32) {
    %c0_i32 = arith.constant 0 : i32
    %c0_i32_0 = arith.constant 0 : i32
    %c0_i32_1 = arith.constant 0 : i32
    return %c0_i32, %c0_i32_0 : i32, i32
  }
  func.func @transform_23(%arg0: i32) -> (i32, i32) {
    %c0_i32 = arith.constant 0 : i32
    %c0_i32_0 = arith.constant 0 : i32
    %c0_i32_1 = arith.constant 0 : i32
    return %c0_i32, %c0_i32_0 : i32, i32
  }
  func.func @transform_24(%arg0: i32) -> (i32, i32) {
    %c0_i32 = arith.constant 0 : i32
    %c0_i32_0 = arith.constant 0 : i32
    %c0_i32_1 = arith.constant 0 : i32
    return %c0_i32, %c0_i32_0 : i32, i32
  }
  func.func @transform_25(%arg0: i32) -> (i32, i32, i32, i32) {
    %c0_i32 = arith.constant 0 : i32
    %c0_i32_0 = arith.constant 0 : i32
    %c0_i32_1 = arith.constant 0 : i32
    %c0_i32_2 = arith.constant 0 : i32
    return %arg0, %c0_i32, %c0_i32_0, %c0_i32_1 : i32, i32, i32, i32
  }
}

</mosaic_0001>

<bundles_post_ra>
// kernel: mnasnet_block_forward.1
= control target key start
LH: loop header
LB: loop body
LE: loop exit
PB: predicated region body
PF: predicated region fallthrough
CT: control target
= control target key end

     0   :  { %s16208_s0 = inlined_call_operand.vmem [shape: f32[2,16,16,8], index: 0, kind: input, shape index: {}]   ;;  %s16209_s1 = inlined_call_operand.vmem [shape: f32[9,8], index: 1, kind: input, shape index: {}]   ;;  %s16210_s2 = inlined_call_operand.vmem [shape: f32[1,8], index: 2, kind: input, shape index: {}]   ;;  %s16211_s3 = inlined_call_operand.vmem [shape: f32[1,8], index: 3, kind: input, shape index: {}]   ;;  %s16212_s4 = inlined_call_operand.vmem [shape: f32[8,16], index: 4, kind: input, shape index: {}]   ;;  %s16213_s5 = inlined_call_operand.vmem [shape: f32[1,16], index: 5, kind: input, shape index: {}]   ;;  %s16214_s6 = inlined_call_operand.vmem [shape: f32[1,16], index: 6, kind: input, shape index: {}]   ;;  %s16215_s7 = inlined_call_operand.vmem [shape: f32[16,96], index: 7, kind: input, shape index: {}]   ;;  %s16216_s8 = inlined_call_operand.vmem [shape: f32[1,96], index: 8, kind: input, shape index: {}]   ;;  %s16217_s9 = inlined_call_operand.vmem [shape: f32[1,96], index: 9, kind: input, shape index: {}]   ;;  %s16218_s10 = inlined_call_operand.vmem [shape: f32[9,96], index: 10, kind: input, shape index: {}]   ;;  %s16219_s11 = inlined_call_operand.vmem [shape: f32[1,96], index: 11, kind: input, shape index: {}]   ;;  %s16220_s12 = inlined_call_operand.vmem [shape: f32[1,96], index: 12, kind: input, shape index: {}]   ;;  %s16221_s13 = inlined_call_operand.vmem [shape: f32[96,16], index: 13, kind: input, shape index: {}]   ;;  %s16222_s14 = inlined_call_operand.vmem [shape: f32[1,16], index: 14, kind: input, shape index: {}]   ;;  %s16223_s15 = inlined_call_operand.vmem [shape: f32[1,16], index: 15, kind: input, shape index: {}]   ;;  %s16224_s16 = inlined_call_operand.vmem [shape: f32[16,96], index: 16, kind: input, shape index: {}]   ;;  %s16225_s17 = inlined_call_operand.vmem [shape: f32[1,96], index: 17, kind: input, shape index: {}]   ;;  %s16226_s18 = inlined_call_operand.vmem [shape: f32[1,96], index: 18, kind: input, shape index: {}]   ;;  %s16227_s19 = inlined_call_operand.vmem [shape: f32[9,96], index: 19, kind: input, shape index: {}]   ;;  %s16228_s20 = inlined_call_operand.vmem [shape: f32[1,96], index: 20, kind: input, shape index: {}]   ;;  %s16229_s21 = inlined_call_operand.vmem [shape: f32[1,96], index: 21, kind: input, shape index: {}]   ;;  %s16230_s22 = inlined_call_operand.vmem [shape: f32[96,16], index: 22, kind: input, shape index: {}]   ;;  %s16231_s23 = inlined_call_operand.vmem [shape: f32[1,16], index: 23, kind: input, shape index: {}]   ;;  %s16232_s24 = inlined_call_operand.vmem [shape: f32[1,16], index: 24, kind: input, shape index: {}]   ;;  %s16233_s25 = inlined_call_operand.hbm [shape: f32[2,16,16,16], index: 25, kind: output, shape index: {}]  }
   0x1   :  { %16320 = sst [smem:[#allocation46_spill]] %s16208_s0 }
   0x2   :  { %16321 = sst [smem:[#allocation47_spill]] %s16209_s1 }
   0x3   :  { %16322 = sst [smem:[#allocation48_spill]] %s16210_s2 }
   0x4   :  { %16323 = sst [smem:[#allocation49_spill]] %s16211_s3 }
   0x5   :  { %16324 = sst [smem:[#allocation50_spill]] %s16212_s4 }
   0x6   :  { %16325 = sst [smem:[#allocation51_spill]] %s16213_s5 }
   0x7   :  { %16326 = sst [smem:[#allocation52_spill]] %s16214_s6 }
   0x8   :  { %16327 = sst [smem:[#allocation53_spill]] %s16215_s7 }
   0x9   :  { %16328 = sst [smem:[#allocation54_spill]] %s16216_s8 }
   0xa   :  { %16329 = sst [smem:[#allocation55_spill]] %s16217_s9 }
   0xb   :  { %16330 = sst [smem:[#allocation56_spill]] %s16218_s10 }
   0xc   :  { %16331 = sst [smem:[#allocation57_spill]] %s16219_s11 }
   0xd   :  { %30 = vsyncpa [#allocation5], 0 }
   0xe   :  { %32 = vsyncpa [#allocation5 + $0x1], 0  ;;  %s10083_s29 = smov 0   ;;  %s10085_s2 = smov 0  }
   0xf   :  { %s10087_s6 = smov 0   ;;  %s10089_s30 = smov 0  }
  0x10 LB: > { %16332 = sst [smem:[#allocation7_spill]] %s9935_s29  ;;  %s10104_s7 = sadd.s32 4294967295, %s9947_s30   ;;  %s9947_s30 = sphi %s10089_s30, %s16478_s30   ;;  %s9943_s6 = sphi %s10087_s6, %s16480_s6   ;;  %s9939_s2 = sphi %s10085_s2, %s16482_s2   ;;  %s9935_s29 = sphi %s10083_s29, %s16481_s29  }
  0x11   : > { %16333 = sst [smem:[#allocation8_spill]] %s9943_s6  ;;  %s9069_s3 = sadd.s32 4294967294, %s9947_s30  }
  0x12   : > { %s10108_s26 = sadd.s32 1, %s9947_s30   ;;  %s575_s1 = sadd.s32 1, %s9943_s6 }
  0x13   : > { %16334 = sst [smem:[#allocation9_spill]] %s10108_s26  ;;  %s572_s8 = ssub.s32 %s9947_s30, %s10108_s26 }
  0x14   : > { %p585_p0 = scmp.ne.s32.totalorder %s9943_s6, %s9939_s2  ;;  %p573_p1 = scmp.eq.s32.totalorder %s572_s8, 0 }
  0x15   : > { %p586_p2 = scmp.eq.s32.totalorder %s10104_s7, 1  ;;  %p591_p3 = scmp.ne.s32.totalorder %s9939_s2, %s9935_s29 }
  0x16   : > { %p592_p4 = scmp.eq.s32.totalorder %s9069_s3, 1  ;;  %p9072_p7 = scmp.ge.s32.totalorder %s9947_s30, 1 }
  0x17   : > { %s10119_s27 = scalar_select %p573_p1, %s9943_s6, %s575_s1  }
  0x18   : > { %p10121_p5 = por %p586_p2, %p585_p0  ;;  %p10125_p6 = por %p592_p4, %p591_p3 }
  0x19   : > { %16335 = sst [smem:[#allocation10_spill]] %s10119_s27  ;;  %p690_p8 = scmp.lt.s32.totalorder %s9947_s30, 3 }
  0x1a   : > { %s16337_s28 = scalar_select %p10125_p6, 1, 0 }
  0x1b   : > { %p691_p9 = pnand %p9072_p7, %p690_p8 }
  0x1c   : > { %16338 = sst [smem:[#allocation11_spill]] %s16337_s28 }
  0x1d   : > { %694 = sbr.rel (%p691_p9) target bundleno = 1717 (0x6b5), region = 120 }
  0x22   : > { %s16339_s0 = sld [smem:[#allocation50_spill]]  ;;  %p758_p10 = scmp.lt.s32.totalorder %s10104_s7, 1  ;;  %vm795_vm0 = vcmask 64512   ;;  %vm798_vm1 = vcmask 58368   ;;  %v16255_v1 = vmov 0.0   ;;  %vm1108_vm2 = vcmask 1046528  }
  0x23   : > { %796 = vst.msk [vmem:[#allocation2] sm:$0xff] %vm795_vm0, %v16255_v1  ;;  %797 = vst.msk [vmem:[#allocation2 + $0x8] sm:$0xff] %vm795_vm0, %v16255_v1  ;;  %s16340_s5 = sld [smem:[#allocation46_spill]]  ;;  %vm1354_vm3 = vcmask 1045504   ;;  %vm3225_vm4 = vcmask 130048   ;;  %vm3689_vm5 = vcmask 785408  }
  0x24   : > { %800 = vst.msk [vmem:[#allocation2 + $0x18] sm:$0xff] %vm795_vm0, %v16255_v1  ;;  %801 = vst.msk [vmem:[#allocation2 + $0x20] sm:$0xff] %vm795_vm0, %v16255_v1  ;;  %s759_s3 = scalar_select %p758_p10, %s10104_s7, 1  ;;  %vm3692_vm6 = vcmask 779264  }
  0x25   : > { %802 = vst.msk [vmem:[#allocation2 + $0x28] sm:$0x3] %vm798_vm1, %v16255_v1  ;;  %805 = vst.msk [vmem:[#allocation2 + $0x40] sm:$0x3] %vm798_vm1, %v16255_v1  ;;  %s16341_s26 = sld [smem:[#allocation47_spill]]  ;;  %s9285_s29 = sshll.u32 %s10104_s7, 12 }
  0x26   : > { %803 = vst.msk [vmem:[#allocation2 + $0x30] sm:$0xff] %vm795_vm0, %v16255_v1  ;;  %804 = vst.msk [vmem:[#allocation2 + $0x38] sm:$0xff] %vm795_vm0, %v16255_v1  ;;  %s9284_s1 = sshll.u32 %s759_s3, 8  ;;  %s16342_s9 = sld [smem:[#allocation48_spill]] }
  0x27   : > { %799 = vst.msk [vmem:[#allocation2 + $0x10] sm:$0x3] %vm798_vm1, %v16255_v1  ;;  %808 = vst.msk [vmem:[#allocation2 + $0x58] sm:$0x3] %vm798_vm1, %v16255_v1  ;;  %s16343_s8 = sld [smem:[#allocation49_spill]]  ;;  %s16157_s28 = scalar_lea.hbm %s16233_s25, %s9285_s29 }
  0x28   : > { %v2759_v0 = vld [vmem:[%s16339_s0] sm:$0xff]  ;;  %806 = vst.msk [vmem:[#allocation2 + $0x48] sm:$0xff] %vm795_vm0, %v16255_v1  ;;  %807 = vst.msk [vmem:[#allocation2 + $0x50] sm:$0xff] %vm795_vm0, %v16255_v1  ;;  %s16344_s27 = sld [smem:[#allocation53_spill]]  ;;  %s9950_s29 = smov [#allocation4]  }
  0x29   : > { %9475 = vmatprep.subr.mxu0 %v2759_v0  ;;  %809 = vst.msk [vmem:[#allocation2 + $0x60] sm:$0xff] %vm795_vm0, %v16255_v1  ;;  %810 = vst.msk [vmem:[#allocation2 + $0x68] sm:$0xff] %vm795_vm0, %v16255_v1  ;;  %9773 = vmatprep.subr.mxu1 %v2759_v0  ;;  %s10249_s0 = scalar_lea.vmem %s16340_s5, %s9284_s1  ;;  %s16346_s1 = sld [smem:[#allocation52_spill]] }
  0x2a   : > { %811 = vst.msk [vmem:[#allocation2 + $0x70] sm:$0x3] %vm798_vm1, %v16255_v1  ;;  %814 = vst.msk [vmem:[#allocation2 + $0x88] sm:$0x3] %vm798_vm1, %v16255_v1  ;;  %9476 = vmatpush3.msra.mxu0 %v2759_v0  ;;  %9774 = vmatpush3.msra.mxu1 %v2759_v0  ;;  %v763_v5 = vld [vmem:[%s10249_s0] sm:$0xff]  ;;  %v764_v6 = vld [vmem:[%s10249_s0 + $0x8] sm:$0xff] }
  0x2b   : > { %812 = vst.msk [vmem:[#allocation2 + $0x78] sm:$0xff] %vm795_vm0, %v16255_v1  ;;  %813 = vst.msk [vmem:[#allocation2 + $0x80] sm:$0xff] %vm795_vm0, %v16255_v1  ;;  %v10254_v2 = vld [vmem:[%s16341_s26] ss:$0 sm:$0xff]  ;;  %v10259_v3 = vld [vmem:[%s16341_s26 + $0x1] ss:$0 sm:$0xff] }
  0x2c   : > { %815 = vst.msk [vmem:[#allocation2 + $0x90] sm:$0xff] %vm795_vm0, %v16255_v1  ;;  %816 = vst.msk [vmem:[#allocation2 + $0x98] sm:$0xff] %vm795_vm0, %v16255_v1  ;;  %v10264_v4 = vld [vmem:[%s16341_s26 + $0x2] ss:$0 sm:$0xff]  ;;  %v765_v7 = vld [vmem:[%s10249_s0 + $0x10] sm:$0xff]  ;;  %s16377_s10 = sld [smem:[#allocation56_spill]] }
  0x2d   : > { %817 = vst.msk [vmem:[#allocation2 + $0xa0] sm:$0x3] %vm798_vm1, %v16255_v1  ;;  %820 = vst.msk [vmem:[#allocation2 + $0xb8] sm:$0x3] %vm798_vm1, %v16255_v1  ;;  %v766_v8 = vld [vmem:[%s10249_s0 + $0x18] sm:$0xff]  ;;  %v767_v9 = vld [vmem:[%s10249_s0 + $0x20] sm:$0xff] }
  0x2e   : > { %818 = vst.msk [vmem:[#allocation2 + $0xa8] sm:$0xff] %vm795_vm0, %v16255_v1  ;;  %819 = vst.msk [vmem:[#allocation2 + $0xb0] sm:$0xff] %vm795_vm0, %v16255_v1  ;;  %v768_v10 = vld [vmem:[%s10249_s0 + $0x28] sm:$0xff]  ;;  %v884_v11 = vld [vmem:[#allocation2] sm:$0xff]  ;;  %s16378_s5 = sld [smem:[#allocation54_spill]] }
  0x2f   : > { %821 = vst.msk [vmem:[#allocation2 + $0xc0] sm:$0xff] %vm795_vm0, %v16255_v1  ;;  %822 = vst.msk [vmem:[#allocation2 + $0xc8] sm:$0xff] %vm795_vm0, %v16255_v1  ;;  %v885_v12 = vld [vmem:[#allocation2 + $0x8] sm:$0xff]  ;;  %v886_v13 = vld [vmem:[#allocation2 + $0x10] sm:$0x3]  ;;  %v1012_v14 = vmul.f32 %v10259_v3, %v884_v11  ;;  %v1258_v16 = vmul.f32 %v10264_v4, %v884_v11  ;;  %v943_v20 = vmul.f32 %v10254_v2, %v884_v11  ;;  %s16383_s11 = sld [smem:[#allocation57_spill]] }
  0x30   : > { %823 = vst.msk [vmem:[#allocation2 + $0xd0] sm:$0x3] %vm798_vm1, %v16255_v1  ;;  %826 = vst.msk [vmem:[#allocation2 + $0xe8] sm:$0x3] %vm798_vm1, %v16255_v1  ;;  %v1013_v15 = vmul.f32 %v10259_v3, %v885_v12  ;;  %v769_v17 = vld [vmem:[%s10249_s0 + $0x30] sm:$0xff]  ;;  %v770_v18 = vld [vmem:[%s10249_s0 + $0x38] sm:$0xff]  ;;  %v1259_v21 = vmul.f32 %v10264_v4, %v885_v12  ;;  %v1014_v25 = vmul.f32 %v10259_v3, %v886_v13 }
  0x31   : > { %824 = vst.msk [vmem:[#allocation2 + $0xd8] sm:$0xff] %vm795_vm0, %v16255_v1  ;;  %825 = vst.msk [vmem:[#allocation2 + $0xe0] sm:$0xff] %vm795_vm0, %v16255_v1  ;;  %v771_v19 = vld [vmem:[%s10249_s0 + $0x40] sm:$0xff]  ;;  %v1260_v26 = vmul.f32 %v10264_v4, %v886_v13  ;;  %v772_v27 = vld [vmem:[%s10249_s0 + $0x48] sm:$0xff]  ;;  %v1109_v30 = vrot.slane %v1012_v14, 1  ;;  %v1355_v32 = vrot.slane %v1258_v16, 2  ;;  %v944_v45 = vmul.f32 %v10254_v2, %v885_v12 }
  0x32   : > { %827 = vst.msk [vmem:[#allocation2 + $0xf0] sm:$0xff] %vm795_vm0, %v16255_v1  ;;  %828 = vst.msk [vmem:[#allocation2 + $0xf8] sm:$0xff] %vm795_vm0, %v16255_v1  ;;  %v10289_v22 = vld [vmem:[%s16341_s26 + $0x3] ss:$0 sm:$0xff]  ;;  %v10294_v23 = vld [vmem:[%s16341_s26 + $0x4] ss:$0 sm:$0xff] }
  0x33   : > { %829 = vst.msk [vmem:[#allocation2 + $0x100] sm:$0x3] %vm798_vm1, %v16255_v1  ;;  %832 = vst.msk [vmem:[#allocation2 + $0x118] sm:$0x3] %vm798_vm1, %v16255_v1  ;;  %v10299_v24 = vld [vmem:[%s16341_s26 + $0x5] ss:$0 sm:$0xff] }
  0x34   : > { %830 = vst.msk [vmem:[#allocation2 + $0x108] sm:$0xff] %vm795_vm0, %v16255_v1  ;;  %831 = vst.msk [vmem:[#allocation2 + $0x110] sm:$0xff] %vm795_vm0, %v16255_v1  ;;  %v773_v28 = vld [vmem:[%s10249_s0 + $0x50] sm:$0xff]  ;;  %v774_v29 = vld [vmem:[%s10249_s0 + $0x58] sm:$0xff]  ;;  %v1110_v31 = vrot.slane %v1013_v15, 1  ;;  %v1356_v36 = vrot.slane %v1259_v21, 2 }
  0x35   : > { %833 = vst.msk [vmem:[#allocation2 + $0x120] sm:$0xff] %vm795_vm0, %v16255_v1  ;;  %834 = vst.msk [vmem:[#allocation2 + $0x128] sm:$0xff] %vm795_vm0, %v16255_v1  ;;  %v775_v33 = vld [vmem:[%s10249_s0 + $0x60] sm:$0xff]  ;;  %v776_v34 = vld [vmem:[%s10249_s0 + $0x68] sm:$0xff]  ;;  %v1112_v37 = vrot.slane %v1014_v25, 1  ;;  %v1358_v38 = vrot.slane %v1260_v26, 2 }
  0x36   : > { %835 = vst.msk [vmem:[#allocation2 + $0x130] sm:$0x3] %vm798_vm1, %v16255_v1  ;;  %838 = vst.msk [vmem:[#allocation2 + $0x148] sm:$0x3] %vm798_vm1, %v16255_v1  ;;  %v777_v35 = vld [vmem:[%s10249_s0 + $0x70] sm:$0xff]  ;;  %v778_v39 = vld [vmem:[%s10249_s0 + $0x78] sm:$0xff]  ;;  %v1111_v42 = vsel %vm1108_vm2, %v1109_v30, %v1110_v31  ;;  %v1357_v49 = vsel %vm1354_vm3, %v1355_v32, %v1356_v36 }
  0x37   : > { %836 = vst.msk [vmem:[#allocation2 + $0x138] sm:$0xff] %vm795_vm0, %v16255_v1  ;;  %837 = vst.msk [vmem:[#allocation2 + $0x140] sm:$0xff] %vm795_vm0, %v16255_v1  ;;  %v779_v40 = vld [vmem:[%s10249_s0 + $0x80] sm:$0xff]  ;;  %v780_v41 = vld [vmem:[%s10249_s0 + $0x88] sm:$0xff]  ;;  %v1221_v48 = vadd.f32 %v1111_v42, %v943_v20  ;;  %v1113_v50 = vsel %vm1108_vm2, %v1110_v31, %v1112_v37  ;;  %v1359_v51 = vsel %vm1354_vm3, %v1356_v36, %v1358_v38 }
  0x38   : > { %839 = vst.msk [vmem:[#allocation2 + $0x150] sm:$0xff] %vm795_vm0, %v16255_v1  ;;  %840 = vst.msk [vmem:[#allocation2 + $0x158] sm:$0xff] %vm795_vm0, %v16255_v1  ;;  %v10325_v43 = vld [vmem:[%s16341_s26 + $0x6] ss:$0 sm:$0xff]  ;;  %v10330_v44 = vld [vmem:[%s16341_s26 + $0x7] ss:$0 sm:$0xff]  ;;  %v1222_v15 = vadd.f32 %v1113_v50, %v944_v45 }
  0x39   : > { %841 = vst.msk [vmem:[#allocation2 + $0x160] sm:$0x3] %vm798_vm1, %v16255_v1  ;;  %844 = vst.msk [vmem:[#allocation2 + $0x178] sm:$0x3] %vm798_vm1, %v16255_v1  ;;  %v10356_v57 = vld [vmem:[%s16341_s26 + $0x8] ss:$0 sm:$0xff]  ;;  %v1467_v59 = vadd.f32 %v1357_v49, %v1221_v48 }
  0x3a   : > { %842 = vst.msk [vmem:[#allocation2 + $0x168] sm:$0xff] %vm795_vm0, %v16255_v1  ;;  %843 = vst.msk [vmem:[#allocation2 + $0x170] sm:$0xff] %vm795_vm0, %v16255_v1  ;;  %v1468_v26 = vadd.f32 %v1359_v51, %v1222_v15 }
  0x3b   : > { %845 = vst.msk [vmem:[#allocation2 + $0x180] sm:$0xff] %vm795_vm0, %v16255_v1  ;;  %846 = vst.msk [vmem:[#allocation2 + $0x188] sm:$0xff] %vm795_vm0, %v16255_v1 }
  0x3c   : > { %847 = vst.msk [vmem:[#allocation2 + $0x190] sm:$0x3] %vm798_vm1, %v16255_v1  ;;  %850 = vst.msk [vmem:[#allocation2 + $0x1a8] sm:$0x3] %vm798_vm1, %v16255_v1 }
  0x3d   : > { %848 = vst.msk [vmem:[#allocation2 + $0x198] sm:$0xff] %vm795_vm0, %v16255_v1  ;;  %849 = vst.msk [vmem:[#allocation2 + $0x1a0] sm:$0xff] %vm795_vm0, %v16255_v1 }
  0x3e   : > { %852 = vst.msk [vmem:[#allocation2 + $0x19] sm:$0xff] %vm795_vm0, %v763_v5  ;;  %853 = vst.msk [vmem:[#allocation2 + $0x21] sm:$0xff] %vm795_vm0, %v764_v6 }
  0x3f   : > { %854 = vst.msk [vmem:[#allocation2 + $0x31] sm:$0xff] %vm795_vm0, %v765_v7  ;;  %855 = vst.msk [vmem:[#allocation2 + $0x39] sm:$0xff] %vm795_vm0, %v766_v8 }
  0x40   : > { %856 = vst.msk [vmem:[#allocation2 + $0x49] sm:$0xff] %vm795_vm0, %v767_v9  ;;  %857 = vst.msk [vmem:[#allocation2 + $0x51] sm:$0xff] %vm795_vm0, %v768_v10 }
  0x41   : > { %858 = vst.msk [vmem:[#allocation2 + $0x61] sm:$0xff] %vm795_vm0, %v769_v17  ;;  %859 = vst.msk [vmem:[#allocation2 + $0x69] sm:$0xff] %vm795_vm0, %v770_v18 }
  0x42   : > { %860 = vst.msk [vmem:[#allocation2 + $0x79] sm:$0xff] %vm795_vm0, %v771_v19  ;;  %861 = vst.msk [vmem:[#allocation2 + $0x81] sm:$0xff] %vm795_vm0, %v772_v27 }
  0x43   : > { %862 = vst.msk [vmem:[#allocation2 + $0x91] sm:$0xff] %vm795_vm0, %v773_v28  ;;  %863 = vst.msk [vmem:[#allocation2 + $0x99] sm:$0xff] %vm795_vm0, %v774_v29 }
  0x44   : > { %864 = vst.msk [vmem:[#allocation2 + $0xa9] sm:$0xff] %vm795_vm0, %v775_v33  ;;  %865 = vst.msk [vmem:[#allocation2 + $0xb1] sm:$0xff] %vm795_vm0, %v776_v34 }
  0x45   : > { %866 = vst.msk [vmem:[#allocation2 + $0xc1] sm:$0xff] %vm795_vm0, %v777_v35  ;;  %867 = vst.msk [vmem:[#allocation2 + $0xc9] sm:$0xff] %vm795_vm0, %v778_v39  ;;  %v10336_v46 = vld [vmem:[#allocation2 + $0x18] sm:$0xff]  ;;  %v10338_v47 = vld [vmem:[#allocation2 + $0x20] sm:$0xff] }
  0x46   : > { %868 = vst.msk [vmem:[#allocation2 + $0xd9] sm:$0xff] %vm795_vm0, %v779_v40  ;;  %869 = vst.msk [vmem:[#allocation2 + $0xe1] sm:$0xff] %vm795_vm0, %v780_v41  ;;  %v10343_v52 = vld [vmem:[#allocation2 + $0x30] sm:$0xff]  ;;  %v1504_v53 = vmul.f32 %v10289_v22, %v10336_v46  ;;  %v1573_v54 = vmul.f32 %v10294_v23, %v10336_v46  ;;  %v1574_v55 = vmul.f32 %v10294_v23, %v10338_v47  ;;  %v10358_v58 = vld [vmem:[#allocation2 + $0x38] sm:$0xff] }
  0x47   : > { %v1818_v56 = vmul.f32 %v10299_v24, %v10336_v46  ;;  %v1819_v60 = vmul.f32 %v10299_v24, %v10338_v47  ;;  %v2063_v61 = vmul.f32 %v10325_v43, %v10343_v52  ;;  %v2132_v62 = vmul.f32 %v10330_v44, %v10343_v52  ;;  %v10370_v11 = vld [vmem:[#allocation2 + $0x28] sm:$0x3]  ;;  %v10379_v25 = vld [vmem:[#allocation2 + $0x40] sm:$0x3]  ;;  %3695 = vst.msk [vmem:[#allocation3 + $0x20] sm:$0xff] %vm3689_vm5, %v16255_v1 }
  0x48   : > { %v1669_v63 = vrot.slane %v1573_v54, 1  ;;  %v1670_v0 = vrot.slane %v1574_v55, 1  ;;  %v2133_v6 = vmul.f32 %v10330_v44, %v10358_v58  ;;  %v1536_v7 = vadd.f32 %v1504_v53, %v1467_v59  ;;  %v781_v53 = vld [vmem:[%s10249_s0 + $0x90] sm:$0xff]  ;;  %v782_v54 = vld [vmem:[%s10249_s0 + $0x98] sm:$0xff]  ;;  %v10408_v55 = vld [vmem:[%s16342_s9] ss:$0 sm:$0xff] }
  0x49   : > { %v1914_v5 = vrot.slane %v1818_v56, 2  ;;  %v1915_v8 = vrot.slane %v1819_v60, 2  ;;  %v2228_v9 = vrot.slane %v2132_v62, 1  ;;  %v2377_v10 = vmul.f32 %v10356_v57, %v10343_v52  ;;  %870 = vst.msk [vmem:[#allocation2 + $0xf1] sm:$0xff] %vm795_vm0, %v781_v53  ;;  %871 = vst.msk [vmem:[#allocation2 + $0xf9] sm:$0xff] %vm795_vm0, %v782_v54 }
  0x4a   : > { %v1671_v12 = vsel %vm1108_vm2, %v1669_v63, %v1670_v0  ;;  %v2229_v13 = vrot.slane %v2133_v6, 1  ;;  %v2378_v14 = vmul.f32 %v10356_v57, %v10358_v58  ;;  %v1505_v19 = vmul.f32 %v10289_v22, %v10338_v47  ;;  %v10423_v6 = vld [vmem:[%s16343_s8] ss:$0 sm:$0xff]  ;;  %3696 = vst.msk [vmem:[#allocation3 + $0x28] sm:$0x3] %vm3692_vm6, %v16255_v1 }
  0x4b   : > { %v1781_v16 = vadd.f32 %v1671_v12, %v1536_v7  ;;  %v1916_v17 = vsel %vm1354_vm3, %v1914_v5, %v1915_v8  ;;  %v2473_v18 = vrot.slane %v2377_v10, 2  ;;  %v1575_v27 = vmul.f32 %v10294_v23, %v10370_v11  ;;  %3690 = vst.msk [vmem:[#allocation3] sm:$0xff] %vm3689_vm5, %v16255_v1  ;;  %3691 = vst.msk [vmem:[#allocation3 + $0x8] sm:$0xff] %vm3689_vm5, %v16255_v1 }
  0x4c   : > { %v2230_v20 = vsel %vm1108_vm2, %v2228_v9, %v2229_v13  ;;  %v2474_v21 = vrot.slane %v2378_v14, 2  ;;  %v1820_v29 = vmul.f32 %v10299_v24, %v10370_v11  ;;  %v2064_v30 = vmul.f32 %v10325_v43, %v10358_v58  ;;  %3693 = vst.msk [vmem:[#allocation3 + $0x10] sm:$0x3] %vm3692_vm6, %v16255_v1  ;;  %3699 = vst.msk [vmem:[#allocation3 + $0x40] sm:$0x3] %vm3692_vm6, %v16255_v1 }
  0x4d   : > { %v2026_v28 = vadd.f32 %v1916_v17, %v1781_v16  ;;  %v2134_v31 = vmul.f32 %v10330_v44, %v10379_v25  ;;  %v1537_v33 = vadd.f32 %v1505_v19, %v1468_v26  ;;  %v1672_v34 = vrot.slane %v1575_v27, 1  ;;  %v10442_v26 = vld [vmem:[#allocation2 + $0x48] sm:$0xff]  ;;  %v10444_v27 = vld [vmem:[#allocation2 + $0x50] sm:$0xff]  ;;  %3694 = vst.msk [vmem:[#allocation3 + $0x18] sm:$0xff] %vm3689_vm5, %v16255_v1  ;;  %3697 = vst.msk [vmem:[#allocation3 + $0x30] sm:$0xff] %vm3689_vm5, %v16255_v1 }
  0x4e   : > { %v2475_v32 = vsel %vm1354_vm3, %v2473_v18, %v2474_v21  ;;  %v2379_v35 = vmul.f32 %v10356_v57, %v10379_v25  ;;  %v1917_v37 = vrot.slane %v1820_v29, 2  ;;  %v945_v39 = vmul.f32 %v10254_v2, %v10336_v46  ;;  %3698 = vst.msk [vmem:[#allocation3 + $0x38] sm:$0xff] %vm3689_vm5, %v16255_v1  ;;  %3700 = vst.msk [vmem:[#allocation3 + $0x48] sm:$0xff] %vm3689_vm5, %v16255_v1 }
  0x4f   : > { %v2095_v36 = vadd.f32 %v2063_v61, %v2026_v28  ;;  %v2231_v38 = vrot.slane %v2134_v31, 1  ;;  %v1673_v40 = vsel %vm1108_vm2, %v1670_v0, %v1672_v34  ;;  %v1015_v42 = vmul.f32 %v10259_v3, %v10336_v46  ;;  %3701 = vst.msk [vmem:[#allocation3 + $0x50] sm:$0xff] %vm3689_vm5, %v16255_v1  ;;  %3703 = vst.msk [vmem:[#allocation3 + $0x60] sm:$0xff] %vm3689_vm5, %v16255_v1 }
  0x50   : > { %v2476_v41 = vrot.slane %v2379_v35, 2  ;;  %v10399_v45 = vmul.f32 %v10259_v3, %v10338_v47  ;;  %v1782_v49 = vadd.f32 %v1673_v40, %v1537_v33  ;;  %v1918_v50 = vsel %vm1354_vm3, %v1915_v8, %v1917_v37  ;;  %3702 = vst.msk [vmem:[#allocation3 + $0x58] sm:$0x3] %vm3692_vm6, %v16255_v1  ;;  %3705 = vst.msk [vmem:[#allocation3 + $0x70] sm:$0x3] %vm3692_vm6, %v16255_v1 }
  0x51   : > { %v2340_v48 = vadd.f32 %v2230_v20, %v2095_v36  ;;  %v2232_v51 = vsel %vm1108_vm2, %v2229_v13, %v2231_v38  ;;  %v1114_v59 = vrot.slane %v1015_v42, 1  ;;  %v1261_v61 = vmul.f32 %v10264_v4, %v10336_v46  ;;  %3704 = vst.msk [vmem:[#allocation3 + $0x68] sm:$0xff] %vm3689_vm5, %v16255_v1  ;;  %3706 = vst.msk [vmem:[#allocation3 + $0x78] sm:$0xff] %vm3689_vm5, %v16255_v1 }
  0x52   : > { %v2477_v56 = vsel %vm1354_vm3, %v2474_v21, %v2476_v41  ;;  %v1115_v60 = vrot.slane %v10399_v45, 1  ;;  %v2027_v63 = vadd.f32 %v1918_v50, %v1782_v49  ;;  %v1262_v0 = vmul.f32 %v10264_v4, %v10338_v47  ;;  %3707 = vst.msk [vmem:[#allocation3 + $0x80] sm:$0xff] %vm3689_vm5, %v16255_v1  ;;  %3709 = vst.msk [vmem:[#allocation3 + $0x90] sm:$0xff] %vm3689_vm5, %v16255_v1 }
  0x53   : > { %v2585_v62 = vadd.f32 %v2475_v32, %v2340_v48  ;;  %v1506_v5 = vmul.f32 %v10289_v22, %v10343_v52  ;;  %v1360_v7 = vrot.slane %v1261_v61, 2  ;;  %v1576_v8 = vmul.f32 %v10294_v23, %v10343_v52  ;;  %3708 = vst.msk [vmem:[#allocation3 + $0x88] sm:$0x3] %vm3692_vm6, %v16255_v1  ;;  %3711 = vst.msk [vmem:[#allocation3 + $0xa0] sm:$0x3] %vm3692_vm6, %v16255_v1 }
  0x54   : > { %v1116_v46 = vsel %vm1108_vm2, %v1114_v59, %v1115_v60  ;;  %v10432_v9 = vmul.f32 %v10294_v23, %v10358_v58  ;;  %v2096_v12 = vadd.f32 %v2064_v30, %v2027_v63  ;;  %v1361_v14 = vrot.slane %v1262_v0, 2  ;;  %3710 = vst.msk [vmem:[#allocation3 + $0x98] sm:$0xff] %vm3689_vm5, %v16255_v1  ;;  %3712 = vst.msk [vmem:[#allocation3 + $0xa8] sm:$0xff] %vm3689_vm5, %v16255_v1 }
  0x55   : > { %v2624_v10 = vmul.f32 %v10408_v55, %v2585_v62  ;;  %v1223_v13 = vadd.f32 %v1116_v46, %v945_v39  ;;  %v1674_v15 = vrot.slane %v1576_v8, 1  ;;  %v1821_v17 = vmul.f32 %v10299_v24, %v10343_v52  ;;  %3713 = vst.msk [vmem:[#allocation3 + $0xb0] sm:$0xff] %vm3689_vm5, %v16255_v1  ;;  %3715 = vst.msk [vmem:[#allocation3 + $0xc0] sm:$0xff] %vm3689_vm5, %v16255_v1 }
  0x56   : > { %v1675_v16 = vrot.slane %v10432_v9, 1  ;;  %v1822_v18 = vmul.f32 %v10299_v24, %v10358_v58  ;;  %v2341_v20 = vadd.f32 %v2232_v51, %v2096_v12  ;;  %v1362_v21 = vsel %vm1354_vm3, %v1360_v7, %v1361_v14  ;;  %v10476_v7 = vld [vmem:[#allocation2 + $0x58] sm:$0x3]  ;;  %3714 = vst.msk [vmem:[#allocation3 + $0xb8] sm:$0x3] %vm3692_vm6, %v16255_v1 }
  0x57   : > { %v2663_v19 = vadd.f32 %v10423_v6, %v2624_v10  ;;  %v1469_v28 = vadd.f32 %v1362_v21, %v1223_v13  ;;  %v1919_v30 = vrot.slane %v1821_v17, 2  ;;  %v2135_v34 = vmul.f32 %v10330_v44, %v10442_v26  ;;  %3716 = vst.msk [vmem:[#allocation3 + $0xc8] sm:$0xff] %vm3689_vm5, %v16255_v1  ;;  %3718 = vst.msk [vmem:[#allocation3 + $0xd8] sm:$0xff] %vm3689_vm5, %v16255_v1 }
  0x58   : > { %v1676_v29 = vsel %vm1108_vm2, %v1674_v15, %v1675_v16  ;;  %v1920_v31 = vrot.slane %v1822_v18, 2  ;;  %v2586_v33 = vadd.f32 %v2477_v56, %v2341_v20  ;;  %v2136_v35 = vmul.f32 %v10330_v44, %v10444_v27  ;;  %3717 = vst.msk [vmem:[#allocation3 + $0xd0] sm:$0x3] %vm3692_vm6, %v16255_v1  ;;  %3720 = vst.msk [vmem:[#allocation3 + $0xe8] sm:$0x3] %vm3692_vm6, %v16255_v1 }
  0x59   : > { %v2695_v32 = vmax.f32 %v2663_v19, 0.0  ;;  %v1538_v36 = vadd.f32 %v1506_v5, %v1469_v28  ;;  %v2380_v38 = vmul.f32 %v10356_v57, %v10442_v26  ;;  %v10456_v39 = vmul.f32 %v10356_v57, %v10444_v27  ;;  %3719 = vst.msk [vmem:[#allocation3 + $0xe0] sm:$0xff] %vm3689_vm5, %v16255_v1  ;;  %3721 = vst.msk [vmem:[#allocation3 + $0xf0] sm:$0xff] %vm3689_vm5, %v16255_v1 }
  0x5a   : > { %v1921_v37 = vsel %vm1354_vm3, %v1919_v30, %v1920_v31  ;;  %v2625_v41 = vmul.f32 %v10408_v55, %v2586_v33  ;;  %v2233_v42 = vrot.slane %v2135_v34, 1  ;;  %v2234_v48 = vrot.slane %v2136_v35, 1  ;;  %3722 = vst.msk [vmem:[#allocation3 + $0xf8] sm:$0xff] %vm3689_vm5, %v16255_v1  ;;  %3724 = vst.msk [vmem:[#allocation3 + $0x108] sm:$0xff] %vm3689_vm5, %v16255_v1 }
  0x5b   : > { %v2727_v40 = vmin.f32 %v2695_v32, 6.0  ;;  %v1783_v49 = vadd.f32 %v1676_v29, %v1538_v36  ;;  %v2065_v50 = vmul.f32 %v10325_v43, %v10442_v26  ;;  %v2478_v51 = vrot.slane %v2380_v38, 2  ;;  %3723 = vst.msk [vmem:[#allocation3 + $0x100] sm:$0x3] %vm3692_vm6, %v16255_v1  ;;  %3726 = vst.msk [vmem:[#allocation3 + $0x118] sm:$0x3] %vm3692_vm6, %v16255_v1 }
  0x5c   : > { %v2479_v53 = vrot.slane %v10456_v39, 2  ;;  %v2664_v54 = vadd.f32 %v10423_v6, %v2625_v41  ;;  %v946_v56 = vmul.f32 %v10254_v2, %v10338_v47  ;;  %v1017_v59 = vmul.f32 %v10259_v3, %v10370_v11  ;;  %3725 = vst.msk [vmem:[#allocation3 + $0x110] sm:$0xff] %vm3689_vm5, %v16255_v1  ;;  %3727 = vst.msk [vmem:[#allocation3 + $0x120] sm:$0xff] %vm3689_vm5, %v16255_v1 }
  0x5d   : > { %9477 = vmatprep.mubr.msk.f32.mxu0 %vm795_vm0, %v2727_v40  ;;  %v1263_v61 = vmul.f32 %v10264_v4, %v10370_v11  ;;  %v2028_v62 = vadd.f32 %v1921_v37, %v1783_v49  ;;  %v2235_v63 = vsel %vm1108_vm2, %v2233_v42, %v2234_v48  ;;  %v1578_v5 = vmul.f32 %v10294_v23, %v10379_v25  ;;  %v783_v49 = vld [vmem:[%s10249_s0 + $0xa0] sm:$0xff] }
  0x5e   : > { %v2480_v0 = vsel %vm1354_vm3, %v2478_v51, %v2479_v53  ;;  %v2696_v46 = vmax.f32 %v2664_v54, 0.0  ;;  %v1117_v47 = vrot.slane %v1017_v59, 1  ;;  %v1823_v9 = vmul.f32 %v10299_v24, %v10379_v25  ;;  %872 = vst.msk [vmem:[#allocation2 + $0x109] sm:$0xff] %vm795_vm0, %v783_v49 }
  0x5f   : > { %v1363_v8 = vrot.slane %v1263_v61, 2  ;;  %v2097_v10 = vadd.f32 %v2065_v50, %v2028_v62  ;;  %v1507_v11 = vmul.f32 %v10289_v22, %v10358_v58  ;;  %v1677_v12 = vrot.slane %v1578_v5, 1  ;;  %v784_v50 = vld [vmem:[%s10249_s0 + $0xa8] sm:$0xff]  ;;  %3728 = vst.msk [vmem:[#allocation3 + $0x128] sm:$0xff] %vm3689_vm5, %v16255_v1  ;;  %3730 = vst.msk [vmem:[#allocation3 + $0x138] sm:$0xff] %vm3689_vm5, %v16255_v1 }
  0x60   : > { %v2137_v13 = vmul.f32 %v10330_v44, %v10476_v7  ;;  %v2728_v15 = vmin.f32 %v2696_v46, 6.0  ;;  %v1118_v17 = vsel %vm1108_vm2, %v1115_v60, %v1117_v47  ;;  %v1922_v19 = vrot.slane %v1823_v9, 2  ;;  %873 = vst.msk [vmem:[#allocation2 + $0x111] sm:$0xff] %vm795_vm0, %v784_v50  ;;  %v10528_v9 = vld [vmem:[#allocation2 + $0x60] sm:$0xff] }
  0x61   : > { %v1364_v18 = vsel %vm1354_vm3, %v1361_v14, %v1363_v8  ;;  %v2342_v20 = vadd.f32 %v2235_v63, %v2097_v10  ;;  %v1224_v21 = vadd.f32 %v1118_v17, %v946_v56  ;;  %v2066_v28 = vmul.f32 %v10325_v43, %v10444_v27  ;;  %3729 = vst.msk [vmem:[#allocation3 + $0x130] sm:$0x3] %vm3692_vm6, %v16255_v1 }
  0x62   : > { %v2236_v29 = vrot.slane %v2137_v13, 1  ;;  %9478 = vmatmul.mubr.msk.f32.vlgmr.msra.gmra.mxu0 %vm795_vm0, %v2728_v15  ;;  %v1678_v30 = vsel %vm1108_vm2, %v1675_v16, %v1677_v12  ;;  %v1923_v32 = vsel %vm1354_vm3, %v1920_v31, %v1922_v19  ;;  %v2382_v45 = vmul.f32 %v10356_v57, %v10476_v7  ;;  %3731 = vst.msk [vmem:[#allocation3 + $0x140] sm:$0xff] %vm3689_vm5, %v16255_v1 }
  0x63   : > { %v1018_v60 = vmul.f32 %v10259_v3, %v10343_v52  ;;  %v2587_v14 = vadd.f32 %v2480_v0, %v2342_v20  ;;  %v1470_v33 = vadd.f32 %v1364_v18, %v1224_v21  ;;  %v947_v34 = vmul.f32 %v10254_v2, %v10343_v52  ;;  %v10537_v20 = vld [vmem:[#allocation2 + $0x68] sm:$0xff]  ;;  %3732 = vst.msk [vmem:[#allocation3 + $0x148] sm:$0x3] %vm3692_vm6, %v16255_v1 }
  0x64   : > { %v10501_v35 = vmul.f32 %v10259_v3, %v10358_v58  ;;  %v2237_v16 = vsel %vm1108_vm2, %v2234_v48, %v2236_v29  ;;  %v1264_v31 = vmul.f32 %v10264_v4, %v10343_v52  ;;  %v10508_v37 = vmul.f32 %v10264_v4, %v10358_v58  ;;  %3733 = vst.msk [vmem:[#allocation3 + $0x150] sm:$0xff] %vm3689_vm5, %v16255_v1 }
  0x65   : > { %v1119_v36 = vrot.slane %v1018_v60, 1  ;;  %v2626_v38 = vmul.f32 %v10408_v55, %v2587_v14  ;;  %v1539_v40 = vadd.f32 %v1507_v11, %v1470_v33  ;;  %v2481_v41 = vrot.slane %v2382_v45, 2  ;;  %3734 = vst.msk [vmem:[#allocation3 + $0x158] sm:$0xff] %vm3689_vm5, %v16255_v1  ;;  %3736 = vst.msk [vmem:[#allocation3 + $0x168] sm:$0xff] %vm3689_vm5, %v16255_v1 }
  0x66   : > { %v1120_v42 = vrot.slane %v10501_v35, 1  ;;  %v1365_v51 = vrot.slane %v1264_v31, 2  ;;  %v1366_v54 = vrot.slane %v10508_v37, 2  ;;  %v1508_v48 = vmul.f32 %v10289_v22, %v10442_v26  ;;  %3735 = vst.msk [vmem:[#allocation3 + $0x160] sm:$0x3] %vm3692_vm6, %v16255_v1 }
  0x67   : > { %v1579_v52 = vmul.f32 %v10294_v23, %v10442_v26  ;;  %v2665_v56 = vadd.f32 %v10423_v6, %v2626_v38  ;;  %v1784_v59 = vadd.f32 %v1678_v30, %v1539_v40  ;;  %v1580_v62 = vmul.f32 %v10294_v23, %v10444_v27  ;;  %3737 = vst.msk [vmem:[#allocation3 + $0x170] sm:$0xff] %vm3689_vm5, %v16255_v1 }
  0x68   : > { %v1121_v61 = vsel %vm1108_vm2, %v1119_v36, %v1120_v42  ;;  %v1367_v0 = vsel %vm1354_vm3, %v1365_v51, %v1366_v54  ;;  %v1824_v46 = vmul.f32 %v10299_v24, %v10442_v26  ;;  %v1825_v11 = vmul.f32 %v10299_v24, %v10444_v27  ;;  %3738 = vst.msk [vmem:[#allocation3 + $0x178] sm:$0x3] %vm3692_vm6, %v16255_v1 }
  0x69   : > { %v1225_v63 = vadd.f32 %v1121_v61, %v947_v34  ;;  %v1679_v5 = vrot.slane %v1579_v52, 1  ;;  %v2697_v47 = vmax.f32 %v2665_v56, 0.0  ;;  %v2029_v8 = vadd.f32 %v1923_v32, %v1784_v59  ;;  %3739 = vst.msk [vmem:[#allocation3 + $0x180] sm:$0xff] %vm3689_vm5, %v16255_v1  ;;  %3740 = vst.msk [vmem:[#allocation3 + $0x188] sm:$0xff] %vm3689_vm5, %v16255_v1 }
  0x6a   : > { %v1680_v10 = vrot.slane %v1580_v62, 1  ;;  %v2482_v12 = vsel %vm1354_vm3, %v2479_v53, %v2481_v41  ;;  %v1924_v15 = vrot.slane %v1824_v46, 2  ;;  %v2138_v17 = vmul.f32 %v10330_v44, %v10528_v9  ;;  %3741 = vst.msk [vmem:[#allocation3 + $0x190] sm:$0x3] %vm3692_vm6, %v16255_v1  ;;  %3744 = vst.msk [vmem:[#allocation3 + $0x1a8] sm:$0x3] %vm3692_vm6, %v16255_v1 }
  0x6b   : > { %v1471_v13 = vadd.f32 %v1367_v0, %v1225_v63  ;;  %v2729_v18 = vmin.f32 %v2697_v47, 6.0  ;;  %v2098_v19 = vadd.f32 %v2066_v28, %v2029_v8  ;;  %v1925_v29 = vrot.slane %v1825_v11, 2  ;;  %v10572_v63 = vld [vmem:[#allocation2 + $0x70] sm:$0x3]  ;;  %3742 = vst.msk [vmem:[#allocation3 + $0x198] sm:$0xff] %vm3689_vm5, %v16255_v1  ;;  %3743 = vst.msk [vmem:[#allocation3 + $0x1a0] sm:$0xff] %vm3689_vm5, %v16255_v1 }
  0x6c   : > { %v1681_v21 = vsel %vm1108_vm2, %v1679_v5, %v1680_v10  ;;  %v2067_v32 = vmul.f32 %v10325_v43, %v10528_v9  ;;  %v2139_v39 = vmul.f32 %v10330_v44, %v10537_v20  ;;  %v2383_v53 = vmul.f32 %v10356_v57, %v10528_v9 }
  0x6d   : > { %v1540_v30 = vadd.f32 %v1508_v48, %v1471_v13  ;;  %9480 = vmatprep.mubr.msk.f32.mxu0 %vm795_vm0, %v2729_v18  ;;  %v2343_v45 = vadd.f32 %v2237_v16, %v2098_v19  ;;  %v1926_v28 = vsel %vm1354_vm3, %v1924_v15, %v1925_v29  ;;  %v2238_v60 = vrot.slane %v2138_v17, 1 }
  0x6e   : > { %v10550_v14 = vmul.f32 %v10356_v57, %v10537_v20  ;;  %v2239_v34 = vrot.slane %v2139_v39, 1  ;;  %v2483_v35 = vrot.slane %v2383_v53, 2  ;;  %v1020_v36 = vmul.f32 %v10259_v3, %v10379_v25 }
  0x6f   : > { %v1785_v33 = vadd.f32 %v1681_v21, %v1540_v30  ;;  %v2588_v31 = vadd.f32 %v2482_v12, %v2343_v45  ;;  %v948_v38 = vmul.f32 %v10254_v2, %v10358_v58  ;;  %v1266_v16 = vmul.f32 %v10264_v4, %v10379_v25 }
  0x70   : > { %v2484_v37 = vrot.slane %v10550_v14, 2  ;;  %v1122_v41 = vrot.slane %v1020_v36, 1  ;;  %v1509_v49 = vmul.f32 %v10289_v22, %v10444_v27  ;;  %v1581_v50 = vmul.f32 %v10294_v23, %v10476_v7 }
  0x71   : > { %v2030_v40 = vadd.f32 %v1926_v28, %v1785_v33  ;;  %v2627_v51 = vmul.f32 %v10408_v55, %v2588_v31  ;;  %v2240_v48 = vsel %vm1108_vm2, %v2238_v60, %v2239_v34  ;;  %v1368_v52 = vrot.slane %v1266_v16, 2  ;;  %v785_v31 = vld [vmem:[%s10249_s0 + $0xb0] sm:$0xff] }
  0x72   : > { %v1826_v56 = vmul.f32 %v10299_v24, %v10476_v7  ;;  %v2485_v25 = vsel %vm1354_vm3, %v2483_v35, %v2484_v37  ;;  %v1123_v59 = vsel %vm1108_vm2, %v1120_v42, %v1122_v41  ;;  %v1682_v61 = vrot.slane %v1581_v50, 1  ;;  %874 = vst.msk [vmem:[#allocation2 + $0x121] sm:$0xff] %vm795_vm0, %v785_v31 }
  0x73   : > { %v2099_v58 = vadd.f32 %v2067_v32, %v2030_v40  ;;  %v2666_v62 = vadd.f32 %v10423_v6, %v2627_v51  ;;  %v1226_v0 = vadd.f32 %v1123_v59, %v948_v38  ;;  %v1369_v5 = vsel %vm1354_vm3, %v1366_v54, %v1368_v52  ;;  %v786_v38 = vld [vmem:[%s10249_s0 + $0xb8] sm:$0xff] }
  0x74   : > { %v1927_v46 = vrot.slane %v1826_v56, 2  ;;  %v2068_v8 = vmul.f32 %v10325_v43, %v10537_v20  ;;  %v2140_v11 = vmul.f32 %v10330_v44, %v10572_v63  ;;  %v2385_v12 = vmul.f32 %v10356_v57, %v10572_v63  ;;  %875 = vst.msk [vmem:[#allocation2 + $0x129] sm:$0xff] %vm795_vm0, %v786_v38 }
  0x75   : > { %v2344_v47 = vadd.f32 %v2240_v48, %v2099_v58  ;;  %v2698_v42 = vmax.f32 %v2666_v62, 0.0  ;;  %v1472_v13 = vadd.f32 %v1369_v5, %v1226_v0  ;;  %v1683_v15 = vsel %vm1108_vm2, %v1680_v10, %v1682_v61 }
  0x76   : > { %v1928_v17 = vsel %vm1354_vm3, %v1925_v29, %v1927_v46  ;;  %v2241_v19 = vrot.slane %v2140_v11, 1  ;;  %v949_v54 = vmul.f32 %v10254_v2, %v10442_v26  ;;  %v1021_v21 = vmul.f32 %v10259_v3, %v10442_v26  ;;  %v10625_v46 = vld [vmem:[#allocation2 + $0x78] sm:$0xff] }
  0x77   : > { %v2589_v18 = vadd.f32 %v2485_v25, %v2344_v47  ;;  %v2730_v30 = vmin.f32 %v2698_v42, 6.0  ;;  %v1541_v32 = vadd.f32 %v1509_v49, %v1472_v13  ;;  %v10589_v39 = vmul.f32 %v10259_v3, %v10444_v27  ;;  %v10627_v47 = vld [vmem:[#allocation2 + $0x80] sm:$0xff] }
  0x78   : > { %v1267_v10 = vmul.f32 %v10264_v4, %v10442_v26  ;;  %v2242_v53 = vsel %vm1108_vm2, %v2239_v34, %v2241_v19  ;;  %v2486_v45 = vrot.slane %v2385_v12, 2  ;;  %v1124_v28 = vrot.slane %v1021_v21, 1 }
  0x79   : > { %v2628_v29 = vmul.f32 %v10408_v55, %v2589_v18  ;;  %9481 = vmatmul.mubr.msk.f32.gmra.mxu0 %vm795_vm0, %v2730_v30  ;;  %v1786_v60 = vadd.f32 %v1683_v15, %v1541_v32  ;;  %v1125_v33 = vrot.slane %v10589_v39, 1  ;;  %v10599_v35 = vmul.f32 %v10264_v4, %v10444_v27 }
  0x7a   : > { %v1370_v36 = vrot.slane %v1267_v10, 2  ;;  %v1510_v16 = vmul.f32 %v10289_v22, %v10528_v9  ;;  %v1582_v34 = vmul.f32 %v10294_v23, %v10528_v9  ;;  %v10610_v40 = vmul.f32 %v10294_v23, %v10537_v20 }
  0x7b   : > { %v2667_v26 = vadd.f32 %v10423_v6, %v2628_v29  ;;  %v2031_v41 = vadd.f32 %v1928_v17, %v1786_v60  ;;  %v1126_v49 = vsel %vm1108_vm2, %v1124_v28, %v1125_v33  ;;  %v1371_v50 = vrot.slane %v10599_v35, 2 }
  0x7c   : > { %v1827_v51 = vmul.f32 %v10299_v24, %v10528_v9  ;;  %v1227_v52 = vadd.f32 %v1126_v49, %v949_v54  ;;  %v1684_v56 = vrot.slane %v1582_v34, 1  ;;  %v1685_v58 = vrot.slane %v10610_v40, 1  ;;  %v10661_v34 = vld [vmem:[#allocation2 + $0x88] sm:$0x3] }
  0x7d   : > { %v2699_v48 = vmax.f32 %v2667_v26, 0.0  ;;  %v2100_v25 = vadd.f32 %v2068_v8, %v2031_v41  ;;  %v1372_v59 = vsel %vm1354_vm3, %v1370_v36, %v1371_v50  ;;  %v1828_v61 = vmul.f32 %v10299_v24, %v10537_v20 }
  0x7e   : > { %v1929_v62 = vrot.slane %v1827_v51, 2  ;;  %v2487_v5 = vsel %vm1354_vm3, %v2484_v37, %v2486_v45  ;;  %v1473_v11 = vadd.f32 %v1372_v59, %v1227_v52  ;;  %v1686_v12 = vsel %vm1108_vm2, %v1684_v56, %v1685_v58 }
  0x7f   : > { %v2731_v0 = vmin.f32 %v2699_v48, 6.0  ;;  %v2345_v42 = vadd.f32 %v2242_v53, %v2100_v25  ;;  %v1930_v8 = vrot.slane %v1828_v61, 2  ;;  %v2141_v13 = vmul.f32 %v10330_v44, %v10625_v46 }
  0x80   : > { %v2142_v15 = vmul.f32 %v10330_v44, %v10627_v47  ;;  %v1542_v14 = vadd.f32 %v1510_v16, %v1473_v11  ;;  %v2069_v37 = vmul.f32 %v10325_v43, %v10625_v46  ;;  %v2386_v17 = vmul.f32 %v10356_v57, %v10625_v46 }
  0x81   : > { %9483 = vmatprep.mubr.msk.f32.mxu0 %vm795_vm0, %v2731_v0  ;;  %v10641_v18 = vmul.f32 %v10356_v57, %v10627_v47  ;;  %v2590_v19 = vadd.f32 %v2487_v5, %v2345_v42  ;;  %v1931_v54 = vsel %vm1354_vm3, %v1929_v62, %v1930_v8  ;;  %v2243_v21 = vrot.slane %v2141_v13, 1 }
  0x82   : > { %v2244_v30 = vrot.slane %v2142_v15, 1  ;;  %v1787_v32 = vadd.f32 %v1686_v12, %v1542_v14  ;;  %v2488_v39 = vrot.slane %v2386_v17, 2  ;;  %v1023_v29 = vmul.f32 %v10259_v3, %v10476_v7 }
  0x83   : > { %v2489_v10 = vrot.slane %v10641_v18, 2  ;;  %v2629_v53 = vmul.f32 %v10408_v55, %v2590_v19  ;;  %v950_v28 = vmul.f32 %v10254_v2, %v10444_v27  ;;  %v1269_v60 = vmul.f32 %v10264_v4, %v10476_v7 }
  0x84   : > { %v2245_v45 = vsel %vm1108_vm2, %v2243_v21, %v2244_v30  ;;  %v2032_v35 = vadd.f32 %v1931_v54, %v1787_v32  ;;  %v1127_v36 = vrot.slane %v1023_v29, 1  ;;  %v1511_v31 = vmul.f32 %v10289_v22, %v10537_v20  ;;  %v788_v32 = vld [vmem:[%s10249_s0 + $0xc8] sm:$0xff] }
  0x85   : > { %v1584_v38 = vmul.f32 %v10294_v23, %v10572_v63  ;;  %v2668_v26 = vadd.f32 %v10423_v6, %v2629_v53  ;;  %v2490_v16 = vsel %vm1354_vm3, %v2488_v39, %v2489_v10  ;;  %v1373_v27 = vrot.slane %v1269_v60, 2  ;;  %877 = vst.msk [vmem:[#allocation2 + $0x141] sm:$0xff] %vm795_vm0, %v788_v32 }
  0x86   : > { %v1829_v7 = vmul.f32 %v10299_v24, %v10572_v63  ;;  %v2101_v40 = vadd.f32 %v2069_v37, %v2032_v35  ;;  %v1128_v41 = vsel %vm1108_vm2, %v1125_v33, %v1127_v36  ;;  %v2143_v51 = vmul.f32 %v10330_v44, %v10661_v34 }
  0x87   : > { %v1687_v49 = vrot.slane %v1584_v38, 1  ;;  %v2700_v48 = vmax.f32 %v2668_v26, 0.0  ;;  %v1228_v52 = vadd.f32 %v1128_v41, %v950_v28  ;;  %v1374_v56 = vsel %vm1354_vm3, %v1371_v50, %v1373_v27 }
  0x88   : > { %v1932_v25 = vrot.slane %v1829_v7, 2  ;;  %v2346_v59 = vadd.f32 %v2245_v45, %v2101_v40  ;;  %v2070_v61 = vmul.f32 %v10325_v43, %v10627_v47  ;;  %v2246_v62 = vrot.slane %v2143_v51, 1  ;;  %v10714_v51 = vld [vmem:[#allocation2 + $0x90] sm:$0xff] }
  0x89   : > { %v2388_v0 = vmul.f32 %v10356_v57, %v10661_v34  ;;  %v2732_v5 = vmin.f32 %v2700_v48, 6.0  ;;  %v1474_v11 = vadd.f32 %v1374_v56, %v1228_v52  ;;  %v1688_v33 = vsel %vm1108_vm2, %v1685_v58, %v1687_v49 }
  0x8a   : > { %v1933_v12 = vsel %vm1354_vm3, %v1930_v8, %v1932_v25  ;;  %v2591_v42 = vadd.f32 %v2490_v16, %v2346_v59  ;;  %v2247_v50 = vsel %vm1108_vm2, %v2244_v30, %v2246_v62  ;;  %v951_v13 = vmul.f32 %v10254_v2, %v10528_v9  ;;  %v787_v30 = vld [vmem:[%s10249_s0 + $0xc0] sm:$0xff]  ;;  %v10716_v25 = vld [vmem:[#allocation2 + $0x98] sm:$0xff] }
  0x8b   : > { %v1024_v15 = vmul.f32 %v10259_v3, %v10528_v9  ;;  %9484 = vmatmul.mubr.msk.f32.gmra.mxu0 %vm795_vm0, %v2732_v5  ;;  %v1543_v14 = vadd.f32 %v1511_v31, %v1474_v11  ;;  %v10683_v37 = vmul.f32 %v10259_v3, %v10537_v20  ;;  %v1270_v58 = vmul.f32 %v10264_v4, %v10528_v9 }
  0x8c   : > { %v10689_v8 = vmul.f32 %v10264_v4, %v10537_v20  ;;  %v2630_v17 = vmul.f32 %v10408_v55, %v2591_v42  ;;  %v2491_v19 = vrot.slane %v2388_v0, 2  ;;  %v1512_v21 = vmul.f32 %v10289_v22, %v10625_v46  ;;  %876 = vst.msk [vmem:[#allocation2 + $0x139] sm:$0xff] %vm795_vm0, %v787_v30 }
  0x8d   : > { %v1129_v54 = vrot.slane %v1024_v15, 1  ;;  %v1788_v39 = vadd.f32 %v1688_v33, %v1543_v14  ;;  %v1130_v29 = vrot.slane %v10683_v37, 1  ;;  %v1375_v53 = vrot.slane %v1270_v58, 2 }
  0x8e   : > { %v1376_v45 = vrot.slane %v10689_v8, 2  ;;  %v2669_v9 = vadd.f32 %v10423_v6, %v2630_v17  ;;  %v1585_v28 = vmul.f32 %v10294_v23, %v10625_v46  ;;  %v1586_v60 = vmul.f32 %v10294_v23, %v10627_v47 }
  0x8f   : > { %v1830_v35 = vmul.f32 %v10299_v24, %v10625_v46  ;;  %v2033_v36 = vadd.f32 %v1933_v12, %v1788_v39  ;;  %v1131_v31 = vsel %vm1108_vm2, %v1129_v54, %v1130_v29  ;;  %v1831_v26 = vmul.f32 %v10299_v24, %v10627_v47 }
  0x90   : > { %v1377_v38 = vsel %vm1354_vm3, %v1375_v53, %v1376_v45  ;;  %v2701_v16 = vmax.f32 %v2669_v9, 0.0  ;;  %v1229_v27 = vadd.f32 %v1131_v31, %v951_v13  ;;  %v1689_v7 = vrot.slane %v1585_v28, 1 }
  0x91   : > { %v1690_v40 = vrot.slane %v1586_v60, 1  ;;  %v2102_v41 = vadd.f32 %v2070_v61, %v2033_v36  ;;  %v2492_v49 = vsel %vm1354_vm3, %v2489_v10, %v2491_v19  ;;  %v1934_v48 = vrot.slane %v1830_v35, 2  ;;  %v10753_v36 = vld [vmem:[#allocation2 + $0xa0] sm:$0x3] }
  0x92   : > { %v1935_v52 = vrot.slane %v1831_v26, 2  ;;  %v2733_v56 = vmin.f32 %v2701_v16, 6.0  ;;  %v1475_v59 = vadd.f32 %v1377_v38, %v1229_v27  ;;  %v2071_v62 = vmul.f32 %v10325_v43, %v10714_v51 }
  0x93   : > { %v2144_v0 = vmul.f32 %v10330_v44, %v10714_v51  ;;  %v2347_v5 = vadd.f32 %v2247_v50, %v2102_v41  ;;  %v1691_v61 = vsel %vm1108_vm2, %v1689_v7, %v1690_v40  ;;  %v2145_v18 = vmul.f32 %v10330_v44, %v10716_v25 }
  0x94   : > { %v2389_v10 = vmul.f32 %v10356_v57, %v10714_v51  ;;  %9486 = vmatprep.mubr.msk.f32.mxu0 %vm795_vm0, %v2733_v56  ;;  %v1544_v11 = vadd.f32 %v1512_v21, %v1475_v59  ;;  %v1936_v33 = vsel %vm1354_vm3, %v1934_v48, %v1935_v52  ;;  %v10731_v42 = vmul.f32 %v10356_v57, %v10716_v25 }
  0x95   : > { %v2248_v12 = vrot.slane %v2144_v0, 1  ;;  %v2592_v13 = vadd.f32 %v2492_v49, %v2347_v5  ;;  %v2249_v50 = vrot.slane %v2145_v18, 1  ;;  %v1026_v14 = vmul.f32 %v10259_v3, %v10572_v63 }
  0x96   : > { %v2493_v15 = vrot.slane %v2389_v10, 2  ;;  %v1789_v37 = vadd.f32 %v1691_v61, %v1544_v11  ;;  %v2494_v58 = vrot.slane %v10731_v42, 2  ;;  %v952_v8 = vmul.f32 %v10254_v2, %v10537_v20 }
  0x97   : > { %v1272_v17 = vmul.f32 %v10264_v4, %v10572_v63  ;;  %v2631_v19 = vmul.f32 %v10408_v55, %v2592_v13  ;;  %v1132_v54 = vrot.slane %v1026_v14, 1  ;;  %v1513_v21 = vmul.f32 %v10289_v22, %v10627_v47 }
  0x98   : > { %v1587_v30 = vmul.f32 %v10294_v23, %v10661_v34  ;;  %v2034_v32 = vadd.f32 %v1936_v33, %v1789_v37  ;;  %v2250_v39 = vsel %vm1108_vm2, %v2248_v12, %v2249_v50  ;;  %v1832_v9 = vmul.f32 %v10299_v24, %v10661_v34 }
  0x99   : > { %v1378_v53 = vrot.slane %v1272_v17, 2  ;;  %v2670_v20 = vadd.f32 %v10423_v6, %v2631_v19  ;;  %v2495_v63 = vsel %vm1354_vm3, %v2493_v15, %v2494_v58  ;;  %v1133_v28 = vsel %vm1108_vm2, %v1130_v29, %v1132_v54  ;;  %v789_v19 = vld [vmem:[%s10249_s0 + $0xd0] sm:$0xff]  ;;  %v790_v54 = vld [vmem:[%s10249_s0 + $0xd8] sm:$0xff] }
  0x9a   : > { %v1692_v60 = vrot.slane %v1587_v30, 1  ;;  %v2103_v35 = vadd.f32 %v2071_v62, %v2034_v32  ;;  %v1230_v31 = vadd.f32 %v1133_v28, %v952_v8  ;;  %v1937_v26 = vrot.slane %v1832_v9, 2  ;;  %878 = vst.msk [vmem:[#allocation2 + $0x151] sm:$0xff] %vm795_vm0, %v789_v19  ;;  %879 = vst.msk [vmem:[#allocation2 + $0x159] sm:$0xff] %vm795_vm0, %v790_v54 }
  0x9b   : > { %v1379_v38 = vsel %vm1354_vm3, %v1376_v45, %v1378_v53  ;;  %v2702_v16 = vmax.f32 %v2670_v20, 0.0  ;;  %v2072_v27 = vmul.f32 %v10325_v43, %v10716_v25  ;;  %v2146_v7 = vmul.f32 %v10330_v44, %v10753_v36  ;;  %v10805_v20 = vld [vmem:[#allocation2 + $0xa8] sm:$0xff] }
  0x9c   : > { %v2391_v41 = vmul.f32 %v10356_v57, %v10753_v36  ;;  %v2348_v49 = vadd.f32 %v2250_v39, %v2103_v35  ;;  %v1476_v29 = vadd.f32 %v1379_v38, %v1230_v31  ;;  %v1693_v48 = vsel %vm1108_vm2, %v1690_v40, %v1692_v60  ;;  %v10812_v35 = vld [vmem:[#allocation2 + $0xb0] sm:$0xff] }
  0x9d   : > { %v1938_v56 = vsel %vm1354_vm3, %v1935_v52, %v1937_v26  ;;  %v2734_v59 = vmin.f32 %v2702_v16, 6.0  ;;  %v2251_v62 = vrot.slane %v2146_v7, 1  ;;  %v953_v45 = vmul.f32 %v10254_v2, %v10625_v46 }
  0x9e   : > { %v1027_v0 = vmul.f32 %v10259_v3, %v10625_v46  ;;  %v2593_v5 = vadd.f32 %v2495_v63, %v2348_v49  ;;  %v1545_v61 = vadd.f32 %v1513_v21, %v1476_v29  ;;  %v10770_v18 = vmul.f32 %v10259_v3, %v10627_v47 }
  0x9f   : > { %v1273_v10 = vmul.f32 %v10264_v4, %v10625_v46  ;;  %9487 = vmatmul.mubr.msk.f32.gmra.mxu0 %vm795_vm0, %v2734_v59  ;;  %v2252_v40 = vsel %vm1108_vm2, %v2249_v50, %v2251_v62  ;;  %v2496_v52 = vrot.slane %v2391_v41, 2  ;;  %v10778_v11 = vmul.f32 %v10264_v4, %v10627_v47 }
  0xa0   : > { %v1134_v2 = vrot.slane %v1027_v0, 1  ;;  %v2632_v33 = vmul.f32 %v10408_v55, %v2593_v5  ;;  %v1790_v12 = vadd.f32 %v1693_v48, %v1545_v61  ;;  %v1135_v3 = vrot.slane %v10770_v18, 1  ;;  %v10833_v61 = vld [vmem:[%s16341_s26 + $0x1] ss:$0 sm:$0xff] }
  0xa1   : > { %v1380_v13 = vrot.slane %v1273_v10, 2  ;;  %v1381_v46 = vrot.slane %v10778_v11, 2  ;;  %v1514_v15 = vmul.f32 %v10289_v22, %v10714_v51  ;;  %v1588_v50 = vmul.f32 %v10294_v23, %v10714_v51 }
  0xa2   : > { %v10789_v14 = vmul.f32 %v10294_v23, %v10716_v25  ;;  %v2671_v4 = vadd.f32 %v10423_v6, %v2632_v33  ;;  %v2035_v37 = vadd.f32 %v1938_v56, %v1790_v12  ;;  %v1136_v8 = vsel %vm1108_vm2, %v1134_v2, %v1135_v3  ;;  %v10842_v2 = vld [vmem:[%s16341_s26] ss:$0 sm:$0xff]  ;;  %v10849_v12 = vld [vmem:[%s16341_s26 + $0x2] ss:$0 sm:$0xff] }
  0xa3   : > { %v1833_v17 = vmul.f32 %v10299_v24, %v10714_v51  ;;  %v1231_v21 = vadd.f32 %v1136_v8, %v953_v45  ;;  %v1382_v30 = vsel %vm1354_vm3, %v1380_v13, %v1381_v46  ;;  %v1694_v32 = vrot.slane %v1588_v50, 1  ;;  %v10861_v8 = vld [vmem:[#allocation2 + $0xb8] sm:$0x3] }
  0xa4   : > { %v1695_v39 = vrot.slane %v10789_v14, 1  ;;  %v2703_v53 = vmax.f32 %v2671_v4, 0.0  ;;  %v2104_v9 = vadd.f32 %v2072_v27, %v2035_v37  ;;  %v1834_v63 = vmul.f32 %v10299_v24, %v10716_v25 }
  0xa5   : > { %v1939_v28 = vrot.slane %v1833_v17, 2  ;;  %v2497_v60 = vsel %vm1354_vm3, %v2494_v58, %v2496_v52  ;;  %v1477_v31 = vadd.f32 %v1382_v30, %v1231_v21  ;;  %v2147_v26 = vmul.f32 %v10330_v44, %v10805_v20 }
  0xa6   : > { %v1696_v38 = vsel %vm1108_vm2, %v1694_v32, %v1695_v39  ;;  %v2735_v16 = vmin.f32 %v2703_v53, 6.0  ;;  %v2349_v27 = vadd.f32 %v2252_v40, %v2104_v9  ;;  %v1940_v7 = vrot.slane %v1834_v63, 2 }
  0xa7   : > { %v2148_v41 = vmul.f32 %v10330_v44, %v10812_v35  ;;  %v1546_v49 = vadd.f32 %v1514_v15, %v1477_v31  ;;  %v2253_v29 = vrot.slane %v2147_v26, 1  ;;  %v2392_v42 = vmul.f32 %v10356_v57, %v10805_v20 }
  0xa8   : > { %v10823_v58 = vmul.f32 %v10356_v57, %v10812_v35  ;;  %9489 = vmatprep.mubr.msk.f32.mxu0 %vm795_vm0, %v2735_v16  ;;  %v2594_v48 = vadd.f32 %v2497_v60, %v2349_v27  ;;  %v1941_v56 = vsel %vm1354_vm3, %v1939_v28, %v1940_v7  ;;  %v2073_v59 = vmul.f32 %v10325_v43, %v10805_v20 }
  0xa9   : > { %v2254_v62 = vrot.slane %v2148_v41, 1  ;;  %v1791_v45 = vadd.f32 %v1696_v38, %v1546_v49  ;;  %v2498_v0 = vrot.slane %v2392_v42, 2  ;;  %v1029_v10 = vmul.f32 %v10833_v61, %v10661_v34  ;;  %v10899_v41 = vld [vmem:[%s16341_s26 + $0x3] ss:$0 sm:$0xff] }
  0xaa   : > { %v2499_v5 = vrot.slane %v10823_v58, 2  ;;  %v2633_v40 = vmul.f32 %v10408_v55, %v2594_v48  ;;  %v954_v33 = vmul.f32 %v10842_v2, %v10627_v47  ;;  %v1275_v13 = vmul.f32 %v10849_v12, %v10661_v34  ;;  %v10955_v58 = vld [vmem:[%s16341_s26 + $0x7] ss:$0 sm:$0xff] }
  0xab   : > { %v2255_v52 = vsel %vm1108_vm2, %v2253_v29, %v2254_v62  ;;  %v2036_v15 = vadd.f32 %v1941_v56, %v1791_v45  ;;  %v1137_v50 = vrot.slane %v1029_v10, 1  ;;  %v1515_v14 = vmul.f32 %v10289_v22, %v10716_v25 }
  0xac   : > { %v1590_v4 = vmul.f32 %v10294_v23, %v10753_v36  ;;  %v2672_v37 = vadd.f32 %v10423_v6, %v2633_v40  ;;  %v2500_v47 = vsel %vm1354_vm3, %v2498_v0, %v2499_v5  ;;  %v1383_v17 = vrot.slane %v1275_v13, 2  ;;  %v10920_v0 = vld [vmem:[%s16341_s26 + $0x5] ss:$0 sm:$0xff] }
  0xad   : > { %v1835_v34 = vmul.f32 %v10299_v24, %v10753_v36  ;;  %v2105_v19 = vadd.f32 %v2073_v59, %v2036_v15  ;;  %v1138_v22 = vsel %vm1108_vm2, %v1135_v3, %v1137_v50  ;;  %v2149_v23 = vmul.f32 %v10330_v44, %v10861_v8  ;;  %v10909_v59 = vld [vmem:[%s16341_s26 + $0x4] ss:$0 sm:$0xff] }
  0xae   : > { %v1697_v54 = vrot.slane %v1590_v4, 1  ;;  %v2704_v21 = vmax.f32 %v2672_v37, 0.0  ;;  %v1232_v30 = vadd.f32 %v1138_v22, %v954_v33  ;;  %v1384_v32 = vsel %vm1354_vm3, %v1381_v46, %v1383_v17  ;;  %v791_v40 = vld [vmem:[%s10249_s0 + $0xe0] sm:$0xff] }
  0xaf   : > { %v1942_v53 = vrot.slane %v1835_v34, 2  ;;  %v2350_v9 = vadd.f32 %v2255_v52, %v2105_v19  ;;  %v2074_v24 = vmul.f32 %v10325_v43, %v10812_v35  ;;  %v2256_v63 = vrot.slane %v2149_v23, 1  ;;  %v792_v52 = vld [vmem:[%s10249_s0 + $0xe8] sm:$0xff]  ;;  %880 = vst.msk [vmem:[#allocation2 + $0x169] sm:$0xff] %vm795_vm0, %v791_v40  ;;  %v10940_v19 = vld [vmem:[#allocation2 + $0xc0] sm:$0xff] }
  0xb0   : > { %v2394_v18 = vmul.f32 %v10356_v57, %v10861_v8  ;;  %v2736_v3 = vmin.f32 %v2704_v21, 6.0  ;;  %v1478_v28 = vadd.f32 %v1384_v32, %v1232_v30  ;;  %v1698_v60 = vsel %vm1108_vm2, %v1695_v39, %v1697_v54  ;;  %881 = vst.msk [vmem:[#allocation2 + $0x171] sm:$0xff] %vm795_vm0, %v792_v52  ;;  %v10943_v21 = vld [vmem:[#allocation2 + $0xc8] sm:$0xff]  ;;  %v10948_v32 = vld [vmem:[%s16341_s26 + $0x6] ss:$0 sm:$0xff] }
  0xb1   : > { %v1943_v44 = vsel %vm1354_vm3, %v1940_v7, %v1942_v53  ;;  %v2595_v31 = vadd.f32 %v2500_v47, %v2350_v9  ;;  %v2257_v11 = vsel %vm1108_vm2, %v2254_v62, %v2256_v63  ;;  %v955_v46 = vmul.f32 %v10842_v2, %v10714_v51 }
  0xb2   : > { %v1030_v38 = vmul.f32 %v10833_v61, %v10714_v51  ;;  %9490 = vmatmul.mubr.msk.f32.gmra.mxu0 %vm795_vm0, %v2736_v3  ;;  %v1547_v43 = vadd.f32 %v1515_v14, %v1478_v28  ;;  %v10887_v57 = vmul.f32 %v10833_v61, %v10716_v25  ;;  %v1276_v39 = vmul.f32 %v10849_v12, %v10714_v51 }
  0xb3   : > { %v10893_v26 = vmul.f32 %v10849_v12, %v10716_v25  ;;  %v2634_v16 = vmul.f32 %v10408_v55, %v2595_v31  ;;  %v2501_v27 = vrot.slane %v2394_v18, 2  ;;  %v1516_v49 = vmul.f32 %v10899_v41, %v10805_v20  ;;  %v10965_v18 = vld [vmem:[%s16341_s26 + $0x8] ss:$0 sm:$0xff] }
  0xb4   : > { %v1139_v7 = vrot.slane %v1030_v38, 1  ;;  %v1792_v29 = vadd.f32 %v1698_v60, %v1547_v43  ;;  %v1140_v51 = vrot.slane %v10887_v57, 1  ;;  %v1385_v42 = vrot.slane %v1276_v39, 2 }
  0xb5   : > { %v1386_v48 = vrot.slane %v10893_v26, 2  ;;  %v2673_v56 = vadd.f32 %v10423_v6, %v2634_v16  ;;  %v1591_v62 = vmul.f32 %v10909_v59, %v10805_v20  ;;  %v10915_v45 = vmul.f32 %v10909_v59, %v10812_v35 }
  0xb6   : > { %v1836_v10 = vmul.f32 %v10920_v0, %v10805_v20  ;;  %v2037_v33 = vadd.f32 %v1943_v44, %v1792_v29  ;;  %v1141_v13 = vsel %vm1108_vm2, %v1139_v7, %v1140_v51  ;;  %v10932_v50 = vmul.f32 %v10920_v0, %v10812_v35 }
  0xb7   : > { %v1387_v15 = vsel %vm1354_vm3, %v1385_v42, %v1386_v48  ;;  %v2705_v14 = vmax.f32 %v2673_v56, 0.0  ;;  %v1233_v4 = vadd.f32 %v1141_v13, %v955_v46  ;;  %v1699_v37 = vrot.slane %v1591_v62, 1 }
  0xb8   : > { %v1700_v47 = vrot.slane %v10915_v45, 1  ;;  %v2106_v17 = vadd.f32 %v2074_v24, %v2037_v33  ;;  %v2502_v34 = vsel %vm1354_vm3, %v2499_v5, %v2501_v27  ;;  %v1944_v22 = vrot.slane %v1836_v10, 2  ;;  %v10995_v33 = vld [vmem:[#allocation2 + $0xd0] sm:$0x3] }
  0xb9   : > { %v1945_v54 = vrot.slane %v10932_v50, 2  ;;  %v2737_v23 = vmin.f32 %v2705_v14, 6.0  ;;  %v1479_v30 = vadd.f32 %v1387_v15, %v1233_v4  ;;  %v2075_v53 = vmul.f32 %v10948_v32, %v10940_v19 }
  0xba   : > { %v2150_v5 = vmul.f32 %v10955_v58, %v10940_v19  ;;  %v2351_v9 = vadd.f32 %v2257_v11, %v2106_v17  ;;  %v1701_v24 = vsel %vm1108_vm2, %v1699_v37, %v1700_v47  ;;  %v2151_v63 = vmul.f32 %v10955_v58, %v10943_v21 }
  0xbb   : > { %v2395_v3 = vmul.f32 %v10965_v18, %v10940_v19  ;;  %9492 = vmatprep.mubr.msk.f32.mxu0 %vm795_vm0, %v2737_v23  ;;  %v1548_v28 = vadd.f32 %v1516_v49, %v1479_v30  ;;  %v1946_v60 = vsel %vm1354_vm3, %v1944_v22, %v1945_v54  ;;  %v10973_v31 = vmul.f32 %v10965_v18, %v10943_v21 }
  0xbc   : > { %v2258_v44 = vrot.slane %v2150_v5, 1  ;;  %v2596_v11 = vadd.f32 %v2502_v34, %v2351_v9  ;;  %v2259_v46 = vrot.slane %v2151_v63, 1  ;;  %v1032_v43 = vmul.f32 %v10833_v61, %v10753_v36 }
  0xbd   : > { %v2503_v38 = vrot.slane %v2395_v3, 2  ;;  %v1793_v57 = vadd.f32 %v1701_v24, %v1548_v28  ;;  %v2504_v39 = vrot.slane %v10973_v31, 2  ;;  %v956_v16 = vmul.f32 %v10842_v2, %v10716_v25  ;;  %v11027_v28 = vld [vmem:[%s16342_s9] ss:$0 sm:$0xff] }
  0xbe   : > { %v1278_v27 = vmul.f32 %v10849_v12, %v10753_v36  ;;  %v2635_v7 = vmul.f32 %v10408_v55, %v2596_v11  ;;  %v1142_v49 = vrot.slane %v1032_v43, 1  ;;  %v1517_v29 = vmul.f32 %v10899_v41, %v10812_v35 }
  0xbf   : > { %v1593_v42 = vmul.f32 %v10909_v59, %v10861_v8  ;;  %v2038_v56 = vadd.f32 %v1946_v60, %v1793_v57  ;;  %v2260_v62 = vsel %vm1108_vm2, %v2258_v44, %v2259_v46  ;;  %v1838_v10 = vmul.f32 %v10920_v0, %v10861_v8 }
  0xc0   : > { %v1388_v45 = vrot.slane %v1278_v27, 2  ;;  %v2674_v25 = vadd.f32 %v10423_v6, %v2635_v7  ;;  %v2505_v55 = vsel %vm1354_vm3, %v2503_v38, %v2504_v39  ;;  %v1143_v36 = vsel %vm1108_vm2, %v1140_v51, %v1142_v49 }
  0xc1   : > { %v1702_v40 = vrot.slane %v1593_v42, 1  ;;  %v2107_v52 = vadd.f32 %v2075_v53, %v2038_v56  ;;  %v1234_v13 = vadd.f32 %v1143_v36, %v956_v16  ;;  %v1947_v50 = vrot.slane %v1838_v10, 2  ;;  %v11043_v16 = vld [vmem:[%s16343_s8] ss:$0 sm:$0xff] }
  0xc2   : > { %v1389_v15 = vsel %vm1354_vm3, %v1386_v48, %v1388_v45  ;;  %v2706_v14 = vmax.f32 %v2674_v25, 0.0  ;;  %v2076_v6 = vmul.f32 %v10948_v32, %v10943_v21  ;;  %v2152_v4 = vmul.f32 %v10955_v58, %v10995_v33 }
  0xc3   : > { %v2397_v51 = vmul.f32 %v10965_v18, %v10995_v33  ;;  %v2352_v37 = vadd.f32 %v2260_v62, %v2107_v52  ;;  %v1480_v17 = vadd.f32 %v1389_v15, %v1234_v13  ;;  %v1703_v34 = vsel %vm1108_vm2, %v1700_v47, %v1702_v40  ;;  %v793_v52 = vld [vmem:[%s10249_s0 + $0xf0] sm:$0xff]  ;;  %v794_v13 = vld [vmem:[%s10249_s0 + $0xf8] sm:$0xff]  ;;  %s16345_s0 = sld [smem:[#allocation51_spill]] }
  0xc4   : > { %v1948_v22 = vsel %vm1354_vm3, %v1945_v54, %v1947_v50  ;;  %v2738_v26 = vmin.f32 %v2706_v14, 6.0  ;;  %v2261_v23 = vrot.slane %v2152_v4, 1  ;;  %v957_v48 = vmul.f32 %v10842_v2, %v10805_v20  ;;  %v11062_v50 = vld [vmem:[#allocation2 + $0xe0] sm:$0xff]  ;;  %882 = vst.msk [vmem:[#allocation2 + $0x181] sm:$0xff] %vm795_vm0, %v793_v52  ;;  %883 = vst.msk [vmem:[#allocation2 + $0x189] sm:$0xff] %vm795_vm0, %v794_v13 }
  0xc5   : > { %v1033_v30 = vmul.f32 %v10833_v61, %v10805_v20  ;;  %v2597_v53 = vadd.f32 %v2505_v55, %v2352_v37  ;;  %v1549_v5 = vadd.f32 %v1517_v29, %v1480_v17  ;;  %v11014_v9 = vmul.f32 %v10833_v61, %v10812_v35  ;;  %v11053_v55 = vld [vmem:[#allocation2 + $0xd8] sm:$0xff] }
  0xc6   : > { %v1279_v24 = vmul.f32 %v10849_v12, %v10805_v20  ;;  %9493 = vmatmul.mubr.msk.f32.gmra.mxu0 %vm795_vm0, %v2738_v26  ;;  %v2262_v47 = vsel %vm1108_vm2, %v2259_v46, %v2261_v23  ;;  %v2506_v54 = vrot.slane %v2397_v51, 2  ;;  %v11022_v3 = vmul.f32 %v10849_v12, %v10812_v35 }
  0xc7   : > { %v1144_v63 = vrot.slane %v1033_v30, 1  ;;  %v2636_v60 = vmul.f32 %v11027_v28, %v2597_v53  ;;  %v1794_v44 = vadd.f32 %v1703_v34, %v1549_v5  ;;  %v1145_v20 = vrot.slane %v11014_v9, 1 }
  0xc8   : > { %v1390_v11 = vrot.slane %v1279_v24, 2  ;;  %v1391_v38 = vrot.slane %v11022_v3, 2  ;;  %v1518_v46 = vmul.f32 %v10899_v41, %v10940_v19  ;;  %v1594_v43 = vmul.f32 %v10909_v59, %v10940_v19 }
  0xc9   : > { %v11038_v57 = vmul.f32 %v10909_v59, %v10943_v21  ;;  %v2675_v27 = vadd.f32 %v11043_v16, %v2636_v60  ;;  %v2039_v7 = vadd.f32 %v1948_v22, %v1794_v44  ;;  %v1146_v49 = vsel %vm1108_vm2, %v1144_v63, %v1145_v20 }
  0xca   : > { %v1839_v29 = vmul.f32 %v10920_v0, %v10940_v19  ;;  %v1235_v42 = vadd.f32 %v1146_v49, %v957_v48  ;;  %v1392_v56 = vsel %vm1354_vm3, %v1390_v11, %v1391_v38  ;;  %v1704_v62 = vrot.slane %v1594_v43, 1  ;;  %v11096_v49 = vld [vmem:[#allocation2 + $0xe8] sm:$0x3] }
  0xcb   : > { %v1705_v45 = vrot.slane %v11038_v57, 1  ;;  %v2707_v10 = vmax.f32 %v2675_v27, 0.0  ;;  %v2108_v25 = vadd.f32 %v2076_v6, %v2039_v7  ;;  %v1840_v36 = vmul.f32 %v10920_v0, %v10943_v21 }
  0xcc   : > { %v1949_v40 = vrot.slane %v1839_v29, 2  ;;  %v2507_v15 = vsel %vm1354_vm3, %v2504_v39, %v2506_v54  ;;  %v1481_v14 = vadd.f32 %v1392_v56, %v1235_v42  ;;  %v2153_v6 = vmul.f32 %v10955_v58, %v11053_v55 }
  0xcd   : > { %v1706_v4 = vsel %vm1108_vm2, %v1704_v62, %v1705_v45  ;;  %v2739_v51 = vmin.f32 %v2707_v10, 6.0  ;;  %v2353_v37 = vadd.f32 %v2262_v47, %v2108_v25  ;;  %v1950_v17 = vrot.slane %v1840_v36, 2 }
  0xce   : > { %v2154_v31 = vmul.f32 %v10955_v58, %v11062_v50  ;;  %v1550_v34 = vadd.f32 %v1518_v46, %v1481_v14  ;;  %v2263_v39 = vrot.slane %v2153_v6, 1  ;;  %v2398_v22 = vmul.f32 %v10965_v18, %v11053_v55 }
  0xcf   : > { %v11075_v26 = vmul.f32 %v10965_v18, %v11062_v50  ;;  %9495 = vmatprep.mubr.msk.f32.mxu0 %vm795_vm0, %v2739_v51  ;;  %v2598_v23 = vadd.f32 %v2507_v15, %v2353_v37  ;;  %v1951_v48 = vsel %vm1354_vm3, %v1949_v40, %v1950_v17  ;;  %v2077_v30 = vmul.f32 %v10948_v32, %v11053_v55 }
  0xd0   : > { %v2264_v53 = vrot.slane %v2154_v31, 1  ;;  %v1795_v5 = vadd.f32 %v1706_v4, %v1550_v34  ;;  %v2508_v9 = vrot.slane %v2398_v22, 2  ;;  %v1035_v47 = vmul.f32 %v10833_v61, %v10861_v8 }
  0xd1   : > { %v2509_v24 = vrot.slane %v11075_v26, 2  ;;  %v2637_v54 = vmul.f32 %v11027_v28, %v2598_v23  ;;  %v958_v60 = vmul.f32 %v10842_v2, %v10812_v35  ;;  %v1281_v44 = vmul.f32 %v10849_v12, %v10861_v8 }
  0xd2   : > { %v2265_v63 = vsel %vm1108_vm2, %v2263_v39, %v2264_v53  ;;  %v2040_v11 = vadd.f32 %v1951_v48, %v1795_v5  ;;  %v1147_v46 = vrot.slane %v1035_v47, 1  ;;  %v1519_v43 = vmul.f32 %v10899_v41, %v10943_v21 }
  0xd3   : > { %v1596_v57 = vmul.f32 %v10909_v59, %v10995_v33  ;;  %v2676_v27 = vadd.f32 %v11043_v16, %v2637_v54  ;;  %v2510_v7 = vsel %vm1354_vm3, %v2508_v9, %v2509_v24  ;;  %v1393_v29 = vrot.slane %v1281_v44, 2 }
  0xd4   : > { %v1841_v35 = vmul.f32 %v10920_v0, %v10995_v33  ;;  %v2109_v42 = vadd.f32 %v2077_v30, %v2040_v11  ;;  %v1148_v8 = vsel %vm1108_vm2, %v1145_v20, %v1147_v46  ;;  %v2155_v62 = vmul.f32 %v10955_v58, %v11096_v49 }
  0xd5   : > { %v1707_v56 = vrot.slane %v1596_v57, 1  ;;  %v2708_v10 = vmax.f32 %v2676_v27, 0.0  ;;  %v1236_v25 = vadd.f32 %v1148_v8, %v958_v60  ;;  %v1394_v36 = vsel %vm1354_vm3, %v1391_v38, %v1393_v29 }
  0xd6   : > { %v1952_v40 = vrot.slane %v1841_v35, 2  ;;  %v2354_v52 = vadd.f32 %v2265_v63, %v2109_v42  ;;  %v2078_v13 = vmul.f32 %v10948_v32, %v11062_v50  ;;  %v2266_v15 = vrot.slane %v2155_v62, 1  ;;  %v11142_v42 = vld [vmem:[#allocation2 + $0xf0] sm:$0xff] }
  0xd7   : > { %v2400_v14 = vmul.f32 %v10965_v18, %v11096_v49  ;;  %v2740_v20 = vmin.f32 %v2708_v10, 6.0  ;;  %v1482_v4 = vadd.f32 %v1394_v36, %v1236_v25  ;;  %v1708_v6 = vsel %vm1108_vm2, %v1705_v45, %v1707_v56  ;;  %v11144_v10 = vld [vmem:[#allocation2 + $0xf8] sm:$0xff] }
  0xd8   : > { %v1953_v51 = vsel %vm1354_vm3, %v1950_v17, %v1952_v40  ;;  %v2599_v37 = vadd.f32 %v2510_v7, %v2354_v52  ;;  %v2267_v3 = vsel %vm1108_vm2, %v2264_v53, %v2266_v15  ;;  %v959_v38 = vmul.f32 %v10842_v2, %v10940_v19 }
  0xd9   : > { %v1036_v31 = vmul.f32 %v10833_v61, %v10940_v19  ;;  %9496 = vmatmul.mubr.msk.f32.gmra.mxu0 %vm795_vm0, %v2740_v20  ;;  %v1551_v34 = vadd.f32 %v1519_v43, %v1482_v4  ;;  %v1037_v39 = vmul.f32 %v10833_v61, %v10943_v21  ;;  %v1282_v45 = vmul.f32 %v10849_v12, %v10940_v19 }
  0xda   : > { %v11124_v17 = vmul.f32 %v10849_v12, %v10943_v21  ;;  %v2638_v22 = vmul.f32 %v11027_v28, %v2599_v37  ;;  %v2511_v26 = vrot.slane %v2400_v14, 2  ;;  %v1520_v48 = vmul.f32 %v10899_v41, %v11053_v55 }
  0xdb   : > { %v1149_v23 = vrot.slane %v1036_v31, 1  ;;  %v1796_v30 = vadd.f32 %v1708_v6, %v1551_v34  ;;  %v1150_v53 = vrot.slane %v1037_v39, 1  ;;  %v1395_v5 = vrot.slane %v1282_v45, 2 }
  0xdc   : > { %v1396_v9 = vrot.slane %v11124_v17, 2  ;;  %v2677_v47 = vadd.f32 %v11043_v16, %v2638_v22  ;;  %v1597_v19 = vmul.f32 %v10909_v59, %v11053_v55  ;;  %v1598_v54 = vmul.f32 %v10909_v59, %v11062_v50 }
  0xdd   : > { %v1842_v63 = vmul.f32 %v10920_v0, %v11053_v55  ;;  %v2041_v60 = vadd.f32 %v1953_v51, %v1796_v30  ;;  %v1151_v44 = vsel %vm1108_vm2, %v1149_v23, %v1150_v53  ;;  %v1843_v46 = vmul.f32 %v10920_v0, %v11062_v50 }
  0xde   : > { %v1397_v11 = vsel %vm1354_vm3, %v1395_v5, %v1396_v9  ;;  %v2709_v43 = vmax.f32 %v2677_v47, 0.0  ;;  %v1237_v57 = vadd.f32 %v1151_v44, %v959_v38  ;;  %v1709_v27 = vrot.slane %v1597_v19, 1 }
  0xdf   : > { %v1710_v7 = vrot.slane %v1598_v54, 1  ;;  %v2110_v29 = vadd.f32 %v2078_v13, %v2041_v60  ;;  %v2512_v35 = vsel %vm1354_vm3, %v2509_v24, %v2511_v26  ;;  %v1954_v8 = vrot.slane %v1842_v63, 2  ;;  %v11181_v60 = vld [vmem:[#allocation2 + $0x100] sm:$0x3] }
  0xe0   : > { %v1955_v56 = vrot.slane %v1843_v46, 2  ;;  %v2741_v62 = vmin.f32 %v2709_v43, 6.0  ;;  %v1483_v25 = vadd.f32 %v1397_v11, %v1237_v57  ;;  %v2079_v36 = vmul.f32 %v10948_v32, %v11142_v42 }
  0xe1   : > { %v2156_v40 = vmul.f32 %v10955_v58, %v11142_v42  ;;  %v2355_v52 = vadd.f32 %v2267_v3, %v2110_v29  ;;  %v1711_v15 = vsel %vm1108_vm2, %v1709_v27, %v1710_v7  ;;  %v2157_v24 = vmul.f32 %v10955_v58, %v11144_v10 }
  0xe2   : > { %v2401_v13 = vmul.f32 %v10965_v18, %v11142_v42  ;;  %9498 = vmatprep.mubr.msk.f32.mxu0 %vm795_vm0, %v2741_v62  ;;  %v1552_v14 = vadd.f32 %v1520_v48, %v1483_v25  ;;  %v1956_v20 = vsel %vm1354_vm3, %v1954_v8, %v1955_v56  ;;  %v11159_v6 = vmul.f32 %v10965_v18, %v11144_v10 }
  0xe3   : > { %v2268_v4 = vrot.slane %v2156_v40, 1  ;;  %v2600_v51 = vadd.f32 %v2512_v35, %v2355_v52  ;;  %v2269_v37 = vrot.slane %v2157_v24, 1  ;;  %v1038_v38 = vmul.f32 %v10833_v61, %v10995_v33 }
  0xe4   : > { %v2513_v3 = vrot.slane %v2401_v13, 2  ;;  %v1797_v31 = vadd.f32 %v1711_v15, %v1552_v14  ;;  %v2514_v34 = vrot.slane %v11159_v6, 2  ;;  %v960_v39 = vmul.f32 %v10842_v2, %v10943_v21 }
  0xe5   : > { %v1284_v45 = vmul.f32 %v10849_v12, %v10995_v33  ;;  %v2639_v17 = vmul.f32 %v11027_v28, %v2600_v51  ;;  %v1152_v22 = vrot.slane %v1038_v38, 1  ;;  %v1521_v26 = vmul.f32 %v10899_v41, %v11062_v50 }
  0xe6   : > { %v1599_v23 = vmul.f32 %v10909_v59, %v11096_v49  ;;  %v2042_v48 = vadd.f32 %v1956_v20, %v1797_v31  ;;  %v2270_v30 = vsel %vm1108_vm2, %v2268_v4, %v2269_v37  ;;  %v1844_v47 = vmul.f32 %v10920_v0, %v11096_v49 }
  0xe7   : > { %v1398_v5 = vrot.slane %v1284_v45, 2  ;;  %v2678_v21 = vadd.f32 %v11043_v16, %v2639_v17  ;;  %v2515_v33 = vsel %vm1354_vm3, %v2513_v3, %v2514_v34  ;;  %v1153_v19 = vsel %vm1108_vm2, %v1150_v53, %v1152_v22 }
  0xe8   : > { %v1712_v54 = vrot.slane %v1599_v23, 1  ;;  %v2111_v63 = vadd.f32 %v2079_v36, %v2042_v48  ;;  %v1238_v44 = vadd.f32 %v1153_v19, %v960_v39  ;;  %v1957_v46 = vrot.slane %v1844_v47, 2 }
  0xe9   : > { %v1399_v11 = vsel %vm1354_vm3, %v1396_v9, %v1398_v5  ;;  %v2710_v43 = vmax.f32 %v2678_v21, 0.0  ;;  %v2080_v57 = vmul.f32 %v10948_v32, %v11144_v10  ;;  %v2158_v27 = vmul.f32 %v10955_v58, %v11181_v60 }
  0xea   : > { %v2403_v29 = vmul.f32 %v10965_v18, %v11181_v60  ;;  %v2356_v35 = vadd.f32 %v2270_v30, %v2111_v63  ;;  %v1484_v53 = vadd.f32 %v1399_v11, %v1238_v44  ;;  %v1713_v8 = vsel %vm1108_vm2, %v1710_v7, %v1712_v54  ;;  %v11232_v44 = vld [vmem:[#allocation2 + $0x110] sm:$0xff] }
  0xeb   : > { %v1958_v62 = vsel %vm1354_vm3, %v1955_v56, %v1957_v46  ;;  %v2742_v25 = vmin.f32 %v2710_v43, 6.0  ;;  %v2271_v36 = vrot.slane %v2158_v27, 1  ;;  %v961_v9 = vmul.f32 %v10842_v2, %v11053_v55 }
  0xec   : > { %v1039_v40 = vmul.f32 %v10833_v61, %v11053_v55  ;;  %v2601_v52 = vadd.f32 %v2515_v33, %v2356_v35  ;;  %v1553_v15 = vadd.f32 %v1521_v26, %v1484_v53  ;;  %v11198_v24 = vmul.f32 %v10833_v61, %v11062_v50  ;;  %v11225_v33 = vld [vmem:[#allocation2 + $0x108] sm:$0xff] }
  0xed   : > { %v1285_v13 = vmul.f32 %v10849_v12, %v11053_v55  ;;  %9499 = vmatmul.mubr.msk.f32.gmra.mxu0 %vm795_vm0, %v2742_v25  ;;  %v2272_v7 = vsel %vm1108_vm2, %v2269_v37, %v2271_v36  ;;  %v2516_v56 = vrot.slane %v2403_v29, 2  ;;  %v11206_v20 = vmul.f32 %v10849_v12, %v11062_v50 }
  0xee   : > { %v1154_v14 = vrot.slane %v1039_v40, 1  ;;  %v2640_v4 = vmul.f32 %v11027_v28, %v2601_v52  ;;  %v1798_v51 = vadd.f32 %v1713_v8, %v1553_v15  ;;  %v1155_v3 = vrot.slane %v11198_v24, 1 }
  0xef   : > { %v1400_v38 = vrot.slane %v1285_v13, 2  ;;  %v1401_v31 = vrot.slane %v11206_v20, 2  ;;  %v1522_v55 = vmul.f32 %v10899_v41, %v11142_v42  ;;  %v1600_v37 = vmul.f32 %v10909_v59, %v11142_v42 }
  0xf0   : > { %v11217_v39 = vmul.f32 %v10909_v59, %v11144_v10  ;;  %v2679_v45 = vadd.f32 %v11043_v16, %v2640_v4  ;;  %v2043_v17 = vadd.f32 %v1958_v62, %v1798_v51  ;;  %v1156_v22 = vsel %vm1108_vm2, %v1154_v14, %v1155_v3 }
  0xf1   : > { %v1845_v26 = vmul.f32 %v10920_v0, %v11142_v42  ;;  %v1239_v23 = vadd.f32 %v1156_v22, %v961_v9  ;;  %v1402_v48 = vsel %vm1354_vm3, %v1400_v38, %v1401_v31  ;;  %v1714_v30 = vrot.slane %v1600_v37, 1 }
  0xf2   : > { %v1715_v5 = vrot.slane %v11217_v39, 1  ;;  %v2711_v47 = vmax.f32 %v2679_v45, 0.0  ;;  %v2112_v21 = vadd.f32 %v2080_v57, %v2043_v17  ;;  %v1846_v19 = vmul.f32 %v10920_v0, %v11144_v10  ;;  %v11264_v39 = vld [vmem:[#allocation2 + $0x118] sm:$0x3] }
  0xf3   : > { %v1959_v54 = vrot.slane %v1845_v26, 2  ;;  %v2517_v63 = vsel %vm1354_vm3, %v2514_v34, %v2516_v56  ;;  %v1485_v11 = vadd.f32 %v1402_v48, %v1239_v23  ;;  %v2159_v43 = vmul.f32 %v10955_v58, %v11225_v33 }
  0xf4   : > { %v1716_v46 = vsel %vm1108_vm2, %v1714_v30, %v1715_v5  ;;  %v2743_v27 = vmin.f32 %v2711_v47, 6.0  ;;  %v2357_v57 = vadd.f32 %v2272_v7, %v2112_v21  ;;  %v1960_v29 = vrot.slane %v1846_v19, 2 }
  0xf5   : > { %v2160_v35 = vmul.f32 %v10955_v58, %v11232_v44  ;;  %v1554_v53 = vadd.f32 %v1522_v55, %v1485_v11  ;;  %v2273_v8 = vrot.slane %v2159_v43, 1  ;;  %v2404_v6 = vmul.f32 %v10965_v18, %v11225_v33 }
  0xf6   : > { %v11243_v34 = vmul.f32 %v10965_v18, %v11232_v44  ;;  %9501 = vmatprep.mubr.msk.f32.mxu1 %vm795_vm0, %v2743_v27  ;;  %v2602_v62 = vadd.f32 %v2517_v63, %v2357_v57  ;;  %v1961_v25 = vsel %vm1354_vm3, %v1959_v54, %v1960_v29  ;;  %v2081_v36 = vmul.f32 %v10948_v32, %v11225_v33 }
  0xf7   : > { %v2274_v9 = vrot.slane %v2160_v35, 1  ;;  %v1799_v40 = vadd.f32 %v1716_v46, %v1554_v53  ;;  %v2518_v52 = vrot.slane %v2404_v6, 2  ;;  %v1041_v24 = vmul.f32 %v10833_v61, %v11096_v49 }
  0xf8   : > { %v2519_v15 = vrot.slane %v11243_v34, 2  ;;  %v2641_v13 = vmul.f32 %v11027_v28, %v2602_v62  ;;  %v962_v56 = vmul.f32 %v10842_v2, %v11062_v50  ;;  %v1287_v14 = vmul.f32 %v10849_v12, %v11096_v49 }
  0xf9   : > { %v2275_v7 = vsel %vm1108_vm2, %v2273_v8, %v2274_v9  ;;  %v2044_v20 = vadd.f32 %v1961_v25, %v1799_v40  ;;  %v1157_v4 = vrot.slane %v1041_v24, 1  ;;  %v1523_v51 = vmul.f32 %v10899_v41, %v11144_v10 }
  0xfa   : > { %v1602_v38 = vmul.f32 %v10909_v59, %v11181_v60  ;;  %v2680_v55 = vadd.f32 %v11043_v16, %v2641_v13  ;;  %v2520_v37 = vsel %vm1354_vm3, %v2518_v52, %v2519_v15  ;;  %v1403_v45 = vrot.slane %v1287_v14, 2 }
  0xfb   : > { %v1847_v50 = vmul.f32 %v10920_v0, %v11181_v60  ;;  %v2113_v17 = vadd.f32 %v2081_v36, %v2044_v20  ;;  %v1158_v49 = vsel %vm1108_vm2, %v1155_v3, %v1157_v4  ;;  %v2161_v26 = vmul.f32 %v10955_v58, %v11264_v39 }
  0xfc   : > { %v1717_v22 = vrot.slane %v1602_v38, 1  ;;  %v2712_v23 = vmax.f32 %v2680_v55, 0.0  ;;  %v1240_v48 = vadd.f32 %v1158_v49, %v962_v56  ;;  %v1404_v30 = vsel %vm1354_vm3, %v1401_v31, %v1403_v45 }
  0xfd   : > { %v1962_v47 = vrot.slane %v1847_v50, 2  ;;  %v2358_v21 = vadd.f32 %v2275_v7, %v2113_v17  ;;  %v2082_v19 = vmul.f32 %v10948_v32, %v11232_v44  ;;  %v2276_v54 = vrot.slane %v2161_v26, 1  ;;  %v11316_v17 = vld [vmem:[#allocation2 + $0x120] sm:$0xff] }
  0xfe   : > { %v2406_v63 = vmul.f32 %v10965_v18, %v11264_v39  ;;  %v2744_v11 = vmin.f32 %v2712_v23, 6.0  ;;  %v1486_v46 = vadd.f32 %v1404_v30, %v1240_v48  ;;  %v1718_v3 = vsel %vm1108_vm2, %v1715_v5, %v1717_v22  ;;  %v11319_v23 = vld [vmem:[#allocation2 + $0x128] sm:$0xff] }
  0xff   : > { %v1963_v43 = vsel %vm1354_vm3, %v1960_v29, %v1962_v47  ;;  %v2603_v27 = vadd.f32 %v2520_v37, %v2358_v21  ;;  %v2277_v57 = vsel %vm1108_vm2, %v2274_v9, %v2276_v54  ;;  %v963_v31 = vmul.f32 %v10842_v2, %v11142_v42 }
 0x100   : > { %v1042_v35 = vmul.f32 %v10833_v61, %v11142_v42  ;;  %9502 = vmatmul.mubr.msk.f32.vlgmr.msra.gmra.mxu1 %vm795_vm0, %v2744_v11  ;;  %v1555_v53 = vadd.f32 %v1523_v51, %v1486_v46  ;;  %v11286_v8 = vmul.f32 %v10833_v61, %v11144_v10  ;;  %v1288_v5 = vmul.f32 %v10849_v12, %v11142_v42 }
 0x101   : > { %v11292_v29 = vmul.f32 %v10849_v12, %v11144_v10  ;;  %v2642_v6 = vmul.f32 %v11027_v28, %v2603_v27  ;;  %v2521_v34 = vrot.slane %v2406_v63, 2  ;;  %v1524_v25 = vmul.f32 %v10899_v41, %v11225_v33  ;;  %v3223_v27 = vld [vmem:[%s16344_s27] sm:$0xff] }
 0x102   : > { %v1159_v62 = vrot.slane %v1042_v35, 1  ;;  %v1800_v36 = vadd.f32 %v1718_v3, %v1555_v53  ;;  %v1160_v9 = vrot.slane %v11286_v8, 1  ;;  %v1405_v40 = vrot.slane %v1288_v5, 2 }
 0x103   : > { %v1406_v52 = vrot.slane %v11292_v29, 2  ;;  %v2681_v24 = vadd.f32 %v11043_v16, %v2642_v6  ;;  %v1603_v42 = vmul.f32 %v10909_v59, %v11225_v33  ;;  %v11304_v13 = vmul.f32 %v10909_v59, %v11232_v44 }
 0x104   : > { %v1848_v7 = vmul.f32 %v10920_v0, %v11225_v33  ;;  %v2045_v56 = vadd.f32 %v1963_v43, %v1800_v36  ;;  %v1161_v14 = vsel %vm1108_vm2, %v1159_v62, %v1160_v9  ;;  %v11312_v4 = vmul.f32 %v10920_v0, %v11232_v44  ;;  %v3224_v43 = vld [vmem:[%s16344_s27 + $0x8] sm:$0xff] }
 0x105   : > { %v1407_v20 = vsel %vm1354_vm3, %v1405_v40, %v1406_v52  ;;  %v2713_v51 = vmax.f32 %v2681_v24, 0.0  ;;  %v1241_v38 = vadd.f32 %v1161_v14, %v963_v31  ;;  %v1719_v55 = vrot.slane %v1603_v42, 1  ;;  %9525 = vmatprep.subr.mxu1 %v3224_v43 }
 0x106   : > { %v1720_v37 = vrot.slane %v11304_v13, 1  ;;  %v2114_v45 = vadd.f32 %v2082_v19, %v2045_v56  ;;  %v2522_v50 = vsel %vm1354_vm3, %v2519_v15, %v2521_v34  ;;  %v1964_v49 = vrot.slane %v1848_v7, 2  ;;  %9526 = vmatpush3.msra.mxu1 %v3224_v43 }
 0x107   : > { %v1965_v22 = vrot.slane %v11312_v4, 2  ;;  %v2745_v26 = vmin.f32 %v2713_v51, 6.0  ;;  %v1487_v48 = vadd.f32 %v1407_v20, %v1241_v38  ;;  %v2083_v30 = vmul.f32 %v10948_v32, %v11316_v17  ;;  %9527 = vmatprep.subr.mxu1 %v3223_v27  ;;  %v11362_v20 = vld [vmem:[#allocation2 + $0x130] sm:$0x3] }
 0x108   : > { %v2162_v47 = vmul.f32 %v10955_v58, %v11316_v17  ;;  %v2359_v21 = vadd.f32 %v2277_v57, %v2114_v45  ;;  %v1721_v19 = vsel %vm1108_vm2, %v1719_v55, %v1720_v37  ;;  %v2163_v15 = vmul.f32 %v10955_v58, %v11319_v23  ;;  %9528 = vmatpush3.msra.mxu1 %v3223_v27 }
 0x109   : > { %v2407_v54 = vmul.f32 %v10965_v18, %v11316_v17  ;;  %9504 = vmatprep.mubr.msk.f32.mxu1 %vm795_vm0, %v2745_v26  ;;  %v1556_v63 = vadd.f32 %v1524_v25, %v1487_v48  ;;  %v1966_v11 = vsel %vm1354_vm3, %v1964_v49, %v1965_v22  ;;  %v11334_v3 = vmul.f32 %v10965_v18, %v11319_v23 }
 0x10a   : > { %v2278_v46 = vrot.slane %v2162_v47, 1  ;;  %v2604_v57 = vadd.f32 %v2522_v50, %v2359_v21  ;;  %v2279_v31 = vrot.slane %v2163_v15, 1  ;;  %v1044_v53 = vmul.f32 %v10833_v61, %v11181_v60 }
 0x10b   : > { %v2523_v35 = vrot.slane %v2407_v54, 2  ;;  %v1801_v8 = vadd.f32 %v1721_v19, %v1556_v63  ;;  %v2524_v5 = vrot.slane %v11334_v3, 2  ;;  %v964_v29 = vmul.f32 %v10842_v2, %v11144_v10 }
 0x10c   : > { %v1290_v6 = vmul.f32 %v10849_v12, %v11181_v60  ;;  %v2643_v34 = vmul.f32 %v11027_v28, %v2604_v57  ;;  %v1162_v62 = vrot.slane %v1044_v53, 1  ;;  %v1525_v25 = vmul.f32 %v10899_v41, %v11232_v44 }
 0x10d   : > { %v1605_v36 = vmul.f32 %v10909_v59, %v11264_v39  ;;  %v2046_v40 = vadd.f32 %v1966_v11, %v1801_v8  ;;  %v2280_v24 = vsel %vm1108_vm2, %v2278_v46, %v2279_v31  ;;  %v1850_v10 = vmul.f32 %v10920_v0, %v11264_v39 }
 0x10e   : > { %v1408_v42 = vrot.slane %v1290_v6, 2  ;;  %v2682_v60 = vadd.f32 %v11043_v16, %v2643_v34  ;;  %v2525_v13 = vsel %vm1354_vm3, %v2523_v35, %v2524_v5  ;;  %v1163_v7 = vsel %vm1108_vm2, %v1160_v9, %v1162_v62 }
 0x10f   : > { %v1722_v56 = vrot.slane %v1605_v36, 1  ;;  %v2115_v14 = vadd.f32 %v2083_v30, %v2046_v40  ;;  %v1242_v4 = vadd.f32 %v1163_v7, %v964_v29  ;;  %v1967_v38 = vrot.slane %v1850_v10, 2  ;;  %v11413_v7 = vld [vmem:[#allocation2 + $0x140] sm:$0xff] }
 0x110   : > { %v1409_v51 = vsel %vm1354_vm3, %v1406_v52, %v1408_v42  ;;  %v2714_v55 = vmax.f32 %v2682_v60, 0.0  ;;  %v2084_v45 = vmul.f32 %v10948_v32, %v11319_v23  ;;  %v2164_v50 = vmul.f32 %v10955_v58, %v11362_v20  ;;  %v11406_v42 = vld [vmem:[#allocation2 + $0x138] sm:$0xff] }
 0x111   : > { %v2409_v49 = vmul.f32 %v10965_v18, %v11362_v20  ;;  %v2360_v26 = vadd.f32 %v2280_v24, %v2115_v14  ;;  %v1488_v9 = vadd.f32 %v1409_v51, %v1242_v4  ;;  %v1723_v48 = vsel %vm1108_vm2, %v1720_v37, %v1722_v56 }
 0x112   : > { %v1968_v30 = vsel %vm1354_vm3, %v1965_v22, %v1967_v38  ;;  %v2746_v47 = vmin.f32 %v2714_v55, 6.0  ;;  %v2281_v21 = vrot.slane %v2164_v50, 1  ;;  %v965_v52 = vmul.f32 %v10842_v2, %v11225_v33 }
 0x113   : > { %v1045_v19 = vmul.f32 %v10833_v61, %v11225_v33  ;;  %v2605_v15 = vadd.f32 %v2525_v13, %v2360_v26  ;;  %v1557_v54 = vadd.f32 %v1525_v25, %v1488_v9  ;;  %v11379_v63 = vmul.f32 %v10833_v61, %v11232_v44 }
 0x114   : > { %v1291_v11 = vmul.f32 %v10849_v12, %v11225_v33  ;;  %9505 = vmatmul.mubr.msk.f32.gmra.mxu1 %vm795_vm0, %v2746_v47  ;;  %v2282_v37 = vsel %vm1108_vm2, %v2279_v31, %v2281_v21  ;;  %v2526_v22 = vrot.slane %v2409_v49, 2  ;;  %v11387_v2 = vmul.f32 %v10849_v12, %v11232_v44 }
 0x115   : > { %v1164_v46 = vrot.slane %v1045_v19, 1  ;;  %v2644_v43 = vmul.f32 %v11027_v28, %v2605_v15  ;;  %v1802_v27 = vadd.f32 %v1723_v48, %v1557_v54  ;;  %v1165_v57 = vrot.slane %v11379_v63, 1  ;;  %v11434_v19 = vld [vmem:[%s16341_s26 + $0x1] ss:$0 sm:$0xff] }
 0x116   : > { %v1410_v61 = vrot.slane %v1291_v11, 2  ;;  %v1411_v35 = vrot.slane %v11387_v2, 2  ;;  %v1526_v33 = vmul.f32 %v10899_v41, %v11316_v17  ;;  %v1606_v31 = vmul.f32 %v10909_v59, %v11316_v17  ;;  %v11443_v11 = vld [vmem:[%s16341_s26] ss:$0 sm:$0xff] }
 0x117   : > { %v11398_v53 = vmul.f32 %v10909_v59, %v11319_v23  ;;  %v2683_v12 = vadd.f32 %v11043_v16, %v2644_v43  ;;  %v2047_v8 = vadd.f32 %v1968_v30, %v1802_v27  ;;  %v1166_v29 = vsel %vm1108_vm2, %v1164_v46, %v1165_v57 }
 0x118   : > { %v1851_v6 = vmul.f32 %v10920_v0, %v11316_v17  ;;  %v1243_v34 = vadd.f32 %v1166_v29, %v965_v52  ;;  %v1412_v62 = vsel %vm1354_vm3, %v1410_v61, %v1411_v35  ;;  %v1724_v25 = vrot.slane %v1606_v31, 1  ;;  %v11462_v31 = vld [vmem:[#allocation2 + $0x148] sm:$0x3] }
 0x119   : > { %v1725_v36 = vrot.slane %v11398_v53, 1  ;;  %v2715_v40 = vmax.f32 %v2683_v12, 0.0  ;;  %v2116_v24 = vadd.f32 %v2084_v45, %v2047_v8  ;;  %v1852_v10 = vmul.f32 %v10920_v0, %v11319_v23 }
 0x11a   : > { %v1969_v60 = vrot.slane %v1851_v6, 2  ;;  %v2527_v13 = vsel %vm1354_vm3, %v2524_v5, %v2526_v22  ;;  %v1489_v56 = vadd.f32 %v1412_v62, %v1243_v34  ;;  %v2165_v4 = vmul.f32 %v10955_v58, %v11406_v42  ;;  %v11450_v22 = vld [vmem:[%s16341_s26 + $0x2] ss:$0 sm:$0xff] }
 0x11b   : > { %v1726_v14 = vsel %vm1108_vm2, %v1724_v25, %v1725_v36  ;;  %v2747_v51 = vmin.f32 %v2715_v40, 6.0  ;;  %v2361_v38 = vadd.f32 %v2282_v37, %v2116_v24  ;;  %v1970_v55 = vrot.slane %v1852_v10, 2 }
 0x11c   : > { %v2166_v45 = vmul.f32 %v10955_v58, %v11413_v7  ;;  %v1558_v50 = vadd.f32 %v1526_v33, %v1489_v56  ;;  %v2283_v49 = vrot.slane %v2165_v4, 1  ;;  %v2410_v3 = vmul.f32 %v10965_v18, %v11406_v42 }
 0x11d   : > { %v11424_v5 = vmul.f32 %v10965_v18, %v11413_v7  ;;  %9507 = vmatprep.mubr.msk.f32.mxu1 %vm795_vm0, %v2747_v51  ;;  %v2606_v26 = vadd.f32 %v2527_v13, %v2361_v38  ;;  %v1971_v9 = vsel %vm1354_vm3, %v1969_v60, %v1970_v55  ;;  %v2085_v48 = vmul.f32 %v10948_v32, %v11406_v42 }
 0x11e   : > { %v2284_v30 = vrot.slane %v2166_v45, 1  ;;  %v1803_v47 = vadd.f32 %v1726_v14, %v1558_v50  ;;  %v2528_v21 = vrot.slane %v2410_v3, 2  ;;  %v1047_v15 = vmul.f32 %v11434_v19, %v11264_v39  ;;  %v11496_v3 = vld [vmem:[%s16341_s26 + $0x3] ss:$0 sm:$0xff] }
 0x11f   : > { %v2529_v52 = vrot.slane %v11424_v5, 2  ;;  %v2645_v54 = vmul.f32 %v11027_v28, %v2606_v26  ;;  %v966_v37 = vmul.f32 %v11443_v11, %v11232_v44  ;;  %v1293_v46 = vmul.f32 %v11450_v22, %v11264_v39 }
 0x120   : > { %v2285_v63 = vsel %vm1108_vm2, %v2283_v49, %v2284_v30  ;;  %v2048_v2 = vadd.f32 %v1971_v9, %v1803_v47  ;;  %v1167_v43 = vrot.slane %v1047_v15, 1  ;;  %v1527_v27 = vmul.f32 %v10899_v41, %v11319_v23 }
 0x121   : > { %v1608_v61 = vmul.f32 %v10909_v59, %v11362_v20  ;;  %v2684_v33 = vadd.f32 %v11043_v16, %v2645_v54  ;;  %v2530_v44 = vsel %vm1354_vm3, %v2528_v21, %v2529_v52  ;;  %v1413_v53 = vrot.slane %v1293_v46, 2  ;;  %v11506_v21 = vld [vmem:[%s16341_s26 + $0x4] ss:$0 sm:$0xff] }
 0x122   : > { %v1853_v39 = vmul.f32 %v10920_v0, %v11362_v20  ;;  %v2117_v12 = vadd.f32 %v2085_v48, %v2048_v2  ;;  %v1168_v8 = vsel %vm1108_vm2, %v1165_v57, %v1167_v43  ;;  %v2167_v41 = vmul.f32 %v10955_v58, %v11462_v31 }
 0x123   : > { %v1727_v29 = vrot.slane %v1608_v61, 1  ;;  %v2716_v59 = vmax.f32 %v2684_v33, 0.0  ;;  %v1244_v6 = vadd.f32 %v1168_v8, %v966_v37  ;;  %v1414_v34 = vsel %vm1354_vm3, %v1411_v35, %v1413_v53  ;;  %v11529_v8 = vld [vmem:[#allocation2 + $0x150] sm:$0xff] }
 0x124   : > { %v1972_v62 = vrot.slane %v1853_v39, 2  ;;  %v2362_v25 = vadd.f32 %v2285_v63, %v2117_v12  ;;  %v2086_v40 = vmul.f32 %v10948_v32, %v11413_v7  ;;  %v2286_v24 = vrot.slane %v2167_v41, 1  ;;  %v11517_v63 = vld [vmem:[%s16341_s26 + $0x5] ss:$0 sm:$0xff] }
 0x125   : > { %v2412_v0 = vmul.f32 %v10965_v18, %v11462_v31  ;;  %v2748_v10 = vmin.f32 %v2716_v59, 6.0  ;;  %v1490_v60 = vadd.f32 %v1414_v34, %v1244_v6  ;;  %v1728_v57 = vsel %vm1108_vm2, %v1725_v36, %v1727_v29  ;;  %v11531_v6 = vld [vmem:[#allocation2 + $0x158] sm:$0xff] }
 0x126   : > { %v1973_v13 = vsel %vm1354_vm3, %v1970_v55, %v1972_v62  ;;  %v2607_v56 = vadd.f32 %v2530_v44, %v2362_v25  ;;  %v2287_v14 = vsel %vm1108_vm2, %v2284_v30, %v2286_v24  ;;  %v967_v35 = vmul.f32 %v11443_v11, %v11316_v17 }
 0x127   : > { %v1048_v4 = vmul.f32 %v11434_v19, %v11316_v17  ;;  %9508 = vmatmul.mubr.msk.f32.gmra.mxu1 %vm795_vm0, %v2748_v10  ;;  %v1559_v51 = vadd.f32 %v1527_v27, %v1490_v60  ;;  %v11484_v38 = vmul.f32 %v11434_v19, %v11319_v23  ;;  %v1294_v36 = vmul.f32 %v11450_v22, %v11316_v17 }
 0x128   : > { %v11490_v55 = vmul.f32 %v11450_v22, %v11319_v23  ;;  %v2646_v45 = vmul.f32 %v11027_v28, %v2607_v56  ;;  %v2531_v50 = vrot.slane %v2412_v0, 2  ;;  %v1528_v26 = vmul.f32 %v11496_v3, %v11406_v42 }
 0x129   : > { %v1169_v49 = vrot.slane %v1048_v4, 1  ;;  %v1804_v9 = vadd.f32 %v1728_v57, %v1559_v51  ;;  %v1170_v48 = vrot.slane %v11484_v38, 1  ;;  %v1415_v17 = vrot.slane %v1294_v36, 2 }
 0x12a   : > { %v1416_v30 = vrot.slane %v11490_v55, 2  ;;  %v2685_v47 = vadd.f32 %v11043_v16, %v2646_v45  ;;  %v1609_v15 = vmul.f32 %v11506_v21, %v11406_v42  ;;  %v11512_v54 = vmul.f32 %v11506_v21, %v11413_v7 }
 0x12b   : > { %v1854_v37 = vmul.f32 %v11517_v63, %v11406_v42  ;;  %v2049_v46 = vadd.f32 %v1973_v13, %v1804_v9  ;;  %v1171_v2 = vsel %vm1108_vm2, %v1169_v49, %v1170_v48  ;;  %v1855_v27 = vmul.f32 %v11517_v63, %v11413_v7 }
 0x12c   : > { %v1417_v43 = vsel %vm1354_vm3, %v1415_v17, %v1416_v30  ;;  %v2717_v61 = vmax.f32 %v2685_v47, 0.0  ;;  %v1245_v33 = vadd.f32 %v1171_v2, %v967_v35  ;;  %v1729_v44 = vrot.slane %v1609_v15, 1 }
 0x12d   : > { %v1730_v53 = vrot.slane %v11512_v54, 1  ;;  %v2118_v39 = vadd.f32 %v2086_v40, %v2049_v46  ;;  %v2532_v12 = vsel %vm1354_vm3, %v2529_v52, %v2531_v50  ;;  %v1974_v29 = vrot.slane %v1854_v37, 2  ;;  %v11573_v54 = vld [vmem:[#allocation2 + $0x160] sm:$0x3] }
 0x12e   : > { %v1975_v41 = vrot.slane %v1855_v27, 2  ;;  %v2749_v59 = vmin.f32 %v2717_v61, 6.0  ;;  %v1491_v34 = vadd.f32 %v1417_v43, %v1245_v33  ;;  %v2087_v62 = vmul.f32 %v10948_v32, %v11529_v8  ;;  %v11547_v32 = vld [vmem:[%s16341_s26 + $0x8] ss:$0 sm:$0xff]  ;;  %v11579_v27 = vld [vmem:[%s16341_s26 + $0x6] ss:$0 sm:$0xff] }
 0x12f   : > { %v2168_v25 = vmul.f32 %v10955_v58, %v11529_v8  ;;  %v2363_v24 = vadd.f32 %v2287_v14, %v2118_v39  ;;  %v1731_v40 = vsel %vm1108_vm2, %v1729_v44, %v1730_v53  ;;  %v2169_v5 = vmul.f32 %v10955_v58, %v11531_v6 }
 0x130   : > { %v2413_v52 = vmul.f32 %v10965_v18, %v11529_v8  ;;  %9510 = vmatprep.mubr.msk.f32.mxu1 %vm795_vm0, %v2749_v59  ;;  %v1560_v0 = vadd.f32 %v1528_v26, %v1491_v34  ;;  %v1976_v10 = vsel %vm1354_vm3, %v1974_v29, %v1975_v41  ;;  %v11551_v57 = vmul.f32 %v11547_v32, %v11531_v6 }
 0x131   : > { %v2288_v60 = vrot.slane %v2168_v25, 1  ;;  %v2608_v13 = vadd.f32 %v2532_v12, %v2363_v24  ;;  %v2289_v58 = vrot.slane %v2169_v5, 1  ;;  %v1050_v18 = vmul.f32 %v11434_v19, %v11362_v20 }
 0x132   : > { %v2533_v56 = vrot.slane %v2413_v52, 2  ;;  %v1805_v14 = vadd.f32 %v1731_v40, %v1560_v0  ;;  %v2534_v35 = vrot.slane %v11551_v57, 2  ;;  %v968_v4 = vmul.f32 %v11443_v11, %v11319_v23 }
 0x133   : > { %v1296_v51 = vmul.f32 %v11450_v22, %v11362_v20  ;;  %v2647_v38 = vmul.f32 %v11027_v28, %v2608_v13  ;;  %v1172_v36 = vrot.slane %v1050_v18, 1  ;;  %v1529_v55 = vmul.f32 %v11496_v3, %v11413_v7 }
 0x134   : > { %v1611_v45 = vmul.f32 %v11506_v21, %v11462_v31  ;;  %v2050_v50 = vadd.f32 %v1976_v10, %v1805_v14  ;;  %v2290_v49 = vsel %vm1108_vm2, %v2288_v60, %v2289_v58  ;;  %v1856_v9 = vmul.f32 %v11517_v63, %v11462_v31 }
 0x135   : > { %v1418_v26 = vrot.slane %v1296_v51, 2  ;;  %v2686_v23 = vadd.f32 %v11043_v16, %v2647_v38  ;;  %v2535_v20 = vsel %vm1354_vm3, %v2533_v56, %v2534_v35  ;;  %v1173_v17 = vsel %vm1108_vm2, %v1170_v48, %v1172_v36  ;;  %v11586_v48 = vld [vmem:[%s16341_s26 + $0x7] ss:$0 sm:$0xff] }
 0x136   : > { %v1732_v47 = vrot.slane %v1611_v45, 1  ;;  %v2119_v15 = vadd.f32 %v2087_v62, %v2050_v50  ;;  %v1246_v37 = vadd.f32 %v1173_v17, %v968_v4  ;;  %v1977_v2 = vrot.slane %v1856_v9, 2 }
 0x137   : > { %v1419_v46 = vsel %vm1354_vm3, %v1416_v30, %v1418_v26  ;;  %v2718_v43 = vmax.f32 %v2686_v23, 0.0  ;;  %v2088_v61 = vmul.f32 %v11579_v27, %v11531_v6  ;;  %v2170_v33 = vmul.f32 %v11586_v48, %v11573_v54  ;;  %v11627_v23 = vld [vmem:[#allocation2 + $0x168] sm:$0xff] }
 0x138   : > { %v2415_v30 = vmul.f32 %v11547_v32, %v11573_v54  ;;  %v2364_v44 = vadd.f32 %v2290_v49, %v2119_v15  ;;  %v1492_v39 = vadd.f32 %v1419_v46, %v1246_v37  ;;  %v1733_v12 = vsel %vm1108_vm2, %v1730_v53, %v1732_v47  ;;  %v11634_v47 = vld [vmem:[#allocation2 + $0x170] sm:$0xff] }
 0x139   : > { %v1978_v29 = vsel %vm1354_vm3, %v1975_v41, %v1977_v2  ;;  %v2750_v59 = vmin.f32 %v2718_v43, 6.0  ;;  %v2291_v34 = vrot.slane %v2170_v33, 1  ;;  %v969_v62 = vmul.f32 %v11443_v11, %v11406_v42 }
 0x13a   : > { %v1051_v25 = vmul.f32 %v11434_v19, %v11406_v42  ;;  %v2609_v24 = vadd.f32 %v2535_v20, %v2364_v44  ;;  %v1561_v40 = vadd.f32 %v1529_v55, %v1492_v39  ;;  %v11600_v5 = vmul.f32 %v11434_v19, %v11413_v7 }
 0x13b   : > { %v1297_v52 = vmul.f32 %v11450_v22, %v11406_v42  ;;  %9511 = vmatmul.mubr.msk.f32.gmra.mxu1 %vm795_vm0, %v2750_v59  ;;  %v2292_v53 = vsel %vm1108_vm2, %v2289_v58, %v2291_v34  ;;  %v2536_v41 = vrot.slane %v2415_v30, 2  ;;  %v11608_v10 = vmul.f32 %v11450_v22, %v11413_v7 }
 0x13c   : > { %v1174_v0 = vrot.slane %v1051_v25, 1  ;;  %v2648_v60 = vmul.f32 %v11027_v28, %v2609_v24  ;;  %v1806_v13 = vadd.f32 %v1733_v12, %v1561_v40  ;;  %v1175_v56 = vrot.slane %v11600_v5, 1  ;;  %v11657_v40 = vld [vmem:[%s16342_s9] ss:$0 sm:$0xff] }
 0x13d   : > { %v1420_v18 = vrot.slane %v1297_v52, 2  ;;  %v1421_v14 = vrot.slane %v11608_v10, 2  ;;  %v1530_v42 = vmul.f32 %v11496_v3, %v11529_v8  ;;  %v1612_v58 = vmul.f32 %v11506_v21, %v11529_v8 }
 0x13e   : > { %v11619_v4 = vmul.f32 %v11506_v21, %v11531_v6  ;;  %v2687_v51 = vadd.f32 %v11043_v16, %v2648_v60  ;;  %v2051_v38 = vadd.f32 %v1978_v29, %v1806_v13  ;;  %v1176_v28 = vsel %vm1108_vm2, %v1174_v0, %v1175_v56 }
 0x13f   : > { %v1857_v36 = vmul.f32 %v11517_v63, %v11529_v8  ;;  %v1247_v55 = vadd.f32 %v1176_v28, %v969_v62  ;;  %v1422_v45 = vsel %vm1354_vm3, %v1420_v18, %v1421_v14  ;;  %v1734_v50 = vrot.slane %v1612_v58, 1  ;;  %v11672_v18 = vld [vmem:[%s16343_s8] ss:$0 sm:$0xff]  ;;  %s16379_s8 = sld [smem:[#allocation55_spill]] }
 0x140   : > { %v1735_v49 = vrot.slane %v11619_v4, 1  ;;  %v2719_v26 = vmax.f32 %v2687_v51, 0.0  ;;  %v2120_v9 = vadd.f32 %v2088_v61, %v2051_v38  ;;  %v1858_v20 = vmul.f32 %v11517_v63, %v11531_v6 }
 0x141   : > { %v1979_v16 = vrot.slane %v1857_v36, 2  ;;  %v2537_v17 = vsel %vm1354_vm3, %v2534_v35, %v2536_v41  ;;  %v1493_v15 = vadd.f32 %v1422_v45, %v1247_v55  ;;  %v2171_v46 = vmul.f32 %v11586_v48, %v11627_v23 }
 0x142   : > { %v1736_v37 = vsel %vm1108_vm2, %v1734_v50, %v1735_v49  ;;  %v2751_v2 = vmin.f32 %v2719_v26, 6.0  ;;  %v2365_v43 = vadd.f32 %v2292_v53, %v2120_v9  ;;  %v1980_v61 = vrot.slane %v1858_v20, 2 }
 0x143   : > { %v2172_v33 = vmul.f32 %v11586_v48, %v11634_v47  ;;  %v1562_v30 = vadd.f32 %v1530_v42, %v1493_v15  ;;  %v2293_v44 = vrot.slane %v2171_v46, 1  ;;  %v2416_v57 = vmul.f32 %v11547_v32, %v11627_v23 }
 0x144   : > { %v11645_v35 = vmul.f32 %v11547_v32, %v11634_v47  ;;  %9513 = vmatprep.mubr.msk.f32.mxu1 %vm795_vm0, %v2751_v2  ;;  %v2610_v39 = vadd.f32 %v2537_v17, %v2365_v43  ;;  %v1981_v12 = vsel %vm1354_vm3, %v1979_v16, %v1980_v61  ;;  %v2089_v29 = vmul.f32 %v11579_v27, %v11627_v23 }
 0x145   : > { %v2294_v59 = vrot.slane %v2172_v33, 1  ;;  %v1807_v34 = vadd.f32 %v1736_v37, %v1562_v30  ;;  %v2538_v62 = vrot.slane %v2416_v57, 2  ;;  %v1053_v24 = vmul.f32 %v11434_v19, %v11462_v31 }
 0x146   : > { %v2539_v25 = vrot.slane %v11645_v35, 2  ;;  %v2649_v5 = vmul.f32 %v11657_v40, %v2610_v39  ;;  %v970_v53 = vmul.f32 %v11443_v11, %v11413_v7  ;;  %v1299_v41 = vmul.f32 %v11450_v22, %v11462_v31  ;;  %v11678_v31 = vld [vmem:[#allocation2 + $0x178] sm:$0x3] }
 0x147   : > { %v2295_v52 = vsel %vm1108_vm2, %v2293_v44, %v2294_v59  ;;  %v2052_v0 = vadd.f32 %v1981_v12, %v1807_v34  ;;  %v1177_v10 = vrot.slane %v1053_v24, 1  ;;  %v1531_v60 = vmul.f32 %v11496_v3, %v11531_v6 }
 0x148   : > { %v1614_v13 = vmul.f32 %v11506_v21, %v11573_v54  ;;  %v2688_v42 = vadd.f32 %v11672_v18, %v2649_v5  ;;  %v2540_v7 = vsel %vm1354_vm3, %v2538_v62, %v2539_v25  ;;  %v1423_v58 = vrot.slane %v1299_v41, 2 }
 0x149   : > { %v1859_v4 = vmul.f32 %v11517_v63, %v11573_v54  ;;  %v2121_v51 = vadd.f32 %v2089_v29, %v2052_v0  ;;  %v1178_v38 = vsel %vm1108_vm2, %v1175_v56, %v1177_v10  ;;  %v2173_v36 = vmul.f32 %v11586_v48, %v11678_v31 }
 0x14a   : > { %v1737_v28 = vrot.slane %v1614_v13, 1  ;;  %v2720_v55 = vmax.f32 %v2688_v42, 0.0  ;;  %v1248_v45 = vadd.f32 %v1178_v38, %v970_v53  ;;  %v1424_v50 = vsel %vm1354_vm3, %v1421_v14, %v1423_v58  ;;  %v11724_v38 = vld [vmem:[#allocation2 + $0x180] sm:$0xff] }
 0x14b   : > { %v1982_v26 = vrot.slane %v1859_v4, 2  ;;  %v2366_v9 = vadd.f32 %v2295_v52, %v2121_v51  ;;  %v2090_v20 = vmul.f32 %v11579_v27, %v11634_v47  ;;  %v2296_v16 = vrot.slane %v2173_v36, 1 }
 0x14c   : > { %v2418_v17 = vmul.f32 %v11547_v32, %v11678_v31  ;;  %v2752_v15 = vmin.f32 %v2720_v55, 6.0  ;;  %v1494_v37 = vadd.f32 %v1424_v50, %v1248_v45  ;;  %v1738_v56 = vsel %vm1108_vm2, %v1735_v49, %v1737_v28  ;;  %v11726_v45 = vld [vmem:[#allocation2 + $0x188] sm:$0xff] }
 0x14d   : > { %v1983_v46 = vsel %vm1354_vm3, %v1980_v61, %v1982_v26  ;;  %v2611_v2 = vadd.f32 %v2540_v7, %v2366_v9  ;;  %v2297_v43 = vsel %vm1108_vm2, %v2294_v59, %v2296_v16  ;;  %v971_v14 = vmul.f32 %v11443_v11, %v11529_v8 }
 0x14e   : > { %v1054_v33 = vmul.f32 %v11434_v19, %v11529_v8  ;;  %9514 = vmatmul.mubr.msk.f32.gmra.mxu1 %vm795_vm0, %v2752_v15  ;;  %v1563_v30 = vadd.f32 %v1531_v60, %v1494_v37  ;;  %v1055_v44 = vmul.f32 %v11434_v19, %v11531_v6  ;;  %v1300_v49 = vmul.f32 %v11450_v22, %v11529_v8 }
 0x14f   : > { %v11704_v61 = vmul.f32 %v11450_v22, %v11531_v6  ;;  %v2650_v57 = vmul.f32 %v11657_v40, %v2611_v2  ;;  %v2541_v39 = vrot.slane %v2418_v17, 2  ;;  %v1532_v29 = vmul.f32 %v11496_v3, %v11627_v23 }
 0x150   : > { %v1179_v12 = vrot.slane %v1054_v33, 1  ;;  %v1808_v59 = vadd.f32 %v1738_v56, %v1563_v30  ;;  %v1180_v34 = vrot.slane %v1055_v44, 1  ;;  %v1425_v62 = vrot.slane %v1300_v49, 2 }
 0x151   : > { %v1426_v24 = vrot.slane %v11704_v61, 2  ;;  %v2689_v5 = vadd.f32 %v11672_v18, %v2650_v57  ;;  %v1615_v8 = vmul.f32 %v11506_v21, %v11627_v23  ;;  %v1616_v52 = vmul.f32 %v11506_v21, %v11634_v47 }
 0x152   : > { %v1860_v53 = vmul.f32 %v11517_v63, %v11627_v23  ;;  %v2053_v41 = vadd.f32 %v1983_v46, %v1808_v59  ;;  %v1181_v0 = vsel %vm1108_vm2, %v1179_v12, %v1180_v34  ;;  %v1861_v60 = vmul.f32 %v11517_v63, %v11634_v47 }
 0x153   : > { %v1427_v10 = vsel %vm1354_vm3, %v1425_v62, %v1426_v24  ;;  %v2721_v13 = vmax.f32 %v2689_v5, 0.0  ;;  %v1249_v42 = vadd.f32 %v1181_v0, %v971_v14  ;;  %v1739_v7 = vrot.slane %v1615_v8, 1 }
 0x154   : > { %v1740_v58 = vrot.slane %v1616_v52, 1  ;;  %v2122_v4 = vadd.f32 %v2090_v20, %v2053_v41  ;;  %v2542_v51 = vsel %vm1354_vm3, %v2539_v25, %v2541_v39  ;;  %v1984_v28 = vrot.slane %v1860_v53, 2  ;;  %v11763_v41 = vld [vmem:[#allocation2 + $0x190] sm:$0x3] }
 0x155   : > { %v1985_v36 = vrot.slane %v1861_v60, 2  ;;  %v2753_v55 = vmin.f32 %v2721_v13, 6.0  ;;  %v1495_v50 = vadd.f32 %v1427_v10, %v1249_v42  ;;  %v2091_v26 = vmul.f32 %v11579_v27, %v11724_v38 }
 0x156   : > { %v2174_v9 = vmul.f32 %v11586_v48, %v11724_v38  ;;  %v2367_v16 = vadd.f32 %v2297_v43, %v2122_v4  ;;  %v1741_v20 = vsel %vm1108_vm2, %v1739_v7, %v1740_v58  ;;  %v2175_v35 = vmul.f32 %v11586_v48, %v11726_v45 }
 0x157   : > { %v2419_v25 = vmul.f32 %v11547_v32, %v11724_v38  ;;  %9516 = vmatprep.mubr.msk.f32.mxu1 %vm795_vm0, %v2753_v55  ;;  %v1564_v17 = vadd.f32 %v1532_v29, %v1495_v50  ;;  %v1986_v15 = vsel %vm1354_vm3, %v1984_v28, %v1985_v36  ;;  %v11741_v56 = vmul.f32 %v11547_v32, %v11726_v45 }
 0x158   : > { %v2298_v37 = vrot.slane %v2174_v9, 1  ;;  %v2612_v46 = vadd.f32 %v2542_v51, %v2367_v16  ;;  %v2299_v2 = vrot.slane %v2175_v35, 1  ;;  %v1056_v14 = vmul.f32 %v11434_v19, %v11573_v54 }
 0x159   : > { %v2543_v43 = vrot.slane %v2419_v25, 2  ;;  %v1809_v33 = vadd.f32 %v1741_v20, %v1564_v17  ;;  %v2544_v30 = vrot.slane %v11741_v56, 2  ;;  %v972_v44 = vmul.f32 %v11443_v11, %v11531_v6 }
 0x15a   : > { %v1302_v49 = vmul.f32 %v11450_v22, %v11573_v54  ;;  %v2651_v61 = vmul.f32 %v11657_v40, %v2612_v46  ;;  %v1182_v57 = vrot.slane %v1056_v14, 1  ;;  %v1533_v39 = vmul.f32 %v11496_v3, %v11634_v47 }
 0x15b   : > { %v1617_v12 = vmul.f32 %v11506_v21, %v11678_v31  ;;  %v2054_v29 = vadd.f32 %v1986_v15, %v1809_v33  ;;  %v2300_v59 = vsel %vm1108_vm2, %v2298_v37, %v2299_v2  ;;  %v1862_v5 = vmul.f32 %v11517_v63, %v11678_v31 }
 0x15c   : > { %v1428_v62 = vrot.slane %v1302_v49, 2  ;;  %v2690_v6 = vadd.f32 %v11672_v18, %v2651_v61  ;;  %v2545_v54 = vsel %vm1354_vm3, %v2543_v43, %v2544_v30  ;;  %v1183_v8 = vsel %vm1108_vm2, %v1180_v34, %v1182_v57 }
 0x15d   : > { %v1742_v52 = vrot.slane %v1617_v12, 1  ;;  %v2123_v53 = vadd.f32 %v2091_v26, %v2054_v29  ;;  %v1250_v0 = vadd.f32 %v1183_v8, %v972_v44  ;;  %v1987_v60 = vrot.slane %v1862_v5, 2 }
 0x15e   : > { %v1429_v10 = vsel %vm1354_vm3, %v1426_v24, %v1428_v62  ;;  %v2722_v13 = vmax.f32 %v2690_v6, 0.0  ;;  %v2092_v42 = vmul.f32 %v11579_v27, %v11726_v45  ;;  %v2176_v7 = vmul.f32 %v11586_v48, %v11763_v41  ;;  %v11809_v62 = vld [vmem:[#allocation2 + $0x1a0] sm:$0xff] }
 0x15f   : > { %v2421_v4 = vmul.f32 %v11547_v32, %v11763_v41  ;;  %v2368_v51 = vadd.f32 %v2300_v59, %v2123_v53  ;;  %v1496_v34 = vadd.f32 %v1429_v10, %v1250_v0  ;;  %v1743_v28 = vsel %vm1108_vm2, %v1740_v58, %v1742_v52  ;;  %v11784_v58 = vpop.f32.mrf.mxu0 }
 0x160   : > { %v1988_v55 = vsel %vm1354_vm3, %v1985_v36, %v1987_v60  ;;  %v2754_v50 = vmin.f32 %v2722_v13, 6.0  ;;  %v2301_v26 = vrot.slane %v2176_v7, 1  ;;  %v973_v24 = vmul.f32 %v11443_v11, %v11627_v23 }
 0x161   : > { %v1057_v9 = vmul.f32 %v11434_v19, %v11627_v23  ;;  %v2613_v16 = vadd.f32 %v2545_v54, %v2368_v51  ;;  %v1565_v20 = vadd.f32 %v1533_v39, %v1496_v34  ;;  %v11780_v35 = vmul.f32 %v11434_v19, %v11634_v47  ;;  %v935_v39 = vld [vmem:[#allocation2 + $0x198] sm:$0xff]  ;;  %v11807_v59 = vpop.f32.mrf.mxu0 }
 0x162   : > { %v1303_v25 = vmul.f32 %v11450_v22, %v11627_v23  ;;  %9517 = vmatmul.mubr.msk.f32.gmra.mxu1 %vm795_vm0, %v2754_v50  ;;  %v2302_v36 = vsel %vm1108_vm2, %v2299_v2, %v2301_v26  ;;  %v2546_v17 = vrot.slane %v2421_v4, 2  ;;  %v11790_v37 = vmul.f32 %v11450_v22, %v11634_v47 }
 0x163   : > { %v1184_v15 = vrot.slane %v1057_v9, 1  ;;  %v2652_v46 = vmul.f32 %v11657_v40, %v2613_v16  ;;  %v1810_v43 = vadd.f32 %v1743_v28, %v1565_v20  ;;  %v1185_v14 = vrot.slane %v11780_v35, 1  ;;  %v11815_v60 = vpop.f32.mrf.mxu0 }
 0x164   : > { %v1430_v33 = vrot.slane %v1303_v25, 2  ;;  %v1431_v23 = vrot.slane %v11790_v37, 2  ;;  %v1534_v44 = vmul.f32 %v11496_v3, %v11724_v38  ;;  %v1618_v2 = vmul.f32 %v11506_v21, %v11724_v38 }
 0x165   : > { %v11801_v49 = vmul.f32 %v11506_v21, %v11726_v45  ;;  %v2691_v61 = vadd.f32 %v11672_v18, %v2652_v46  ;;  %v2055_v57 = vadd.f32 %v1988_v55, %v1810_v43  ;;  %v1186_v12 = vsel %vm1108_vm2, %v1184_v15, %v1185_v14  ;;  %v2932_v16 = vpop.f32.mrf.mxu0 }
 0x166   : > { %v1863_v29 = vmul.f32 %v11517_v63, %v11724_v38  ;;  %v1251_v5 = vadd.f32 %v1186_v12, %v973_v24  ;;  %v1432_v6 = vsel %vm1354_vm3, %v1430_v33, %v1431_v23  ;;  %v1744_v54 = vrot.slane %v1618_v2, 1 }
 0x167   : > { %v1745_v8 = vrot.slane %v11801_v49, 1  ;;  %v2723_v52 = vmax.f32 %v2691_v61, 0.0  ;;  %v2124_v53 = vadd.f32 %v2092_v42, %v2055_v57  ;;  %v1864_v0 = vmul.f32 %v11517_v63, %v11726_v45  ;;  %v9485_v61 = vpop.f32.mrf.mxu0 }
 0x168   : > { %v1989_v10 = vrot.slane %v1863_v29, 2  ;;  %v2547_v38 = vsel %vm1354_vm3, %v2544_v30, %v2546_v17  ;;  %v1497_v13 = vadd.f32 %v1432_v6, %v1251_v5  ;;  %v2177_v4 = vmul.f32 %v11586_v48, %v935_v39 }
 0x169   : > { %v1746_v7 = vsel %vm1108_vm2, %v1744_v54, %v1745_v8  ;;  %v2755_v51 = vmin.f32 %v2723_v52, 6.0  ;;  %v2369_v34 = vadd.f32 %v2302_v36, %v2124_v53  ;;  %v1990_v28 = vrot.slane %v1864_v0, 2 }
 0x16a   : > { %v2178_v42 = vmul.f32 %v11586_v48, %v11809_v62  ;;  %v1566_v55 = vadd.f32 %v1534_v44, %v1497_v13  ;;  %v2422_v50 = vmul.f32 %v11547_v32, %v935_v39  ;;  %v2423_v26 = vmul.f32 %v11547_v32, %v11809_v62 }
 0x16b   : > { %9519 = vmatprep.mubr.msk.f32.mxu1 %vm795_vm0, %v2755_v51  ;;  %v2614_v56 = vadd.f32 %v2547_v38, %v2369_v34  ;;  %v1991_v30 = vsel %vm1354_vm3, %v1989_v10, %v1990_v28  ;;  %v2303_v24 = vrot.slane %v2177_v4, 1  ;;  %v2093_v35 = vmul.f32 %v11579_v27, %v935_v39 }
 0x16c   : > { %v2304_v9 = vrot.slane %v2178_v42, 1  ;;  %v1811_v20 = vadd.f32 %v1746_v7, %v1566_v55  ;;  %v974_v25 = vmul.f32 %v11443_v11, %v11634_v47  ;;  %v1059_v36 = vmul.f32 %v11434_v19, %v11678_v31  ;;  %v937_v11 = vld [vmem:[#allocation2 + $0x1a8] sm:$0x3]  ;;  %v11859_v7 = vld [vmem:[%s16345_s0] ss:$0 sm:$0xff]  ;;  %s755_s0 = sand.u32 1, %s9939_s2  }
 0x16d   : > { %v2653_v17 = vmul.f32 %v11657_v40, %v2614_v56  ;;  %v2548_v15 = vrot.slane %v2422_v50, 2  ;;  %v2549_v37 = vrot.slane %v2423_v26, 2  ;;  %v1305_v46 = vmul.f32 %v11450_v22, %v11678_v31  ;;  %s16168_s7 = scalar_lea.sflag [#allocation5], %s755_s0 }
 0x16e   : > { %v2056_v43 = vadd.f32 %v1991_v30, %v1811_v20  ;;  %v1187_v33 = vrot.slane %v1059_v36, 1  ;;  %v1620_v44 = vmul.f32 %v11506_v21, %v11763_v41  ;;  %v2305_v49 = vsel %vm1108_vm2, %v2303_v24, %v2304_v9 }
 0x16f   : > { %v2692_v2 = vadd.f32 %v11672_v18, %v2653_v17  ;;  %v1433_v47 = vrot.slane %v1305_v46, 2  ;;  %v1865_v19 = vmul.f32 %v11517_v63, %v11763_v41  ;;  %v1535_v22 = vmul.f32 %v11496_v3, %v11726_v45  ;;  %v2942_v41 = vpop.f32.mrf.mxu0 }
 0x170   : > { %v2125_v57 = vadd.f32 %v2093_v35, %v2056_v43  ;;  %v1188_v39 = vsel %vm1108_vm2, %v1185_v14, %v1187_v33  ;;  %v1747_v31 = vrot.slane %v1620_v44, 1  ;;  %v2550_v21 = vsel %vm1354_vm3, %v2548_v15, %v2549_v37 }
 0x171   : > { %v2724_v12 = vmax.f32 %v2692_v2, 0.0  ;;  %v1252_v29 = vadd.f32 %v1188_v39, %v974_v25  ;;  %v1434_v5 = vsel %vm1354_vm3, %v1431_v23, %v1433_v47  ;;  %v1992_v54 = vrot.slane %v1865_v19, 2 }
 0x172   : > { %v2370_v6 = vadd.f32 %v2305_v49, %v2125_v57  ;;  %v2179_v52 = vmul.f32 %v11586_v48, %v937_v11  ;;  %v1748_v14 = vsel %vm1108_vm2, %v1745_v8, %v1747_v31  ;;  %v2424_v10 = vmul.f32 %v11547_v32, %v937_v11  ;;  %v9488_v8 = vpop.f32.mrf.mxu0 }
 0x173   : > { %v2756_v53 = vmin.f32 %v2724_v12, 6.0  ;;  %v1498_v63 = vadd.f32 %v1434_v5, %v1252_v29  ;;  %v1993_v38 = vsel %vm1354_vm3, %v1990_v28, %v1992_v54  ;;  %v2094_v48 = vmul.f32 %v11579_v27, %v11809_v62  ;;  %v11868_v27 = vld [vmem:[%s16346_s1] ss:$0 sm:$0xff]  ;;  %s9073_s1 = sshll.u32 %s755_s0, 8 }
 0x174   : > { %v2615_v0 = vadd.f32 %v2550_v21, %v2370_v6  ;;  %v2306_v23 = vrot.slane %v2179_v52, 1  ;;  %v2551_v4 = vrot.slane %v2424_v10, 2  ;;  %v3088_v28 = vmul.f32 %v11859_v7, %v11807_v59  ;;  %v2952_v62 = vpop.f32.mrf.mxu0  ;;  %s16003_s3 = scalar_lea.vmem [#allocation4], %s9073_s1 }
 0x175   : > { %9520 = vmatmul.mubr.msk.f32.gmra.mxu1 %vm795_vm0, %v2756_v53  ;;  %v1567_v3 = vadd.f32 %v1535_v22, %v1498_v63  ;;  %v3089_v30 = vmul.f32 %v11784_v58, %v11859_v7  ;;  %v3090_v59 = vmul.f32 %v11859_v7, %v2932_v16  ;;  %v3092_v15 = vmul.f32 %v11859_v7, %v2942_v41  ;;  %s9007_s6 = sshll.u32 %s16003_s3, 4  ;;  %s16159_s6 = int_to_ptr.vmem [resolvable:$true] %s9007_s6 }
 0x176   : > { %v2654_v45 = vmul.f32 %v11657_v40, %v2615_v0  ;;  %v2307_v42 = vsel %vm1108_vm2, %v2304_v9, %v2306_v23  ;;  %v2552_v26 = vsel %vm1354_vm3, %v2549_v37, %v2551_v4  ;;  %v3127_v24 = vadd.f32 %v11868_v27, %v3088_v28  ;;  %v9491_v20 = vpop.f32.mrf.mxu0  ;;  %s9887_s1 = scalar_lea.vmem %s16159_s6, 4096 }
 0x177   : > { %v1812_v13 = vadd.f32 %v1748_v14, %v1567_v3  ;;  %v3128_v25 = vadd.f32 %v11868_v27, %v3089_v30  ;;  %v3129_v17 = vadd.f32 %v11868_v27, %v3090_v59  ;;  %v3091_v58 = vmul.f32 %v11815_v60, %v11859_v7  ;;  %p9888_p11 = scmp.ne.s32.totalorder %s16159_s6, %s9887_s1 }
 0x178   : > { %v2693_v32 = vadd.f32 %v11672_v18, %v2654_v45  ;;  %v3159_v36 = vmax.f32 %v3127_v24, 0.0  ;;  %v2962_v46 = vpop.f32.mrf.mxu0  ;;  %v3094_v2 = vmul.f32 %v11859_v7, %v2952_v62  ;;  %v3093_v47 = vmul.f32 %v9485_v61, %v11859_v7 }
 0x179   : > { %v2057_v51 = vadd.f32 %v1993_v38, %v1812_v13  ;;  %v3160_v33 = vmax.f32 %v3128_v25, 0.0  ;;  %v3161_v44 = vmax.f32 %v3129_v17, 0.0  ;;  %v3130_v11 = vadd.f32 %v11868_v27, %v3091_v58  ;;  %p9889_p12 = pnand %p9888_p11, %p10121_p5 }
 0x17a   : > { %v2725_v34 = vmax.f32 %v2693_v32, 0.0  ;;  %v11883_v16 = vmin.f32 %v3159_v36, 6.0  ;;  %v3133_v39 = vadd.f32 %v11868_v27, %v3094_v2  ;;  %v3096_v22 = vmul.f32 %v11859_v7, %v2962_v46 }
 0x17b   : > { %v2126_v55 = vadd.f32 %v2094_v48, %v2057_v51  ;;  %v11890_v60 = vmin.f32 %v3160_v33, 6.0  ;;  %v11892_v19 = vmin.f32 %v3161_v44, 6.0  ;;  %v3162_v31 = vmax.f32 %v3130_v11, 0.0  ;;  %p9890_p13 = pneg %p9889_p12 }
 0x17c   : > { %v2757_v50 = vmin.f32 %v2725_v34, 6.0  ;;  %16347 = vst [vmem:[#allocation12_spill] sm:$0xff] %v11883_v16  ;;  %v3132_v12 = vadd.f32 %v11868_v27, %v3093_v47  ;;  %v3095_v61 = vmul.f32 %v9488_v8, %v11859_v7  ;;  %v3165_v5 = vmax.f32 %v3133_v39, 0.0 }
 0x17d   : > { %v2371_v56 = vadd.f32 %v2307_v42, %v2126_v55  ;;  %16348 = vst [vmem:[#allocation13_spill] sm:$0xff] %v11890_v60  ;;  %16349 = vst [vmem:[#allocation14_spill] sm:$0xff] %v11892_v19  ;;  %v3135_v6 = vadd.f32 %v11868_v27, %v3096_v22  ;;  %v11908_v52 = vmin.f32 %v3162_v31, 6.0  ;;  %v3097_v41 = vmul.f32 %v9491_v20, %v11859_v7 }
 0x17e   : > { %9522 = vmatprep.mubr.msk.f32.mxu1 %vm795_vm0, %v2757_v50  ;;  %v3164_v53 = vmax.f32 %v3132_v12, 0.0  ;;  %v3134_v63 = vadd.f32 %v11868_v27, %v3095_v61  ;;  %v11914_v0 = vmin.f32 %v3165_v5, 6.0 }
 0x17f   : > { %v2616_v9 = vadd.f32 %v2552_v26, %v2371_v56  ;;  %16351 = vst [vmem:[#allocation16_spill] sm:$0xff] %v11908_v52  ;;  %v3167_v14 = vmax.f32 %v3135_v6, 0.0  ;;  %v3136_v38 = vadd.f32 %v11868_v27, %v3097_v41 }
 0x180   : > { %16352 = vst [vmem:[#allocation17_spill] sm:$0xff] %v11914_v0  ;;  %v11919_v3 = vmin.f32 %v3164_v53, 6.0  ;;  %v3166_v45 = vmax.f32 %v3134_v63, 0.0 }
 0x181   : > { %v2655_v35 = vmul.f32 %v11657_v40, %v2616_v9  ;;  %v3131_v40 = vadd.f32 %v11868_v27, %v3092_v15  ;;  %v11925_v13 = vmin.f32 %v3167_v14, 6.0  ;;  %v3168_v32 = vmax.f32 %v3136_v38, 0.0 }
 0x182   : > { %16353 = vst [vmem:[#allocation18_spill] sm:$0xff] %v11919_v3  ;;  %v11929_v8 = vmin.f32 %v3166_v45, 6.0 }
 0x183   : > { %v2694_v37 = vadd.f32 %v11672_v18, %v2655_v35  ;;  %v3163_v57 = vmax.f32 %v3131_v40, 0.0  ;;  %16354 = vst [vmem:[#allocation19_spill] sm:$0xff] %v11925_v13  ;;  %v11939_v28 = vmin.f32 %v3168_v32, 6.0  ;;  %v5661_v32 = vld [vmem:[%s16221_s13 + $0x50] sm:$0xff] }
 0x184   : > { %16355 = vst [vmem:[#allocation20_spill] sm:$0xff] %v11929_v8 }
 0x185   : > { %v2726_v43 = vmax.f32 %v2694_v37, 0.0  ;;  %v11902_v29 = vmin.f32 %v3163_v57, 6.0  ;;  %16357 = vst [vmem:[#allocation22_spill] sm:$0xff] %v11939_v28 }
 0x186   : > { %v9494_v18 = vpop.f32.mrf.mxu0 }
 0x187   : > { %v2758_v49 = vmin.f32 %v2726_v43, 6.0  ;;  %16350 = vst [vmem:[#allocation15_spill] sm:$0xff] %v11902_v29  ;;  %v3099_v23 = vmul.f32 %v9494_v18, %v11859_v7 }
 0x188   : > { %v2972_v21 = vpop.f32.mrf.mxu0 }
 0x189   : > { %9523 = vmatmul.mubr.msk.f32.gmra.mxu1 %vm795_vm0, %v2758_v49  ;;  %v3098_v54 = vmul.f32 %v11859_v7, %v2972_v21  ;;  %v3138_v4 = vadd.f32 %v11868_v27, %v3099_v23 }
 0x18a   : > { %9529 = vmatprep.mubr.msk.f32.mxu1 %vm3225_vm4, %v11883_v16 }
 0x18b   : > { %v3137_v10 = vadd.f32 %v11868_v27, %v3098_v54  ;;  %v3170_v55 = vmax.f32 %v3138_v4, 0.0 }
 0x18d   : > { %9530 = vmatmul.mubr.msk.f32.vlgmr.msra.gmra.mxu1 %vm3225_vm4, %v11890_v60  ;;  %v3169_v48 = vmax.f32 %v3137_v10, 0.0  ;;  %v11948_v30 = vmin.f32 %v3170_v55, 6.0  ;;  %v5660_v55 = vld [vmem:[%s16221_s13 + $0x48] sm:$0xff] }
 0x18e   : > { %9532 = vmatprep.mubr.msk.f32.mxu1 %vm3225_vm4, %v11892_v19 }
 0x18f   : > { %v11934_v34 = vmin.f32 %v3169_v48, 6.0  ;;  %16358 = vst [vmem:[#allocation23_spill] sm:$0xff] %v11948_v30  ;;  %v5662_v48 = vld [vmem:[%s16221_s13 + $0x58] sm:$0xff] }
 0x190   : > { %9577 = vmatprep.subr.mxu0 %v5662_v48 }
 0x191   : > { %9533 = vmatmul.mubr.msk.f32.gmra.mxu1 %vm3225_vm4, %v11908_v52  ;;  %16356 = vst [vmem:[#allocation21_spill] sm:$0xff] %v11934_v34  ;;  %9578 = vmatpush3.msra.mxu0 %v5662_v48 }
 0x192   : > { %9535 = vmatprep.mubr.msk.f32.mxu1 %vm3225_vm4, %v11902_v29  ;;  %9579 = vmatprep.subr.mxu0 %v5661_v32 }
 0x193   : > { %9580 = vmatpush3.msra.mxu0 %v5661_v32 }
 0x194   : > { %9581 = vmatprep.subr.mxu0 %v5660_v55 }
 0x195   : > { %9536 = vmatmul.mubr.msk.f32.gmra.mxu1 %vm3225_vm4, %v11919_v3  ;;  %9582 = vmatpush3.msra.mxu0 %v5660_v55  ;;  %v5651_v55 = vld [vmem:[%s16221_s13] sm:$0xff] }
 0x196   : > { %9538 = vmatprep.mubr.msk.f32.mxu1 %vm3225_vm4, %v11914_v0 }
 0x199   : > { %v9497_v51 = vpop.f32.mrf.mxu0  ;;  %9539 = vmatmul.mubr.msk.f32.gmra.mxu1 %vm3225_vm4, %v11929_v8 }
 0x19a   : > { %v3101_v42 = vmul.f32 %v9497_v51, %v11859_v7  ;;  %9541 = vmatprep.mubr.msk.f32.mxu1 %vm3225_vm4, %v11925_v13 }
 0x19b   : > { %v2982_v62 = vpop.f32.mrf.mxu0 }
 0x19c   : > { %v3140_v50 = vadd.f32 %v11868_v27, %v3101_v42  ;;  %v3100_v26 = vmul.f32 %v11859_v7, %v2982_v62 }
 0x19d   : > { %9542 = vmatmul.mubr.msk.f32.gmra.mxu1 %vm3225_vm4, %v11939_v28 }
 0x19e   : > { %v3139_v56 = vadd.f32 %v11868_v27, %v3100_v26  ;;  %9544 = vmatprep.mubr.msk.f32.mxu1 %vm3225_vm4, %v11934_v34  ;;  %v3172_v24 = vmax.f32 %v3140_v50, 0.0  ;;  %v5659_v26 = vld [vmem:[%s16221_s13 + $0x40] sm:$0xff] }
 0x19f   : > { %9583 = vmatprep.subr.mxu0 %v5659_v26 }
 0x1a0   : > { %v3171_v59 = vmax.f32 %v3139_v56, 0.0  ;;  %v11954_v20 = vmin.f32 %v3172_v24, 6.0  ;;  %v5658_v56 = vld [vmem:[%s16221_s13 + $0x38] sm:$0xff]  ;;  %9584 = vmatpush3.msra.mxu0 %v5659_v26  ;;  %v5657_v24 = vld [vmem:[%s16221_s13 + $0x30] sm:$0xff] }
 0x1a1   : > { %9545 = vmatmul.mubr.msk.f32.gmra.mxu1 %vm3225_vm4, %v11948_v30  ;;  %9585 = vmatprep.subr.mxu0 %v5658_v56 }
 0x1a2   : > { %v11952_v9 = vmin.f32 %v3171_v59, 6.0  ;;  %16360 = vst [vmem:[#allocation25_spill] sm:$0xff] %v11954_v20  ;;  %9586 = vmatpush3.msra.mxu0 %v5658_v56 }
 0x1a3   : > { %9587 = vmatprep.subr.mxu0 %v5657_v24 }
 0x1a4   : > { %16359 = vst [vmem:[#allocation24_spill] sm:$0xff] %v11952_v9  ;;  %9547 = vmatprep.mubr.msk.f32.mxu1 %vm3225_vm4, %v11952_v9  ;;  %9588 = vmatpush3.msra.mxu0 %v5657_v24 }
 0x1a5   : > { %9548 = vmatmul.mubr.msk.f32.gmra.mxu1 %vm3225_vm4, %v11954_v20 }
 0x1ad   : > { %v9500_v35 = vpop.f32.mrf.mxu0 }
 0x1ae   : > { %v3103_v25 = vmul.f32 %v9500_v35, %v11859_v7 }
 0x1af   : > { %v2992_v36 = vpop.f32.mrf.mxu0 }
 0x1b0   : > { %v3142_v17 = vadd.f32 %v11868_v27, %v3103_v25  ;;  %v3102_v15 = vmul.f32 %v11859_v7, %v2992_v36 }
 0x1b2   : > { %v3141_v37 = vadd.f32 %v11868_v27, %v3102_v15  ;;  %v3174_v58 = vmax.f32 %v3142_v17, 0.0 }
 0x1b4   : > { %v3173_v46 = vmax.f32 %v3141_v37, 0.0  ;;  %v11966_v33 = vmin.f32 %v3174_v58, 6.0 }
 0x1b6   : > { %v11964_v43 = vmin.f32 %v3173_v46, 6.0  ;;  %16362 = vst [vmem:[#allocation27_spill] sm:$0xff] %v11966_v33 }
 0x1b8   : > { %16361 = vst [vmem:[#allocation26_spill] sm:$0xff] %v11964_v43  ;;  %9550 = vmatprep.mubr.msk.f32.mxu1 %vm3225_vm4, %v11964_v43 }
 0x1b9   : > { %9551 = vmatmul.mubr.msk.f32.gmra.mxu1 %vm3225_vm4, %v11966_v33 }
 0x1c0   : > { %v9503_v44 = vpop.f32.mrf.mxu1 }
 0x1c1   : > { %v3105_v40 = vmul.f32 %v9503_v44, %v11859_v7 }
 0x1c2   : > { %v3002_v2 = vpop.f32.mrf.mxu1 }
 0x1c3   : > { %v3144_v49 = vadd.f32 %v11868_v27, %v3105_v40  ;;  %v3104_v11 = vmul.f32 %v11859_v7, %v3002_v2  ;;  %v5656_v40 = vld [vmem:[%s16221_s13 + $0x28] sm:$0xff]  ;;  %v5655_v2 = vld [vmem:[%s16221_s13 + $0x20] sm:$0xff] }
 0x1c4   : > { %9589 = vmatprep.subr.mxu0 %v5656_v40 }
 0x1c5   : > { %v3143_v47 = vadd.f32 %v11868_v27, %v3104_v11  ;;  %v3176_v18 = vmax.f32 %v3144_v49, 0.0  ;;  %9590 = vmatpush3.msra.mxu0 %v5656_v40  ;;  %v3779_v40 = vld [vmem:[#allocation3 + $0x8] sm:$0xff] }
 0x1c6   : > { %9591 = vmatprep.subr.mxu0 %v5655_v2  ;;  %6560 = vst.msk [vmem:[#allocation3 + $0x8] sm:$0xff] %vm3689_vm5, %v16255_v1 }
 0x1c7   : > { %v3175_v57 = vmax.f32 %v3143_v47, 0.0  ;;  %v11978_v22 = vmin.f32 %v3176_v18, 6.0  ;;  %9592 = vmatpush3.msra.mxu0 %v5655_v2  ;;  %v3780_v2 = vld [vmem:[#allocation3 + $0x10] sm:$0x3] }
 0x1c8   : > { %6561 = vst.msk [vmem:[#allocation3 + $0x10] sm:$0x3] %vm3692_vm6, %v16255_v1 }
 0x1c9   : > { %v11976_v39 = vmin.f32 %v3175_v57, 6.0  ;;  %16364 = vst [vmem:[#allocation29_spill] sm:$0xff] %v11978_v22 }
 0x1cb   : > { %16363 = vst [vmem:[#allocation28_spill] sm:$0xff] %v11976_v39  ;;  %9553 = vmatprep.mubr.msk.f32.mxu1 %vm3225_vm4, %v11976_v39 }
 0x1cc   : > { %9554 = vmatmul.mubr.msk.f32.gmra.mxu1 %vm3225_vm4, %v11978_v22 }
 0x1d4   : > { %v9506_v31 = vpop.f32.mrf.mxu1 }
 0x1d5   : > { %v3107_v12 = vmul.f32 %v9506_v31, %v11859_v7 }
 0x1d6   : > { %v3012_v61 = vpop.f32.mrf.mxu1 }
 0x1d7   : > { %v3146_v21 = vadd.f32 %v11868_v27, %v3107_v12  ;;  %v3106_v5 = vmul.f32 %v11859_v7, %v3012_v61 }
 0x1d9   : > { %v3145_v6 = vadd.f32 %v11868_v27, %v3106_v5  ;;  %v3178_v54 = vmax.f32 %v3146_v21, 0.0 }
 0x1db   : > { %v3177_v53 = vmax.f32 %v3145_v6, 0.0  ;;  %v12098_v41 = vmin.f32 %v3178_v54, 6.0  ;;  %v5654_v6 = vld [vmem:[%s16221_s13 + $0x18] sm:$0xff]  ;;  %v5653_v54 = vld [vmem:[%s16221_s13 + $0x10] sm:$0xff] }
 0x1dc   : > { %9593 = vmatprep.subr.mxu0 %v5654_v6 }
 0x1dd   : > { %v12096_v63 = vmin.f32 %v3177_v53, 6.0  ;;  %16366 = vst [vmem:[#allocation31_spill] sm:$0xff] %v12098_v41  ;;  %9594 = vmatpush3.msra.mxu0 %v5654_v6  ;;  %v12222_v6 = vld [vmem:[%s16379_s8] ss:$0 sm:$0xff] }
 0x1de   : > { %9595 = vmatprep.subr.mxu0 %v5653_v54 }
 0x1df   : > { %16365 = vst [vmem:[#allocation30_spill] sm:$0xff] %v12096_v63  ;;  %9556 = vmatprep.mubr.msk.f32.mxu1 %vm3225_vm4, %v12096_v63  ;;  %9596 = vmatpush3.msra.mxu0 %v5653_v54 }
 0x1e0   : > { %9557 = vmatmul.mubr.msk.f32.gmra.mxu1 %vm3225_vm4, %v12098_v41 }
 0x1e7   : > { %v9509_v14 = vpop.f32.mrf.mxu1 }
 0x1e8   : > { %v3109_v10 = vmul.f32 %v9509_v14, %v11859_v7 }
 0x1e9   : > { %v3022_v45 = vpop.f32.mrf.mxu1 }
 0x1ea   : > { %v3148_v38 = vadd.f32 %v11868_v27, %v3109_v10  ;;  %v3108_v23 = vmul.f32 %v11859_v7, %v3022_v45 }
 0x1ec   : > { %v3147_v4 = vadd.f32 %v11868_v27, %v3108_v23  ;;  %v3180_v51 = vmax.f32 %v3148_v38, 0.0 }
 0x1ee   : > { %v3179_v42 = vmax.f32 %v3147_v4, 0.0  ;;  %v12119_v50 = vmin.f32 %v3180_v51, 6.0 }
 0x1f0   : > { %v12117_v62 = vmin.f32 %v3179_v42, 6.0  ;;  %16368 = vst [vmem:[#allocation33_spill] sm:$0xff] %v12119_v50  ;;  %v5652_v42 = vld [vmem:[%s16221_s13 + $0x8] sm:$0xff] }
 0x1f1   : > { %9597 = vmatprep.subr.mxu0 %v5652_v42 }
 0x1f2   : > { %16367 = vst [vmem:[#allocation32_spill] sm:$0xff] %v12117_v62  ;;  %9559 = vmatprep.mubr.msk.f32.mxu1 %vm3225_vm4, %v12117_v62  ;;  %9598 = vmatpush3.msra.mxu0 %v5652_v42 }
 0x1f3   : > { %9560 = vmatmul.mubr.msk.f32.gmra.mxu1 %vm3225_vm4, %v12119_v50  ;;  %9599 = vmatprep.subr.mxu0 %v5651_v55 }
 0x1f4   : > { %9600 = vmatpush3.msra.mxu0 %v5651_v55 }
 0x1fb   : > { %v9512_v59 = vpop.f32.mrf.mxu1 }
 0x1fc   : > { %v3111_v35 = vmul.f32 %v9512_v59, %v11859_v7 }
 0x1fd   : > { %v3032_v25 = vpop.f32.mrf.mxu1 }
 0x1fe   : > { %v3150_v36 = vadd.f32 %v11868_v27, %v3111_v35  ;;  %v3110_v17 = vmul.f32 %v11859_v7, %v3032_v25 }
 0x200   : > { %v3149_v15 = vadd.f32 %v11868_v27, %v3110_v17  ;;  %v3182_v37 = vmax.f32 %v3150_v36, 0.0 }
 0x202   : > { %v3181_v58 = vmax.f32 %v3149_v15, 0.0  ;;  %v12140_v44 = vmin.f32 %v3182_v37, 6.0 }
 0x204   : > { %v12138_v46 = vmin.f32 %v3181_v58, 6.0  ;;  %16370 = vst [vmem:[#allocation35_spill] sm:$0xff] %v12140_v44  ;;  %v3778_v58 = vld [vmem:[#allocation3] sm:$0xff] }
 0x205   : > { %6559 = vst.msk [vmem:[#allocation3] sm:$0xff] %vm3689_vm5, %v16255_v1 }
 0x206   : > { %16369 = vst [vmem:[#allocation34_spill] sm:$0xff] %v12138_v46  ;;  %9562 = vmatprep.mubr.msk.f32.mxu1 %vm3225_vm4, %v12138_v46 }
 0x207   : > { %9563 = vmatmul.mubr.msk.f32.gmra.mxu1 %vm3225_vm4, %v12140_v44 }
 0x20e   : > { %v9515_v49 = vpop.f32.mrf.mxu1 }
 0x20f   : > { %v3113_v11 = vmul.f32 %v9515_v49, %v11859_v7 }
 0x210   : > { %v3042_v47 = vpop.f32.mrf.mxu1 }
 0x211   : > { %v3152_v18 = vadd.f32 %v11868_v27, %v3113_v11  ;;  %v3112_v57 = vmul.f32 %v11859_v7, %v3042_v47  ;;  %v12210_v47 = vld [vmem:[%s16377_s10 + $0x1] ss:$0 sm:$0xff] }
 0x212   : > { %v3906_v54 = vmul.f32 %v12210_v47, %v3778_v58 }
 0x213   : > { %v3151_v31 = vadd.f32 %v11868_v27, %v3112_v57  ;;  %v3184_v12 = vmax.f32 %v3152_v18, 0.0  ;;  %v12215_v57 = vld [vmem:[%s16378_s5] ss:$0 sm:$0xff] }
 0x215   : > { %v3183_v61 = vmax.f32 %v3151_v31, 0.0  ;;  %v12158_v5 = vmin.f32 %v3184_v12, 6.0 }
 0x217   : > { %v12156_v21 = vmin.f32 %v3183_v61, 6.0  ;;  %16372 = vst [vmem:[#allocation37_spill] sm:$0xff] %v12158_v5 }
 0x219   : > { %16371 = vst [vmem:[#allocation36_spill] sm:$0xff] %v12156_v21  ;;  %9565 = vmatprep.mubr.msk.f32.mxu1 %vm3225_vm4, %v12156_v21 }
 0x21a   : > { %9566 = vmatmul.mubr.msk.f32.gmra.mxu1 %vm3225_vm4, %v12158_v5 }
 0x222   : > { %v9518_v53 = vpop.f32.mrf.mxu1 }
 0x223   : > { %v3115_v14 = vmul.f32 %v9518_v53, %v11859_v7  ;;  %v3907_v53 = vmul.f32 %v12210_v47, %v3779_v40 }
 0x224   : > { %v3052_v10 = vpop.f32.mrf.mxu1 }
 0x225   : > { %v3154_v45 = vadd.f32 %v11868_v27, %v3115_v14  ;;  %v3114_v38 = vmul.f32 %v11859_v7, %v3052_v10  ;;  %v12229_v14 = vld [vmem:[%s16377_s10 + $0x2] ss:$0 sm:$0xff] }
 0x226   : > { %v4151_v55 = vmul.f32 %v12229_v14, %v3778_v58 }
 0x227   : > { %v3153_v23 = vadd.f32 %v11868_v27, %v3114_v38  ;;  %v3186_v48 = vmax.f32 %v3154_v45, 0.0 }
 0x229   : > { %v3185_v32 = vmax.f32 %v3153_v23, 0.0  ;;  %v12176_v51 = vmin.f32 %v3186_v48, 6.0  ;;  %v3908_v23 = vmul.f32 %v12210_v47, %v3780_v2 }
 0x22b   : > { %v12174_v4 = vmin.f32 %v3185_v32, 6.0  ;;  %16374 = vst [vmem:[#allocation39_spill] sm:$0xff] %v12176_v51 }
 0x22d   : > { %16373 = vst [vmem:[#allocation38_spill] sm:$0xff] %v12174_v4  ;;  %9568 = vmatprep.mubr.msk.f32.mxu1 %vm3225_vm4, %v12174_v4 }
 0x22e   : > { %9569 = vmatmul.mubr.msk.f32.gmra.mxu1 %vm3225_vm4, %v12176_v51 }
 0x235   : > { %v9521_v26 = vpop.f32.mrf.mxu1 }
 0x236   : > { %v3117_v56 = vmul.f32 %v9521_v26, %v11859_v7 }
 0x237   : > { %v3062_v24 = vpop.f32.mrf.mxu1 }
 0x238   : > { %v3156_v59 = vadd.f32 %v11868_v27, %v3117_v56  ;;  %v3116_v35 = vmul.f32 %v11859_v7, %v3062_v24  ;;  %v4002_v24 = vrot.slane %v3906_v54, 1 }
 0x23a   : > { %v3188_v25 = vmax.f32 %v3156_v59, 0.0  ;;  %v3155_v36 = vadd.f32 %v11868_v27, %v3116_v35  ;;  %v4003_v59 = vrot.slane %v3907_v53, 1  ;;  %v4152_v35 = vmul.f32 %v12229_v14, %v3779_v40 }
 0x23c   : > { %v3187_v17 = vmax.f32 %v3155_v36, 0.0  ;;  %v12192_v15 = vmin.f32 %v3188_v25, 6.0 }
 0x23e   : > { %16375 = vst [vmem:[#allocation40_spill] sm:$0xff] %v12192_v15  ;;  %v12194_v37 = vmin.f32 %v3187_v17, 6.0 }
 0x240   : > { %16376 = vst [vmem:[#allocation41_spill] sm:$0xff] %v12194_v37  ;;  %9571 = vmatprep.mubr.msk.f32.mxu1 %vm3225_vm4, %v12194_v37 }
 0x241   : > { %9572 = vmatmul.mubr.msk.f32.gmra.mxu1 %vm3225_vm4, %v12192_v15 }
 0x249   : > { %v9524_v49 = vpop.f32.mrf.mxu1 }
 0x24a   : > { %v3119_v11 = vmul.f32 %v9524_v49, %v11859_v7  ;;  %v12247_v49 = vld [vmem:[%s16377_s10] ss:$0 sm:$0xff] }
 0x24b   : > { %v3072_v18 = vpop.f32.mrf.mxu1 }
 0x24c   : > { %v3158_v31 = vadd.f32 %v11868_v27, %v3119_v11  ;;  %v3118_v12 = vmul.f32 %v11859_v7, %v3072_v18  ;;  %v4005_v18 = vrot.slane %v3908_v23, 1  ;;  %v4248_v23 = vrot.slane %v4152_v35, 2 }
 0x24d   : > { %v9531_v61 = vpop.f32.mrf.mxu1 }
 0x24e   : > { %v3190_v10 = vmax.f32 %v3158_v31, 0.0  ;;  %v3157_v45 = vadd.f32 %v11868_v27, %v3118_v12  ;;  %v3555_v7 = vmul.f32 %v9531_v61, %v12215_v57  ;;  %v4153_v31 = vmul.f32 %v12229_v14, %v3780_v2 }
 0x24f   : > { %v3388_v38 = vpop.f32.mrf.mxu1 }
 0x250   : > { %v3189_v48 = vmax.f32 %v3157_v45, 0.0  ;;  %v3594_v32 = vadd.f32 %v12222_v6, %v3555_v7  ;;  %v3554_v42 = vmul.f32 %v12215_v57, %v3388_v38  ;;  %v12237_v26 = vmin.f32 %v3190_v10, 6.0 }
 0x251   : > { %v9534_v56 = vpop.f32.mrf.mxu1  ;;  %v3837_v45 = vmul.f32 %v12247_v49, %v3778_v58  ;;  %v4004_v7 = vsel %vm1108_vm2, %v4002_v24, %v4003_v59  ;;  %v4247_v38 = vrot.slane %v4151_v55, 2 }
 0x252   : > { %16380 = vst [vmem:[#allocation42_spill] sm:$0xff] %v12237_v26  ;;  %v12240_v27 = vmin.f32 %v3189_v48, 6.0  ;;  %v3626_v25 = vmax.f32 %v3594_v32, 0.0  ;;  %v3593_v36 = vadd.f32 %v12222_v6, %v3554_v42  ;;  %v3557_v17 = vmul.f32 %v9534_v56, %v12215_v57 }
 0x253   : > { %v3398_v11 = vpop.f32.mrf.mxu1 }
 0x254   : > { %16381 = vst [vmem:[#allocation43_spill] sm:$0xff] %v12240_v27  ;;  %9574 = vmatprep.mubr.msk.f32.mxu1 %vm3225_vm4, %v12240_v27  ;;  %v3658_v12 = vmin.f32 %v3626_v25, 6.0  ;;  %v3625_v61 = vmax.f32 %v3593_v36, 0.0  ;;  %v3596_v54 = vadd.f32 %v12222_v6, %v3557_v17  ;;  %v3556_v53 = vmul.f32 %v12215_v57, %v3398_v11 }
 0x255   : > { %9575 = vmatmul.mubr.msk.f32.gmra.mxu1 %vm3225_vm4, %v12237_v26  ;;  %v9537_v10 = vpop.f32.mrf.mxu1  ;;  %v4006_v25 = vsel %vm1108_vm2, %v4003_v59, %v4005_v18  ;;  %v4250_v36 = vrot.slane %v4153_v31, 2  ;;  %v3838_v17 = vmul.f32 %v12247_v49, %v3779_v40 }
 0x256   : > { %3747 = vst.msk [vmem:[#allocation3 + $0x21] sm:$0xff] %vm3689_vm5, %v3658_v12  ;;  %v3657_v2 = vmin.f32 %v3625_v61, 6.0  ;;  %v3628_v48 = vmax.f32 %v3596_v54, 0.0  ;;  %v3595_v32 = vadd.f32 %v12222_v6, %v3556_v53  ;;  %v3559_v42 = vmul.f32 %v9537_v10, %v12215_v57 }
 0x257   : > { %v3408_v56 = vpop.f32.mrf.mxu1  ;;  %v4114_v12 = vadd.f32 %v4004_v7, %v3837_v45  ;;  %v4249_v61 = vsel %vm1354_vm3, %v4247_v38, %v4248_v23  ;;  %v4251_v31 = vsel %vm1354_vm3, %v4248_v23, %v4250_v36  ;;  %v4115_v10 = vadd.f32 %v4006_v25, %v3838_v17  ;;  %v12277_v38 = vld [vmem:[%s16377_s10 + $0x4] ss:$0 sm:$0xff] }
 0x258   : > { %3746 = vst.msk [vmem:[#allocation3 + $0x19] sm:$0xff] %vm3689_vm5, %v3657_v2  ;;  %v3660_v58 = vmin.f32 %v3628_v48, 6.0  ;;  %v3627_v24 = vmax.f32 %v3595_v32, 0.0  ;;  %v3598_v55 = vadd.f32 %v12222_v6, %v3559_v42  ;;  %v3558_v35 = vmul.f32 %v12215_v57, %v3408_v56  ;;  %v12282_v32 = vld [vmem:[%s16377_s10 + $0x5] ss:$0 sm:$0xff] }
 0x259   : > { %v9540_v11 = vpop.f32.mrf.mxu1  ;;  %v4359_v56 = vadd.f32 %v4249_v61, %v4114_v12 }
 0x25a   : > { %3749 = vst.msk [vmem:[#allocation3 + $0x39] sm:$0xff] %vm3689_vm5, %v3660_v58  ;;  %v3659_v54 = vmin.f32 %v3627_v24, 6.0  ;;  %v3630_v53 = vmax.f32 %v3598_v55, 0.0  ;;  %v3597_v59 = vadd.f32 %v12222_v6, %v3558_v35  ;;  %v3561_v40 = vmul.f32 %v9540_v11, %v12215_v57  ;;  %v12292_v24 = vld [vmem:[%s16377_s10 + $0x3] ss:$0 sm:$0xff] }
 0x25b   : > { %v3418_v18 = vpop.f32.mrf.mxu1 }
 0x25c   : > { %3748 = vst.msk [vmem:[#allocation3 + $0x31] sm:$0xff] %vm3689_vm5, %v3659_v54  ;;  %v3662_v2 = vmin.f32 %v3630_v53, 6.0  ;;  %v3629_v48 = vmax.f32 %v3597_v59, 0.0  ;;  %v3600_v45 = vadd.f32 %v12222_v6, %v3561_v40  ;;  %v3560_v7 = vmul.f32 %v12215_v57, %v3418_v18 }
 0x25d   : > { %v3783_v23 = vld [vmem:[#allocation3 + $0x28] sm:$0x3]  ;;  %v9543_v42 = vpop.f32.mrf.mxu1  ;;  %v12302_v54 = vadd.f32 %v4251_v31, %v4115_v10 }
 0x25e   : > { %6564 = vst.msk [vmem:[#allocation3 + $0x28] sm:$0x3] %vm3692_vm6, %v16255_v1  ;;  %v3661_v25 = vmin.f32 %v3629_v48, 6.0  ;;  %v3632_v36 = vmax.f32 %v3600_v45, 0.0  ;;  %v3599_v17 = vadd.f32 %v12222_v6, %v3560_v7  ;;  %v3563_v58 = vmul.f32 %v9543_v42, %v12215_v57 }
 0x25f   : > { %3751 = vst.msk [vmem:[#allocation3 + $0x51] sm:$0xff] %vm3689_vm5, %v3662_v2  ;;  %v3428_v55 = vpop.f32.mrf.mxu1  ;;  %v12294_v35 = vld [vmem:[#allocation3 + $0x18] sm:$0xff]  ;;  %v12296_v11 = vld [vmem:[#allocation3 + $0x20] sm:$0xff]  ;;  %v4467_v12 = vmul.f32 %v12277_v38, %v3783_v23  ;;  %v12300_v61 = vmul.f32 %v12282_v32, %v3783_v23  ;;  %v12305_v53 = vmul.f32 %v12210_v47, %v3783_v23  ;;  %v12323_v42 = vmul.f32 %v12229_v14, %v3783_v23 }
 0x260   : > { %3750 = vst.msk [vmem:[#allocation3 + $0x49] sm:$0xff] %vm3689_vm5, %v3661_v25  ;;  %v3664_v59 = vmin.f32 %v3632_v36, 6.0  ;;  %v3631_v40 = vmax.f32 %v3599_v17, 0.0  ;;  %v3602_v18 = vadd.f32 %v12222_v6, %v3563_v58  ;;  %v3562_v2 = vmul.f32 %v12215_v57, %v3428_v55  ;;  %6562 = vst.msk [vmem:[#allocation3 + $0x18] sm:$0xff] %vm3689_vm5, %v16255_v1 }
 0x261   : > { %6563 = vst.msk [vmem:[#allocation3 + $0x20] sm:$0xff] %vm3689_vm5, %v16255_v1  ;;  %v12314_v48 = vld [vmem:[#allocation3 + $0x40] sm:$0x3]  ;;  %v9546_v31 = vpop.f32.mrf.mxu1  ;;  %v4396_v10 = vmul.f32 %v12292_v24, %v12294_v35  ;;  %v4465_v45 = vmul.f32 %v12277_v38, %v12294_v35  ;;  %v4466_v7 = vmul.f32 %v12277_v38, %v12296_v11  ;;  %v4710_v51 = vmul.f32 %v12282_v32, %v12294_v35 }
 0x262   : > { %6567 = vst.msk [vmem:[#allocation3 + $0x40] sm:$0x3] %vm3692_vm6, %v16255_v1  ;;  %v3663_v25 = vmin.f32 %v3631_v40, 6.0  ;;  %v3634_v36 = vmax.f32 %v3602_v18, 0.0  ;;  %v3601_v17 = vadd.f32 %v12222_v6, %v3562_v2  ;;  %v3565_v58 = vmul.f32 %v9546_v31, %v12215_v57  ;;  %v12342_v31 = vld [vmem:[%s16377_s10 + $0x6] ss:$0 sm:$0xff] }
 0x263   : > { %3753 = vst.msk [vmem:[#allocation3 + $0x69] sm:$0xff] %vm3689_vm5, %v3664_v59  ;;  %v3438_v55 = vpop.f32.mrf.mxu1  ;;  %v12330_v27 = vld [vmem:[#allocation3 + $0x30] sm:$0xff]  ;;  %v12332_v26 = vld [vmem:[#allocation3 + $0x38] sm:$0xff]  ;;  %v4428_v15 = vadd.f32 %v4396_v10, %v4359_v56  ;;  %v4561_v37 = vrot.slane %v4465_v45, 1  ;;  %v4562_v23 = vrot.slane %v4466_v7, 1  ;;  %v4564_v7 = vrot.slane %v4467_v12, 1 }
 0x264   : > { %3752 = vst.msk [vmem:[#allocation3 + $0x61] sm:$0xff] %vm3689_vm5, %v3663_v25  ;;  %v3666_v59 = vmin.f32 %v3634_v36, 6.0  ;;  %v3633_v40 = vmax.f32 %v3601_v17, 0.0  ;;  %v3604_v18 = vadd.f32 %v12222_v6, %v3565_v58  ;;  %v3564_v2 = vmul.f32 %v12215_v57, %v3438_v55  ;;  %6565 = vst.msk [vmem:[#allocation3 + $0x30] sm:$0xff] %vm3689_vm5, %v16255_v1 }
 0x265   : > { %6566 = vst.msk [vmem:[#allocation3 + $0x38] sm:$0xff] %vm3689_vm5, %v16255_v1  ;;  %v9549_v10 = vpop.f32.mrf.mxu1  ;;  %v4563_v45 = vsel %vm1108_vm2, %v4561_v37, %v4562_v23  ;;  %v4711_v25 = vmul.f32 %v12282_v32, %v12296_v11  ;;  %v4806_v36 = vrot.slane %v4710_v51, 2  ;;  %v12359_v21 = vsel %vm1108_vm2, %v4562_v23, %v4564_v7 }
 0x266   : > { %v12348_v56 = vld [vmem:[#allocation3 + $0x58] sm:$0x3]  ;;  %3755 = vst.msk [vmem:[#allocation3 + $0x81] sm:$0xff] %vm3689_vm5, %v3666_v59  ;;  %v3665_v17 = vmin.f32 %v3633_v40, 6.0  ;;  %v3636_v58 = vmax.f32 %v3604_v18, 0.0  ;;  %v3603_v55 = vadd.f32 %v12222_v6, %v3564_v2  ;;  %v3567_v4 = vmul.f32 %v9549_v10, %v12215_v57 }
 0x267   : > { %6570 = vst.msk [vmem:[#allocation3 + $0x58] sm:$0x3] %vm3692_vm6, %v16255_v1  ;;  %v3448_v5 = vpop.f32.mrf.mxu1  ;;  %v4673_v37 = vadd.f32 %v4563_v45, %v4428_v15  ;;  %v4807_v12 = vrot.slane %v4711_v25, 2  ;;  %v4955_v51 = vmul.f32 %v12342_v31, %v12330_v27  ;;  %v12363_v44 = vld [vmem:[#allocation3 + $0x48] sm:$0xff]  ;;  %v12365_v1 = vld [vmem:[#allocation3 + $0x50] sm:$0xff]  ;;  %v16382_v23 = vmov 0.0  }
 0x268   : > { %3754 = vst.msk [vmem:[#allocation3 + $0x79] sm:$0xff] %vm3689_vm5, %v3665_v17  ;;  %v3668_v59 = vmin.f32 %v3636_v58, 6.0  ;;  %v3635_v40 = vmax.f32 %v3603_v55, 0.0  ;;  %v3606_v18 = vadd.f32 %v12222_v6, %v3567_v4  ;;  %v3566_v2 = vmul.f32 %v12215_v57, %v3448_v5  ;;  %v12373_v15 = vld [vmem:[%s16377_s10 + $0x7] ss:$0 sm:$0xff]  ;;  %6568 = vst.msk [vmem:[#allocation3 + $0x48] sm:$0xff] %vm3689_vm5, %v16382_v23 }
 0x269   : > { %6569 = vst.msk [vmem:[#allocation3 + $0x50] sm:$0xff] %vm3689_vm5, %v16382_v23  ;;  %v4808_v45 = vsel %vm1354_vm3, %v4806_v36, %v4807_v12  ;;  %v4809_v7 = vrot.slane %v12300_v61, 2  ;;  %v5024_v5 = vmul.f32 %v12373_v15, %v12330_v27  ;;  %v5025_v4 = vmul.f32 %v12373_v15, %v12332_v26  ;;  %v12394_v61 = vld [vmem:[%s16377_s10 + $0x8] ss:$0 sm:$0xff] }
 0x26a   : > { %v12379_v10 = vld [vmem:[#allocation3 + $0x70] sm:$0x3]  ;;  %3757 = vst.msk [vmem:[#allocation3 + $0x99] sm:$0xff] %vm3689_vm5, %v3668_v59  ;;  %v3667_v25 = vmin.f32 %v3635_v40, 6.0  ;;  %v3638_v17 = vmax.f32 %v3606_v18, 0.0  ;;  %v3605_v58 = vadd.f32 %v12222_v6, %v3566_v2  ;;  %v4918_v55 = vadd.f32 %v4808_v45, %v4673_v37 }
 0x26b   : > { %6573 = vst.msk [vmem:[#allocation3 + $0x70] sm:$0x3] %vm3692_vm6, %v16382_v23  ;;  %v5026_v36 = vmul.f32 %v12373_v15, %v12314_v48  ;;  %v5120_v46 = vrot.slane %v5024_v5, 1  ;;  %v5121_v50 = vrot.slane %v5025_v4, 1  ;;  %v5269_v62 = vmul.f32 %v12394_v61, %v12330_v27  ;;  %v12481_v43 = vld [vmem:[#allocation3 + $0x60] sm:$0xff]  ;;  %v12483_v20 = vld [vmem:[#allocation3 + $0x68] sm:$0xff] }
 0x26c   : > { %3756 = vst.msk [vmem:[#allocation3 + $0x91] sm:$0xff] %vm3689_vm5, %v3667_v25  ;;  %v3670_v59 = vmin.f32 %v3638_v17, 6.0  ;;  %v3637_v40 = vmax.f32 %v3605_v58, 0.0  ;;  %v4987_v18 = vadd.f32 %v4955_v51, %v4918_v55  ;;  %v5270_v37 = vmul.f32 %v12394_v61, %v12332_v26  ;;  %6571 = vst.msk [vmem:[#allocation3 + $0x60] sm:$0xff] %vm3689_vm5, %v16382_v23 }
 0x26d   : > { %v12403_v2 = vld [vmem:[#allocation3 + $0x88] sm:$0x3]  ;;  %v5122_v45 = vsel %vm1108_vm2, %v5120_v46, %v5121_v50  ;;  %v5123_v41 = vrot.slane %v5026_v36, 1  ;;  %v5271_v5 = vmul.f32 %v12394_v61, %v12314_v48  ;;  %v5365_v4 = vrot.slane %v5269_v62, 2  ;;  %6572 = vst.msk [vmem:[#allocation3 + $0x68] sm:$0xff] %vm3689_vm5, %v16382_v23 }
 0x26e   : > { %6576 = vst.msk [vmem:[#allocation3 + $0x88] sm:$0x3] %vm3692_vm6, %v16382_v23  ;;  %v3669_v25 = vmin.f32 %v3637_v40, 6.0  ;;  %v5232_v17 = vadd.f32 %v5122_v45, %v4987_v18  ;;  %v5366_v51 = vrot.slane %v5270_v37, 2  ;;  %v4397_v58 = vmul.f32 %v12292_v24, %v12296_v11 }
 0x26f   : > { %3759 = vst.msk [vmem:[#allocation3 + $0xb1] sm:$0xff] %vm3689_vm5, %v3670_v59  ;;  %v4810_v55 = vsel %vm1354_vm3, %v4807_v12, %v4809_v7  ;;  %v5124_v46 = vsel %vm1108_vm2, %v5121_v50, %v5123_v41  ;;  %v5368_v36 = vrot.slane %v5271_v5, 2  ;;  %v4956_v63 = vmul.f32 %v12342_v31, %v12332_v26  ;;  %v12422_v59 = vld [vmem:[%s16383_s11] ss:$0 sm:$0xff] }
 0x270   : > { %3758 = vst.msk [vmem:[#allocation3 + $0xa9] sm:$0xff] %vm3689_vm5, %v3669_v25  ;;  %v5367_v62 = vsel %vm1354_vm3, %v5365_v4, %v5366_v51  ;;  %v4429_v40 = vadd.f32 %v4397_v58, %v12302_v54  ;;  %v3909_v12 = vmul.f32 %v12210_v47, %v12294_v35  ;;  %v12429_v41 = vmul.f32 %v12210_v47, %v12296_v11  ;;  %v12447_v5 = vld [vmem:[%s16220_s12] ss:$0 sm:$0xff] }
 0x271   : > { %v12431_v50 = vld [vmem:[#allocation3 + $0xa0] sm:$0x3]  ;;  %v5477_v7 = vadd.f32 %v5367_v62, %v5232_v17  ;;  %v3839_v18 = vmul.f32 %v12247_v49, %v12294_v35  ;;  %v4154_v37 = vmul.f32 %v12229_v14, %v12294_v35  ;;  %v12439_v45 = vmul.f32 %v12229_v14, %v12296_v11 }
 0x272   : > { %6579 = vst.msk [vmem:[#allocation3 + $0xa0] sm:$0x3] %vm3692_vm6, %v16382_v23  ;;  %v5369_v54 = vsel %vm1354_vm3, %v5366_v51, %v5368_v36  ;;  %v4674_v4 = vadd.f32 %v12359_v21, %v4429_v40  ;;  %v4007_v25 = vrot.slane %v3909_v12, 1  ;;  %v16264_v17 = vrot.slane %v12429_v41, 1 }
 0x273   : > { %v5516_v35 = vmul.f32 %v12422_v59, %v5477_v7  ;;  %v4252_v58 = vrot.slane %v4154_v37, 2  ;;  %v16268_v62 = vrot.slane %v12439_v45, 2  ;;  %v4468_v22 = vmul.f32 %v12277_v38, %v12330_v27 }
 0x274   : > { %v4919_v39 = vadd.f32 %v4810_v55, %v4674_v4  ;;  %v4009_v51 = vsel %vm1108_vm2, %v4007_v25, %v16264_v17  ;;  %v12460_v36 = vmul.f32 %v12277_v38, %v12332_v26  ;;  %v4713_v21 = vmul.f32 %v12282_v32, %v12330_v27 }
 0x275   : > { %v5555_v12 = vadd.f32 %v12447_v5, %v5516_v35  ;;  %v4116_v7 = vadd.f32 %v4009_v51, %v3839_v18  ;;  %v4398_v37 = vmul.f32 %v12292_v24, %v12330_v27  ;;  %v4566_v55 = vrot.slane %v4468_v22, 1 }
 0x276   : > { %v12464_v40 = vld [vmem:[#allocation3 + $0xb8] sm:$0x3]  ;;  %v4988_v4 = vadd.f32 %v4956_v63, %v4919_v39  ;;  %v4254_v25 = vsel %vm1354_vm3, %v4252_v58, %v16268_v62  ;;  %v16269_v17 = vrot.slane %v12460_v36, 1  ;;  %v12477_v33 = vmul.f32 %v12282_v32, %v12332_v26 }
 0x277   : > { %6582 = vst.msk [vmem:[#allocation3 + $0xb8] sm:$0x3] %vm3692_vm6, %v16382_v23  ;;  %v5587_v35 = vmax.f32 %v5555_v12, 0.0  ;;  %v4361_v18 = vadd.f32 %v4254_v25, %v4116_v7  ;;  %v4811_v51 = vrot.slane %v4713_v21, 2  ;;  %v5027_v22 = vmul.f32 %v12373_v15, %v12363_v44 }
 0x278   : > { %v5233_v39 = vadd.f32 %v5124_v46, %v4988_v4  ;;  %v4568_v63 = vsel %vm1108_vm2, %v4566_v55, %v16269_v17  ;;  %v12491_v62 = vmul.f32 %v12373_v15, %v12365_v1  ;;  %v5272_v4 = vmul.f32 %v12394_v61, %v12363_v44 }
 0x279   : > { %v9552_v21 = vpop.f32.mrf.mxu1  ;;  %v5619_v12 = vmin.f32 %v5587_v35, 6.0  ;;  %v4430_v7 = vadd.f32 %v4398_v37, %v4361_v18  ;;  %v5125_v46 = vrot.slane %v5027_v22, 1  ;;  %v4957_v17 = vmul.f32 %v12342_v31, %v12363_v44  ;;  %v12511_v22 = vld [vmem:[#allocation3 + $0x78] sm:$0xff] }
 0x27a   : > { %v3569_v55 = vmul.f32 %v9552_v21, %v12215_v57  ;;  %v5478_v25 = vadd.f32 %v5369_v54, %v5233_v39  ;;  %v16275_v58 = vrot.slane %v12491_v62, 1  ;;  %v16384_v28 = vrot.slane %v12477_v33, 2  ;;  %v12513_v54 = vld [vmem:[#allocation3 + $0x80] sm:$0xff]  ;;  %6574 = vst.msk [vmem:[#allocation3 + $0x78] sm:$0xff] %vm3689_vm5, %v16382_v23 }
 0x27b   : > { %v3458_v9 = vpop.f32.mrf.mxu1  ;;  %9601 = vmatprep.mubr.msk.f32.mxu0 %vm3689_vm5, %v5619_v12  ;;  %v4675_v30 = vadd.f32 %v4568_v63, %v4430_v7  ;;  %v12509_v35 = vmul.f32 %v12394_v61, %v12365_v1  ;;  %v5370_v18 = vrot.slane %v5272_v4, 2  ;;  %v3840_v63 = vmul.f32 %v12247_v49, %v12296_v11  ;;  %6575 = vst.msk [vmem:[#allocation3 + $0x80] sm:$0xff] %vm3689_vm5, %v16382_v23 }
 0x27c   : > { %v4813_v37 = vsel %vm1354_vm3, %v4811_v51, %v16384_v28  ;;  %v3608_v39 = vadd.f32 %v12222_v6, %v3569_v55  ;;  %v3568_v21 = vmul.f32 %v12215_v57, %v3458_v9  ;;  %v5517_v12 = vmul.f32 %v12422_v59, %v5478_v25 }
 0x27d   : > { %v4920_v28 = vadd.f32 %v4813_v37, %v4675_v30  ;;  %v5127_v51 = vsel %vm1108_vm2, %v5125_v46, %v16275_v58  ;;  %v5371_v7 = vrot.slane %v12509_v35, 2  ;;  %v4010_v9 = vrot.slane %v12305_v53, 1  ;;  %v12538_v35 = vld [vmem:[#allocation3 + $0x90] sm:$0xff]  ;;  %v12540_v53 = vld [vmem:[#allocation3 + $0x98] sm:$0xff] }
 0x27e   : > { %v3640_v4 = vmax.f32 %v3608_v39, 0.0  ;;  %v3607_v55 = vadd.f32 %v12222_v6, %v3568_v21  ;;  %v5556_v11 = vadd.f32 %v12447_v5, %v5517_v12  ;;  %v4255_v25 = vrot.slane %v12323_v42, 2  ;;  %6577 = vst.msk [vmem:[#allocation3 + $0x90] sm:$0xff] %vm3689_vm5, %v16382_v23  ;;  %6578 = vst.msk [vmem:[#allocation3 + $0x98] sm:$0xff] %vm3689_vm5, %v16382_v23 }
 0x27f   : > { %v4989_v34 = vadd.f32 %v4957_v17, %v4920_v28  ;;  %v5372_v8 = vsel %vm1354_vm3, %v5370_v18, %v5371_v7  ;;  %v16385_v30 = vrot.slane %v12429_v41, 1  ;;  %v4399_v46 = vmul.f32 %v12292_v24, %v12332_v26 }
 0x280   : > { %v3672_v39 = vmin.f32 %v3640_v4, 6.0  ;;  %v3639_v21 = vmax.f32 %v3607_v55, 0.0  ;;  %v5588_v58 = vmax.f32 %v5556_v11, 0.0  ;;  %v16386_v41 = vrot.slane %v12439_v45, 2 }
 0x281   : > { %v4011_v37 = vsel %vm1108_vm2, %v16385_v30, %v4010_v9  ;;  %v5234_v42 = vadd.f32 %v5127_v51, %v4989_v34  ;;  %v4470_v18 = vmul.f32 %v12277_v38, %v12314_v48  ;;  %v4715_v28 = vmul.f32 %v12282_v32, %v12314_v48  ;;  %v12560_v30 = vld [vmem:[#allocation3 + $0xb0] sm:$0xff] }
 0x282   : > { %v4117_v12 = vadd.f32 %v4011_v37, %v3840_v63  ;;  %v4256_v17 = vsel %vm1354_vm3, %v16386_v41, %v4255_v25  ;;  %3761 = vst.msk [vmem:[#allocation3 + $0xc9] sm:$0xff] %vm3689_vm5, %v3672_v39  ;;  %v3671_v63 = vmin.f32 %v3639_v21, 6.0  ;;  %v5620_v9 = vmin.f32 %v5588_v58, 6.0  ;;  %v12558_v25 = vld [vmem:[#allocation3 + $0xa8] sm:$0xff]  ;;  %6581 = vst.msk [vmem:[#allocation3 + $0xb0] sm:$0xff] %vm3689_vm5, %v16382_v23 }
 0x283   : > { %v5029_v55 = vmul.f32 %v12373_v15, %v12348_v56  ;;  %v5479_v11 = vadd.f32 %v5372_v8, %v5234_v42  ;;  %v4569_v34 = vrot.slane %v4470_v18, 1  ;;  %v4814_v51 = vrot.slane %v4715_v28, 2  ;;  %6580 = vst.msk [vmem:[#allocation3 + $0xa8] sm:$0xff] %vm3689_vm5, %v16382_v23 }
 0x284   : > { %v4362_v4 = vadd.f32 %v4256_v17, %v4117_v12  ;;  %v5274_v45 = vmul.f32 %v12394_v61, %v12348_v56  ;;  %3760 = vst.msk [vmem:[#allocation3 + $0xc1] sm:$0xff] %vm3689_vm5, %v3671_v63  ;;  %9602 = vmatmul.mubr.msk.f32.vlgmr.msra.gmra.mxu0 %vm3689_vm5, %v5620_v9  ;;  %v4958_v58 = vmul.f32 %v12342_v31, %v12365_v1  ;;  %v16387_v12 = vrot.slane %v12460_v36, 1 }
 0x285   : > { %v5128_v39 = vrot.slane %v5029_v55, 1  ;;  %v3912_v8 = vmul.f32 %v12210_v47, %v12330_v27  ;;  %v5518_v21 = vmul.f32 %v12422_v59, %v5479_v11  ;;  %v3841_v17 = vmul.f32 %v12247_v49, %v12330_v27 }
 0x286   : > { %v4431_v37 = vadd.f32 %v4399_v46, %v4362_v4  ;;  %v4570_v42 = vsel %vm1108_vm2, %v16387_v12, %v4569_v34  ;;  %v16388_v46 = vrot.slane %v12477_v33, 2  ;;  %v5373_v28 = vrot.slane %v5274_v45, 2 }
 0x287   : > { %v12583_v63 = vmul.f32 %v12210_v47, %v12332_v26  ;;  %v4012_v9 = vrot.slane %v3912_v8, 1  ;;  %v5557_v4 = vadd.f32 %v12447_v5, %v5518_v21  ;;  %v16389_v36 = vrot.slane %v12491_v62, 1 }
 0x288   : > { %v4815_v41 = vsel %vm1354_vm3, %v16388_v46, %v4814_v51  ;;  %v4676_v18 = vadd.f32 %v4570_v42, %v4431_v37  ;;  %v4157_v33 = vmul.f32 %v12229_v14, %v12330_v27  ;;  %v12593_v11 = vmul.f32 %v12229_v14, %v12332_v26 }
 0x289   : > { %v5129_v55 = vsel %vm1108_vm2, %v16389_v36, %v5128_v39  ;;  %v5374_v51 = vsel %vm1354_vm3, %v5371_v7, %v5373_v28  ;;  %v16276_v45 = vrot.slane %v12583_v63, 1  ;;  %v4471_v37 = vmul.f32 %v12277_v38, %v12363_v44  ;;  %v12599_v8 = vld [vmem:[#allocation3 + $0xd0] sm:$0x3] }
 0x28a   : > { %v4921_v34 = vadd.f32 %v4815_v41, %v4676_v18  ;;  %v5589_v62 = vmax.f32 %v5557_v4, 0.0  ;;  %v4257_v21 = vrot.slane %v4157_v33, 2  ;;  %v16278_v39 = vrot.slane %v12593_v11, 2  ;;  %6585 = vst.msk [vmem:[#allocation3 + $0xd0] sm:$0x3] %vm3692_vm6, %v16382_v23 }
 0x28b   : > { %v12604_v27 = vmul.f32 %v12277_v38, %v12365_v1  ;;  %v4014_v7 = vsel %vm1108_vm2, %v4012_v9, %v16276_v45  ;;  %v4400_v42 = vmul.f32 %v12292_v24, %v12363_v44  ;;  %v4716_v46 = vmul.f32 %v12282_v32, %v12363_v44  ;;  %v12618_v36 = vld [vmem:[#allocation3 + $0xc0] sm:$0xff] }
 0x28c   : > { %v4990_v12 = vadd.f32 %v4958_v58, %v4921_v34  ;;  %v5621_v41 = vmin.f32 %v5589_v62, 6.0  ;;  %v4118_v18 = vadd.f32 %v4014_v7, %v3841_v17  ;;  %v4259_v28 = vsel %vm1354_vm3, %v4257_v21, %v16278_v39  ;;  %v12620_v58 = vld [vmem:[#allocation3 + $0xc8] sm:$0xff]  ;;  %v9555_v33 = vpop.f32.mrf.mxu1  ;;  %6583 = vst.msk [vmem:[#allocation3 + $0xc0] sm:$0xff] %vm3689_vm5, %v16382_v23 }
 0x28d   : > { %v4571_v4 = vrot.slane %v4471_v37, 1  ;;  %v4572_v9 = vrot.slane %v12604_v27, 1  ;;  %v12625_v45 = vmul.f32 %v12282_v32, %v12365_v1  ;;  %v4816_v13 = vrot.slane %v4716_v46, 2  ;;  %6584 = vst.msk [vmem:[#allocation3 + $0xc8] sm:$0xff] %vm3689_vm5, %v16382_v23 }
 0x28e   : > { %v5235_v34 = vadd.f32 %v5129_v55, %v4990_v12  ;;  %v3571_v17 = vmul.f32 %v9555_v33, %v12215_v57  ;;  %9604 = vmatprep.mubr.msk.f32.mxu0 %vm3689_vm5, %v5621_v41  ;;  %v4363_v37 = vadd.f32 %v4259_v28, %v4118_v18  ;;  %v4959_v55 = vmul.f32 %v12342_v31, %v12481_v43  ;;  %v3468_v21 = vpop.f32.mrf.mxu1 }
 0x28f   : > { %v5030_v62 = vmul.f32 %v12373_v15, %v12481_v43  ;;  %v4817_v12 = vrot.slane %v12625_v45, 2  ;;  %v5031_v7 = vmul.f32 %v12373_v15, %v12483_v20  ;;  %v5275_v46 = vmul.f32 %v12394_v61, %v12481_v43 }
 0x290   : > { %v5480_v27 = vadd.f32 %v5374_v51, %v5235_v34  ;;  %v3610_v33 = vadd.f32 %v12222_v6, %v3571_v17  ;;  %v3570_v41 = vmul.f32 %v12215_v57, %v3468_v21  ;;  %v4432_v18 = vadd.f32 %v4400_v42, %v4363_v37 }
 0x291   : > { %v5130_v28 = vrot.slane %v5030_v62, 1  ;;  %v4573_v3 = vsel %vm1108_vm2, %v4571_v4, %v4572_v9  ;;  %v5131_v0 = vrot.slane %v5031_v7, 1  ;;  %v5276_v51 = vmul.f32 %v12394_v61, %v12483_v20 }
 0x292   : > { %v5519_v39 = vmul.f32 %v12422_v59, %v5480_v27  ;;  %v3642_v45 = vmax.f32 %v3610_v33, 0.0  ;;  %v3609_v34 = vadd.f32 %v12222_v6, %v3570_v41  ;;  %v4677_v52 = vadd.f32 %v4573_v3, %v4432_v18 }
 0x293   : > { %v5375_v29 = vrot.slane %v5275_v46, 2  ;;  %v4818_v17 = vsel %vm1354_vm3, %v4816_v13, %v4817_v12  ;;  %v5132_v42 = vsel %vm1108_vm2, %v5130_v28, %v5131_v0  ;;  %v5376_v37 = vrot.slane %v5276_v51, 2 }
 0x294   : > { %v5558_v19 = vadd.f32 %v12447_v5, %v5519_v39  ;;  %v3674_v62 = vmin.f32 %v3642_v45, 6.0  ;;  %v3641_v21 = vmax.f32 %v3609_v34, 0.0  ;;  %v4922_v27 = vadd.f32 %v4818_v17, %v4677_v52 }
 0x295   : > { %v3914_v4 = vmul.f32 %v12210_v47, %v12314_v48  ;;  %v5377_v33 = vsel %vm1354_vm3, %v5375_v29, %v5376_v37  ;;  %v3842_v3 = vmul.f32 %v12247_v49, %v12332_v26  ;;  %v4159_v39 = vmul.f32 %v12229_v14, %v12314_v48 }
 0x296   : > { %v5590_v7 = vmax.f32 %v5558_v19, 0.0  ;;  %3763 = vst.msk [vmem:[#allocation3 + $0xe1] sm:$0xff] %vm3689_vm5, %v3674_v62  ;;  %v3673_v13 = vmin.f32 %v3641_v21, 6.0  ;;  %v4991_v46 = vadd.f32 %v4959_v55, %v4922_v27  ;;  %v4473_v52 = vmul.f32 %v12277_v38, %v12348_v56 }
 0x297   : > { %v4015_v41 = vrot.slane %v3914_v4, 1  ;;  %v4260_v28 = vrot.slane %v4159_v39, 2  ;;  %v4401_v19 = vmul.f32 %v12292_v24, %v12365_v1  ;;  %v4718_v29 = vmul.f32 %v12282_v32, %v12348_v56 }
 0x298   : > { %v5622_v18 = vmin.f32 %v5590_v7, 6.0  ;;  %3762 = vst.msk [vmem:[#allocation3 + $0xd9] sm:$0xff] %vm3689_vm5, %v3673_v13  ;;  %v5236_v26 = vadd.f32 %v5132_v42, %v4991_v46  ;;  %v16390_v48 = vrot.slane %v12583_v63, 1  ;;  %v4574_v55 = vrot.slane %v4473_v52, 1 }
 0x299   : > { %v5032_v45 = vmul.f32 %v12373_v15, %v12379_v10  ;;  %v4819_v17 = vrot.slane %v4718_v29, 2  ;;  %v4960_v62 = vmul.f32 %v12342_v31, %v12483_v20  ;;  %v5277_v21 = vmul.f32 %v12394_v61, %v12379_v10 }
 0x29a   : > { %v4016_v51 = vsel %vm1108_vm2, %v16390_v48, %v4015_v41  ;;  %9605 = vmatmul.mubr.msk.f32.gmra.mxu0 %vm3689_vm5, %v5622_v18  ;;  %v5481_v27 = vadd.f32 %v5377_v33, %v5236_v26  ;;  %v16391_v42 = vrot.slane %v12593_v11, 2  ;;  %v4575_v4 = vsel %vm1108_vm2, %v4572_v9, %v4574_v55 }
 0x29b   : > { %v4119_v34 = vadd.f32 %v4016_v51, %v3842_v3  ;;  %v5133_v7 = vrot.slane %v5032_v45, 1  ;;  %v4820_v13 = vsel %vm1354_vm3, %v4817_v12, %v4819_v17  ;;  %v3843_v3 = vmul.f32 %v12247_v49, %v12363_v44 }
 0x29c   : > { %v4261_v63 = vsel %vm1354_vm3, %v16391_v42, %v4260_v28  ;;  %v3915_v46 = vmul.f32 %v12210_v47, %v12363_v44  ;;  %v5520_v41 = vmul.f32 %v12422_v59, %v5481_v27  ;;  %v5378_v52 = vrot.slane %v5277_v21, 2 }
 0x29d   : > { %v4364_v39 = vadd.f32 %v4261_v63, %v4119_v34  ;;  %v12689_v11 = vmul.f32 %v12210_v47, %v12365_v1  ;;  %v4160_v9 = vmul.f32 %v12229_v14, %v12363_v44  ;;  %v12693_v33 = vld [vmem:[#allocation3 + $0xe8] sm:$0x3]  ;;  %v5134_v12 = vsel %vm1108_vm2, %v5131_v0, %v5133_v7 }
 0x29e   : > { %v4017_v28 = vrot.slane %v3915_v46, 1  ;;  %v12698_v29 = vmul.f32 %v12229_v14, %v12365_v1  ;;  %6588 = vst.msk [vmem:[#allocation3 + $0xe8] sm:$0x3] %vm3692_vm6, %v16382_v23  ;;  %v5559_v26 = vadd.f32 %v12447_v5, %v5520_v41  ;;  %v5379_v48 = vsel %vm1354_vm3, %v5376_v37, %v5378_v52 }
 0x29f   : > { %v4433_v18 = vadd.f32 %v4401_v19, %v4364_v39  ;;  %v16284_v51 = vrot.slane %v12689_v11, 1  ;;  %v4262_v44 = vrot.slane %v4160_v9, 2  ;;  %v4474_v0 = vmul.f32 %v12277_v38, %v12481_v43  ;;  %v12712_v34 = vld [vmem:[#allocation3 + $0xd8] sm:$0xff]  ;;  %v12714_v17 = vld [vmem:[#allocation3 + $0xe0] sm:$0xff] }
 0x2a0   : > { %v4263_v19 = vrot.slane %v12698_v29, 2  ;;  %v12710_v45 = vmul.f32 %v12277_v38, %v12483_v20  ;;  %v5591_v21 = vmax.f32 %v5559_v26, 0.0  ;;  %v4719_v27 = vmul.f32 %v12282_v32, %v12481_v43  ;;  %6586 = vst.msk [vmem:[#allocation3 + $0xd8] sm:$0xff] %vm3689_vm5, %v16382_v23  ;;  %6587 = vst.msk [vmem:[#allocation3 + $0xe0] sm:$0xff] %vm3689_vm5, %v16382_v23  ;;  %v9558_v63 = vpop.f32.mrf.mxu1 }
 0x2a1   : > { %v4678_v55 = vadd.f32 %v4575_v4, %v4433_v18  ;;  %v4019_v37 = vsel %vm1108_vm2, %v4017_v28, %v16284_v51  ;;  %v12723_v42 = vmul.f32 %v12282_v32, %v12483_v20  ;;  %v4402_v39 = vmul.f32 %v12292_v24, %v12481_v43 }
 0x2a2   : > { %v4120_v7 = vadd.f32 %v4019_v37, %v3843_v3  ;;  %v4576_v46 = vrot.slane %v4474_v0, 1  ;;  %v3573_v41 = vmul.f32 %v9558_v63, %v12215_v57  ;;  %v5623_v52 = vmin.f32 %v5591_v21, 6.0  ;;  %v3478_v28 = vpop.f32.mrf.mxu1 }
 0x2a3   : > { %v4923_v4 = vadd.f32 %v4820_v13, %v4678_v55  ;;  %v4264_v9 = vsel %vm1354_vm3, %v4262_v44, %v4263_v19  ;;  %v4577_v18 = vrot.slane %v12710_v45, 1  ;;  %v4821_v16 = vrot.slane %v4719_v27, 2 }
 0x2a4   : > { %v4365_v51 = vadd.f32 %v4264_v9, %v4120_v7  ;;  %v4822_v13 = vrot.slane %v12723_v42, 2  ;;  %v3612_v3 = vadd.f32 %v12222_v6, %v3573_v41  ;;  %v3572_v55 = vmul.f32 %v12215_v57, %v3478_v28  ;;  %9607 = vmatprep.mubr.msk.f32.mxu0 %vm3689_vm5, %v5623_v52 }
 0x2a5   : > { %v4992_v26 = vadd.f32 %v4960_v62, %v4923_v4  ;;  %v4961_v0 = vmul.f32 %v12342_v31, %v12511_v22  ;;  %v5033_v44 = vmul.f32 %v12373_v15, %v12511_v22  ;;  %v4578_v62 = vsel %vm1108_vm2, %v4576_v46, %v4577_v18 }
 0x2a6   : > { %v4434_v45 = vadd.f32 %v4402_v39, %v4365_v51  ;;  %v5034_v37 = vmul.f32 %v12373_v15, %v12513_v54  ;;  %v3644_v27 = vmax.f32 %v3612_v3, 0.0  ;;  %v3611_v42 = vadd.f32 %v12222_v6, %v3572_v55 }
 0x2a7   : > { %v5237_v21 = vadd.f32 %v5134_v12, %v4992_v26  ;;  %v5135_v63 = vrot.slane %v5033_v44, 1  ;;  %v5278_v57 = vmul.f32 %v12394_v61, %v12511_v22  ;;  %v12752_v52 = vmul.f32 %v12394_v61, %v12513_v54 }
 0x2a8   : > { %v4679_v7 = vadd.f32 %v4578_v62, %v4434_v45  ;;  %v5136_v41 = vrot.slane %v5034_v37, 1  ;;  %v3676_v12 = vmin.f32 %v3644_v27, 6.0  ;;  %v3643_v51 = vmax.f32 %v3611_v42, 0.0 }
 0x2a9   : > { %v5482_v4 = vadd.f32 %v5379_v48, %v5237_v21  ;;  %v4823_v39 = vsel %vm1354_vm3, %v4821_v16, %v4822_v13  ;;  %v5380_v46 = vrot.slane %v5278_v57, 2  ;;  %v5381_v6 = vrot.slane %v12752_v52, 2 }
 0x2aa   : > { %v4924_v28 = vadd.f32 %v4823_v39, %v4679_v7  ;;  %v3844_v26 = vmul.f32 %v12247_v49, %v12365_v1  ;;  %3765 = vst.msk [vmem:[#allocation3 + $0xf9] sm:$0xff] %vm3689_vm5, %v3676_v12  ;;  %v3675_v48 = vmin.f32 %v3643_v51, 6.0  ;;  %v5137_v3 = vsel %vm1108_vm2, %v5135_v63, %v5136_v41 }
 0x2ab   : > { %v5521_v9 = vmul.f32 %v12422_v59, %v5482_v4  ;;  %v3917_v55 = vmul.f32 %v12210_v47, %v12348_v56  ;;  %v4162_v16 = vmul.f32 %v12229_v14, %v12348_v56  ;;  %v4403_v45 = vmul.f32 %v12292_v24, %v12483_v20 }
 0x2ac   : > { %v4993_v21 = vadd.f32 %v4961_v0, %v4924_v28  ;;  %v4476_v1 = vmul.f32 %v12277_v38, %v12379_v10  ;;  %3764 = vst.msk [vmem:[#allocation3 + $0xf1] sm:$0xff] %vm3689_vm5, %v3675_v48  ;;  %v5382_v62 = vsel %vm1354_vm3, %v5380_v46, %v5381_v6  ;;  %v4721_v56 = vmul.f32 %v12282_v32, %v12379_v10 }
 0x2ad   : > { %v5560_v44 = vadd.f32 %v12447_v5, %v5521_v9  ;;  %v4020_v37 = vrot.slane %v3917_v55, 1  ;;  %v4265_v27 = vrot.slane %v4162_v16, 2  ;;  %v4962_v0 = vmul.f32 %v12342_v31, %v12513_v54 }
 0x2ae   : > { %v5238_v63 = vadd.f32 %v5137_v3, %v4993_v21  ;;  %v5035_v57 = vmul.f32 %v12373_v15, %v12403_v2  ;;  %v16392_v4 = vrot.slane %v12689_v11, 1  ;;  %v4579_v12 = vrot.slane %v4476_v1, 1 }
 0x2af   : > { %v5592_v42 = vmax.f32 %v5560_v44, 0.0  ;;  %v4824_v51 = vrot.slane %v4721_v56, 2  ;;  %v5280_v39 = vmul.f32 %v12394_v61, %v12403_v2  ;;  %v4266_v48 = vsel %vm1354_vm3, %v4263_v19, %v4265_v27 }
 0x2b0   : > { %v4021_v7 = vsel %vm1108_vm2, %v16392_v4, %v4020_v37  ;;  %v5483_v9 = vadd.f32 %v5382_v62, %v5238_v63  ;;  %v4580_v3 = vsel %vm1108_vm2, %v4577_v18, %v4579_v12  ;;  %v5138_v16 = vrot.slane %v5035_v57, 1 }
 0x2b1   : > { %v5624_v46 = vmin.f32 %v5592_v42, 6.0  ;;  %v4121_v28 = vadd.f32 %v4021_v7, %v3844_v26  ;;  %v4825_v55 = vsel %vm1354_vm3, %v4822_v13, %v4824_v51  ;;  %v5383_v11 = vrot.slane %v5280_v39, 2  ;;  %v12790_v44 = vld [vmem:[#allocation3 + $0x100] sm:$0x3] }
 0x2b2   : > { %v5522_v21 = vmul.f32 %v12422_v59, %v5483_v9  ;;  %v3918_v26 = vmul.f32 %v12210_v47, %v12481_v43  ;;  %v12798_v29 = vmul.f32 %v12210_v47, %v12483_v20  ;;  %6591 = vst.msk [vmem:[#allocation3 + $0x100] sm:$0x3] %vm3692_vm6, %v16382_v23  ;;  %v5139_v19 = vsel %vm1108_vm2, %v5136_v41, %v5138_v16  ;;  %v12845_v16 = vld [vmem:[%s16379_s8] ss:$0 sm:$0xff]  ;;  %s9891_s8 = sshll.u32 %s9950_s29, 4  ;;  %s9892_s8 = int_to_ptr.vmem [resolvable:$false] %s9891_s8 }
 0x2b3   : > { %9608 = vmatmul.mubr.msk.f32.gmra.mxu0 %vm3689_vm5, %v5624_v46  ;;  %v4366_v1 = vadd.f32 %v4266_v48, %v4121_v28  ;;  %v3845_v18 = vmul.f32 %v12247_v49, %v12481_v43  ;;  %v4163_v13 = vmul.f32 %v12229_v14, %v12481_v43  ;;  %v12809_v62 = vmul.f32 %v12229_v14, %v12483_v20  ;;  %v12813_v42 = vld [vmem:[#allocation3 + $0xf0] sm:$0xff]  ;;  %v12815_v63 = vld [vmem:[#allocation3 + $0xf8] sm:$0xff]  ;;  %v9561_v41 = vpop.f32.mrf.mxu1  ;;  %p9894_p0 = scmp.lt.s32.totalorder %s16159_s6, %s9892_s8 }
 0x2b4   : > { %v5561_v37 = vadd.f32 %v12447_v5, %v5522_v21  ;;  %v4022_v47 = vrot.slane %v3918_v26, 1  ;;  %v4023_v56 = vrot.slane %v12798_v29, 1  ;;  %v4404_v43 = vmul.f32 %v12292_v24, %v12511_v22  ;;  %6589 = vst.msk [vmem:[#allocation3 + $0xf0] sm:$0xff] %vm3689_vm5, %v16382_v23  ;;  %6590 = vst.msk [vmem:[#allocation3 + $0xf8] sm:$0xff] %vm3689_vm5, %v16382_v23 }
 0x2b5   : > { %v4435_v27 = vadd.f32 %v4403_v45, %v4366_v1  ;;  %v4267_v57 = vrot.slane %v4163_v13, 2  ;;  %v4268_v49 = vrot.slane %v12809_v62, 2  ;;  %v4477_v14 = vmul.f32 %v12277_v38, %v12511_v22  ;;  %v12829_v45 = vld [vmem:[%s16378_s5] ss:$0 sm:$0xff]  ;;  %v3488_v39 = vpop.f32.mrf.mxu1  ;;  %s9893_s5 = scalar_lea.vmem %s9892_s8, 8192 }
 0x2b6   : > { %v3575_v4 = vmul.f32 %v12829_v45, %v9561_v41  ;;  %v5593_v7 = vmax.f32 %v5561_v37, 0.0  ;;  %v4024_v51 = vsel %vm1108_vm2, %v4022_v47, %v4023_v56  ;;  %v12840_v28 = vmul.f32 %v12277_v38, %v12513_v54  ;;  %p9895_p1 = scmp.lt.s32.totalorder %s9893_s5, %s9887_s1 }
 0x2b7   : > { %v4680_v12 = vadd.f32 %v4580_v3, %v4435_v27  ;;  %v4122_v46 = vadd.f32 %v4024_v51, %v3845_v18  ;;  %v4269_v9 = vsel %vm1354_vm3, %v4267_v57, %v4268_v49  ;;  %v4581_v48 = vrot.slane %v4477_v14, 1 }
 0x2b8   : > { %v3614_v3 = vadd.f32 %v12845_v16, %v3575_v4  ;;  %v3574_v21 = vmul.f32 %v12829_v45, %v3488_v39  ;;  %v5625_v1 = vmin.f32 %v5593_v7, 6.0  ;;  %v4582_v13 = vrot.slane %v12840_v28, 1  ;;  %p9896_p2 = por %p9895_p1, %p9894_p0 }
 0x2b9   : > { %v4925_v26 = vadd.f32 %v4825_v55, %v4680_v12  ;;  %v4367_v18 = vadd.f32 %v4269_v9, %v4122_v46  ;;  %v4722_v37 = vmul.f32 %v12282_v32, %v12511_v22  ;;  %v12854_v27 = vmul.f32 %v12282_v32, %v12513_v54 }
 0x2ba   : > { %v3646_v47 = vmax.f32 %v3614_v3, 0.0  ;;  %v3613_v41 = vadd.f32 %v12845_v16, %v3574_v21  ;;  %9610 = vmatprep.mubr.msk.f32.mxu0 %vm3689_vm5, %v5625_v1  ;;  %v5384_v55 = vsel %vm1354_vm3, %v5381_v6, %v5383_v11  ;;  %v4583_v4 = vsel %vm1108_vm2, %v4581_v48, %v4582_v13  ;;  %p9897_p3 = pnand %p9896_p2, %p9890_p13 }
 0x2bb   : > { %v4994_v57 = vadd.f32 %v4962_v0, %v4925_v26  ;;  %v4436_v14 = vadd.f32 %v4404_v43, %v4367_v18  ;;  %v4826_v7 = vrot.slane %v4722_v37, 2  ;;  %v4827_v12 = vrot.slane %v12854_v27, 2  ;;  %v12883_v27 = vld [vmem:[%s16377_s10 + $0x1] ss:$0 sm:$0xff] }
 0x2bc   : > { %v3678_v51 = vmin.f32 %v3646_v47, 6.0  ;;  %v3645_v39 = vmax.f32 %v3613_v41, 0.0  ;;  %v5036_v9 = vmul.f32 %v12373_v15, %v12538_v35  ;;  %v5037_v52 = vmul.f32 %v12373_v15, %v12540_v53  ;;  %v12890_v41 = vld [vmem:[%s16377_s10 + $0x2] ss:$0 sm:$0xff] }
 0x2bd   : > { %v5239_v46 = vadd.f32 %v5139_v19, %v4994_v57  ;;  %v4681_v28 = vadd.f32 %v4583_v4, %v4436_v14  ;;  %v4828_v3 = vsel %vm1354_vm3, %v4826_v7, %v4827_v12  ;;  %v5281_v6 = vmul.f32 %v12394_v61, %v12538_v35  ;;  %v12898_v4 = vld [vmem:[%s16377_s10] ss:$0 sm:$0xff] }
 0x2be   : > { %3767 = vst.msk [vmem:[#allocation3 + $0x111] sm:$0xff] %vm3689_vm5, %v3678_v51  ;;  %v3677_v0 = vmin.f32 %v3645_v39, 6.0  ;;  %v5140_v43 = vrot.slane %v5036_v9, 1  ;;  %v12873_v19 = vmul.f32 %v12394_v61, %v12540_v53  ;;  %v4963_v21 = vmul.f32 %v12342_v31, %v12538_v35 }
 0x2bf   : > { %v5484_v11 = vadd.f32 %v5384_v55, %v5239_v46  ;;  %v4926_v48 = vadd.f32 %v4828_v3, %v4681_v28  ;;  %v5141_v1 = vrot.slane %v5037_v52, 1  ;;  %v5385_v26 = vrot.slane %v5281_v6, 2 }
 0x2c0   : > { %3766 = vst.msk [vmem:[#allocation3 + $0x109] sm:$0xff] %vm3689_vm5, %v3677_v0  ;;  %v5386_v37 = vrot.slane %v12873_v19, 2  ;;  %v3920_v47 = vmul.f32 %v12883_v27, %v12379_v10  ;;  %v4165_v57 = vmul.f32 %v12890_v41, %v12379_v10  ;;  %v3846_v7 = vmul.f32 %v12898_v4, %v12483_v20 }
 0x2c1   : > { %v5523_v18 = vmul.f32 %v12422_v59, %v5484_v11  ;;  %v4995_v55 = vadd.f32 %v4963_v21, %v4926_v48  ;;  %v5142_v14 = vsel %vm1108_vm2, %v5140_v43, %v5141_v1  ;;  %v4479_v51 = vmul.f32 %v12277_v38, %v12403_v2 }
 0x2c2   : > { %v5387_v10 = vsel %vm1354_vm3, %v5385_v26, %v5386_v37  ;;  %v4025_v46 = vrot.slane %v3920_v47, 1  ;;  %v4405_v9 = vmul.f32 %v12292_v24, %v12513_v54  ;;  %v4270_v3 = vrot.slane %v4165_v57, 2 }
 0x2c3   : > { %v5562_v39 = vadd.f32 %v12447_v5, %v5523_v18  ;;  %v5240_v28 = vadd.f32 %v5142_v14, %v4995_v55  ;;  %v4584_v52 = vrot.slane %v4479_v51, 1  ;;  %v4724_v6 = vmul.f32 %v12282_v32, %v12403_v2 }
 0x2c4   : > { %v4026_v38 = vsel %vm1108_vm2, %v4023_v56, %v4025_v46  ;;  %v4964_v0 = vmul.f32 %v12342_v31, %v12540_v53  ;;  %v5038_v11 = vmul.f32 %v12373_v15, %v12431_v50  ;;  %v4271_v21 = vsel %vm1354_vm3, %v4268_v49, %v4270_v3 }
 0x2c5   : > { %v5594_v20 = vmax.f32 %v5562_v39, 0.0  ;;  %v12919_v43 = vld [vmem:[#allocation3 + $0x118] sm:$0x3]  ;;  %v5485_v24 = vadd.f32 %v5387_v10, %v5240_v28  ;;  %v4123_v48 = vadd.f32 %v4026_v38, %v3846_v7  ;;  %v4585_v32 = vsel %vm1108_vm2, %v4582_v13, %v4584_v52 }
 0x2c6   : > { %6594 = vst.msk [vmem:[#allocation3 + $0x118] sm:$0x3] %vm3692_vm6, %v16382_v23  ;;  %v4829_v56 = vrot.slane %v4724_v6, 2  ;;  %v5143_v26 = vrot.slane %v5038_v11, 1  ;;  %v5283_v31 = vmul.f32 %v12394_v61, %v12431_v50  ;;  %v3847_v57 = vmul.f32 %v12898_v4, %v12511_v22 }
 0x2c7   : > { %v5626_v29 = vmin.f32 %v5594_v20, 6.0  ;;  %v5524_v18 = vmul.f32 %v12422_v59, %v5485_v24  ;;  %v4368_v47 = vadd.f32 %v4271_v21, %v4123_v48  ;;  %v3921_v62 = vmul.f32 %v12883_v27, %v12511_v22  ;;  %v12934_v49 = vld [vmem:[#allocation3 + $0x108] sm:$0xff]  ;;  %v12936_v13 = vld [vmem:[#allocation3 + $0x110] sm:$0xff]  ;;  %v9564_v39 = vpop.f32.mrf.mxu1 }
 0x2c8   : > { %v4830_v55 = vsel %vm1354_vm3, %v4827_v12, %v4829_v56  ;;  %v5144_v14 = vsel %vm1108_vm2, %v5141_v1, %v5143_v26  ;;  %v12943_v7 = vmul.f32 %v12883_v27, %v12513_v54  ;;  %v4166_v51 = vmul.f32 %v12890_v41, %v12511_v22  ;;  %6592 = vst.msk [vmem:[#allocation3 + $0x108] sm:$0xff] %vm3689_vm5, %v16382_v23 }
 0x2c9   : > { %9611 = vmatmul.mubr.msk.f32.gmra.mxu0 %vm3689_vm5, %v5626_v29  ;;  %6593 = vst.msk [vmem:[#allocation3 + $0x110] sm:$0xff] %vm3689_vm5, %v16382_v23  ;;  %v5563_v10 = vadd.f32 %v12447_v5, %v5524_v18  ;;  %v4437_v46 = vadd.f32 %v4405_v9, %v4368_v47  ;;  %v4027_v12 = vrot.slane %v3921_v62, 1  ;;  %v12954_v1 = vmul.f32 %v12890_v41, %v12513_v54  ;;  %v3498_v6 = vpop.f32.mrf.mxu1  ;;  %v12962_v9 = vld [vmem:[%s16377_s10 + $0x3] ss:$0 sm:$0xff] }
 0x2ca   : > { %v3577_v28 = vmul.f32 %v12829_v45, %v9564_v39  ;;  %v5388_v3 = vrot.slane %v5283_v31, 2  ;;  %v4028_v22 = vrot.slane %v12943_v7, 1  ;;  %v4272_v52 = vrot.slane %v4166_v51, 2 }
 0x2cb   : > { %v5595_v20 = vmax.f32 %v5563_v10, 0.0  ;;  %v4682_v38 = vadd.f32 %v4585_v32, %v4437_v46  ;;  %v4273_v11 = vrot.slane %v12954_v1, 2  ;;  %v4406_v24 = vmul.f32 %v12962_v9, %v12538_v35  ;;  %v12974_v32 = vld [vmem:[%s16377_s10 + $0x4] ss:$0 sm:$0xff] }
 0x2cc   : > { %v3616_v48 = vadd.f32 %v12845_v16, %v3577_v28  ;;  %v3576_v21 = vmul.f32 %v12829_v45, %v3498_v6  ;;  %v4029_v29 = vsel %vm1108_vm2, %v4027_v12, %v4028_v22  ;;  %v4480_v56 = vmul.f32 %v12974_v32, %v12538_v35 }
 0x2cd   : > { %v5627_v26 = vmin.f32 %v5595_v20, 6.0  ;;  %v4927_v31 = vadd.f32 %v4830_v55, %v4682_v38  ;;  %v4124_v18 = vadd.f32 %v4029_v29, %v3847_v57  ;;  %v4274_v47 = vsel %vm1354_vm3, %v4272_v52, %v4273_v11  ;;  %v12990_v57 = vld [vmem:[%s16377_s10 + $0x5] ss:$0 sm:$0xff] }
 0x2ce   : > { %v3648_v62 = vmax.f32 %v3616_v48, 0.0  ;;  %v3615_v51 = vadd.f32 %v12845_v16, %v3576_v21  ;;  %v12984_v39 = vmul.f32 %v12974_v32, %v12540_v53  ;;  %v4586_v10 = vrot.slane %v4480_v56, 1 }
 0x2cf   : > { %9613 = vmatprep.mubr.msk.f32.mxu0 %vm3689_vm5, %v5627_v26  ;;  %v4996_v46 = vadd.f32 %v4964_v0, %v4927_v31  ;;  %v4369_v12 = vadd.f32 %v4274_v47, %v4124_v18  ;;  %v4725_v55 = vmul.f32 %v12990_v57, %v12538_v35  ;;  %v12996_v28 = vmul.f32 %v12990_v57, %v12540_v53 }
 0x2d0   : > { %v3680_v52 = vmin.f32 %v3648_v62, 6.0  ;;  %v3647_v6 = vmax.f32 %v3615_v51, 0.0  ;;  %v5389_v20 = vsel %vm1354_vm3, %v5386_v37, %v5388_v3  ;;  %v4587_v0 = vrot.slane %v12984_v39, 1 }
 0x2d1   : > { %v5241_v38 = vadd.f32 %v5144_v14, %v4996_v46  ;;  %v4438_v48 = vadd.f32 %v4406_v24, %v4369_v12  ;;  %v4831_v21 = vrot.slane %v4725_v55, 2  ;;  %v4832_v29 = vrot.slane %v12996_v28, 2  ;;  %v13014_v14 = vld [vmem:[%s16377_s10 + $0x6] ss:$0 sm:$0xff] }
 0x2d2   : > { %3769 = vst.msk [vmem:[#allocation3 + $0x129] sm:$0xff] %vm3689_vm5, %v3680_v52  ;;  %v3679_v56 = vmin.f32 %v3647_v6, 6.0  ;;  %v4588_v26 = vsel %vm1108_vm2, %v4586_v10, %v4587_v0  ;;  %v5039_v31 = vmul.f32 %v12373_v15, %v12558_v25  ;;  %v13009_v19 = vmul.f32 %v12373_v15, %v12560_v30 }
 0x2d3   : > { %v5486_v37 = vadd.f32 %v5389_v20, %v5241_v38  ;;  %v4683_v3 = vadd.f32 %v4588_v26, %v4438_v48  ;;  %v4965_v24 = vmul.f32 %v13014_v14, %v12558_v25  ;;  %v5284_v18 = vmul.f32 %v12394_v61, %v12558_v25 }
 0x2d4   : > { %3768 = vst.msk [vmem:[#allocation3 + $0x121] sm:$0xff] %vm3689_vm5, %v3679_v56  ;;  %v4833_v47 = vsel %vm1354_vm3, %v4831_v21, %v4832_v29  ;;  %v5145_v62 = vrot.slane %v5039_v31, 1  ;;  %v5146_v15 = vrot.slane %v13009_v19, 1  ;;  %v13025_v51 = vmul.f32 %v12394_v61, %v12560_v30 }
 0x2d5   : > { %v5525_v39 = vmul.f32 %v12422_v59, %v5486_v37  ;;  %v4928_v10 = vadd.f32 %v4833_v47, %v4683_v3  ;;  %v5390_v46 = vrot.slane %v5284_v18, 2  ;;  %v3923_v12 = vmul.f32 %v12883_v27, %v12403_v2 }
 0x2d6   : > { %v5147_v55 = vsel %vm1108_vm2, %v5145_v62, %v5146_v15  ;;  %v5391_v28 = vrot.slane %v13025_v51, 2  ;;  %v3848_v52 = vmul.f32 %v12898_v4, %v12513_v54  ;;  %v4168_v6 = vmul.f32 %v12890_v41, %v12403_v2  ;;  %v13058_v62 = vld [vmem:[%s16377_s10 + $0x7] ss:$0 sm:$0xff] }
 0x2d7   : > { %v5564_v61 = vadd.f32 %v12447_v5, %v5525_v39  ;;  %v4997_v20 = vadd.f32 %v4965_v24, %v4928_v10  ;;  %v4030_v38 = vrot.slane %v3923_v12, 1  ;;  %v4482_v48 = vmul.f32 %v12974_v32, %v12431_v50 }
 0x2d8   : > { %v5392_v21 = vsel %vm1354_vm3, %v5390_v46, %v5391_v28  ;;  %v4275_v56 = vrot.slane %v4168_v6, 2  ;;  %v4407_v26 = vmul.f32 %v12962_v9, %v12540_v53  ;;  %v4727_v54 = vmul.f32 %v12990_v57, %v12431_v50  ;;  %v13068_v46 = vld [vmem:[%s16377_s10 + $0x8] ss:$0 sm:$0xff] }
 0x2d9   : > { %v13046_v31 = vld [vmem:[#allocation3 + $0x130] sm:$0x3]  ;;  %v5596_v2 = vmax.f32 %v5564_v61, 0.0  ;;  %v5242_v19 = vadd.f32 %v5147_v55, %v4997_v20  ;;  %v4031_v37 = vsel %vm1108_vm2, %v4028_v22, %v4030_v38  ;;  %v4966_v3 = vmul.f32 %v13014_v14, %v12560_v30 }
 0x2da   : > { %6597 = vst.msk [vmem:[#allocation3 + $0x130] sm:$0x3] %vm3692_vm6, %v16382_v23  ;;  %v4125_v24 = vadd.f32 %v4031_v37, %v3848_v52  ;;  %v4589_v18 = vrot.slane %v4482_v48, 1  ;;  %v4834_v47 = vrot.slane %v4727_v54, 2  ;;  %v5041_v39 = vmul.f32 %v13058_v62, %v12464_v40  ;;  %v9567_v6 = vpop.f32.mrf.mxu1 }
 0x2db   : > { %v5628_v7 = vmin.f32 %v5596_v2, 6.0  ;;  %v5487_v10 = vadd.f32 %v5392_v21, %v5242_v19  ;;  %v4276_v22 = vsel %vm1354_vm3, %v4273_v11, %v4275_v56  ;;  %v5286_v12 = vmul.f32 %v13068_v46, %v12464_v40  ;;  %v13072_v55 = vld [vmem:[#allocation3 + $0x120] sm:$0xff]  ;;  %v13074_v52 = vld [vmem:[#allocation3 + $0x128] sm:$0xff] }
 0x2dc   : > { %v4370_v61 = vadd.f32 %v4276_v22, %v4125_v24  ;;  %v4590_v20 = vsel %vm1108_vm2, %v4587_v0, %v4589_v18  ;;  %v4835_v1 = vsel %vm1354_vm3, %v4832_v29, %v4834_v47  ;;  %v5148_v38 = vrot.slane %v5041_v39, 1  ;;  %6595 = vst.msk [vmem:[#allocation3 + $0x120] sm:$0xff] %vm3689_vm5, %v16382_v23  ;;  %6596 = vst.msk [vmem:[#allocation3 + $0x128] sm:$0xff] %vm3689_vm5, %v16382_v23  ;;  %v3508_v29 = vpop.f32.mrf.mxu1 }
 0x2dd   : > { %v3579_v11 = vmul.f32 %v12829_v45, %v9567_v6  ;;  %9614 = vmatmul.mubr.msk.f32.gmra.mxu0 %vm3689_vm5, %v5628_v7  ;;  %v5526_v48 = vmul.f32 %v12422_v59, %v5487_v10  ;;  %v3849_v21 = vmul.f32 %v12898_v4, %v12538_v35  ;;  %v3924_v0 = vmul.f32 %v12883_v27, %v12538_v35 }
 0x2de   : > { %v4439_v56 = vadd.f32 %v4407_v26, %v4370_v61  ;;  %v5393_v54 = vrot.slane %v5286_v12, 2  ;;  %v13091_v2 = vmul.f32 %v12883_v27, %v12540_v53  ;;  %v4169_v19 = vmul.f32 %v12890_v41, %v12538_v35 }
 0x2df   : > { %v3618_v37 = vadd.f32 %v12845_v16, %v3579_v11  ;;  %v3578_v59 = vmul.f32 %v12829_v45, %v3508_v29  ;;  %v5565_v24 = vadd.f32 %v12447_v5, %v5526_v48  ;;  %v5149_v18 = vsel %vm1108_vm2, %v5146_v15, %v5148_v38 }
 0x2e0   : > { %v4684_v47 = vadd.f32 %v4590_v20, %v4439_v56  ;;  %v4032_v39 = vrot.slane %v3924_v0, 1  ;;  %v4033_v26 = vrot.slane %v13091_v2, 1  ;;  %v13102_v7 = vmul.f32 %v12890_v41, %v12540_v53 }
 0x2e1   : > { %v3650_v10 = vmax.f32 %v3618_v37, 0.0  ;;  %v3617_v22 = vadd.f32 %v12845_v16, %v3578_v59  ;;  %v5597_v35 = vmax.f32 %v5565_v24, 0.0  ;;  %v4277_v12 = vrot.slane %v4169_v19, 2 }
 0x2e2   : > { %v4929_v6 = vadd.f32 %v4835_v1, %v4684_v47  ;;  %v4034_v5 = vsel %vm1108_vm2, %v4032_v39, %v4033_v26  ;;  %v4278_v15 = vrot.slane %v13102_v7, 2  ;;  %v4408_v61 = vmul.f32 %v12962_v9, %v12558_v25 }
 0x2e3   : > { %v3682_v20 = vmin.f32 %v3650_v10, 6.0  ;;  %v3649_v38 = vmax.f32 %v3617_v22, 0.0  ;;  %v5629_v11 = vmin.f32 %v5597_v35, 6.0  ;;  %v4126_v48 = vadd.f32 %v4034_v5, %v3849_v21 }
 0x2e4   : > { %v4998_v0 = vadd.f32 %v4966_v3, %v4929_v6  ;;  %v4279_v29 = vsel %vm1354_vm3, %v4277_v12, %v4278_v15  ;;  %v4483_v1 = vmul.f32 %v12974_v32, %v12558_v25  ;;  %v13118_v56 = vmul.f32 %v12974_v32, %v12560_v30 }
 0x2e5   : > { %3771 = vst.msk [vmem:[#allocation3 + $0x141] sm:$0xff] %vm3689_vm5, %v3682_v20  ;;  %v3681_v19 = vmin.f32 %v3649_v38, 6.0  ;;  %9616 = vmatprep.mubr.msk.f32.mxu0 %vm3689_vm5, %v5629_v11  ;;  %v4371_v37 = vadd.f32 %v4279_v29, %v4126_v48  ;;  %v4728_v3 = vmul.f32 %v12990_v57, %v12558_v25  ;;  %v13126_v21 = vmul.f32 %v12990_v57, %v12560_v30  ;;  %v13150_v38 = vld [vmem:[%s16383_s11] ss:$0 sm:$0xff] }
 0x2e6   : > { %v5243_v59 = vadd.f32 %v5149_v18, %v4998_v0  ;;  %v5394_v24 = vsel %vm1354_vm3, %v5391_v28, %v5393_v54  ;;  %v4591_v47 = vrot.slane %v4483_v1, 1  ;;  %v4592_v39 = vrot.slane %v13118_v56, 1 }
 0x2e7   : > { %3770 = vst.msk [vmem:[#allocation3 + $0x139] sm:$0xff] %vm3689_vm5, %v3681_v19  ;;  %v4440_v10 = vadd.f32 %v4408_v61, %v4371_v37  ;;  %v4836_v22 = vrot.slane %v4728_v3, 2  ;;  %v4837_v35 = vrot.slane %v13126_v21, 2  ;;  %v5042_v12 = vmul.f32 %v13058_v62, %v12618_v36  ;;  %v13164_v21 = vld [vmem:[%s16220_s12] ss:$0 sm:$0xff] }
 0x2e8   : > { %v5488_v6 = vadd.f32 %v5394_v24, %v5243_v59  ;;  %v4593_v5 = vsel %vm1108_vm2, %v4591_v47, %v4592_v39  ;;  %v5043_v51 = vmul.f32 %v13058_v62, %v12620_v58  ;;  %v5287_v28 = vmul.f32 %v13068_v46, %v12618_v36 }
 0x2e9   : > { %v4685_v54 = vadd.f32 %v4593_v5, %v4440_v10  ;;  %v4967_v18 = vmul.f32 %v13014_v14, %v12618_v36  ;;  %v5150_v61 = vrot.slane %v5042_v12, 1  ;;  %v13145_v20 = vmul.f32 %v13068_v46, %v12620_v58 }
 0x2ea   : > { %v5527_v11 = vmul.f32 %v13150_v38, %v5488_v6  ;;  %v4838_v48 = vsel %vm1354_vm3, %v4836_v22, %v4837_v35  ;;  %v5151_v0 = vrot.slane %v5043_v51, 1  ;;  %v5395_v29 = vrot.slane %v5287_v28, 2 }
 0x2eb   : > { %v4930_v1 = vadd.f32 %v4838_v48, %v4685_v54  ;;  %v16286_v56 = vrot.slane %v13145_v20, 2  ;;  %v3926_v19 = vmul.f32 %v12883_v27, %v12431_v50  ;;  %v4171_v37 = vmul.f32 %v12890_v41, %v12431_v50 }
 0x2ec   : > { %v13159_v3 = vld [vmem:[#allocation3 + $0x148] sm:$0x3]  ;;  %v5566_v59 = vadd.f32 %v13164_v21, %v5527_v11  ;;  %v5152_v24 = vsel %vm1108_vm2, %v5150_v61, %v5151_v0  ;;  %v3850_v47 = vmul.f32 %v12898_v4, %v12540_v53  ;;  %v4485_v10 = vmul.f32 %v12974_v32, %v12464_v40 }
 0x2ed   : > { %6600 = vst.msk [vmem:[#allocation3 + $0x148] sm:$0x3] %vm3692_vm6, %v16382_v23  ;;  %v4999_v50 = vadd.f32 %v4967_v18, %v4930_v1  ;;  %v5397_v22 = vsel %vm1354_vm3, %v5395_v29, %v16286_v56  ;;  %v4035_v12 = vrot.slane %v3926_v19, 1  ;;  %v4409_v6 = vmul.f32 %v12962_v9, %v12560_v30 }
 0x2ee   : > { %v5598_v5 = vmax.f32 %v5566_v59, 0.0  ;;  %v4280_v51 = vrot.slane %v4171_v37, 2  ;;  %v4594_v28 = vrot.slane %v4485_v10, 1  ;;  %v4730_v53 = vmul.f32 %v12990_v57, %v12464_v40  ;;  %v13181_v54 = vld [vmem:[#allocation3 + $0x138] sm:$0xff]  ;;  %v13183_v61 = vld [vmem:[#allocation3 + $0x140] sm:$0xff]  ;;  %v9570_v1 = vpop.f32.mrf.mxu1 }
 0x2ef   : > { %v5244_v11 = vadd.f32 %v5152_v24, %v4999_v50  ;;  %v4036_v18 = vsel %vm1108_vm2, %v4033_v26, %v4035_v12  ;;  %v4968_v48 = vmul.f32 %v13014_v14, %v12620_v58  ;;  %v5044_v29 = vmul.f32 %v13058_v62, %v12599_v8  ;;  %6598 = vst.msk [vmem:[#allocation3 + $0x138] sm:$0xff] %vm3689_vm5, %v16382_v23 }
 0x2f0   : > { %6599 = vst.msk [vmem:[#allocation3 + $0x140] sm:$0xff] %vm3689_vm5, %v16382_v23  ;;  %v5630_v19 = vmin.f32 %v5598_v5, 6.0  ;;  %v4127_v37 = vadd.f32 %v4036_v18, %v3850_v47  ;;  %v4281_v2 = vsel %vm1354_vm3, %v4278_v15, %v4280_v51  ;;  %v4839_v26 = vrot.slane %v4730_v53, 2  ;;  %v3518_v12 = vpop.f32.mrf.mxu1 }
 0x2f1   : > { %v3581_v59 = vmul.f32 %v12829_v45, %v9570_v1  ;;  %v5489_v24 = vadd.f32 %v5397_v22, %v5244_v11  ;;  %v4595_v10 = vsel %vm1108_vm2, %v4592_v39, %v4594_v28  ;;  %v5153_v50 = vrot.slane %v5044_v29, 1 }
 0x2f2   : > { %9617 = vmatmul.mubr.msk.f32.gmra.mxu0 %vm3689_vm5, %v5630_v19  ;;  %v4372_v56 = vadd.f32 %v4281_v2, %v4127_v37  ;;  %v4840_v60 = vsel %vm1354_vm3, %v4837_v35, %v4839_v26  ;;  %v5289_v47 = vmul.f32 %v13068_v46, %v12599_v8  ;;  %v3927_v7 = vmul.f32 %v12883_v27, %v12558_v25 }
 0x2f3   : > { %v3620_v15 = vadd.f32 %v12845_v16, %v3581_v59  ;;  %v3580_v5 = vmul.f32 %v12829_v45, %v3518_v12  ;;  %v5528_v22 = vmul.f32 %v13150_v38, %v5489_v24  ;;  %v3851_v39 = vmul.f32 %v12898_v4, %v12558_v25 }
 0x2f4   : > { %v4441_v51 = vadd.f32 %v4409_v6, %v4372_v56  ;;  %v5154_v28 = vsel %vm1108_vm2, %v5151_v0, %v5153_v50  ;;  %v13215_v35 = vmul.f32 %v12883_v27, %v12560_v30  ;;  %v4037_v53 = vrot.slane %v3927_v7, 1 }
 0x2f5   : > { %v3652_v11 = vmax.f32 %v3620_v15, 0.0  ;;  %v3619_v18 = vadd.f32 %v12845_v16, %v3580_v5  ;;  %v5567_v29 = vadd.f32 %v13164_v21, %v5528_v22  ;;  %v4172_v1 = vmul.f32 %v12890_v41, %v12558_v25 }
 0x2f6   : > { %v4686_v19 = vadd.f32 %v4595_v10, %v4441_v51  ;;  %v5398_v37 = vrot.slane %v5289_v47, 2  ;;  %v4038_v2 = vrot.slane %v13215_v35, 1  ;;  %v13224_v0 = vmul.f32 %v12890_v41, %v12560_v30 }
 0x2f7   : > { %v3684_v56 = vmin.f32 %v3652_v11, 6.0  ;;  %v3651_v6 = vmax.f32 %v3619_v18, 0.0  ;;  %v5599_v26 = vmax.f32 %v5567_v29, 0.0  ;;  %v4282_v59 = vrot.slane %v4172_v1, 2 }
 0x2f8   : > { %v4931_v24 = vadd.f32 %v4840_v60, %v4686_v19  ;;  %v16393_v50 = vrot.slane %v13145_v20, 2  ;;  %v4039_v25 = vsel %vm1108_vm2, %v4037_v53, %v4038_v2  ;;  %v16290_v10 = vrot.slane %v13224_v0, 2 }
 0x2f9   : > { %3773 = vst.msk [vmem:[#allocation3 + $0x159] sm:$0xff] %vm3689_vm5, %v3684_v56  ;;  %v3683_v47 = vmin.f32 %v3651_v6, 6.0  ;;  %v5631_v7 = vmin.f32 %v5599_v26, 6.0  ;;  %v4128_v15 = vadd.f32 %v4039_v25, %v3851_v39  ;;  %v4486_v5 = vmul.f32 %v12974_v32, %v12618_v36 }
 0x2fa   : > { %v5399_v12 = vsel %vm1354_vm3, %v16393_v50, %v5398_v37  ;;  %v5000_v22 = vadd.f32 %v4968_v48, %v4931_v24  ;;  %v4284_v60 = vsel %vm1354_vm3, %v4282_v59, %v16290_v10  ;;  %v13241_v20 = vmul.f32 %v12974_v32, %v12620_v58 }
 0x2fb   : > { %v4731_v51 = vmul.f32 %v12990_v57, %v12618_v36  ;;  %3772 = vst.msk [vmem:[#allocation3 + $0x151] sm:$0xff] %vm3689_vm5, %v3683_v47  ;;  %9619 = vmatprep.mubr.msk.f32.mxu0 %vm3689_vm5, %v5631_v7  ;;  %v4373_v39 = vadd.f32 %v4284_v60, %v4128_v15  ;;  %v4410_v53 = vmul.f32 %v12962_v9, %v12618_v36  ;;  %v4596_v48 = vrot.slane %v4486_v5, 1 }
 0x2fc   : > { %v13251_v11 = vmul.f32 %v12990_v57, %v12620_v58  ;;  %v5245_v18 = vadd.f32 %v5154_v28, %v5000_v22  ;;  %v4597_v29 = vrot.slane %v13241_v20, 1  ;;  %v5045_v19 = vmul.f32 %v13058_v62, %v12712_v34 }
 0x2fd   : > { %v4841_v1 = vrot.slane %v4731_v51, 2  ;;  %v4442_v37 = vadd.f32 %v4410_v53, %v4373_v39  ;;  %v13259_v6 = vmul.f32 %v13058_v62, %v12714_v17  ;;  %v5290_v26 = vmul.f32 %v13068_v46, %v12712_v34 }
 0x2fe   : > { %v4842_v56 = vrot.slane %v13251_v11, 2  ;;  %v5490_v59 = vadd.f32 %v5399_v12, %v5245_v18  ;;  %v4598_v24 = vsel %vm1108_vm2, %v4596_v48, %v4597_v29  ;;  %v5155_v28 = vrot.slane %v5045_v19, 1 }
 0x2ff   : > { %v13266_v50 = vmul.f32 %v13068_v46, %v12714_v17  ;;  %v4687_v25 = vadd.f32 %v4598_v24, %v4442_v37  ;;  %v16289_v47 = vrot.slane %v13259_v6, 1  ;;  %v5400_v7 = vrot.slane %v5290_v26, 2 }
 0x300   : > { %v13269_v15 = vld [vmem:[#allocation3 + $0x160] sm:$0x3]  ;;  %v5529_v5 = vmul.f32 %v13150_v38, %v5490_v59  ;;  %v4843_v22 = vsel %vm1354_vm3, %v4841_v1, %v4842_v56  ;;  %v3929_v12 = vmul.f32 %v12883_v27, %v12464_v40  ;;  %v4969_v51 = vmul.f32 %v13014_v14, %v12712_v34 }
 0x301   : > { %16394 = vst [vmem:[#allocation44_spill] sm:$0xff] %v13269_v15  ;;  %v16288_v60 = vrot.slane %v13266_v50, 2  ;;  %6603 = vst.msk [vmem:[#allocation3 + $0x160] sm:$0x3] %vm3692_vm6, %v16382_v23  ;;  %v4932_v20 = vadd.f32 %v4843_v22, %v4687_v25  ;;  %v3852_v39 = vmul.f32 %v12898_v4, %v12560_v30  ;;  %v4174_v53 = vmul.f32 %v12890_v41, %v12464_v40  ;;  %v9573_v26 = vpop.f32.mrf.mxu1 }
 0x302   : > { %v5568_v48 = vadd.f32 %v13164_v21, %v5529_v5  ;;  %v5157_v11 = vsel %vm1108_vm2, %v5155_v28, %v16289_v47  ;;  %v4040_v18 = vrot.slane %v3929_v12, 1  ;;  %v4488_v1 = vmul.f32 %v12974_v32, %v12599_v8  ;;  %v13290_v19 = vld [vmem:[#allocation3 + $0x150] sm:$0xff]  ;;  %v13292_v37 = vld [vmem:[#allocation3 + $0x158] sm:$0xff] }
 0x303   : > { %16395 = vst [vmem:[#allocation45_spill] sm:$0xff] %v13292_v37  ;;  %v5001_v59 = vadd.f32 %v4969_v51, %v4932_v20  ;;  %v5402_v40 = vsel %vm1354_vm3, %v5400_v7, %v16288_v60  ;;  %v4411_v30 = vmul.f32 %v12962_v9, %v12620_v58  ;;  %v4733_v24 = vmul.f32 %v12990_v57, %v12599_v8  ;;  %v3528_v22 = vpop.f32.mrf.mxu1 }
 0x304   : > { %6601 = vst.msk [vmem:[#allocation3 + $0x150] sm:$0xff] %vm3689_vm5, %v16382_v23  ;;  %6602 = vst.msk [vmem:[#allocation3 + $0x158] sm:$0xff] %vm3689_vm5, %v16382_v23  ;;  %v3583_v28 = vmul.f32 %v12829_v45, %v9573_v26  ;;  %v5600_v25 = vmax.f32 %v5568_v48, 0.0  ;;  %v4041_v5 = vsel %vm1108_vm2, %v4038_v2, %v4040_v18  ;;  %v4285_v7 = vrot.slane %v4174_v53, 2 }
 0x305   : > { %v5246_v12 = vadd.f32 %v5157_v11, %v5001_v59  ;;  %v4129_v20 = vadd.f32 %v4041_v5, %v3852_v39  ;;  %v4599_v51 = vrot.slane %v4488_v1, 1  ;;  %v4970_v60 = vmul.f32 %v13014_v14, %v12714_v17 }
 0x306   : > { %v3622_v47 = vadd.f32 %v12845_v16, %v3583_v28  ;;  %v3582_v10 = vmul.f32 %v12829_v45, %v3528_v22  ;;  %v5632_v15 = vmin.f32 %v5600_v25, 6.0  ;;  %v16396_v26 = vrot.slane %v13224_v0, 2 }
 0x307   : > { %v5491_v35 = vadd.f32 %v5402_v40, %v5246_v12  ;;  %v4844_v2 = vrot.slane %v4733_v24, 2  ;;  %v5047_v53 = vmul.f32 %v13058_v62, %v12693_v33  ;;  %v4600_v18 = vsel %vm1108_vm2, %v4597_v29, %v4599_v51 }
 0x308   : > { %v4286_v48 = vsel %vm1354_vm3, %v16396_v26, %v4285_v7  ;;  %v3654_v39 = vmax.f32 %v3622_v47, 0.0  ;;  %v3621_v11 = vadd.f32 %v12845_v16, %v3582_v10  ;;  %9620 = vmatmul.mubr.msk.f32.gmra.mxu0 %vm3689_vm5, %v5632_v15  ;;  %v5292_v1 = vmul.f32 %v13068_v46, %v12693_v33 }
 0x309   : > { %v4374_v37 = vadd.f32 %v4286_v48, %v4129_v20  ;;  %v5530_v0 = vmul.f32 %v13150_v38, %v5491_v35  ;;  %v4845_v40 = vsel %vm1354_vm3, %v4842_v56, %v4844_v2  ;;  %v3930_v24 = vmul.f32 %v12883_v27, %v12618_v36 }
 0x30a   : > { %v3686_v28 = vmin.f32 %v3654_v39, 6.0  ;;  %v3653_v25 = vmax.f32 %v3621_v11, 0.0  ;;  %v3853_v10 = vmul.f32 %v12898_v4, %v12618_v36  ;;  %v13331_v47 = vmul.f32 %v12883_v27, %v12620_v58 }
 0x30b   : > { %v4443_v59 = vadd.f32 %v4411_v30, %v4374_v37  ;;  %v5569_v29 = vadd.f32 %v13164_v21, %v5530_v0  ;;  %v5158_v5 = vrot.slane %v5047_v53, 1  ;;  %v4042_v7 = vrot.slane %v3930_v24, 1 }
 0x30c   : > { %3775 = vst.msk [vmem:[#allocation3 + $0x171] sm:$0xff] %vm3689_vm5, %v3686_v28  ;;  %v3685_v56 = vmin.f32 %v3653_v25, 6.0  ;;  %v5403_v37 = vrot.slane %v5292_v1, 2  ;;  %v4043_v30 = vrot.slane %v13331_v47, 1  ;;  %v4175_v22 = vmul.f32 %v12890_v41, %v12618_v36 }
 0x30d   : > { %v4688_v15 = vadd.f32 %v4600_v18, %v4443_v59  ;;  %v5601_v12 = vmax.f32 %v5569_v29, 0.0  ;;  %v16397_v51 = vrot.slane %v13259_v6, 1  ;;  %v13343_v48 = vmul.f32 %v12890_v41, %v12620_v58 }
 0x30e   : > { %3774 = vst.msk [vmem:[#allocation3 + $0x169] sm:$0xff] %vm3689_vm5, %v3685_v56  ;;  %v4044_v35 = vsel %vm1108_vm2, %v4042_v7, %v4043_v30  ;;  %v4287_v2 = vrot.slane %v4175_v22, 2  ;;  %v4489_v53 = vmul.f32 %v12974_v32, %v12712_v34  ;;  %v13351_v36 = vmul.f32 %v12974_v32, %v12714_v17 }
 0x30f   : > { %v4933_v20 = vadd.f32 %v4845_v40, %v4688_v15  ;;  %v5159_v26 = vsel %vm1108_vm2, %v16397_v51, %v5158_v5  ;;  %v5633_v39 = vmin.f32 %v5601_v12, 6.0  ;;  %v4130_v11 = vadd.f32 %v4044_v35, %v3853_v10 }
 0x310   : > { %v4288_v18 = vrot.slane %v13343_v48, 2  ;;  %v4601_v1 = vrot.slane %v4489_v53, 1  ;;  %v4602_v0 = vrot.slane %v13351_v36, 1  ;;  %v4734_v59 = vmul.f32 %v12990_v57, %v12712_v34 }
 0x311   : > { %v5002_v6 = vadd.f32 %v4970_v60, %v4933_v20  ;;  %v13359_v40 = vmul.f32 %v12990_v57, %v12714_v17  ;;  %9622 = vmatprep.mubr.msk.f32.mxu0 %vm3689_vm5, %v5633_v39  ;;  %v16398_v28 = vrot.slane %v13266_v50, 2  ;;  %v5048_v10 = vmul.f32 %v13058_v62, %v12813_v42 }
 0x312   : > { %v4289_v25 = vsel %vm1354_vm3, %v4287_v2, %v4288_v18  ;;  %v4412_v29 = vmul.f32 %v12962_v9, %v12712_v34  ;;  %v4846_v15 = vrot.slane %v4734_v59, 2  ;;  %v4971_v50 = vmul.f32 %v13014_v14, %v12813_v42 }
 0x313   : > { %v5247_v24 = vadd.f32 %v5159_v26, %v5002_v6  ;;  %v5404_v60 = vsel %vm1354_vm3, %v16398_v28, %v5403_v37  ;;  %v4375_v47 = vadd.f32 %v4289_v25, %v4130_v11  ;;  %v4847_v5 = vrot.slane %v13359_v40, 2  ;;  %v13371_v7 = vld [vmem:[#allocation3 + $0x178] sm:$0x3] }
 0x314   : > { %v13377_v37 = vmul.f32 %v13058_v62, %v12815_v63  ;;  %v5293_v22 = vmul.f32 %v13068_v46, %v12813_v42  ;;  %6606 = vst.msk [vmem:[#allocation3 + $0x178] sm:$0x3] %vm3692_vm6, %v16382_v23  ;;  %v4603_v20 = vsel %vm1108_vm2, %v4601_v1, %v4602_v0  ;;  %v5160_v51 = vrot.slane %v5048_v10, 1 }
 0x315   : > { %v5492_v56 = vadd.f32 %v5404_v60, %v5247_v24  ;;  %v4444_v12 = vadd.f32 %v4412_v29, %v4375_v47  ;;  %v13386_v26 = vmul.f32 %v13068_v46, %v12815_v63  ;;  %v4848_v35 = vsel %vm1354_vm3, %v4846_v15, %v4847_v5  ;;  %v13393_v36 = vld [vmem:[#allocation3 + $0x168] sm:$0xff]  ;;  %v13395_v39 = vld [vmem:[#allocation3 + $0x170] sm:$0xff]  ;;  %v9576_v40 = vpop.f32.mrf.mxu1 }
 0x316   : > { %v16293_v2 = vrot.slane %v13377_v37, 1  ;;  %v3932_v53 = vmul.f32 %v12883_v27, %v12599_v8  ;;  %v5405_v11 = vrot.slane %v5293_v22, 2  ;;  %v3854_v1 = vmul.f32 %v12898_v4, %v12620_v58  ;;  %6604 = vst.msk [vmem:[#allocation3 + $0x168] sm:$0xff] %vm3689_vm5, %v16382_v23  ;;  %6605 = vst.msk [vmem:[#allocation3 + $0x170] sm:$0xff] %vm3689_vm5, %v16382_v23 }
 0x317   : > { %v5531_v48 = vmul.f32 %v13150_v38, %v5492_v56  ;;  %v4689_v6 = vadd.f32 %v4603_v20, %v4444_v12  ;;  %v4177_v59 = vmul.f32 %v12890_v41, %v12599_v8  ;;  %v5406_v28 = vrot.slane %v13386_v26, 2  ;;  %v3538_v29 = vpop.f32.mrf.mxu1 }
 0x318   : > { %v4045_v60 = vrot.slane %v3932_v53, 1  ;;  %v4491_v25 = vmul.f32 %v12974_v32, %v12693_v33  ;;  %v3585_v58 = vmul.f32 %v12829_v45, %v9576_v40  ;;  %v5162_v8 = vsel %vm1108_vm2, %v5160_v51, %v16293_v2 }
 0x319   : > { %v5570_v24 = vadd.f32 %v13164_v21, %v5531_v48  ;;  %v4934_v10 = vadd.f32 %v4848_v35, %v4689_v6  ;;  %v4413_v47 = vmul.f32 %v12962_v9, %v12714_v17  ;;  %v4290_v22 = vrot.slane %v4177_v59, 2 }
 0x31a   : > { %v4046_v56 = vsel %vm1108_vm2, %v4043_v30, %v4045_v60  ;;  %v4736_v12 = vmul.f32 %v12990_v57, %v12693_v33  ;;  %v3624_v20 = vadd.f32 %v12845_v16, %v3585_v58  ;;  %v3584_v48 = vmul.f32 %v12829_v45, %v3538_v29  ;;  %v13431_v29 = vld [vmem:[#allocation3 + $0x198] sm:$0xff] }
 0x31b   : > { %v5602_v15 = vmax.f32 %v5570_v24, 0.0  ;;  %v5003_v35 = vadd.f32 %v4971_v50, %v4934_v10  ;;  %v4131_v53 = vadd.f32 %v4046_v56, %v3854_v1  ;;  %v5407_v51 = vsel %vm1354_vm3, %v5405_v11, %v5406_v28  ;;  %6610 = vst.msk [vmem:[#allocation3 + $0x198] sm:$0xff] %vm3689_vm5, %v16382_v23 }
 0x31c   : > { %v4291_v40 = vsel %vm1354_vm3, %v4288_v18, %v4290_v22  ;;  %v4604_v24 = vrot.slane %v4491_v25, 1  ;;  %v3656_v2 = vmax.f32 %v3624_v20, 0.0  ;;  %v3623_v30 = vadd.f32 %v12845_v16, %v3584_v48  ;;  %v13433_v16 = vld [vmem:[#allocation3 + $0x1a0] sm:$0xff] }
 0x31d   : > { %v5634_v6 = vmin.f32 %v5602_v15, 6.0  ;;  %v5248_v59 = vadd.f32 %v5162_v8, %v5003_v35  ;;  %v4376_v60 = vadd.f32 %v4291_v40, %v4131_v53  ;;  %v4849_v45 = vrot.slane %v4736_v12, 2  ;;  %6611 = vst.msk [vmem:[#allocation3 + $0x1a0] sm:$0xff] %vm3689_vm5, %v16382_v23  ;;  %v13454_v53 = vld [vmem:[#allocation3 + $0x1a8] sm:$0x3] }
 0x31e   : > { %v4605_v58 = vsel %vm1108_vm2, %v4602_v0, %v4604_v24  ;;  %v5050_v50 = vmul.f32 %v13058_v62, %v12790_v44  ;;  %v5295_v1 = vmul.f32 %v13068_v46, %v12790_v44  ;;  %v3688_v11 = vmin.f32 %v3656_v2, 6.0  ;;  %6612 = vst.msk [vmem:[#allocation3 + $0x1a8] sm:$0x3] %vm3692_vm6, %v16382_v23 }
 0x31f   : > { %9623 = vmatmul.mubr.msk.f32.gmra.mxu0 %vm3689_vm5, %v5634_v6  ;;  %v3655_v10 = vmax.f32 %v3623_v30, 0.0  ;;  %v5493_v18 = vadd.f32 %v5407_v51, %v5248_v59  ;;  %v4445_v25 = vadd.f32 %v4413_v47, %v4376_v60  ;;  %v4850_v8 = vsel %vm1354_vm3, %v4847_v5, %v4849_v45 }
 0x320   : > { %v4972_v0 = vmul.f32 %v13014_v14, %v12815_v63  ;;  %v5163_v15 = vrot.slane %v5050_v50, 1  ;;  %v3933_v56 = vmul.f32 %v12883_v27, %v12712_v34  ;;  %3777 = vst.msk [vmem:[#allocation3 + $0x189] sm:$0xff] %vm3689_vm5, %v3688_v11  ;;  %v13448_v5 = vmul.f32 %v12883_v27, %v12714_v17 }
 0x321   : > { %v3687_v2 = vmin.f32 %v3655_v10, 6.0  ;;  %v5532_v47 = vmul.f32 %v13150_v38, %v5493_v18  ;;  %v4690_v22 = vadd.f32 %v4605_v58, %v4445_v25  ;;  %v5408_v12 = vrot.slane %v5295_v1, 2 }
 0x322   : > { %v3855_v20 = vmul.f32 %v12898_v4, %v12712_v34  ;;  %v4047_v48 = vrot.slane %v3933_v56, 1  ;;  %v4178_v35 = vmul.f32 %v12890_v41, %v12712_v34  ;;  %v4048_v40 = vrot.slane %v13448_v5, 1 }
 0x323   : > { %3776 = vst.msk [vmem:[#allocation3 + $0x181] sm:$0xff] %vm3689_vm5, %v3687_v2  ;;  %v5571_v6 = vadd.f32 %v13164_v21, %v5532_v47  ;;  %v4935_v51 = vadd.f32 %v4850_v8, %v4690_v22  ;;  %v13461_v24 = vmul.f32 %v12890_v41, %v12714_v17  ;;  %v16399_v30 = vrot.slane %v13377_v37, 1 }
 0x324   : > { %v4292_v59 = vrot.slane %v4178_v35, 2  ;;  %v4492_v60 = vmul.f32 %v12974_v32, %v12813_v42  ;;  %v13472_v58 = vmul.f32 %v12974_v32, %v12815_v63  ;;  %v4049_v1 = vsel %vm1108_vm2, %v4047_v48, %v4048_v40 }
 0x325   : > { %v5164_v34 = vsel %vm1108_vm2, %v16399_v30, %v5163_v15  ;;  %v5603_v45 = vmax.f32 %v5571_v6, 0.0  ;;  %v5004_v50 = vadd.f32 %v4972_v0, %v4935_v51  ;;  %v4293_v11 = vrot.slane %v13461_v24, 2 }
 0x326   : > { %v4132_v10 = vadd.f32 %v4049_v1, %v3855_v20  ;;  %v4606_v18 = vrot.slane %v4492_v60, 1  ;;  %v4607_v37 = vrot.slane %v13472_v58, 1  ;;  %v4737_v25 = vmul.f32 %v12990_v57, %v12813_v42 }
 0x327   : > { %v5635_v8 = vmin.f32 %v5603_v45, 6.0  ;;  %v5249_v15 = vadd.f32 %v5164_v34, %v5004_v50  ;;  %v4294_v56 = vsel %vm1354_vm3, %v4292_v59, %v4293_v11  ;;  %v4738_v2 = vmul.f32 %v12990_v57, %v12815_v63  ;;  %v13482_v47 = vld [vmem:[#allocation3 + $0x190] sm:$0x3] }
 0x328   : > { %v5409_v0 = vsel %vm1354_vm3, %v5406_v28, %v5408_v12  ;;  %v4377_v22 = vadd.f32 %v4294_v56, %v4132_v10  ;;  %v4414_v5 = vmul.f32 %v12962_v9, %v12813_v42  ;;  %v4851_v20 = vrot.slane %v4737_v25, 2  ;;  %6609 = vst.msk [vmem:[#allocation3 + $0x190] sm:$0x3] %vm3692_vm6, %v16382_v23 }
 0x329   : > { %9625 = vmatprep.mubr.msk.f32.mxu0 %vm3689_vm5, %v5635_v8  ;;  %v5494_v48 = vadd.f32 %v5409_v0, %v5249_v15  ;;  %v4852_v35 = vrot.slane %v4738_v2, 2  ;;  %v5051_v6 = vmul.f32 %v13058_v62, %v12934_v49  ;;  %v5052_v26 = vmul.f32 %v13058_v62, %v12936_v13 }
 0x32a   : > { %v4446_v51 = vadd.f32 %v4414_v5, %v4377_v22  ;;  %v4608_v28 = vsel %vm1108_vm2, %v4606_v18, %v4607_v37  ;;  %v5296_v12 = vmul.f32 %v13068_v46, %v12934_v49  ;;  %v13501_v24 = vmul.f32 %v13068_v46, %v12936_v13  ;;  %v13503_v30 = vld [vmem:[#allocation3 + $0x180] sm:$0xff]  ;;  %v13505_v34 = vld [vmem:[#allocation3 + $0x188] sm:$0xff] }
 0x32b   : > { %v5533_v59 = vmul.f32 %v13150_v38, %v5494_v48  ;;  %v4973_v60 = vmul.f32 %v13014_v14, %v12934_v49  ;;  %v5165_v58 = vrot.slane %v5051_v6, 1  ;;  %v5166_v45 = vrot.slane %v5052_v26, 1  ;;  %6607 = vst.msk [vmem:[#allocation3 + $0x180] sm:$0xff] %vm3689_vm5, %v16382_v23  ;;  %6608 = vst.msk [vmem:[#allocation3 + $0x188] sm:$0xff] %vm3689_vm5, %v16382_v23 }
 0x32c   : > { %v4691_v50 = vadd.f32 %v4608_v28, %v4446_v51  ;;  %v5410_v1 = vrot.slane %v5296_v12, 2  ;;  %v5411_v10 = vrot.slane %v13501_v24, 2  ;;  %v3935_v18 = vmul.f32 %v12883_v27, %v12693_v33 }
 0x32d   : > { %v5572_v25 = vadd.f32 %v13164_v21, %v5533_v59  ;;  %v4853_v8 = vsel %vm1354_vm3, %v4851_v20, %v4852_v35  ;;  %v3856_v15 = vmul.f32 %v12898_v4, %v12714_v17  ;;  %v4180_v56 = vmul.f32 %v12890_v41, %v12693_v33 }
 0x32e   : > { %v4936_v2 = vadd.f32 %v4853_v8, %v4691_v50  ;;  %v5167_v23 = vsel %vm1108_vm2, %v5165_v58, %v5166_v45  ;;  %v4050_v0 = vrot.slane %v3935_v18, 1  ;;  %v4494_v22 = vmul.f32 %v12974_v32, %v12790_v44  ;;  %v13552_v8 = vld [vmem:[%s16377_s10] ss:$0 sm:$0xff] }
 0x32f   : > { %v5604_v5 = vmax.f32 %v5572_v25, 0.0  ;;  %v5412_v27 = vsel %vm1354_vm3, %v5410_v1, %v5411_v10  ;;  %v4415_v48 = vmul.f32 %v12962_v9, %v12815_v63  ;;  %v4739_v20 = vmul.f32 %v12990_v57, %v12790_v44  ;;  %v13544_v1 = vld [vmem:[%s16377_s10 + $0x1] ss:$0 sm:$0xff] }
 0x330   : > { %v5005_v17 = vadd.f32 %v4973_v60, %v4936_v2  ;;  %v4051_v4 = vsel %vm1108_vm2, %v4048_v40, %v4050_v0  ;;  %v4295_v33 = vrot.slane %v4180_v56, 2  ;;  %v5053_v41 = vmul.f32 %v13058_v62, %v12919_v43 }
 0x331   : > { %v5636_v6 = vmin.f32 %v5604_v5, 6.0  ;;  %v4133_v26 = vadd.f32 %v4051_v4, %v3856_v15  ;;  %v4609_v51 = vrot.slane %v4494_v22, 1  ;;  %v4974_v28 = vmul.f32 %v13014_v14, %v12936_v13 }
 0x332   : > { %v5250_v12 = vadd.f32 %v5167_v23, %v5005_v17  ;;  %v4296_v24 = vsel %vm1354_vm3, %v4293_v11, %v4295_v33  ;;  %v4854_v59 = vrot.slane %v4739_v20, 2  ;;  %v5298_v58 = vmul.f32 %v13068_v46, %v12919_v43  ;;  %v13563_v23 = vld [vmem:[%s16377_s10 + $0x2] ss:$0 sm:$0xff] }
 0x333   : > { %9626 = vmatmul.mubr.msk.f32.gmra.mxu0 %vm3689_vm5, %v5636_v6  ;;  %v4378_v40 = vadd.f32 %v4296_v24, %v4133_v26  ;;  %v4610_v60 = vsel %vm1108_vm2, %v4607_v37, %v4609_v51  ;;  %v5168_v50 = vrot.slane %v5053_v41, 1  ;;  %v3936_v18 = vmul.f32 %v13544_v1, %v12813_v42 }
 0x334   : > { %v5495_v25 = vadd.f32 %v5412_v27, %v5250_v12  ;;  %v4855_v11 = vsel %vm1354_vm3, %v4852_v35, %v4854_v59  ;;  %v3857_v37 = vmul.f32 %v13552_v8, %v12813_v42  ;;  %v13558_v15 = vmul.f32 %v13544_v1, %v12815_v63 }
 0x335   : > { %v4447_v56 = vadd.f32 %v4415_v48, %v4378_v40  ;;  %v4052_v2 = vrot.slane %v3936_v18, 1  ;;  %v4181_v35 = vmul.f32 %v13563_v23, %v12813_v42  ;;  %v13569_v0 = vmul.f32 %v13563_v23, %v12815_v63 }
 0x336   : > { %v5534_v22 = vmul.f32 %v13150_v38, %v5495_v25  ;;  %v5169_v5 = vsel %vm1108_vm2, %v5166_v45, %v5168_v50  ;;  %v5413_v27 = vrot.slane %v5298_v58, 2  ;;  %v4053_v48 = vrot.slane %v13558_v15, 1 }
 0x337   : > { %v4692_v20 = vadd.f32 %v4610_v60, %v4447_v56  ;;  %v4297_v17 = vrot.slane %v4181_v35, 2  ;;  %v4298_v4 = vrot.slane %v13569_v0, 2  ;;  %v4495_v33 = vmul.f32 %v12974_v32, %v12934_v49  ;;  %v6094_v35 = vld [vmem:[%s16224_s16] sm:$0xff] }
 0x338   : > { %v5573_v42 = vadd.f32 %v13164_v21, %v5534_v22  ;;  %v4054_v41 = vsel %vm1108_vm2, %v4052_v2, %v4053_v48  ;;  %v13581_v6 = vmul.f32 %v12974_v32, %v12936_v13  ;;  %v4740_v45 = vmul.f32 %v12990_v57, %v12934_v49 }
 0x339   : > { %v4937_v26 = vadd.f32 %v4855_v11, %v4692_v20  ;;  %v5414_v51 = vsel %vm1354_vm3, %v5411_v10, %v5413_v27  ;;  %v4134_v12 = vadd.f32 %v4054_v41, %v3857_v37  ;;  %v4299_v24 = vsel %vm1354_vm3, %v4297_v17, %v4298_v4 }
 0x33a   : > { %v5605_v59 = vmax.f32 %v5573_v42, 0.0  ;;  %v4611_v58 = vrot.slane %v4495_v33, 1  ;;  %v4612_v40 = vrot.slane %v13581_v6, 1  ;;  %v4741_v60 = vmul.f32 %v12990_v57, %v12936_v13 }
 0x33b   : > { %v5006_v32 = vadd.f32 %v4974_v28, %v4937_v26  ;;  %v4379_v50 = vadd.f32 %v4299_v24, %v4134_v12  ;;  %v4416_v18 = vmul.f32 %v12962_v9, %v12934_v49  ;;  %v5054_v10 = vmul.f32 %v13058_v62, %v13072_v55  ;;  %v6095_v9 = vld [vmem:[%s16224_s16 + $0x8] sm:$0xff] }
 0x33c   : > { %v5637_v25 = vmin.f32 %v5605_v59, 6.0  ;;  %v4856_v11 = vrot.slane %v4740_v45, 2  ;;  %v4857_v37 = vrot.slane %v4741_v60, 2  ;;  %v13598_v15 = vmul.f32 %v13058_v62, %v13074_v52  ;;  %9649 = vmatprep.subr.mxu1 %v6095_v9  ;;  %v13629_v59 = vld [vmem:[%s16377_s10 + $0x4] ss:$0 sm:$0xff] }
 0x33d   : > { %v5251_v56 = vadd.f32 %v5169_v5, %v5006_v32  ;;  %v4448_v2 = vadd.f32 %v4416_v18, %v4379_v50  ;;  %v4975_v57 = vmul.f32 %v13014_v14, %v13072_v55  ;;  %v5299_v28 = vmul.f32 %v13068_v46, %v13072_v55  ;;  %9650 = vmatpush3.msra.mxu1 %v6095_v9  ;;  %v13647_v50 = vld [vmem:[%s16377_s10 + $0x5] ss:$0 sm:$0xff] }
 0x33e   : > { %9628 = vmatprep.mubr.msk.f32.mxu0 %vm3689_vm5, %v5637_v25  ;;  %v4613_v22 = vsel %vm1108_vm2, %v4611_v58, %v4612_v40  ;;  %v5170_v5 = vrot.slane %v5054_v10, 1  ;;  %v5171_v27 = vrot.slane %v13598_v15, 1  ;;  %v13615_v14 = vmul.f32 %v13068_v46, %v13074_v52  ;;  %9651 = vmatprep.subr.mxu1 %v6094_v35 }
 0x33f   : > { %v5496_v20 = vadd.f32 %v5414_v51, %v5251_v56  ;;  %v4693_v17 = vadd.f32 %v4613_v22, %v4448_v2  ;;  %v5415_v33 = vrot.slane %v5299_v28, 2  ;;  %v3938_v42 = vmul.f32 %v13544_v1, %v12790_v44  ;;  %9652 = vmatpush3.msra.mxu1 %v6094_v35 }
 0x340   : > { %v4858_v41 = vsel %vm1354_vm3, %v4856_v11, %v4857_v37  ;;  %v5416_v6 = vrot.slane %v13615_v14, 2  ;;  %v3858_v45 = vmul.f32 %v13552_v8, %v12815_v63  ;;  %v4183_v26 = vmul.f32 %v13563_v23, %v12790_v44  ;;  %v13640_v63 = vld [vmem:[%s16377_s10 + $0x3] ss:$0 sm:$0xff] }
 0x341   : > { %v5535_v12 = vmul.f32 %v13150_v38, %v5496_v20  ;;  %v4938_v51 = vadd.f32 %v4858_v41, %v4693_v17  ;;  %v4055_v24 = vrot.slane %v3938_v42, 1  ;;  %v4497_v58 = vmul.f32 %v13629_v59, %v12919_v43 }
 0x342   : > { %v5172_v60 = vsel %vm1108_vm2, %v5170_v5, %v5171_v27  ;;  %v5417_v44 = vsel %vm1354_vm3, %v5415_v33, %v5416_v6  ;;  %v4417_v32 = vmul.f32 %v13640_v63, %v12936_v13  ;;  %v4742_v18 = vmul.f32 %v13647_v50, %v12919_v43  ;;  %v13665_v33 = vld [vmem:[%s16377_s10 + $0x6] ss:$0 sm:$0xff] }
 0x343   : > { %v5574_v10 = vadd.f32 %v13164_v21, %v5535_v12  ;;  %v5007_v25 = vadd.f32 %v4975_v57, %v4938_v51  ;;  %v4056_v11 = vsel %vm1108_vm2, %v4053_v48, %v4055_v24  ;;  %v4300_v15 = vrot.slane %v4183_v26, 2 }
 0x344   : > { %v4135_v56 = vadd.f32 %v4056_v11, %v3858_v45  ;;  %v4614_v2 = vrot.slane %v4497_v58, 1  ;;  %v4859_v28 = vrot.slane %v4742_v18, 2  ;;  %v5056_v9 = vmul.f32 %v13058_v62, %v13046_v31 }
 0x345   : > { %v5606_v35 = vmax.f32 %v5574_v10, 0.0  ;;  %v5252_v22 = vadd.f32 %v5172_v60, %v5007_v25  ;;  %v4301_v5 = vsel %vm1354_vm3, %v4298_v4, %v4300_v15  ;;  %v5301_v20 = vmul.f32 %v13068_v46, %v13046_v31 }
 0x346   : > { %v4380_v17 = vadd.f32 %v4301_v5, %v4135_v56  ;;  %v4615_v57 = vsel %vm1108_vm2, %v4612_v40, %v4614_v2  ;;  %v4860_v48 = vsel %vm1354_vm3, %v4857_v37, %v4859_v28  ;;  %v4976_v62 = vmul.f32 %v13665_v33, %v13074_v52 }
 0x347   : > { %v5638_v42 = vmin.f32 %v5606_v35, 6.0  ;;  %v5497_v0 = vadd.f32 %v5417_v44, %v5252_v22  ;;  %v5173_v41 = vrot.slane %v5056_v9, 1  ;;  %v3939_v4 = vmul.f32 %v13544_v1, %v12934_v49 }
 0x348   : > { %v4449_v46 = vadd.f32 %v4417_v32, %v4380_v17  ;;  %v3859_v40 = vmul.f32 %v13552_v8, %v12934_v49  ;;  %v3940_v37 = vmul.f32 %v13544_v1, %v12936_v13  ;;  %v4184_v45 = vmul.f32 %v13563_v23, %v12934_v49 }
 0x349   : > { %9629 = vmatmul.mubr.msk.f32.gmra.mxu0 %vm3689_vm5, %v5638_v42  ;;  %v5536_v26 = vmul.f32 %v13150_v38, %v5497_v0  ;;  %v5418_v12 = vrot.slane %v5301_v20, 2  ;;  %v4057_v51 = vrot.slane %v3939_v4, 1  ;;  %v4185_v24 = vmul.f32 %v13563_v23, %v12936_v13  ;;  %v13701_v0 = vld [vmem:[%s16377_s10 + $0x7] ss:$0 sm:$0xff] }
 0x34a   : > { %v4694_v58 = vadd.f32 %v4615_v57, %v4449_v46  ;;  %v5174_v60 = vsel %vm1108_vm2, %v5171_v27, %v5173_v41  ;;  %v4058_v44 = vrot.slane %v3940_v37, 1  ;;  %v4302_v32 = vrot.slane %v4184_v45, 2 }
 0x34b   : > { %v5575_v18 = vadd.f32 %v13164_v21, %v5536_v26  ;;  %v4303_v10 = vrot.slane %v4185_v24, 2  ;;  %v4498_v49 = vmul.f32 %v13629_v59, %v13072_v55  ;;  %v13687_v25 = vmul.f32 %v13629_v59, %v13074_v52  ;;  %v13716_v26 = vld [vmem:[%s16377_s10 + $0x8] ss:$0 sm:$0xff] }
 0x34c   : > { %v4939_v11 = vadd.f32 %v4860_v48, %v4694_v58  ;;  %v4059_v15 = vsel %vm1108_vm2, %v4057_v51, %v4058_v44  ;;  %v4743_v56 = vmul.f32 %v13647_v50, %v13072_v55  ;;  %v4744_v27 = vmul.f32 %v13647_v50, %v13074_v52 }
 0x34d   : > { %v5607_v2 = vmax.f32 %v5575_v18, 0.0  ;;  %v4136_v28 = vadd.f32 %v4059_v15, %v3859_v40  ;;  %v4304_v9 = vsel %vm1354_vm3, %v4302_v32, %v4303_v10  ;;  %v4418_v35 = vmul.f32 %v13640_v63, %v13072_v55 }
 0x34e   : > { %v5008_v22 = vadd.f32 %v4976_v62, %v4939_v11  ;;  %v4616_v5 = vrot.slane %v4498_v49, 1  ;;  %v4617_v20 = vrot.slane %v13687_v25, 1  ;;  %v4861_v17 = vrot.slane %v4743_v56, 2 }
 0x34f   : > { %v5639_v57 = vmin.f32 %v5607_v2, 6.0  ;;  %v4381_v48 = vadd.f32 %v4304_v9, %v4136_v28  ;;  %v4862_v42 = vrot.slane %v4744_v27, 2  ;;  %v5057_v41 = vmul.f32 %v13701_v0, %v13181_v54 }
 0x350   : > { %v5253_v4 = vadd.f32 %v5174_v60, %v5008_v22  ;;  %v5419_v62 = vsel %vm1354_vm3, %v5416_v6, %v5418_v12  ;;  %v4977_v46 = vmul.f32 %v13665_v33, %v13181_v54  ;;  %v5058_v40 = vmul.f32 %v13701_v0, %v13183_v61 }
 0x351   : > { %9631 = vmatprep.mubr.msk.f32.mxu0 %vm3689_vm5, %v5639_v57  ;;  %v4450_v37 = vadd.f32 %v4418_v35, %v4381_v48  ;;  %v5175_v45 = vrot.slane %v5057_v41, 1  ;;  %v5302_v14 = vmul.f32 %v13716_v26, %v13181_v54  ;;  %v13722_v6 = vmul.f32 %v13716_v26, %v13183_v61 }
 0x352   : > { %v5498_v12 = vadd.f32 %v5419_v62, %v5253_v4  ;;  %v4618_v51 = vsel %vm1108_vm2, %v4616_v5, %v4617_v20  ;;  %v5176_v24 = vrot.slane %v5058_v40, 1  ;;  %v3941_v58 = vmul.f32 %v13544_v1, %v12919_v43 }
 0x353   : > { %v4695_v60 = vadd.f32 %v4618_v51, %v4450_v37  ;;  %v4863_v32 = vsel %vm1354_vm3, %v4861_v17, %v4862_v42  ;;  %v3860_v18 = vmul.f32 %v13552_v8, %v12936_v13  ;;  %v4186_v49 = vmul.f32 %v13563_v23, %v12919_v43 }
 0x354   : > { %v5537_v25 = vmul.f32 %v13150_v38, %v5498_v12  ;;  %v5420_v11 = vrot.slane %v5302_v14, 2  ;;  %v5421_v15 = vrot.slane %v13722_v6, 2  ;;  %v4060_v56 = vrot.slane %v3941_v58, 1 }
 0x355   : > { %v4940_v27 = vadd.f32 %v4863_v32, %v4695_v60  ;;  %v5177_v2 = vsel %vm1108_vm2, %v5175_v45, %v5176_v24  ;;  %v4305_v28 = vrot.slane %v4186_v49, 2  ;;  %v4500_v9 = vmul.f32 %v13629_v59, %v13046_v31 }
 0x356   : > { %v5576_v35 = vadd.f32 %v13164_v21, %v5537_v25  ;;  %v4061_v13 = vsel %vm1108_vm2, %v4058_v44, %v4060_v56  ;;  %v4419_v43 = vmul.f32 %v13640_v63, %v13074_v52  ;;  %v4745_v38 = vmul.f32 %v13647_v50, %v13046_v31 }
 0x357   : > { %v5009_v22 = vadd.f32 %v4977_v46, %v4940_v27  ;;  %v4137_v5 = vadd.f32 %v4061_v13, %v3860_v18  ;;  %v4306_v17 = vsel %vm1354_vm3, %v4303_v10, %v4305_v28  ;;  %v4619_v57 = vrot.slane %v4500_v9, 1  ;;  %v13771_v18 = vld [vmem:[%s16383_s11] ss:$0 sm:$0xff] }
 0x358   : > { %v5608_v48 = vmax.f32 %v5576_v35, 0.0  ;;  %v4864_v41 = vrot.slane %v4745_v38, 2  ;;  %v5059_v4 = vmul.f32 %v13701_v0, %v13159_v3  ;;  %v5304_v21 = vmul.f32 %v13716_v26, %v13159_v3  ;;  %v13782_v9 = vld [vmem:[%s16220_s12] ss:$0 sm:$0xff] }
 0x359   : > { %v5254_v44 = vadd.f32 %v5177_v2, %v5009_v22  ;;  %v5422_v62 = vsel %vm1354_vm3, %v5420_v11, %v5421_v15  ;;  %v4382_v40 = vadd.f32 %v4306_v17, %v4137_v5  ;;  %v4978_v37 = vmul.f32 %v13665_v33, %v13183_v61 }
 0x35a   : > { %v5640_v46 = vmin.f32 %v5608_v48, 6.0  ;;  %v4620_v45 = vsel %vm1108_vm2, %v4617_v20, %v4619_v57  ;;  %v4865_v10 = vsel %vm1354_vm3, %v4862_v42, %v4864_v41  ;;  %v3861_v14 = vmul.f32 %v13552_v8, %v13072_v55 }
 0x35b   : > { %v5499_v6 = vadd.f32 %v5422_v62, %v5254_v44  ;;  %v4451_v12 = vadd.f32 %v4419_v43, %v4382_v40  ;;  %v3942_v51 = vmul.f32 %v13544_v1, %v13072_v55  ;;  %v13759_v58 = vmul.f32 %v13544_v1, %v13074_v52 }
 0x35c   : > { %9632 = vmatmul.mubr.msk.f32.gmra.mxu0 %vm3689_vm5, %v5640_v46  ;;  %v5178_v60 = vrot.slane %v5059_v4, 1  ;;  %v5423_v32 = vrot.slane %v5304_v21, 2  ;;  %v4187_v20 = vmul.f32 %v13563_v23, %v13072_v55  ;;  %v13766_v42 = vmul.f32 %v13563_v23, %v13074_v52 }
 0x35d   : > { %v5538_v49 = vmul.f32 %v13771_v18, %v5499_v6  ;;  %v4696_v25 = vadd.f32 %v4620_v45, %v4451_v12  ;;  %v4062_v11 = vrot.slane %v3942_v51, 1  ;;  %v4063_v56 = vrot.slane %v13759_v58, 1  ;;  %v16400_v12 = vld [vmem:[#allocation45_spill] sm:$0xff] }
 0x35e   : > { %v5179_v27 = vsel %vm1108_vm2, %v5176_v24, %v5178_v60  ;;  %v4307_v2 = vrot.slane %v4187_v20, 2  ;;  %v4308_v55 = vrot.slane %v13766_v42, 2  ;;  %v4501_v28 = vmul.f32 %v13629_v59, %v13181_v54 }
 0x35f   : > { %v5577_v35 = vadd.f32 %v13782_v9, %v5538_v49  ;;  %v4941_v13 = vadd.f32 %v4865_v10, %v4696_v25  ;;  %v4064_v43 = vsel %vm1108_vm2, %v4062_v11, %v4063_v56  ;;  %v4502_v38 = vmul.f32 %v13629_v59, %v13183_v61 }
 0x360   : > { %v4138_v24 = vadd.f32 %v4064_v43, %v3861_v14  ;;  %v4309_v22 = vsel %vm1354_vm3, %v4307_v2, %v4308_v55  ;;  %v4621_v5 = vrot.slane %v4501_v28, 1  ;;  %v4746_v17 = vmul.f32 %v13647_v50, %v13181_v54 }
 0x361   : > { %v5609_v57 = vmax.f32 %v5577_v35, 0.0  ;;  %v5010_v48 = vadd.f32 %v4978_v37, %v4941_v13  ;;  %v4622_v41 = vrot.slane %v4502_v38, 1  ;;  %v4747_v4 = vmul.f32 %v13647_v50, %v13183_v61 }
 0x362   : > { %v5424_v21 = vsel %vm1354_vm3, %v5421_v15, %v5423_v32  ;;  %v4383_v44 = vadd.f32 %v4309_v22, %v4138_v24  ;;  %v4420_v62 = vmul.f32 %v13640_v63, %v13181_v54  ;;  %v5060_v40 = vmul.f32 %v13701_v0, %v13290_v19 }
 0x363   : > { %v5641_v46 = vmin.f32 %v5609_v57, 6.0  ;;  %v5255_v45 = vadd.f32 %v5179_v27, %v5010_v48  ;;  %v4866_v10 = vrot.slane %v4746_v17, 2  ;;  %v4867_v14 = vrot.slane %v4747_v4, 2 }
 0x364   : > { %v4452_v6 = vadd.f32 %v4420_v62, %v4383_v44  ;;  %v4979_v37 = vmul.f32 %v13665_v33, %v13290_v19  ;;  %v5061_v51 = vmul.f32 %v13701_v0, %v16400_v12  ;;  %v5305_v15 = vmul.f32 %v13716_v26, %v13290_v19 }
 0x365   : > { %9634 = vmatprep.mubr.msk.f32.mxu0 %vm3689_vm5, %v5641_v46  ;;  %v5500_v58 = vadd.f32 %v5424_v21, %v5255_v45  ;;  %v4623_v60 = vsel %vm1108_vm2, %v4621_v5, %v4622_v41  ;;  %v5180_v32 = vrot.slane %v5060_v40, 1  ;;  %v5306_v20 = vmul.f32 %v13716_v26, %v16400_v12 }
 0x366   : > { %v4697_v42 = vadd.f32 %v4623_v60, %v4452_v6  ;;  %v5181_v49 = vrot.slane %v5061_v51, 1  ;;  %v5425_v25 = vrot.slane %v5305_v15, 2  ;;  %v3944_v11 = vmul.f32 %v13544_v1, %v13046_v31 }
 0x367   : > { %v5539_v27 = vmul.f32 %v13771_v18, %v5500_v58  ;;  %v4868_v2 = vsel %vm1354_vm3, %v4866_v10, %v4867_v14  ;;  %v5426_v28 = vrot.slane %v5306_v20, 2  ;;  %v4189_v35 = vmul.f32 %v13563_v23, %v13046_v31  ;;  %v16401_v10 = vld [vmem:[#allocation44_spill] sm:$0xff] }
 0x368   : > { %v4942_v13 = vadd.f32 %v4868_v2, %v4697_v42  ;;  %v3862_v43 = vmul.f32 %v13552_v8, %v13074_v52  ;;  %v4065_v38 = vrot.slane %v3944_v11, 1  ;;  %v4503_v24 = vmul.f32 %v13629_v59, %v13159_v3 }
 0x369   : > { %v5578_v22 = vadd.f32 %v13782_v9, %v5539_v27  ;;  %v4310_v5 = vrot.slane %v4189_v35, 2  ;;  %v4421_v17 = vmul.f32 %v13640_v63, %v13183_v61  ;;  %v4748_v57 = vmul.f32 %v13647_v50, %v13159_v3 }
 0x36a   : > { %v5011_v48 = vadd.f32 %v4979_v37, %v4942_v13  ;;  %v5182_v31 = vsel %vm1108_vm2, %v5180_v32, %v5181_v49  ;;  %v5427_v4 = vsel %vm1354_vm3, %v5425_v25, %v5426_v28  ;;  %v4066_v52 = vsel %vm1108_vm2, %v4063_v56, %v4065_v38 }
 0x36b   : > { %v5610_v21 = vmax.f32 %v5578_v22, 0.0  ;;  %v4139_v44 = vadd.f32 %v4066_v52, %v3862_v43  ;;  %v4311_v62 = vsel %vm1354_vm3, %v4308_v55, %v4310_v5  ;;  %v4624_v40 = vrot.slane %v4503_v24, 1 }
 0x36c   : > { %v5256_v46 = vadd.f32 %v5182_v31, %v5011_v48  ;;  %v4869_v45 = vrot.slane %v4748_v57, 2  ;;  %v5062_v6 = vmul.f32 %v13701_v0, %v16401_v10  ;;  %v5307_v51 = vmul.f32 %v13716_v26, %v16401_v10 }
 0x36d   : > { %v5642_v37 = vmin.f32 %v5610_v21, 6.0  ;;  %v4384_v15 = vadd.f32 %v4311_v62, %v4139_v44  ;;  %v4625_v58 = vsel %vm1108_vm2, %v4622_v41, %v4624_v40  ;;  %v4980_v56 = vmul.f32 %v13665_v33, %v16400_v12 }
 0x36e   : > { %v5501_v60 = vadd.f32 %v5427_v4, %v5256_v46  ;;  %v4870_v32 = vsel %vm1354_vm3, %v4867_v14, %v4869_v45  ;;  %v3863_v55 = vmul.f32 %v13552_v8, %v13181_v54  ;;  %v3945_v20 = vmul.f32 %v13544_v1, %v13181_v54 }
 0x36f   : > { %9635 = vmatmul.mubr.msk.f32.gmra.mxu0 %vm3689_vm5, %v5642_v37  ;;  %v4453_v42 = vadd.f32 %v4421_v17, %v4384_v15  ;;  %v13842_v25 = vmul.f32 %v13544_v1, %v13183_v61  ;;  %v4190_v41 = vmul.f32 %v13563_v23, %v13181_v54  ;;  %v13848_v11 = vmul.f32 %v13563_v23, %v13183_v61 }
 0x370   : > { %v5540_v14 = vmul.f32 %v13771_v18, %v5501_v60  ;;  %v5183_v27 = vrot.slane %v5062_v6, 1  ;;  %v5428_v2 = vrot.slane %v5307_v51, 2  ;;  %v4067_v35 = vrot.slane %v3945_v20, 1 }
 0x371   : > { %v4698_v13 = vadd.f32 %v4625_v58, %v4453_v42  ;;  %v4068_v43 = vrot.slane %v13842_v25, 1  ;;  %v4312_v38 = vrot.slane %v4190_v41, 2  ;;  %v4313_v24 = vrot.slane %v13848_v11, 2 }
 0x372   : > { %v5579_v22 = vadd.f32 %v13782_v9, %v5540_v14  ;;  %v5184_v5 = vsel %vm1108_vm2, %v5181_v49, %v5183_v27  ;;  %v4504_v54 = vmul.f32 %v13629_v59, %v13290_v19  ;;  %v4505_v17 = vmul.f32 %v13629_v59, %v16400_v12 }
 0x373   : > { %v4943_v57 = vadd.f32 %v4870_v32, %v4698_v13  ;;  %v5429_v48 = vsel %vm1354_vm3, %v5426_v28, %v5428_v2  ;;  %v4069_v31 = vsel %vm1108_vm2, %v4067_v35, %v4068_v43  ;;  %v4749_v4 = vmul.f32 %v13647_v50, %v13290_v19 }
 0x374   : > { %v5611_v52 = vmax.f32 %v5579_v22, 0.0  ;;  %v4140_v21 = vadd.f32 %v4069_v31, %v3863_v55  ;;  %v4314_v44 = vsel %vm1354_vm3, %v4312_v38, %v4313_v24  ;;  %v4422_v49 = vmul.f32 %v13640_v63, %v13290_v19 }
 0x375   : > { %v5012_v62 = vadd.f32 %v4980_v56, %v4943_v57  ;;  %v4626_v40 = vrot.slane %v4504_v54, 1  ;;  %v4627_v46 = vrot.slane %v4505_v17, 1  ;;  %v4750_v45 = vmul.f32 %v13647_v50, %v16400_v12 }
 0x376   : > { %v5643_v6 = vmin.f32 %v5611_v52, 6.0  ;;  %v4385_v28 = vadd.f32 %v4314_v44, %v4140_v21  ;;  %v4871_v51 = vrot.slane %v4749_v4, 2  ;;  %v5063_v37 = vmul.f32 %v13701_v0, %v13393_v36 }
 0x377   : > { %v5257_v15 = vadd.f32 %v5184_v5, %v5012_v62  ;;  %v4872_v58 = vrot.slane %v4750_v45, 2  ;;  %v5064_v60 = vmul.f32 %v13701_v0, %v13395_v39  ;;  %v5308_v32 = vmul.f32 %v13716_v26, %v13393_v36 }
 0x378   : > { %9637 = vmatprep.mubr.msk.f32.mxu0 %vm3689_vm5, %v5643_v6  ;;  %v4454_v56 = vadd.f32 %v4422_v49, %v4385_v28  ;;  %v4981_v55 = vmul.f32 %v13665_v33, %v13393_v36  ;;  %v5185_v20 = vrot.slane %v5063_v37, 1  ;;  %v5309_v42 = vmul.f32 %v13716_v26, %v13395_v39 }
 0x379   : > { %v5502_v25 = vadd.f32 %v5429_v48, %v5257_v15  ;;  %v4628_v41 = vsel %vm1108_vm2, %v4626_v40, %v4627_v46  ;;  %v5186_v11 = vrot.slane %v5064_v60, 1  ;;  %v5430_v14 = vrot.slane %v5308_v32, 2 }
 0x37a   : > { %v4699_v27 = vadd.f32 %v4628_v41, %v4454_v56  ;;  %v5431_v2 = vrot.slane %v5309_v42, 2  ;;  %v3947_v35 = vmul.f32 %v13544_v1, %v13159_v3  ;;  %v4192_v13 = vmul.f32 %v13563_v23, %v13159_v3 }
 0x37b   : > { %v5541_v38 = vmul.f32 %v13771_v18, %v5502_v25  ;;  %v4873_v22 = vsel %vm1354_vm3, %v4871_v51, %v4872_v58  ;;  %v3864_v5 = vmul.f32 %v13552_v8, %v13183_v61  ;;  %v4506_v54 = vmul.f32 %v13629_v59, %v16401_v10 }
 0x37c   : > { %v4944_v17 = vadd.f32 %v4873_v22, %v4699_v27  ;;  %v5187_v57 = vsel %vm1108_vm2, %v5185_v20, %v5186_v11  ;;  %v4070_v48 = vrot.slane %v3947_v35, 1  ;;  %v4423_v31 = vmul.f32 %v13640_v63, %v16400_v12 }
 0x37d   : > { %v5580_v4 = vadd.f32 %v13782_v9, %v5541_v38  ;;  %v5432_v3 = vsel %vm1354_vm3, %v5430_v14, %v5431_v2  ;;  %v4315_v52 = vrot.slane %v4192_v13, 2  ;;  %v4751_v21 = vmul.f32 %v13647_v50, %v16401_v10 }
 0x37e   : > { %v5013_v44 = vadd.f32 %v4981_v55, %v4944_v17  ;;  %v4071_v61 = vsel %vm1108_vm2, %v4068_v43, %v4070_v48  ;;  %v4629_v49 = vrot.slane %v4506_v54, 1  ;;  %v5065_v62 = vmul.f32 %v13701_v0, %v13371_v7 }
 0x37f   : > { %v5612_v40 = vmax.f32 %v5580_v4, 0.0  ;;  %v4141_v45 = vadd.f32 %v4071_v61, %v3864_v5  ;;  %v4316_v6 = vsel %vm1354_vm3, %v4313_v24, %v4315_v52  ;;  %v4982_v28 = vmul.f32 %v13665_v33, %v13395_v39 }
 0x380   : > { %v5258_v51 = vadd.f32 %v5187_v57, %v5013_v44  ;;  %v4630_v37 = vsel %vm1108_vm2, %v4627_v46, %v4629_v49  ;;  %v4874_v15 = vrot.slane %v4751_v21, 2  ;;  %v5310_v60 = vmul.f32 %v13716_v26, %v13371_v7 }
 0x381   : > { %v5644_v32 = vmin.f32 %v5612_v40, 6.0  ;;  %v4386_v43 = vadd.f32 %v4316_v6, %v4141_v45  ;;  %v5188_v56 = vrot.slane %v5065_v62, 1  ;;  %v3948_v55 = vmul.f32 %v13544_v1, %v13290_v19 }
 0x382   : > { %v5503_v20 = vadd.f32 %v5432_v3, %v5258_v51  ;;  %v4875_v42 = vsel %vm1354_vm3, %v4872_v58, %v4874_v15  ;;  %v3865_v24 = vmul.f32 %v13552_v8, %v13290_v19  ;;  %v13913_v25 = vmul.f32 %v13544_v1, %v16400_v12 }
 0x383   : > { %9638 = vmatmul.mubr.msk.f32.gmra.mxu0 %vm3689_vm5, %v5644_v32  ;;  %v4455_v46 = vadd.f32 %v4423_v31, %v4386_v43  ;;  %v4072_v41 = vrot.slane %v3948_v55, 1  ;;  %v4193_v14 = vmul.f32 %v13563_v23, %v13290_v19  ;;  %v4194_v27 = vmul.f32 %v13563_v23, %v16400_v12 }
 0x384   : > { %v5542_v35 = vmul.f32 %v13771_v18, %v5503_v20  ;;  %v5189_v58 = vsel %vm1108_vm2, %v5186_v11, %v5188_v56  ;;  %v5433_v13 = vrot.slane %v5310_v60, 2  ;;  %v4073_v38 = vrot.slane %v13913_v25, 1 }
 0x385   : > { %v4700_v22 = vadd.f32 %v4630_v37, %v4455_v46  ;;  %v4317_v5 = vrot.slane %v4193_v14, 2  ;;  %v4318_v54 = vrot.slane %v4194_v27, 2  ;;  %v4507_v17 = vmul.f32 %v13629_v59, %v13393_v36 }
 0x386   : > { %v5581_v57 = vadd.f32 %v13782_v9, %v5542_v35  ;;  %v4074_v19 = vsel %vm1108_vm2, %v4072_v41, %v4073_v38  ;;  %v4508_v48 = vmul.f32 %v13629_v59, %v13395_v39  ;;  %v4752_v31 = vmul.f32 %v13647_v50, %v13393_v36 }
 0x387   : > { %v4945_v11 = vadd.f32 %v4875_v42, %v4700_v22  ;;  %v5434_v4 = vsel %vm1354_vm3, %v5431_v2, %v5433_v13  ;;  %v4142_v3 = vadd.f32 %v4074_v19, %v3865_v24  ;;  %v4319_v52 = vsel %vm1354_vm3, %v4317_v5, %v4318_v54  ;;  %v13959_v13 = vpop.f32.mrf.mxu0 }
 0x388   : > { %v5613_v21 = vmax.f32 %v5581_v57, 0.0  ;;  %v4631_v44 = vrot.slane %v4507_v17, 1  ;;  %v4632_v61 = vrot.slane %v4508_v48, 1  ;;  %v4753_v49 = vmul.f32 %v13647_v50, %v13395_v39 }
 0x389   : > { %v5014_v62 = vadd.f32 %v4982_v28, %v4945_v11  ;;  %v4387_v40 = vadd.f32 %v4319_v52, %v4142_v3  ;;  %v4424_v45 = vmul.f32 %v13640_v63, %v13393_v36  ;;  %v5066_v6 = vmul.f32 %v13701_v0, %v13503_v30 }
 0x38a   : > { %v5645_v51 = vmin.f32 %v5613_v21, 6.0  ;;  %v4876_v37 = vrot.slane %v4752_v31, 2  ;;  %v4877_v2 = vrot.slane %v4753_v49, 2  ;;  %v5067_v15 = vmul.f32 %v13701_v0, %v13505_v34 }
 0x38b   : > { %v5259_v60 = vadd.f32 %v5189_v58, %v5014_v62  ;;  %v4456_v32 = vadd.f32 %v4424_v45, %v4387_v40  ;;  %v4983_v43 = vmul.f32 %v13665_v33, %v13503_v30  ;;  %v5311_v28 = vmul.f32 %v13716_v26, %v13503_v30  ;;  %v13975_v62 = vpop.f32.mrf.mxu0 }
 0x38c   : > { %9640 = vmatprep.mubr.msk.f32.mxu0 %vm3689_vm5, %v5645_v51  ;;  %v4633_v56 = vsel %vm1108_vm2, %v4631_v44, %v4632_v61  ;;  %v5190_v55 = vrot.slane %v5066_v6, 1  ;;  %v5191_v20 = vrot.slane %v5067_v15, 1  ;;  %v13949_v42 = vmul.f32 %v13716_v26, %v13505_v34 }
 0x38d   : > { %v5504_v24 = vadd.f32 %v5434_v4, %v5259_v60  ;;  %v4701_v25 = vadd.f32 %v4633_v56, %v4456_v32  ;;  %v5435_v46 = vrot.slane %v5311_v28, 2  ;;  %v3950_v41 = vmul.f32 %v13544_v1, %v16401_v10 }
 0x38e   : > { %v4878_v14 = vsel %vm1354_vm3, %v4876_v37, %v4877_v2  ;;  %v5436_v27 = vrot.slane %v13949_v42, 2  ;;  %v3866_v35 = vmul.f32 %v13552_v8, %v16400_v12  ;;  %v4195_v58 = vmul.f32 %v13563_v23, %v16401_v10 }
 0x38f   : > { %v5543_v22 = vmul.f32 %v13771_v18, %v5504_v24  ;;  %v4946_v5 = vadd.f32 %v4878_v14, %v4701_v25  ;;  %v4075_v17 = vrot.slane %v3950_v41, 1  ;;  %v4509_v57 = vmul.f32 %v13629_v59, %v13371_v7 }
 0x390   : > { %v5192_v19 = vsel %vm1108_vm2, %v5190_v55, %v5191_v20  ;;  %v4320_v48 = vrot.slane %v4195_v58, 2  ;;  %v4425_v31 = vmul.f32 %v13640_v63, %v13395_v39  ;;  %v4754_v12 = vmul.f32 %v13647_v50, %v13371_v7 }
 0x391   : > { %v5582_v10 = vadd.f32 %v13782_v9, %v5543_v22  ;;  %v5015_v11 = vadd.f32 %v4983_v43, %v4946_v5  ;;  %v5437_v4 = vsel %vm1354_vm3, %v5435_v46, %v5436_v27  ;;  %v4076_v3 = vsel %vm1108_vm2, %v4073_v38, %v4075_v17 }
 0x392   : > { %v4143_v52 = vadd.f32 %v4076_v3, %v3866_v35  ;;  %v4321_v21 = vsel %vm1354_vm3, %v4318_v54, %v4320_v48  ;;  %v4634_v44 = vrot.slane %v4509_v57, 1  ;;  %v5068_v49 = vmul.f32 %v13701_v0, %v13482_v47  ;;  %v13982_v54 = vpop.f32.mrf.mxu0 }
 0x393   : > { %v5614_v40 = vmax.f32 %v5582_v10, 0.0  ;;  %v5260_v45 = vadd.f32 %v5192_v19, %v5015_v11  ;;  %v4879_v6 = vrot.slane %v4754_v12, 2  ;;  %v5313_v51 = vmul.f32 %v13716_v26, %v13482_v47 }
 0x394   : > { %v4388_v37 = vadd.f32 %v4321_v21, %v4143_v52  ;;  %v4635_v15 = vsel %vm1108_vm2, %v4632_v61, %v4634_v44  ;;  %v4984_v38 = vmul.f32 %v13665_v33, %v13505_v34  ;;  %v5193_v60 = vrot.slane %v5068_v49, 1  ;;  %v14000_v5 = vpop.f32.mrf.mxu0 }
 0x395   : > { %v5646_v32 = vmin.f32 %v5614_v40, 6.0  ;;  %v5505_v43 = vadd.f32 %v5437_v4, %v5260_v45  ;;  %v4880_v28 = vsel %vm1354_vm3, %v4877_v2, %v4879_v6  ;;  %v3951_v56 = vmul.f32 %v13544_v1, %v13393_v36 }
 0x396   : > { %v4457_v55 = vadd.f32 %v4425_v31, %v4388_v37  ;;  %v3867_v42 = vmul.f32 %v13552_v8, %v13393_v36  ;;  %v3952_v61 = vmul.f32 %v13544_v1, %v13395_v39  ;;  %v4196_v24 = vmul.f32 %v13563_v23, %v13393_v36  ;;  %v14017_v10 = vpop.f32.mrf.mxu0 }
 0x397   : > { %9641 = vmatmul.mubr.msk.f32.gmra.mxu0 %vm3689_vm5, %v5646_v32  ;;  %v5544_v25 = vmul.f32 %v13771_v18, %v5505_v43  ;;  %v5438_v46 = vrot.slane %v5313_v51, 2  ;;  %v4077_v41 = vrot.slane %v3951_v56, 1  ;;  %v13997_v2 = vmul.f32 %v13563_v23, %v13395_v39 }
 0x398   : > { %v4702_v14 = vadd.f32 %v4635_v15, %v4457_v55  ;;  %v5194_v35 = vsel %vm1108_vm2, %v5191_v20, %v5193_v60  ;;  %v4078_v58 = vrot.slane %v3952_v61, 1  ;;  %v4322_v22 = vrot.slane %v4196_v24, 2 }
 0x399   : > { %v5583_v17 = vadd.f32 %v13782_v9, %v5544_v25  ;;  %v4323_v36 = vrot.slane %v13997_v2, 2  ;;  %v4510_v57 = vmul.f32 %v13629_v59, %v13503_v30  ;;  %v14008_v19 = vmul.f32 %v13629_v59, %v13505_v34 }
 0x39a   : > { %v4947_v48 = vadd.f32 %v4880_v28, %v4702_v14  ;;  %v4079_v31 = vsel %vm1108_vm2, %v4077_v41, %v4078_v58  ;;  %v4755_v20 = vmul.f32 %v13647_v50, %v13503_v30  ;;  %v14015_v12 = vmul.f32 %v13647_v50, %v13505_v34 }
 0x39b   : > { %v5615_v11 = vmax.f32 %v5583_v17, 0.0  ;;  %v5439_v4 = vsel %vm1354_vm3, %v5436_v27, %v5438_v46  ;;  %v4144_v3 = vadd.f32 %v4079_v31, %v3867_v42  ;;  %v4426_v52 = vmul.f32 %v13640_v63, %v13503_v30 }
 0x39c   : > { %v5016_v21 = vadd.f32 %v4984_v38, %v4947_v48  ;;  %v4324_v44 = vsel %vm1354_vm3, %v4322_v22, %v4323_v36  ;;  %v4636_v49 = vrot.slane %v4510_v57, 1  ;;  %v4637_v40 = vrot.slane %v14008_v19, 1  ;;  %v5845_v38 = vpop.f32.mrf.mxu0 }
 0x39d   : > { %v5647_v45 = vmin.f32 %v5615_v11, 6.0  ;;  %v4389_v6 = vadd.f32 %v4324_v44, %v4144_v3  ;;  %v4881_v51 = vrot.slane %v4755_v20, 2  ;;  %v5069_v37 = vmul.f32 %v13701_v0, %v13431_v29  ;;  %v14060_v20 = vld [vmem:[%s16222_s14] ss:$0 sm:$0xff] }
 0x39e   : > { %v5261_v15 = vadd.f32 %v5194_v35, %v5016_v21  ;;  %v4882_v60 = vrot.slane %v14015_v12, 2  ;;  %v4985_v27 = vmul.f32 %v13665_v33, %v13431_v29  ;;  %v5070_v30 = vmul.f32 %v13701_v0, %v13433_v16  ;;  %v14046_v22 = vpop.f32.mrf.mxu0 }
 0x39f   : > { %9643 = vmatprep.mubr.msk.f32.mxu0 %vm3689_vm5, %v5647_v45  ;;  %v4458_v32 = vadd.f32 %v4426_v52, %v4389_v6  ;;  %v5195_v43 = vrot.slane %v5069_v37, 1  ;;  %v5314_v28 = vmul.f32 %v13716_v26, %v13431_v29  ;;  %v14036_v56 = vmul.f32 %v13716_v26, %v13433_v16 }
 0x3a0   : > { %v5506_v55 = vadd.f32 %v5439_v4, %v5261_v15  ;;  %v4638_v42 = vsel %vm1108_vm2, %v4636_v49, %v4637_v40  ;;  %v5196_v61 = vrot.slane %v5070_v30, 1  ;;  %v3953_v24 = vmul.f32 %v13544_v1, %v13371_v7  ;;  %v5855_v3 = vpop.f32.mrf.mxu0 }
 0x3a1   : > { %v4703_v25 = vadd.f32 %v4638_v42, %v4458_v32  ;;  %v5440_v46 = vrot.slane %v5314_v28, 2  ;;  %v5441_v41 = vrot.slane %v14036_v56, 2  ;;  %v4198_v2 = vmul.f32 %v13563_v23, %v13371_v7  ;;  %v16403_v42 = vld [vmem:[#allocation12_spill] sm:$0xff] }
 0x3a2   : > { %v5545_v29 = vmul.f32 %v13771_v18, %v5506_v55  ;;  %v4883_v14 = vsel %vm1354_vm3, %v4881_v51, %v4882_v60  ;;  %v4080_v35 = vrot.slane %v3953_v24, 1  ;;  %v5197_v57 = vsel %vm1108_vm2, %v5195_v43, %v5196_v61  ;;  %v16402_v55 = vld [vmem:[#allocation13_spill] sm:$0xff] }
 0x3a3   : > { %v4948_v17 = vadd.f32 %v4883_v14, %v4703_v25  ;;  %v3868_v1 = vmul.f32 %v13552_v8, %v13395_v39  ;;  %v4512_v19 = vmul.f32 %v13629_v59, %v13482_v47  ;;  %v4325_v23 = vrot.slane %v4198_v2, 2  ;;  %v16404_v25 = vld [vmem:[#allocation14_spill] sm:$0xff] }
 0x3a4   : > { %v5584_v48 = vadd.f32 %v13782_v9, %v5545_v29  ;;  %v4081_v7 = vsel %vm1108_vm2, %v4078_v58, %v4080_v35  ;;  %v4757_v31 = vmul.f32 %v13647_v50, %v13482_v47  ;;  %v5442_v39 = vsel %vm1354_vm3, %v5440_v46, %v5441_v41  ;;  %v14073_v50 = vld [vmem:[%s16223_s15] ss:$0 sm:$0xff] }
 0x3a5   : > { %v5017_v12 = vadd.f32 %v4985_v27, %v4948_v17  ;;  %v4145_v8 = vadd.f32 %v4081_v7, %v3868_v1  ;;  %v4427_v59 = vmul.f32 %v13640_v63, %v13505_v34  ;;  %v4326_v58 = vsel %vm1354_vm3, %v4323_v36, %v4325_v23  ;;  %v16406_v23 = vld [vmem:[#allocation16_spill] sm:$0xff] }
 0x3a6   : > { %v5616_v11 = vmax.f32 %v5584_v48, 0.0  ;;  %v4639_v4 = vrot.slane %v4512_v19, 1  ;;  %v5071_v47 = vmul.f32 %v13701_v0, %v13454_v53  ;;  %v4884_v44 = vrot.slane %v4757_v31, 2 }
 0x3a7   : > { %v5262_v52 = vadd.f32 %v5197_v57, %v5017_v12  ;;  %v4390_v21 = vadd.f32 %v4326_v58, %v4145_v8  ;;  %v5992_v49 = vmul.f32 %v13959_v13, %v14060_v20  ;;  %v5316_v36 = vmul.f32 %v13716_v26, %v13454_v53  ;;  %v9615_v26 = vpop.f32.mrf.mxu0  ;;  %v16405_v57 = vld [vmem:[#allocation15_spill] sm:$0xff] }
 0x3a8   : > { %v5648_v34 = vmin.f32 %v5616_v11, 6.0  ;;  %v5198_v63 = vrot.slane %v5071_v47, 1  ;;  %v5991_v51 = vmul.f32 %v14060_v20, %v13975_v62  ;;  %v4640_v37 = vsel %vm1108_vm2, %v4637_v40, %v4639_v4  ;;  %v16408_v47 = vld [vmem:[#allocation18_spill] sm:$0xff] }
 0x3a9   : > { %v5507_v45 = vadd.f32 %v5442_v39, %v5262_v52  ;;  %v4459_v6 = vadd.f32 %v4427_v59, %v4390_v21  ;;  %v6031_v0 = vadd.f32 %v14073_v50, %v5992_v49  ;;  %v4986_v15 = vmul.f32 %v13665_v33, %v13433_v16  ;;  %v16407_v59 = vld [vmem:[#allocation17_spill] sm:$0xff]  ;;  %v16409_v49 = vld [vmem:[#allocation19_spill] sm:$0xff] }
 0x3aa   : > { %9644 = vmatmul.mubr.msk.f32.gmra.mxu0 %vm3689_vm5, %v5648_v34  ;;  %v5994_v13 = vmul.f32 %v13982_v54, %v14060_v20  ;;  %v5993_v53 = vmul.f32 %v14060_v20, %v14000_v5  ;;  %v4885_v32 = vsel %vm1354_vm3, %v4882_v60, %v4884_v44  ;;  %v6030_v62 = vadd.f32 %v14073_v50, %v5991_v51  ;;  %v16411_v51 = vld [vmem:[#allocation21_spill] sm:$0xff] }
 0x3ab   : > { %v5546_v27 = vmul.f32 %v13771_v18, %v5507_v45  ;;  %v4704_v30 = vadd.f32 %v4640_v37, %v4459_v6  ;;  %v5199_v43 = vsel %vm1108_vm2, %v5196_v61, %v5198_v63  ;;  %v5443_v40 = vrot.slane %v5316_v36, 2  ;;  %v16410_v36 = vld [vmem:[#allocation20_spill] sm:$0xff] }
 0x3ac   : > { %v6032_v28 = vadd.f32 %v14073_v50, %v5993_v53  ;;  %v5995_v16 = vmul.f32 %v14060_v20, %v5845_v38  ;;  %v14098_v5 = vadd.f32 %v6031_v0, %v16402_v55  ;;  %v14101_v24 = vadd.f32 %v6030_v62, %v16403_v42  ;;  %v5865_v38 = vpop.f32.mrf.mxu0 }
 0x3ad   : > { %v5585_v33 = vadd.f32 %v13782_v9, %v5546_v27  ;;  %v4949_v54 = vadd.f32 %v4885_v32, %v4704_v30  ;;  %v6033_v60 = vadd.f32 %v14073_v50, %v5994_v13  ;;  %v5996_v61 = vmul.f32 %v14017_v10, %v14060_v20 }
 0x3ae   : > { %v14105_v46 = vadd.f32 %v6032_v28, %v16404_v25  ;;  %v6034_v2 = vadd.f32 %v14073_v50, %v5995_v16  ;;  %9653 = vmatprep.mubr.msk.f32.mxu1 %vm3225_vm4, %v14101_v24  ;;  %v5997_v35 = vmul.f32 %v14060_v20, %v5855_v3  ;;  %v5444_v17 = vsel %vm1354_vm3, %v5441_v41, %v5443_v40  ;;  %v16414_v16 = vld [vmem:[#allocation24_spill] sm:$0xff] }
 0x3af   : > { %v5617_v29 = vmax.f32 %v5585_v33, 0.0  ;;  %v5018_v14 = vadd.f32 %v4986_v15, %v4949_v54  ;;  %9654 = vmatmul.mubr.msk.f32.vlgmr.msra.gmra.mxu1 %vm3225_vm4, %v14098_v5  ;;  %v5999_v7 = vmul.f32 %v14060_v20, %v5865_v38  ;;  %v14126_v31 = vadd.f32 %v6033_v60, %v16406_v23  ;;  %v16412_v15 = vld [vmem:[#allocation22_spill] sm:$0xff]  ;;  %v16416_v54 = vld [vmem:[#allocation25_spill] sm:$0xff] }
 0x3b0   : > { %v14119_v1 = vadd.f32 %v6034_v2, %v16405_v57  ;;  %9656 = vmatprep.mubr.msk.f32.mxu1 %vm3225_vm4, %v14105_v46  ;;  %v6036_v48 = vadd.f32 %v14073_v50, %v5997_v35  ;;  %v6035_v56 = vadd.f32 %v14073_v50, %v5996_v61  ;;  %v5998_v41 = vmul.f32 %v14046_v22, %v14060_v20  ;;  %v16419_v35 = vld [vmem:[#allocation27_spill] sm:$0xff] }
 0x3b1   : > { %v5649_v10 = vmin.f32 %v5617_v29, 6.0  ;;  %v5263_v19 = vadd.f32 %v5199_v43, %v5018_v14  ;;  %v6038_v58 = vadd.f32 %v14073_v50, %v5999_v7  ;;  %v6000_v52 = vmul.f32 %v9615_v26, %v14060_v20  ;;  %v16413_v26 = vld [vmem:[#allocation23_spill] sm:$0xff]  ;;  %v16417_v29 = vld [vmem:[#allocation26_spill] sm:$0xff] }
 0x3b2   : > { %v9618_v39 = vpop.f32.mrf.mxu0  ;;  %v14136_v11 = vadd.f32 %v6036_v48, %v16407_v59  ;;  %v14142_v22 = vadd.f32 %v6035_v56, %v16408_v47  ;;  %v6037_v3 = vadd.f32 %v14073_v50, %v5998_v41  ;;  %v16421_v56 = vld [vmem:[#allocation28_spill] sm:$0xff]  ;;  %v8528_v59 = vld [vmem:[%s16230_s22 + $0x50] sm:$0xff] }
 0x3b3   : > { %9646 = vmatprep.mubr.msk.f32.mxu0 %vm3689_vm5, %v5649_v10  ;;  %v5508_v12 = vadd.f32 %v5444_v17, %v5263_v19  ;;  %9657 = vmatmul.mubr.msk.f32.gmra.mxu1 %vm3225_vm4, %v14126_v31  ;;  %v14151_v34 = vadd.f32 %v6038_v58, %v16409_v49  ;;  %v6039_v6 = vadd.f32 %v14073_v50, %v6000_v52  ;;  %v8526_v52 = vld [vmem:[%s16230_s22 + $0x40] sm:$0xff] }
 0x3b4   : > { %9659 = vmatprep.mubr.msk.f32.mxu1 %vm3225_vm4, %v14119_v1  ;;  %v5875_v4 = vpop.f32.mrf.mxu0  ;;  %v14157_v45 = vadd.f32 %v6037_v3, %v16410_v36  ;;  %v6002_v0 = vmul.f32 %v9618_v39, %v14060_v20  ;;  %v16425_v36 = vld [vmem:[#allocation30_spill] sm:$0xff] }
 0x3b5   : > { %v5547_v8 = vmul.f32 %v13771_v18, %v5508_v12  ;;  %v6001_v21 = vmul.f32 %v14060_v20, %v5875_v4  ;;  %v14170_v13 = vadd.f32 %v6039_v6, %v16412_v15  ;;  %v16423_v12 = vld [vmem:[#allocation29_spill] sm:$0xff]  ;;  %v8522_v15 = vld [vmem:[%s16230_s22 + $0x20] sm:$0xff] }
 0x3b6   : > { %v6041_v53 = vadd.f32 %v14073_v50, %v6002_v0  ;;  %v8527_v4 = vld [vmem:[%s16230_s22 + $0x48] sm:$0xff]  ;;  %v16427_v0 = vld [vmem:[#allocation31_spill] sm:$0xff] }
 0x3b7   : > { %v5586_v18 = vadd.f32 %v13782_v9, %v5547_v8  ;;  %9660 = vmatmul.mubr.msk.f32.gmra.mxu1 %vm3225_vm4, %v14142_v22  ;;  %v6040_v63 = vadd.f32 %v14073_v50, %v6001_v21  ;;  %v8529_v8 = vld [vmem:[%s16230_s22 + $0x58] sm:$0xff] }
 0x3b8   : > { %9662 = vmatprep.mubr.msk.f32.mxu1 %vm3225_vm4, %v14136_v11  ;;  %v14178_v27 = vadd.f32 %v6041_v53, %v16413_v26  ;;  %9701 = vmatprep.subr.mxu0 %v8529_v8  ;;  %v8521_v53 = vld [vmem:[%s16230_s22 + $0x18] sm:$0xff] }
 0x3b9   : > { %v5618_v44 = vmax.f32 %v5586_v18, 0.0  ;;  %v14165_v37 = vadd.f32 %v6040_v63, %v16411_v51  ;;  %9702 = vmatpush3.msra.mxu0 %v8529_v8  ;;  %v8524_v63 = vld [vmem:[%s16230_s22 + $0x30] sm:$0xff]  ;;  %v8523_v51 = vld [vmem:[%s16230_s22 + $0x28] sm:$0xff] }
 0x3ba   : > { %9703 = vmatprep.subr.mxu0 %v8528_v59 }
 0x3bb   : > { %v5650_v9 = vmin.f32 %v5618_v44, 6.0  ;;  %9663 = vmatmul.mubr.msk.f32.gmra.mxu1 %vm3225_vm4, %v14157_v45  ;;  %9704 = vmatpush3.msra.mxu0 %v8528_v59  ;;  %v8525_v44 = vld [vmem:[%s16230_s22 + $0x38] sm:$0xff] }
 0x3bc   : > { %9665 = vmatprep.mubr.msk.f32.mxu1 %vm3225_vm4, %v14151_v34  ;;  %9705 = vmatprep.subr.mxu0 %v8527_v4 }
 0x3bd   : > { %9647 = vmatmul.mubr.msk.f32.gmra.mxu0 %vm3689_vm5, %v5650_v9 }
 0x3be   : > { %9706 = vmatpush3.msra.mxu0 %v8527_v4  ;;  %v16437_v4 = vld [vmem:[#allocation36_spill] sm:$0xff] }
 0x3bf   : > { %9666 = vmatmul.mubr.msk.f32.gmra.mxu1 %vm3225_vm4, %v14170_v13  ;;  %9707 = vmatprep.subr.mxu0 %v8526_v52 }
 0x3c0   : > { %9668 = vmatprep.mubr.msk.f32.mxu1 %vm3225_vm4, %v14165_v37  ;;  %9708 = vmatpush3.msra.mxu0 %v8526_v52 }
 0x3c1   : > { %9709 = vmatprep.subr.mxu0 %v8525_v44 }
 0x3c2   : > { %9710 = vmatpush3.msra.mxu0 %v8525_v44 }
 0x3c3   : > { %9669 = vmatmul.mubr.msk.f32.gmra.mxu1 %vm3225_vm4, %v14178_v27  ;;  %9711 = vmatprep.subr.mxu0 %v8524_v63 }
 0x3c4   : > { %9712 = vmatpush3.msra.mxu0 %v8524_v63 }
 0x3c5   : > { %9713 = vmatprep.subr.mxu0 %v8523_v51 }
 0x3c6   : > { %9714 = vmatpush3.msra.mxu0 %v8523_v51  ;;  %v16441_v51 = vld [vmem:[#allocation38_spill] sm:$0xff] }
 0x3c7   : > { %9715 = vmatprep.subr.mxu0 %v8522_v15 }
 0x3c8   : > { %v9621_v30 = vpop.f32.mrf.mxu0  ;;  %9716 = vmatpush3.msra.mxu0 %v8522_v15 }
 0x3c9   : > { %v6004_v32 = vmul.f32 %v9621_v30, %v14060_v20  ;;  %9717 = vmatprep.subr.mxu0 %v8521_v53 }
 0x3ca   : > { %v5885_v62 = vpop.f32.mrf.mxu0  ;;  %9718 = vmatpush3.msra.mxu0 %v8521_v53  ;;  %v16443_v53 = vld [vmem:[#allocation39_spill] sm:$0xff] }
 0x3cb   : > { %v6003_v43 = vmul.f32 %v14060_v20, %v5885_v62  ;;  %v6043_v40 = vadd.f32 %v14073_v50, %v6004_v32 }
 0x3cd   : > { %v6042_v28 = vadd.f32 %v14073_v50, %v6003_v43  ;;  %v14190_v55 = vadd.f32 %v6043_v40, %v16416_v54  ;;  %v16431_v54 = vld [vmem:[#allocation33_spill] sm:$0xff] }
 0x3cf   : > { %v14187_v33 = vadd.f32 %v6042_v28, %v16414_v16  ;;  %v16429_v28 = vld [vmem:[#allocation32_spill] sm:$0xff] }
 0x3d1   : > { %16415 = vst [vmem:[#allocation45_spill] sm:$0xff] %v14187_v33  ;;  %9671 = vmatprep.mubr.msk.f32.mxu1 %vm3225_vm4, %v14187_v33 }
 0x3d2   : > { %9672 = vmatmul.mubr.msk.f32.gmra.mxu1 %vm3225_vm4, %v14190_v55 }
 0x3df   : > { %v9624_v42 = vpop.f32.mrf.mxu0 }
 0x3e0   : > { %v6006_v60 = vmul.f32 %v9624_v42, %v14060_v20 }
 0x3e1   : > { %v5895_v25 = vpop.f32.mrf.mxu0 }
 0x3e2   : > { %v6005_v61 = vmul.f32 %v14060_v20, %v5895_v25  ;;  %v6045_v2 = vadd.f32 %v14073_v50, %v6006_v60 }
 0x3e4   : > { %v6044_v38 = vadd.f32 %v14073_v50, %v6005_v61  ;;  %v14204_v17 = vadd.f32 %v6045_v2, %v16419_v35  ;;  %v8520_v2 = vld [vmem:[%s16230_s22 + $0x10] sm:$0xff] }
 0x3e5   : > { %9719 = vmatprep.subr.mxu0 %v8520_v2 }
 0x3e6   : > { %v14201_v14 = vadd.f32 %v6044_v38, %v16417_v29  ;;  %16420 = vst [vmem:[#allocation13_spill] sm:$0xff] %v14204_v17  ;;  %9720 = vmatpush3.msra.mxu0 %v8520_v2 }
 0x3e8   : > { %16418 = vst [vmem:[#allocation44_spill] sm:$0xff] %v14201_v14  ;;  %9674 = vmatprep.mubr.msk.f32.mxu1 %vm3225_vm4, %v14201_v14 }
 0x3e9   : > { %9675 = vmatmul.mubr.msk.f32.gmra.mxu1 %vm3225_vm4, %v14204_v17 }
 0x3f3   : > { %v9627_v57 = vpop.f32.mrf.mxu0 }
 0x3f4   : > { %v6008_v10 = vmul.f32 %v9627_v57, %v14060_v20  ;;  %v16433_v57 = vld [vmem:[#allocation34_spill] sm:$0xff] }
 0x3f5   : > { %v5905_v19 = vpop.f32.mrf.mxu0 }
 0x3f6   : > { %v6007_v48 = vmul.f32 %v14060_v20, %v5905_v19  ;;  %v6047_v7 = vadd.f32 %v14073_v50, %v6008_v10  ;;  %v16435_v19 = vld [vmem:[#allocation35_spill] sm:$0xff] }
 0x3f8   : > { %v6046_v23 = vadd.f32 %v14073_v50, %v6007_v48  ;;  %v14218_v39 = vadd.f32 %v6047_v7, %v16423_v12 }
 0x3fa   : > { %v14215_v41 = vadd.f32 %v6046_v23, %v16421_v56  ;;  %16424 = vst [vmem:[#allocation14_spill] sm:$0xff] %v14218_v39 }
 0x3fc   : > { %16422 = vst [vmem:[#allocation12_spill] sm:$0xff] %v14215_v41  ;;  %9677 = vmatprep.mubr.msk.f32.mxu1 %vm3225_vm4, %v14215_v41 }
 0x3fd   : > { %9678 = vmatmul.mubr.msk.f32.gmra.mxu1 %vm3225_vm4, %v14218_v39 }
 0x409   : > { %v9630_v58 = vpop.f32.mrf.mxu0 }
 0x40a   : > { %v6010_v47 = vmul.f32 %v9630_v58, %v14060_v20  ;;  %v8519_v58 = vld [vmem:[%s16230_s22 + $0x8] sm:$0xff] }
 0x40b   : > { %v5915_v3 = vpop.f32.mrf.mxu0  ;;  %9721 = vmatprep.subr.mxu0 %v8519_v58 }
 0x40c   : > { %v6009_v21 = vmul.f32 %v14060_v20, %v5915_v3  ;;  %v6049_v18 = vadd.f32 %v14073_v50, %v6010_v47  ;;  %9722 = vmatpush3.msra.mxu0 %v8519_v58  ;;  %v16439_v3 = vld [vmem:[#allocation37_spill] sm:$0xff] }
 0x40e   : > { %v6048_v49 = vadd.f32 %v14073_v50, %v6009_v21  ;;  %v14250_v9 = vadd.f32 %v6049_v18, %v16427_v0  ;;  %v8518_v0 = vld [vmem:[%s16230_s22] sm:$0xff] }
 0x40f   : > { %9723 = vmatprep.subr.mxu0 %v8518_v0 }
 0x410   : > { %v14247_v6 = vadd.f32 %v6048_v49, %v16425_v36  ;;  %16428 = vst [vmem:[#allocation16_spill] sm:$0xff] %v14250_v9  ;;  %9724 = vmatpush3.msra.mxu0 %v8518_v0 }
 0x412   : > { %16426 = vst [vmem:[#allocation15_spill] sm:$0xff] %v14247_v6  ;;  %9680 = vmatprep.mubr.msk.f32.mxu1 %vm3225_vm4, %v14247_v6 }
 0x413   : > { %9681 = vmatmul.mubr.msk.f32.gmra.mxu1 %vm3225_vm4, %v14250_v9 }
 0x41c   : > { %v9633_v26 = vpop.f32.mrf.mxu0 }
 0x41d   : > { %v6012_v30 = vmul.f32 %v9633_v26, %v14060_v20 }
 0x41e   : > { %v5925_v32 = vpop.f32.mrf.mxu0 }
 0x41f   : > { %v6011_v62 = vmul.f32 %v14060_v20, %v5925_v32  ;;  %v6051_v43 = vadd.f32 %v14073_v50, %v6012_v30 }
 0x421   : > { %v6050_v40 = vadd.f32 %v14073_v50, %v6011_v62  ;;  %v14273_v42 = vadd.f32 %v6051_v43, %v16431_v54  ;;  %v6645_v43 = vld [vmem:[#allocation3] sm:$0xff]  ;;  %v6647_v54 = vld [vmem:[#allocation3 + $0x10] sm:$0x3] }
 0x423   : > { %v14270_v16 = vadd.f32 %v6050_v40, %v16429_v28  ;;  %16432 = vst [vmem:[#allocation18_spill] sm:$0xff] %v14273_v42  ;;  %v6646_v28 = vld [vmem:[#allocation3 + $0x8] sm:$0xff] }
 0x425   : > { %16430 = vst [vmem:[#allocation17_spill] sm:$0xff] %v14270_v16  ;;  %9683 = vmatprep.mubr.msk.f32.mxu1 %vm3225_vm4, %v14270_v16 }
 0x426   : > { %9684 = vmatmul.mubr.msk.f32.gmra.mxu1 %vm3225_vm4, %v14273_v42 }
 0x42f   : > { %v9636_v60 = vpop.f32.mrf.mxu0 }
 0x430   : > { %v6014_v25 = vmul.f32 %v9636_v60, %v14060_v20  ;;  %v14335_v60 = vld [vmem:[%s16227_s19 + $0x1] ss:$0 sm:$0xff] }
 0x431   : > { %v5935_v61 = vpop.f32.mrf.mxu0 }
 0x432   : > { %v6013_v38 = vmul.f32 %v14060_v20, %v5935_v61  ;;  %v6053_v29 = vadd.f32 %v14073_v50, %v6014_v25  ;;  %v14341_v61 = vld [vmem:[%s16225_s17] ss:$0 sm:$0xff] }
 0x434   : > { %v6052_v35 = vadd.f32 %v14073_v50, %v6013_v38  ;;  %v14290_v48 = vadd.f32 %v6053_v29, %v16435_v19  ;;  %v14347_v38 = vld [vmem:[%s16227_s19 + $0x2] ss:$0 sm:$0xff]  ;;  %v6774_v19 = vmul.f32 %v14335_v60, %v6646_v28 }
 0x436   : > { %v14287_v10 = vadd.f32 %v6052_v35, %v16433_v57  ;;  %16436 = vst [vmem:[#allocation20_spill] sm:$0xff] %v14290_v48  ;;  %v14352_v35 = vld [vmem:[%s16226_s18] ss:$0 sm:$0xff]  ;;  %v6773_v57 = vmul.f32 %v14335_v60, %v6645_v43 }
 0x438   : > { %16434 = vst [vmem:[#allocation19_spill] sm:$0xff] %v14287_v10  ;;  %9686 = vmatprep.mubr.msk.f32.mxu1 %vm3225_vm4, %v14287_v10 }
 0x439   : > { %9687 = vmatmul.mubr.msk.f32.gmra.mxu1 %vm3225_vm4, %v14290_v48 }
 0x443   : > { %v9639_v7 = vpop.f32.mrf.mxu0 }
 0x444   : > { %v6016_v23 = vmul.f32 %v9639_v7, %v14060_v20  ;;  %v6775_v7 = vmul.f32 %v14335_v60, %v6647_v54 }
 0x445   : > { %v5945_v56 = vpop.f32.mrf.mxu0 }
 0x446   : > { %v6015_v12 = vmul.f32 %v14060_v20, %v5945_v56  ;;  %v6055_v8 = vadd.f32 %v14073_v50, %v6016_v23  ;;  %v16445_v23 = vld [vmem:[#allocation41_spill] sm:$0xff]  ;;  %v6872_v0 = vrot.slane %v6775_v7, 1 }
 0x448   : > { %v6054_v59 = vadd.f32 %v14073_v50, %v6015_v12  ;;  %v14307_v52 = vadd.f32 %v6055_v8, %v16439_v3  ;;  %v16447_v8 = vld [vmem:[#allocation40_spill] sm:$0xff] }
 0x44a   : > { %v14304_v47 = vadd.f32 %v6054_v59, %v16437_v4  ;;  %16440 = vst [vmem:[#allocation22_spill] sm:$0xff] %v14307_v52  ;;  %v7018_v4 = vmul.f32 %v14347_v38, %v6645_v43 }
 0x44c   : > { %16438 = vst [vmem:[#allocation21_spill] sm:$0xff] %v14304_v47  ;;  %9689 = vmatprep.mubr.msk.f32.mxu1 %vm3225_vm4, %v14304_v47 }
 0x44d   : > { %9690 = vmatmul.mubr.msk.f32.gmra.mxu1 %vm3225_vm4, %v14307_v52 }
 0x457   : > { %v9642_v21 = vpop.f32.mrf.mxu0 }
 0x458   : > { %v6018_v18 = vmul.f32 %v9642_v21, %v14060_v20 }
 0x459   : > { %v5955_v44 = vpop.f32.mrf.mxu0 }
 0x45a   : > { %v6017_v49 = vmul.f32 %v14060_v20, %v5955_v44  ;;  %v6057_v63 = vadd.f32 %v14073_v50, %v6018_v18  ;;  %v14372_v18 = vld [vmem:[%s16227_s19] ss:$0 sm:$0xff]  ;;  %v7019_v44 = vmul.f32 %v14347_v38, %v6646_v28 }
 0x45c   : > { %v6056_v36 = vadd.f32 %v14073_v50, %v6017_v49  ;;  %v14324_v26 = vadd.f32 %v6057_v63, %v16443_v53  ;;  %v6869_v63 = vrot.slane %v6773_v57, 1 }
 0x45e   : > { %v14321_v15 = vadd.f32 %v6056_v36, %v16441_v51  ;;  %16444 = vst [vmem:[#allocation24_spill] sm:$0xff] %v14324_v26  ;;  %v6870_v36 = vrot.slane %v6774_v19, 1  ;;  %v7020_v51 = vmul.f32 %v14347_v38, %v6647_v54 }
 0x460   : > { %16442 = vst [vmem:[#allocation23_spill] sm:$0xff] %v14321_v15  ;;  %9692 = vmatprep.mubr.msk.f32.mxu1 %vm3225_vm4, %v14321_v15  ;;  %v6871_v54 = vsel %vm1108_vm2, %v6869_v63, %v6870_v36  ;;  %v6873_v7 = vsel %vm1108_vm2, %v6870_v36, %v6872_v0 }
 0x461   : > { %9693 = vmatmul.mubr.msk.f32.gmra.mxu1 %vm3225_vm4, %v14324_v26 }
 0x46a   : > { %v9645_v30 = vpop.f32.mrf.mxu0 }
 0x46b   : > { %v6020_v32 = vmul.f32 %v9645_v30, %v14060_v20 }
 0x46c   : > { %v5965_v62 = vpop.f32.mrf.mxu0 }
 0x46d   : > { %v6019_v40 = vmul.f32 %v14060_v20, %v5965_v62  ;;  %v6059_v25 = vadd.f32 %v14073_v50, %v6020_v32 }
 0x46f   : > { %v6058_v2 = vadd.f32 %v14073_v50, %v6019_v40  ;;  %v9655_v29 = vpop.f32.mrf.mxu1  ;;  %v14362_v59 = vadd.f32 %v6059_v25, %v16447_v8  ;;  %v6704_v40 = vmul.f32 %v14372_v18, %v6645_v43  ;;  %v6705_v25 = vmul.f32 %v14372_v18, %v6646_v28 }
 0x470   : > { %v6425_v12 = vmul.f32 %v9655_v29, %v14341_v61  ;;  %v7115_v8 = vrot.slane %v7019_v44, 2 }
 0x471   : > { %v14358_v56 = vadd.f32 %v6058_v2, %v16445_v23  ;;  %16448 = vst [vmem:[#allocation26_spill] sm:$0xff] %v14362_v59  ;;  %v6258_v58 = vpop.f32.mrf.mxu1  ;;  %v7114_v2 = vrot.slane %v7018_v4, 2  ;;  %v6981_v44 = vadd.f32 %v6871_v54, %v6704_v40 }
 0x472   : > { %v6464_v3 = vadd.f32 %v14352_v35, %v6425_v12  ;;  %v6424_v21 = vmul.f32 %v14341_v61, %v6258_v58  ;;  %v7117_v58 = vrot.slane %v7020_v51, 2 }
 0x473   : > { %16446 = vst [vmem:[#allocation25_spill] sm:$0xff] %v14358_v56  ;;  %9695 = vmatprep.mubr.msk.f32.mxu1 %vm3225_vm4, %v14358_v56  ;;  %v9658_v49 = vpop.f32.mrf.mxu1  ;;  %v7116_v0 = vsel %vm1354_vm3, %v7114_v2, %v7115_v8 }
 0x474   : > { %9696 = vmatmul.mubr.msk.f32.gmra.mxu1 %vm3225_vm4, %v14362_v59  ;;  %v6496_v53 = vmax.f32 %v6464_v3, 0.0  ;;  %v6463_v30 = vadd.f32 %v14352_v35, %v6424_v21  ;;  %v6427_v32 = vmul.f32 %v9658_v49, %v14341_v61  ;;  %v7118_v51 = vsel %vm1354_vm3, %v7115_v8, %v7117_v58  ;;  %v14409_v8 = vld [vmem:[%s16227_s19 + $0x5] ss:$0 sm:$0xff] }
 0x475   : > { %v6268_v62 = vpop.f32.mrf.mxu1 }
 0x476   : > { %v6528_v29 = vmin.f32 %v6496_v53, 6.0  ;;  %v6495_v23 = vmax.f32 %v6463_v30, 0.0  ;;  %v6466_v12 = vadd.f32 %v14352_v35, %v6427_v32  ;;  %v6426_v57 = vmul.f32 %v14341_v61, %v6268_v62 }
 0x477   : > { %v9661_v19 = vpop.f32.mrf.mxu1  ;;  %v6982_v32 = vadd.f32 %v6873_v7, %v6705_v25  ;;  %v14404_v7 = vld [vmem:[%s16227_s19 + $0x4] ss:$0 sm:$0xff] }
 0x478   : > { %6614 = vst.msk [vmem:[#allocation3 + $0x21] sm:$0xff] %vm3689_vm5, %v6528_v29  ;;  %v6527_v3 = vmin.f32 %v6495_v23, 6.0  ;;  %v6498_v43 = vmax.f32 %v6466_v12, 0.0  ;;  %v6465_v28 = vadd.f32 %v14352_v35, %v6426_v57  ;;  %v6429_v4 = vmul.f32 %v9661_v19, %v14341_v61 }
 0x479   : > { %v6278_v21 = vpop.f32.mrf.mxu1 }
 0x47a   : > { %6613 = vst.msk [vmem:[#allocation3 + $0x19] sm:$0xff] %vm3689_vm5, %v6527_v3  ;;  %v6530_v49 = vmin.f32 %v6498_v43, 6.0  ;;  %v6497_v53 = vmax.f32 %v6465_v28, 0.0  ;;  %v6468_v30 = vadd.f32 %v14352_v35, %v6429_v4  ;;  %v6428_v63 = vmul.f32 %v14341_v61, %v6278_v21 }
 0x47b   : > { %v9664_v36 = vpop.f32.mrf.mxu1 }
 0x47c   : > { %6616 = vst.msk [vmem:[#allocation3 + $0x39] sm:$0xff] %vm3689_vm5, %v6530_v49  ;;  %v6529_v29 = vmin.f32 %v6497_v53, 6.0  ;;  %v6500_v23 = vmax.f32 %v6468_v30, 0.0  ;;  %v6467_v12 = vadd.f32 %v14352_v35, %v6428_v63  ;;  %v6431_v57 = vmul.f32 %v9664_v36, %v14341_v61 }
 0x47d   : > { %v9648_v62 = vpop.f32.mrf.mxu0  ;;  %v6288_v3 = vpop.f32.mrf.mxu1  ;;  %v7226_v49 = vadd.f32 %v7116_v0, %v6981_v44  ;;  %v14415_v53 = vadd.f32 %v7118_v51, %v6982_v32 }
 0x47e   : > { %v6022_v19 = vmul.f32 %v9648_v62, %v14060_v20  ;;  %6615 = vst.msk [vmem:[#allocation3 + $0x31] sm:$0xff] %vm3689_vm5, %v6529_v29  ;;  %v6532_v40 = vmin.f32 %v6500_v23, 6.0  ;;  %v6499_v2 = vmax.f32 %v6467_v12, 0.0  ;;  %v6470_v54 = vadd.f32 %v14352_v35, %v6431_v57  ;;  %v14423_v29 = vld [vmem:[%s16227_s19 + $0x3] ss:$0 sm:$0xff] }
 0x47f   : > { %v5975_v43 = vpop.f32.mrf.mxu0  ;;  %v6430_v25 = vmul.f32 %v14341_v61, %v6288_v3  ;;  %v9667_v4 = vpop.f32.mrf.mxu1  ;;  %v14413_v21 = vld [vmem:[#allocation3 + $0x28] sm:$0x3] }
 0x480   : > { %v6061_v58 = vadd.f32 %v14073_v50, %v6022_v19  ;;  %v6021_v28 = vmul.f32 %v14060_v20, %v5975_v43  ;;  %6618 = vst.msk [vmem:[#allocation3 + $0x51] sm:$0xff] %vm3689_vm5, %v6532_v40  ;;  %v6531_v30 = vmin.f32 %v6499_v2, 6.0  ;;  %v6502_v63 = vmax.f32 %v6470_v54, 0.0  ;;  %v16449_v20 = vld [vmem:[#allocation42_spill] sm:$0xff] }
 0x481   : > { %v6469_v36 = vadd.f32 %v14352_v35, %v6430_v25  ;;  %v6433_v62 = vmul.f32 %v9667_v4, %v14341_v61  ;;  %v6298_v0 = vpop.f32.mrf.mxu1  ;;  %v14429_v51 = vld [vmem:[#allocation3 + $0x18] sm:$0xff]  ;;  %v14431_v32 = vld [vmem:[#allocation3 + $0x20] sm:$0xff]  ;;  %v7334_v12 = vmul.f32 %v14404_v7, %v14413_v21  ;;  %v7579_v57 = vmul.f32 %v14409_v8, %v14413_v21 }
 0x482   : > { %v14426_v23 = vadd.f32 %v6061_v58, %v16449_v20  ;;  %v6060_v44 = vadd.f32 %v14073_v50, %v6021_v28  ;;  %6617 = vst.msk [vmem:[#allocation3 + $0x49] sm:$0xff] %vm3689_vm5, %v6531_v30  ;;  %v6534_v19 = vmin.f32 %v6502_v63, 6.0  ;;  %v6432_v40 = vmul.f32 %v14341_v61, %v6298_v0  ;;  %v16451_v50 = vld [vmem:[#allocation43_spill] sm:$0xff] }
 0x483   : > { %v6501_v3 = vmax.f32 %v6469_v36, 0.0  ;;  %v6472_v43 = vadd.f32 %v14352_v35, %v6433_v62  ;;  %v9670_v54 = vpop.f32.mrf.mxu1  ;;  %v7263_v25 = vmul.f32 %v14423_v29, %v14429_v51  ;;  %v7332_v58 = vmul.f32 %v14404_v7, %v14429_v51 }
 0x484   : > { %16450 = vst [vmem:[#allocation27_spill] sm:$0xff] %v14426_v23  ;;  %v14441_v2 = vadd.f32 %v6060_v44, %v16451_v50  ;;  %v7333_v28 = vmul.f32 %v14404_v7, %v14431_v32  ;;  %6620 = vst.msk [vmem:[#allocation3 + $0x69] sm:$0xff] %vm3689_vm5, %v6534_v19  ;;  %v6471_v63 = vadd.f32 %v14352_v35, %v6432_v40  ;;  %v7431_v50 = vrot.slane %v7334_v12, 1 }
 0x485   : > { %v6533_v4 = vmin.f32 %v6501_v3, 6.0  ;;  %v6504_v30 = vmax.f32 %v6472_v43, 0.0  ;;  %v6435_v36 = vmul.f32 %v9670_v54, %v14341_v61  ;;  %v6308_v62 = vpop.f32.mrf.mxu1  ;;  %v7295_v20 = vadd.f32 %v7263_v25, %v7226_v49  ;;  %v14459_v54 = vld [vmem:[#allocation3 + $0x30] sm:$0xff]  ;;  %v14466_v25 = vld [vmem:[#allocation3 + $0x38] sm:$0xff] }
 0x486   : > { %16452 = vst [vmem:[#allocation28_spill] sm:$0xff] %v14441_v2  ;;  %9698 = vmatprep.mubr.msk.f32.mxu1 %vm3225_vm4, %v14441_v2  ;;  %v7428_v44 = vrot.slane %v7332_v58, 1  ;;  %v7429_v0 = vrot.slane %v7333_v28, 1  ;;  %v6503_v3 = vmax.f32 %v6471_v63, 0.0  ;;  %v6434_v40 = vmul.f32 %v14341_v61, %v6308_v62  ;;  %v14464_v49 = vld [vmem:[%s16227_s19 + $0x6] ss:$0 sm:$0xff] }
 0x487   : > { %9699 = vmatmul.mubr.msk.f32.gmra.mxu1 %vm3225_vm4, %v14426_v23  ;;  %6619 = vst.msk [vmem:[#allocation3 + $0x61] sm:$0xff] %vm3689_vm5, %v6533_v4  ;;  %v6536_v19 = vmin.f32 %v6504_v30, 6.0  ;;  %v6474_v43 = vadd.f32 %v14352_v35, %v6435_v36  ;;  %v7577_v28 = vmul.f32 %v14409_v8, %v14429_v51  ;;  %v7578_v4 = vmul.f32 %v14409_v8, %v14431_v32  ;;  %v14476_v62 = vld [vmem:[#allocation3 + $0x40] sm:$0x3] }
 0x488   : > { %v7430_v12 = vsel %vm1108_vm2, %v7428_v44, %v7429_v0  ;;  %v7432_v58 = vsel %vm1108_vm2, %v7429_v0, %v7431_v50  ;;  %v6535_v30 = vmin.f32 %v6503_v3, 6.0  ;;  %v6473_v36 = vadd.f32 %v14352_v35, %v6434_v40  ;;  %v14481_v44 = vld [vmem:[%s16227_s19 + $0x7] ss:$0 sm:$0xff]  ;;  %v14493_v40 = vld [vmem:[%s16227_s19 + $0x8] ss:$0 sm:$0xff] }
 0x489   : > { %6622 = vst.msk [vmem:[#allocation3 + $0x81] sm:$0xff] %vm3689_vm5, %v6536_v19  ;;  %v6506_v63 = vmax.f32 %v6474_v43, 0.0  ;;  %v7540_v2 = vadd.f32 %v7430_v12, %v7295_v20  ;;  %v7673_v0 = vrot.slane %v7577_v28, 2  ;;  %v7674_v50 = vrot.slane %v7578_v4, 2 }
 0x48a   : > { %v7676_v23 = vrot.slane %v7579_v57, 2  ;;  %v7822_v56 = vmul.f32 %v14464_v49, %v14459_v54  ;;  %6621 = vst.msk [vmem:[#allocation3 + $0x79] sm:$0xff] %vm3689_vm5, %v6535_v30  ;;  %v6505_v3 = vmax.f32 %v6473_v36, 0.0  ;;  %v7891_v43 = vmul.f32 %v14481_v44, %v14459_v54 }
 0x48b   : > { %v6538_v19 = vmin.f32 %v6506_v63, 6.0  ;;  %v7892_v20 = vmul.f32 %v14481_v44, %v14466_v25  ;;  %v7675_v57 = vsel %vm1354_vm3, %v7673_v0, %v7674_v50  ;;  %v7893_v28 = vmul.f32 %v14481_v44, %v14476_v62 }
 0x48c   : > { %v7677_v12 = vsel %vm1354_vm3, %v7674_v50, %v7676_v23  ;;  %v8136_v4 = vmul.f32 %v14493_v40, %v14459_v54  ;;  %v6537_v30 = vmin.f32 %v6505_v3, 6.0  ;;  %v7785_v63 = vadd.f32 %v7675_v57, %v7540_v2 }
 0x48d   : > { %6624 = vst.msk [vmem:[#allocation3 + $0x99] sm:$0xff] %vm3689_vm5, %v6538_v19  ;;  %v7987_v36 = vrot.slane %v7891_v43, 1  ;;  %v7988_v59 = vrot.slane %v7892_v20, 1  ;;  %v7990_v15 = vrot.slane %v7893_v28, 1  ;;  %v8137_v26 = vmul.f32 %v14493_v40, %v14466_v25 }
 0x48e   : > { %v8138_v0 = vmul.f32 %v14493_v40, %v14476_v62  ;;  %v8232_v23 = vrot.slane %v8136_v4, 2  ;;  %6623 = vst.msk [vmem:[#allocation3 + $0x91] sm:$0xff] %vm3689_vm5, %v6537_v30  ;;  %v7854_v50 = vadd.f32 %v7822_v56, %v7785_v63  ;;  %v7264_v19 = vmul.f32 %v14423_v29, %v14431_v32 }
 0x48f   : > { %v7989_v47 = vsel %vm1108_vm2, %v7987_v36, %v7988_v59  ;;  %v7823_v2 = vmul.f32 %v14464_v49, %v14466_v25  ;;  %v7991_v3 = vsel %vm1108_vm2, %v7988_v59, %v7990_v15  ;;  %v8233_v43 = vrot.slane %v8137_v26, 2  ;;  %v14527_v15 = vld [vmem:[%s16228_s20] ss:$0 sm:$0xff] }
 0x490   : > { %v8235_v20 = vrot.slane %v8138_v0, 2  ;;  %v6706_v57 = vmul.f32 %v14372_v18, %v14429_v51  ;;  %v8099_v28 = vadd.f32 %v7989_v47, %v7854_v50  ;;  %v7296_v4 = vadd.f32 %v7264_v19, %v14415_v53 }
 0x491   : > { %v6776_v56 = vmul.f32 %v14335_v60, %v14429_v51  ;;  %v14520_v30 = vmul.f32 %v14335_v60, %v14431_v32  ;;  %v8234_v63 = vsel %vm1354_vm3, %v8232_v23, %v8233_v43  ;;  %v7021_v47 = vmul.f32 %v14347_v38, %v14429_v51 }
 0x492   : > { %v8236_v36 = vsel %vm1354_vm3, %v8233_v43, %v8235_v20  ;;  %v14533_v26 = vmul.f32 %v14347_v38, %v14431_v32  ;;  %v9673_v59 = vpop.f32.mrf.mxu1  ;;  %v8344_v53 = vadd.f32 %v8234_v63, %v8099_v28  ;;  %v7541_v0 = vadd.f32 %v7432_v58, %v7296_v4  ;;  %v14540_v43 = vld [vmem:[%s16229_s21] ss:$0 sm:$0xff] }
 0x493   : > { %v6874_v50 = vrot.slane %v6776_v56, 1  ;;  %v16307_v23 = vrot.slane %v14520_v30, 1  ;;  %v6437_v19 = vmul.f32 %v9673_v59, %v14341_v61  ;;  %v7119_v20 = vrot.slane %v7021_v47, 2 }
 0x494   : > { %v16309_v51 = vrot.slane %v14533_v26, 2  ;;  %v7265_v52 = vmul.f32 %v14423_v29, %v14459_v54  ;;  %v6318_v10 = vpop.f32.mrf.mxu1  ;;  %v8383_v28 = vmul.f32 %v14527_v15, %v8344_v53  ;;  %v7786_v58 = vadd.f32 %v7677_v12, %v7541_v0 }
 0x495   : > { %v6876_v4 = vsel %vm1108_vm2, %v6874_v50, %v16307_v23  ;;  %v7335_v56 = vmul.f32 %v14404_v7, %v14459_v54  ;;  %v6476_v63 = vadd.f32 %v14352_v35, %v6437_v19  ;;  %v6436_v47 = vmul.f32 %v14341_v61, %v6318_v10 }
 0x496   : > { %v6983_v59 = vadd.f32 %v6876_v4, %v6706_v57  ;;  %v7121_v48 = vsel %vm1354_vm3, %v7119_v20, %v16309_v51  ;;  %v8422_v16 = vadd.f32 %v14540_v43, %v8383_v28  ;;  %v7855_v53 = vadd.f32 %v7823_v2, %v7786_v58  ;;  %v14564_v4 = vld [vmem:[#allocation3 + $0x48] sm:$0xff]  ;;  %v14569_v51 = vld [vmem:[#allocation3 + $0x50] sm:$0xff] }
 0x497   : > { %v14559_v12 = vmul.f32 %v14404_v7, %v14466_v25  ;;  %v7433_v0 = vrot.slane %v7335_v56, 1  ;;  %v6508_v50 = vmax.f32 %v6476_v63, 0.0  ;;  %v6475_v23 = vadd.f32 %v14352_v35, %v6436_v47 }
 0x498   : > { %v7228_v42 = vadd.f32 %v7121_v48, %v6983_v59  ;;  %v7580_v10 = vmul.f32 %v14409_v8, %v14459_v54  ;;  %v8454_v57 = vmax.f32 %v8422_v16, 0.0  ;;  %v8100_v19 = vadd.f32 %v7991_v3, %v7855_v53 }
 0x499   : > { %v7434_v20 = vrot.slane %v14559_v12, 1  ;;  %v7581_v2 = vmul.f32 %v14409_v8, %v14466_v25  ;;  %v6540_v28 = vmin.f32 %v6508_v50, 6.0  ;;  %v6507_v58 = vmax.f32 %v6475_v23, 0.0 }
 0x49a   : > { %v7297_v56 = vadd.f32 %v7265_v52, %v7228_v42  ;;  %v7678_v63 = vrot.slane %v7580_v10, 2  ;;  %v8486_v47 = vmin.f32 %v8454_v57, 6.0  ;;  %v8345_v48 = vadd.f32 %v8236_v36, %v8100_v19 }
 0x49b   : > { %v7435_v59 = vsel %vm1108_vm2, %v7433_v0, %v7434_v20  ;;  %v7679_v6 = vrot.slane %v7581_v2, 2  ;;  %6626 = vst.msk [vmem:[#allocation3 + $0xb1] sm:$0xff] %vm3689_vm5, %v6540_v28  ;;  %v6539_v16 = vmin.f32 %v6507_v58, 6.0  ;;  %v7824_v53 = vmul.f32 %v14464_v49, %v14564_v4 }
 0x49c   : > { %v7542_v3 = vadd.f32 %v7435_v59, %v7297_v56  ;;  %v7894_v12 = vmul.f32 %v14481_v44, %v14564_v4  ;;  %9725 = vmatprep.mubr.msk.f32.mxu0 %vm3689_vm5, %v8486_v47  ;;  %v8384_v42 = vmul.f32 %v14527_v15, %v8345_v48  ;;  %v7895_v36 = vmul.f32 %v14481_v44, %v14569_v51 }
 0x49d   : > { %v7680_v52 = vsel %vm1354_vm3, %v7678_v63, %v7679_v6  ;;  %v8139_v23 = vmul.f32 %v14493_v40, %v14564_v4  ;;  %6625 = vst.msk [vmem:[#allocation3 + $0xa9] sm:$0xff] %vm3689_vm5, %v6539_v16  ;;  %v8140_v10 = vmul.f32 %v14493_v40, %v14569_v51  ;;  %v6707_v57 = vmul.f32 %v14372_v18, %v14431_v32 }
 0x49e   : > { %v7787_v0 = vadd.f32 %v7680_v52, %v7542_v3  ;;  %v7992_v50 = vrot.slane %v7894_v12, 1  ;;  %v8423_v19 = vadd.f32 %v14540_v43, %v8384_v42  ;;  %v7993_v2 = vrot.slane %v7895_v36, 1  ;;  %v14600_v52 = vld [vmem:[#allocation3 + $0x58] sm:$0x3] }
 0x49f   : > { %v8237_v28 = vrot.slane %v8139_v23, 2  ;;  %v6778_v58 = vmul.f32 %v14335_v60, %v14413_v21  ;;  %v8238_v63 = vrot.slane %v8140_v10, 2  ;;  %v7023_v47 = vmul.f32 %v14347_v38, %v14413_v21 }
 0x4a0   : > { %v7856_v56 = vadd.f32 %v7824_v53, %v7787_v0  ;;  %v7266_v48 = vmul.f32 %v14423_v29, %v14466_v25  ;;  %v8455_v59 = vmax.f32 %v8423_v19, 0.0  ;;  %v7994_v16 = vsel %vm1108_vm2, %v7992_v50, %v7993_v2 }
 0x4a1   : > { %v6877_v3 = vrot.slane %v6778_v58, 1  ;;  %v7337_v32 = vmul.f32 %v14404_v7, %v14476_v62  ;;  %v8239_v42 = vsel %vm1354_vm3, %v8237_v28, %v8238_v63  ;;  %v7122_v53 = vrot.slane %v7023_v47, 2 }
 0x4a2   : > { %v8101_v12 = vadd.f32 %v7994_v16, %v7856_v56  ;;  %v7582_v36 = vmul.f32 %v14409_v8, %v14476_v62  ;;  %v8487_v21 = vmin.f32 %v8455_v59, 6.0  ;;  %v16453_v23 = vrot.slane %v14520_v30, 1 }
 0x4a3   : > { %v7436_v10 = vrot.slane %v7337_v32, 1  ;;  %v7825_v50 = vmul.f32 %v14464_v49, %v14569_v51  ;;  %v16454_v56 = vrot.slane %v14533_v26, 2  ;;  %v7896_v30 = vmul.f32 %v14481_v44, %v14600_v52 }
 0x4a4   : > { %v6878_v0 = vsel %vm1108_vm2, %v16453_v23, %v6877_v3  ;;  %v8346_v19 = vadd.f32 %v8239_v42, %v8101_v12  ;;  %v7681_v16 = vrot.slane %v7582_v36, 2  ;;  %9726 = vmatmul.mubr.msk.f32.vlgmr.msra.gmra.mxu0 %vm3689_vm5, %v8487_v21  ;;  %v8141_v59 = vmul.f32 %v14493_v40, %v14600_v52 }
 0x4a5   : > { %v6984_v58 = vadd.f32 %v6878_v0, %v6707_v57  ;;  %v7123_v28 = vsel %vm1354_vm3, %v16454_v56, %v7122_v53  ;;  %v7437_v47 = vsel %vm1108_vm2, %v7434_v20, %v7436_v10  ;;  %v6708_v3 = vmul.f32 %v14372_v18, %v14459_v54 }
 0x4a6   : > { %v8385_v57 = vmul.f32 %v14527_v15, %v8346_v19  ;;  %v7682_v26 = vsel %vm1354_vm3, %v7679_v6, %v7681_v16  ;;  %v6779_v12 = vmul.f32 %v14335_v60, %v14459_v54  ;;  %v7995_v42 = vrot.slane %v7896_v30, 1 }
 0x4a7   : > { %v7229_v32 = vadd.f32 %v7123_v28, %v6984_v58  ;;  %v8240_v53 = vrot.slane %v8141_v59, 2  ;;  %v14626_v20 = vmul.f32 %v14335_v60, %v14466_v25  ;;  %v7024_v36 = vmul.f32 %v14347_v38, %v14459_v54 }
 0x4a8   : > { %v8424_v23 = vadd.f32 %v14540_v43, %v8385_v57  ;;  %v6879_v10 = vrot.slane %v6779_v12, 1  ;;  %v14633_v6 = vmul.f32 %v14347_v38, %v14466_v25  ;;  %v7996_v58 = vsel %vm1108_vm2, %v7993_v2, %v7995_v42 }
 0x4a9   : > { %v9676_v21 = vpop.f32.mrf.mxu1  ;;  %v7298_v0 = vadd.f32 %v7266_v48, %v7229_v32  ;;  %v8241_v56 = vsel %vm1354_vm3, %v8238_v63, %v8240_v53  ;;  %v16312_v28 = vrot.slane %v14626_v20, 1  ;;  %v7124_v59 = vrot.slane %v7024_v36, 2 }
 0x4aa   : > { %v6439_v19 = vmul.f32 %v9676_v21, %v14341_v61  ;;  %v8456_v30 = vmax.f32 %v8424_v23, 0.0  ;;  %v16311_v57 = vrot.slane %v14633_v6, 2  ;;  %v7267_v2 = vmul.f32 %v14423_v29, %v14564_v4 }
 0x4ab   : > { %v6328_v16 = vpop.f32.mrf.mxu1  ;;  %v7543_v54 = vadd.f32 %v7437_v47, %v7298_v0  ;;  %v6881_v12 = vsel %vm1108_vm2, %v6879_v10, %v16312_v28  ;;  %v7338_v23 = vmul.f32 %v14404_v7, %v14564_v4  ;;  %v7339_v0 = vmul.f32 %v14404_v7, %v14569_v51 }
 0x4ac   : > { %v6478_v48 = vadd.f32 %v14352_v35, %v6439_v19  ;;  %v6438_v32 = vmul.f32 %v14341_v61, %v6328_v16  ;;  %v8488_v63 = vmin.f32 %v8456_v30, 6.0  ;;  %v6985_v53 = vadd.f32 %v6881_v12, %v6708_v3  ;;  %v14656_v19 = vld [vmem:[#allocation3 + $0x60] sm:$0xff] }
 0x4ad   : > { %v7788_v42 = vadd.f32 %v7682_v26, %v7543_v54  ;;  %v7126_v47 = vsel %vm1354_vm3, %v7124_v59, %v16311_v57  ;;  %v7583_v3 = vmul.f32 %v14409_v8, %v14564_v4  ;;  %v7584_v16 = vmul.f32 %v14409_v8, %v14569_v51  ;;  %v14662_v59 = vld [vmem:[#allocation3 + $0x68] sm:$0xff] }
 0x4ae   : > { %v6510_v36 = vmax.f32 %v6478_v48, 0.0  ;;  %v6477_v21 = vadd.f32 %v14352_v35, %v6438_v32  ;;  %9728 = vmatprep.mubr.msk.f32.mxu0 %vm3689_vm5, %v8488_v63  ;;  %v7230_v26 = vadd.f32 %v7126_v47, %v6985_v53  ;;  %v7438_v48 = vrot.slane %v7338_v23, 1 }
 0x4af   : > { %v7857_v10 = vadd.f32 %v7825_v50, %v7788_v42  ;;  %v7439_v32 = vrot.slane %v7339_v0, 1  ;;  %v7683_v28 = vrot.slane %v7583_v3, 2  ;;  %v7684_v63 = vrot.slane %v7584_v16, 2 }
 0x4b0   : > { %v6542_v30 = vmin.f32 %v6510_v36, 6.0  ;;  %v6509_v54 = vmax.f32 %v6477_v21, 0.0  ;;  %v7299_v57 = vadd.f32 %v7267_v2, %v7230_v26  ;;  %v7826_v53 = vmul.f32 %v14464_v49, %v14656_v19 }
 0x4b1   : > { %v8102_v12 = vadd.f32 %v7996_v58, %v7857_v10  ;;  %v7440_v42 = vsel %vm1108_vm2, %v7438_v48, %v7439_v32  ;;  %v7897_v47 = vmul.f32 %v14481_v44, %v14656_v19  ;;  %v7685_v23 = vsel %vm1354_vm3, %v7683_v28, %v7684_v63 }
 0x4b2   : > { %6628 = vst.msk [vmem:[#allocation3 + $0xc9] sm:$0xff] %vm3689_vm5, %v6542_v30  ;;  %v6541_v50 = vmin.f32 %v6509_v54, 6.0  ;;  %v7544_v21 = vadd.f32 %v7440_v42, %v7299_v57  ;;  %v7898_v58 = vmul.f32 %v14481_v44, %v14662_v59  ;;  %v8142_v0 = vmul.f32 %v14493_v40, %v14656_v19 }
 0x4b3   : > { %v8347_v36 = vadd.f32 %v8241_v56, %v8102_v12  ;;  %v7997_v2 = vrot.slane %v7897_v47, 1  ;;  %v8143_v10 = vmul.f32 %v14493_v40, %v14662_v59  ;;  %v6709_v26 = vmul.f32 %v14372_v18, %v14466_v25 }
 0x4b4   : > { %6627 = vst.msk [vmem:[#allocation3 + $0xc1] sm:$0xff] %vm3689_vm5, %v6541_v50  ;;  %v7789_v57 = vadd.f32 %v7685_v23, %v7544_v21  ;;  %v7998_v3 = vrot.slane %v7898_v58, 1  ;;  %v6781_v28 = vmul.f32 %v14335_v60, %v14476_v62  ;;  %v8242_v16 = vrot.slane %v8142_v0, 2 }
 0x4b5   : > { %v8386_v56 = vmul.f32 %v14527_v15, %v8347_v36  ;;  %v8243_v30 = vrot.slane %v8143_v10, 2  ;;  %v7026_v54 = vmul.f32 %v14347_v38, %v14476_v62  ;;  %v7268_v48 = vmul.f32 %v14423_v29, %v14569_v51  ;;  %v14690_v36 = vld [vmem:[#allocation3 + $0x70] sm:$0x3] }
 0x4b6   : > { %v7858_v50 = vadd.f32 %v7826_v53, %v7789_v57  ;;  %v7999_v25 = vsel %vm1108_vm2, %v7997_v2, %v7998_v3  ;;  %v6882_v42 = vrot.slane %v6781_v28, 1  ;;  %v7340_v23 = vmul.f32 %v14404_v7, %v14600_v52 }
 0x4b7   : > { %v8425_v12 = vadd.f32 %v14540_v43, %v8386_v56  ;;  %v8244_v47 = vsel %vm1354_vm3, %v8242_v16, %v8243_v30  ;;  %v7127_v21 = vrot.slane %v7026_v54, 2  ;;  %v7585_v62 = vmul.f32 %v14409_v8, %v14600_v52 }
 0x4b8   : > { %v8103_v0 = vadd.f32 %v7999_v25, %v7858_v50  ;;  %v16455_v10 = vrot.slane %v14626_v20, 1  ;;  %v7827_v2 = vmul.f32 %v14464_v49, %v14662_v59  ;;  %v16456_v57 = vrot.slane %v14633_v6, 2 }
 0x4b9   : > { %v8457_v58 = vmax.f32 %v8425_v12, 0.0  ;;  %v7441_v16 = vrot.slane %v7340_v23, 1  ;;  %v7686_v54 = vrot.slane %v7585_v62, 2  ;;  %v7899_v12 = vmul.f32 %v14481_v44, %v14690_v36 }
 0x4ba   : > { %v6883_v53 = vsel %vm1108_vm2, %v16455_v10, %v6882_v42  ;;  %v7128_v28 = vsel %vm1354_vm3, %v16456_v57, %v7127_v21  ;;  %v8348_v41 = vadd.f32 %v8244_v47, %v8103_v0  ;;  %v8144_v20 = vmul.f32 %v14493_v40, %v14690_v36 }
 0x4bb   : > { %v6986_v56 = vadd.f32 %v6883_v53, %v6709_v26  ;;  %v8489_v9 = vmin.f32 %v8457_v58, 6.0  ;;  %v7442_v25 = vsel %vm1108_vm2, %v7439_v32, %v7441_v16  ;;  %v7687_v42 = vsel %vm1354_vm3, %v7684_v63, %v7686_v54 }
 0x4bc   : > { %v6710_v6 = vmul.f32 %v14372_v18, %v14564_v4  ;;  %v8387_v26 = vmul.f32 %v14527_v15, %v8348_v41  ;;  %v8000_v21 = vrot.slane %v7899_v12, 1  ;;  %v8245_v47 = vrot.slane %v8144_v20, 2 }
 0x4bd   : > { %v7231_v50 = vadd.f32 %v7128_v28, %v6986_v56  ;;  %9729 = vmatmul.mubr.msk.f32.gmra.mxu0 %vm3689_vm5, %v8489_v9  ;;  %v6782_v23 = vmul.f32 %v14335_v60, %v14564_v4  ;;  %v9679_v62 = vpop.f32.mrf.mxu1  ;;  %v14718_v0 = vmul.f32 %v14335_v60, %v14569_v51  ;;  %v7027_v32 = vmul.f32 %v14347_v38, %v14564_v4 }
 0x4be   : > { %v14724_v63 = vmul.f32 %v14347_v38, %v14569_v51  ;;  %v6441_v41 = vmul.f32 %v9679_v62, %v14341_v61  ;;  %v8426_v9 = vadd.f32 %v14540_v43, %v8387_v26  ;;  %v8001_v10 = vsel %vm1108_vm2, %v7998_v3, %v8000_v21 }
 0x4bf   : > { %v7300_v58 = vadd.f32 %v7268_v48, %v7231_v50  ;;  %v8246_v53 = vsel %vm1354_vm3, %v8243_v30, %v8245_v47  ;;  %v6338_v48 = vpop.f32.mrf.mxu1  ;;  %v6884_v57 = vrot.slane %v6782_v23, 1  ;;  %v6885_v28 = vrot.slane %v14718_v0, 1  ;;  %v14742_v23 = vld [vmem:[#allocation3 + $0x78] sm:$0xff] }
 0x4c0   : > { %v7129_v16 = vrot.slane %v7027_v32, 2  ;;  %v6480_v4 = vadd.f32 %v14352_v35, %v6441_v41  ;;  %v6440_v54 = vmul.f32 %v14341_v61, %v6338_v48  ;;  %v8458_v12 = vmax.f32 %v8426_v9, 0.0 }
 0x4c1   : > { %v7545_v56 = vadd.f32 %v7442_v25, %v7300_v58  ;;  %v7130_v20 = vrot.slane %v14724_v63, 2  ;;  %v6886_v3 = vsel %vm1108_vm2, %v6884_v57, %v6885_v28  ;;  %v7269_v30 = vmul.f32 %v14423_v29, %v14656_v19 }
 0x4c2   : > { %v7341_v25 = vmul.f32 %v14404_v7, %v14656_v19  ;;  %v6512_v26 = vmax.f32 %v6480_v4, 0.0  ;;  %v6479_v21 = vadd.f32 %v14352_v35, %v6440_v54  ;;  %v8490_v47 = vmin.f32 %v8458_v12, 6.0 }
 0x4c3   : > { %v7790_v50 = vadd.f32 %v7687_v42, %v7545_v56  ;;  %v6987_v62 = vadd.f32 %v6886_v3, %v6710_v6  ;;  %v7131_v42 = vsel %vm1354_vm3, %v7129_v16, %v7130_v20  ;;  %v7342_v32 = vmul.f32 %v14404_v7, %v14662_v59  ;;  %v14750_v56 = vld [vmem:[#allocation3 + $0x80] sm:$0xff] }
 0x4c4   : > { %v7443_v41 = vrot.slane %v7341_v25, 1  ;;  %v6544_v9 = vmin.f32 %v6512_v26, 6.0  ;;  %v6511_v48 = vmax.f32 %v6479_v21, 0.0  ;;  %9731 = vmatprep.mubr.msk.f32.mxu0 %vm3689_vm5, %v8490_v47  ;;  %v7586_v4 = vmul.f32 %v14409_v8, %v14656_v19 }
 0x4c5   : > { %v7859_v58 = vadd.f32 %v7827_v2, %v7790_v50  ;;  %v7232_v57 = vadd.f32 %v7131_v42, %v6987_v62  ;;  %v7444_v2 = vrot.slane %v7342_v32, 1  ;;  %v7587_v54 = vmul.f32 %v14409_v8, %v14662_v59 }
 0x4c6   : > { %v7828_v16 = vmul.f32 %v14464_v49, %v14742_v23  ;;  %6630 = vst.msk [vmem:[#allocation3 + $0xe1] sm:$0xff] %vm3689_vm5, %v6544_v9  ;;  %v6543_v12 = vmin.f32 %v6511_v48, 6.0  ;;  %v7688_v3 = vrot.slane %v7586_v4, 2  ;;  %v7900_v25 = vmul.f32 %v14481_v44, %v14742_v23 }
 0x4c7   : > { %v8104_v6 = vadd.f32 %v8001_v10, %v7859_v58  ;;  %v7301_v50 = vadd.f32 %v7269_v30, %v7232_v57  ;;  %v7445_v21 = vsel %vm1108_vm2, %v7443_v41, %v7444_v2  ;;  %v7689_v47 = vrot.slane %v7587_v54, 2 }
 0x4c8   : > { %v7901_v10 = vmul.f32 %v14481_v44, %v14750_v56  ;;  %6629 = vst.msk [vmem:[#allocation3 + $0xd9] sm:$0xff] %vm3689_vm5, %v6543_v12  ;;  %v8002_v58 = vrot.slane %v7900_v25, 1  ;;  %v8145_v42 = vmul.f32 %v14493_v40, %v14742_v23  ;;  %v8146_v30 = vmul.f32 %v14493_v40, %v14750_v56 }
 0x4c9   : > { %v8349_v26 = vadd.f32 %v8246_v53, %v8104_v6  ;;  %v7546_v62 = vadd.f32 %v7445_v21, %v7301_v50  ;;  %v7690_v53 = vsel %vm1354_vm3, %v7688_v3, %v7689_v47  ;;  %v6711_v41 = vmul.f32 %v14372_v18, %v14569_v51  ;;  %v14777_v50 = vld [vmem:[#allocation3 + $0x88] sm:$0x3] }
 0x4ca   : > { %v8003_v9 = vrot.slane %v7901_v10, 1  ;;  %v8247_v57 = vrot.slane %v8145_v42, 2  ;;  %v8248_v4 = vrot.slane %v8146_v30, 2  ;;  %v6784_v6 = vmul.f32 %v14335_v60, %v14600_v52 }
 0x4cb   : > { %v8388_v32 = vmul.f32 %v14527_v15, %v8349_v26  ;;  %v7791_v48 = vadd.f32 %v7690_v53, %v7546_v62  ;;  %v7029_v25 = vmul.f32 %v14347_v38, %v14600_v52  ;;  %v7270_v3 = vmul.f32 %v14423_v29, %v14662_v59 }
 0x4cc   : > { %v8004_v12 = vsel %vm1108_vm2, %v8002_v58, %v8003_v9  ;;  %v8249_v51 = vsel %vm1354_vm3, %v8247_v57, %v8248_v4  ;;  %v6887_v21 = vrot.slane %v6784_v6, 1  ;;  %v7343_v10 = vmul.f32 %v14404_v7, %v14690_v36 }
 0x4cd   : > { %v8427_v54 = vadd.f32 %v14540_v43, %v8388_v32  ;;  %v7860_v26 = vadd.f32 %v7828_v16, %v7791_v48  ;;  %v7132_v42 = vrot.slane %v7029_v25, 2  ;;  %v7588_v58 = vmul.f32 %v14409_v8, %v14690_v36 }
 0x4ce   : > { %v7829_v30 = vmul.f32 %v14464_v49, %v14750_v56  ;;  %v6888_v52 = vsel %vm1108_vm2, %v6885_v28, %v6887_v21  ;;  %v7446_v16 = vrot.slane %v7343_v10, 1  ;;  %v7902_v53 = vmul.f32 %v14481_v44, %v14777_v50 }
 0x4cf   : > { %v8459_v62 = vmax.f32 %v8427_v54, 0.0  ;;  %v8105_v32 = vadd.f32 %v8004_v12, %v7860_v26  ;;  %v6988_v57 = vadd.f32 %v6888_v52, %v6711_v41  ;;  %v7133_v6 = vsel %vm1354_vm3, %v7130_v20, %v7132_v42 }
 0x4d0   : > { %v7691_v54 = vrot.slane %v7588_v58, 2  ;;  %v7447_v39 = vsel %vm1108_vm2, %v7444_v2, %v7446_v16  ;;  %v8005_v14 = vrot.slane %v7902_v53, 1  ;;  %v8147_v0 = vmul.f32 %v14493_v40, %v14777_v50 }
 0x4d1   : > { %v8491_v48 = vmin.f32 %v8459_v62, 6.0  ;;  %v8350_v25 = vadd.f32 %v8249_v51, %v8105_v32  ;;  %v7233_v28 = vadd.f32 %v7133_v6, %v6988_v57  ;;  %v6712_v41 = vmul.f32 %v14372_v18, %v14656_v19 }
 0x4d2   : > { %v7692_v12 = vsel %vm1354_vm3, %v7689_v47, %v7691_v54  ;;  %v6785_v63 = vmul.f32 %v14335_v60, %v14656_v19  ;;  %v8006_v26 = vsel %vm1108_vm2, %v8003_v9, %v8005_v14  ;;  %v8250_v2 = vrot.slane %v8147_v0, 2 }
 0x4d3   : > { %9732 = vmatmul.mubr.msk.f32.gmra.mxu0 %vm3689_vm5, %v8491_v48  ;;  %v8389_v20 = vmul.f32 %v14527_v15, %v8350_v25  ;;  %v14811_v51 = vmul.f32 %v14335_v60, %v14662_v59  ;;  %v9682_v21 = vpop.f32.mrf.mxu1  ;;  %v7302_v10 = vadd.f32 %v7270_v3, %v7233_v28  ;;  %v7030_v47 = vmul.f32 %v14347_v38, %v14656_v19 }
 0x4d4   : > { %v6889_v62 = vrot.slane %v6785_v63, 1  ;;  %v14817_v42 = vmul.f32 %v14347_v38, %v14662_v59  ;;  %v6443_v58 = vmul.f32 %v9682_v21, %v14341_v61  ;;  %v8251_v14 = vsel %vm1354_vm3, %v8248_v4, %v8250_v2  ;;  %v14837_v63 = vld [vmem:[#allocation3 + $0x90] sm:$0xff] }
 0x4d5   : > { %v8428_v32 = vadd.f32 %v14540_v43, %v8389_v20  ;;  %v6890_v9 = vrot.slane %v14811_v51, 1  ;;  %v6348_v60 = vpop.f32.mrf.mxu1  ;;  %v7547_v52 = vadd.f32 %v7447_v39, %v7302_v10  ;;  %v7134_v16 = vrot.slane %v7030_v47, 2 }
 0x4d6   : > { %v7135_v3 = vrot.slane %v14817_v42, 2  ;;  %v7271_v19 = vmul.f32 %v14423_v29, %v14742_v23  ;;  %v6482_v53 = vadd.f32 %v14352_v35, %v6443_v58  ;;  %v6442_v38 = vmul.f32 %v14341_v61, %v6348_v60  ;;  %v14907_v42 = vld [vmem:[%s16227_s19] ss:$0 sm:$0xff] }
 0x4d7   : > { %v8460_v48 = vmax.f32 %v8428_v32, 0.0  ;;  %v6891_v57 = vsel %vm1108_vm2, %v6889_v62, %v6890_v9  ;;  %v7792_v4 = vadd.f32 %v7692_v12, %v7547_v52  ;;  %v7344_v54 = vmul.f32 %v14404_v7, %v14742_v23  ;;  %v14844_v62 = vld [vmem:[#allocation3 + $0x98] sm:$0xff] }
 0x4d8   : > { %v6989_v6 = vadd.f32 %v6891_v57, %v6712_v41  ;;  %v7136_v39 = vsel %vm1354_vm3, %v7134_v16, %v7135_v3  ;;  %v6514_v25 = vmax.f32 %v6482_v53, 0.0  ;;  %v6481_v0 = vadd.f32 %v14352_v35, %v6442_v38 }
 0x4d9   : > { %v8492_v28 = vmin.f32 %v8460_v48, 6.0  ;;  %v7345_v61 = vmul.f32 %v14404_v7, %v14750_v56  ;;  %v7861_v20 = vadd.f32 %v7829_v30, %v7792_v4  ;;  %v7448_v12 = vrot.slane %v7344_v54, 1 }
 0x4da   : > { %v7234_v2 = vadd.f32 %v7136_v39, %v6989_v6  ;;  %v7589_v41 = vmul.f32 %v14409_v8, %v14742_v23  ;;  %v6546_v21 = vmin.f32 %v6514_v25, 6.0  ;;  %v6513_v10 = vmax.f32 %v6481_v0, 0.0 }
 0x4db   : > { %9734 = vmatprep.mubr.msk.f32.mxu0 %vm3689_vm5, %v8492_v28  ;;  %v7449_v47 = vrot.slane %v7345_v61, 1  ;;  %v7590_v35 = vmul.f32 %v14409_v8, %v14750_v56  ;;  %v8106_v58 = vadd.f32 %v8006_v26, %v7861_v20  ;;  %v7830_v30 = vmul.f32 %v14464_v49, %v14837_v63  ;;  %v14868_v20 = vld [vmem:[%s16227_s19 + $0x1] ss:$0 sm:$0xff] }
 0x4dc   : > { %v7303_v32 = vadd.f32 %v7271_v19, %v7234_v2  ;;  %v7693_v60 = vrot.slane %v7589_v41, 2  ;;  %6632 = vst.msk [vmem:[#allocation3 + $0xf9] sm:$0xff] %vm3689_vm5, %v6546_v21  ;;  %v6545_v52 = vmin.f32 %v6513_v10, 6.0  ;;  %v7903_v38 = vmul.f32 %v14481_v44, %v14837_v63 }
 0x4dd   : > { %v7450_v16 = vsel %vm1108_vm2, %v7448_v12, %v7449_v47  ;;  %v7694_v53 = vrot.slane %v7590_v35, 2  ;;  %v8351_v48 = vadd.f32 %v8251_v14, %v8106_v58  ;;  %v7904_v4 = vmul.f32 %v14481_v44, %v14844_v62  ;;  %v14875_v12 = vld [vmem:[%s16227_s19 + $0x2] ss:$0 sm:$0xff]  ;;  %v14883_v35 = vld [vmem:[#allocation3 + $0xa0] sm:$0x3] }
 0x4de   : > { %v7548_v57 = vadd.f32 %v7450_v16, %v7303_v32  ;;  %v8148_v26 = vmul.f32 %v14493_v40, %v14837_v63  ;;  %6631 = vst.msk [vmem:[#allocation3 + $0xf1] sm:$0xff] %vm3689_vm5, %v6545_v52  ;;  %v8007_v6 = vrot.slane %v7903_v38, 1  ;;  %v8149_v39 = vmul.f32 %v14493_v40, %v14844_v62 }
 0x4df   : > { %v7695_v19 = vsel %vm1354_vm3, %v7693_v60, %v7694_v53  ;;  %v6713_v54 = vmul.f32 %v14372_v18, %v14662_v59  ;;  %v8390_v14 = vmul.f32 %v14527_v15, %v8351_v48  ;;  %v8008_v0 = vrot.slane %v7904_v4, 1 }
 0x4e0   : > { %v7793_v25 = vadd.f32 %v7695_v19, %v7548_v57  ;;  %v8252_v28 = vrot.slane %v8148_v26, 2  ;;  %v8253_v61 = vrot.slane %v8149_v39, 2  ;;  %v6787_v2 = vmul.f32 %v14868_v20, %v14690_v36 }
 0x4e1   : > { %v7032_v18 = vmul.f32 %v14875_v12, %v14690_v36  ;;  %v7272_v59 = vmul.f32 %v14423_v29, %v14750_v56  ;;  %v8429_v41 = vadd.f32 %v14540_v43, %v8390_v14  ;;  %v8009_v10 = vsel %vm1108_vm2, %v8007_v6, %v8008_v0 }
 0x4e2   : > { %v7862_v21 = vadd.f32 %v7830_v30, %v7793_v25  ;;  %v7346_v58 = vmul.f32 %v14404_v7, %v14777_v50  ;;  %v8254_v32 = vsel %vm1354_vm3, %v8252_v28, %v8253_v61  ;;  %v6892_v60 = vrot.slane %v6787_v2, 1 }
 0x4e3   : > { %v7137_v52 = vrot.slane %v7032_v18, 2  ;;  %v7591_v36 = vmul.f32 %v14409_v8, %v14777_v50  ;;  %v8461_v16 = vmax.f32 %v8429_v41, 0.0  ;;  %v7831_v30 = vmul.f32 %v14464_v49, %v14844_v62 }
 0x4e4   : > { %v8107_v38 = vadd.f32 %v8009_v10, %v7862_v21  ;;  %v7451_v48 = vrot.slane %v7346_v58, 1  ;;  %v6893_v57 = vsel %vm1108_vm2, %v6890_v9, %v6892_v60  ;;  %v7905_v19 = vmul.f32 %v14481_v44, %v14883_v35  ;;  %v14931_v60 = vld [vmem:[%s16226_s18] ss:$0 sm:$0xff] }
 0x4e5   : > { %v7138_v4 = vsel %vm1354_vm3, %v7135_v3, %v7137_v52  ;;  %v7696_v26 = vrot.slane %v7591_v36, 2  ;;  %v8493_v6 = vmin.f32 %v8461_v16, 6.0  ;;  %v6990_v39 = vadd.f32 %v6893_v57, %v6713_v54  ;;  %v14914_v3 = vld [vmem:[%s16225_s17] ss:$0 sm:$0xff] }
 0x4e6   : > { %v8352_v8 = vadd.f32 %v8254_v32, %v8107_v38  ;;  %v7452_v14 = vsel %vm1108_vm2, %v7449_v47, %v7451_v48  ;;  %v9685_v25 = vpop.f32.mrf.mxu1  ;;  %v8010_v2 = vrot.slane %v7905_v19, 1  ;;  %v8150_v51 = vmul.f32 %v14493_v40, %v14883_v35 }
 0x4e7   : > { %v7697_v28 = vsel %vm1354_vm3, %v7694_v53, %v7696_v26  ;;  %v6714_v9 = vmul.f32 %v14907_v42, %v14742_v23  ;;  %v6445_v47 = vmul.f32 %v14914_v3, %v9685_v25  ;;  %9735 = vmatmul.mubr.msk.f32.gmra.mxu0 %vm3689_vm5, %v8493_v6  ;;  %v7235_v54 = vadd.f32 %v7138_v4, %v6990_v39 }
 0x4e8   : > { %v8391_v53 = vmul.f32 %v14527_v15, %v8352_v8  ;;  %v6788_v18 = vmul.f32 %v14868_v20, %v14742_v23  ;;  %v6358_v41 = vpop.f32.mrf.mxu1  ;;  %v8011_v21 = vsel %vm1108_vm2, %v8008_v0, %v8010_v2  ;;  %v8255_v10 = vrot.slane %v8150_v51, 2 }
 0x4e9   : > { %v14924_v58 = vmul.f32 %v14868_v20, %v14750_v56  ;;  %v7033_v32 = vmul.f32 %v14875_v12, %v14742_v23  ;;  %v6484_v52 = vadd.f32 %v14931_v60, %v6445_v47  ;;  %v6444_v36 = vmul.f32 %v14914_v3, %v6358_v41 }
 0x4ea   : > { %v8430_v16 = vadd.f32 %v14540_v43, %v8391_v53  ;;  %v7304_v0 = vadd.f32 %v7272_v59, %v7235_v54  ;;  %v8256_v38 = vsel %vm1354_vm3, %v8253_v61, %v8255_v10  ;;  %v6894_v48 = vrot.slane %v6788_v18, 1  ;;  %v14949_v53 = vld [vmem:[#allocation3 + $0xa8] sm:$0xff] }
 0x4eb   : > { %v6895_v57 = vrot.slane %v14924_v58, 1  ;;  %v14940_v23 = vmul.f32 %v14875_v12, %v14750_v56  ;;  %v6516_v4 = vmax.f32 %v6484_v52, 0.0  ;;  %v6483_v26 = vadd.f32 %v14931_v60, %v6444_v36 }
 0x4ec   : > { %v8462_v19 = vmax.f32 %v8430_v16, 0.0  ;;  %v7549_v6 = vadd.f32 %v7452_v14, %v7304_v0  ;;  %v7139_v39 = vrot.slane %v7033_v32, 2  ;;  %v7273_v61 = vmul.f32 %v14423_v29, %v14837_v63 }
 0x4ed   : > { %v6896_v8 = vsel %vm1108_vm2, %v6894_v48, %v6895_v57  ;;  %v7140_v59 = vrot.slane %v14940_v23, 2  ;;  %v6548_v25 = vmin.f32 %v6516_v4, 6.0  ;;  %v6515_v2 = vmax.f32 %v6483_v26, 0.0 }
 0x4ee   : > { %v8494_v51 = vmin.f32 %v8462_v19, 6.0  ;;  %v7794_v47 = vadd.f32 %v7697_v28, %v7549_v6  ;;  %v6991_v54 = vadd.f32 %v6896_v8, %v6714_v9  ;;  %v7347_v18 = vmul.f32 %v14404_v7, %v14837_v63  ;;  %v14960_v28 = vld [vmem:[#allocation3 + $0xb0] sm:$0xff] }
 0x4ef   : > { %v7141_v14 = vsel %vm1354_vm3, %v7139_v39, %v7140_v59  ;;  %v7348_v41 = vmul.f32 %v14404_v7, %v14844_v62  ;;  %6634 = vst.msk [vmem:[#allocation3 + $0x111] sm:$0xff] %vm3689_vm5, %v6548_v25  ;;  %v6547_v29 = vmin.f32 %v6515_v2, 6.0  ;;  %v14965_v9 = vld [vmem:[%s16227_s19 + $0x5] ss:$0 sm:$0xff]  ;;  %v7832_v0 = vmul.f32 %v14464_v49, %v14949_v53 }
 0x4f0   : > { %9737 = vmatprep.mubr.msk.f32.mxu0 %vm3689_vm5, %v8494_v51  ;;  %v7863_v10 = vadd.f32 %v7831_v30, %v7794_v47  ;;  %v7592_v32 = vmul.f32 %v14965_v9, %v14837_v63  ;;  %v7593_v52 = vmul.f32 %v14965_v9, %v14844_v62  ;;  %v7236_v7 = vadd.f32 %v7141_v14, %v6991_v54 }
 0x4f1   : > { %v7453_v36 = vrot.slane %v7347_v18, 1  ;;  %v7454_v16 = vrot.slane %v7348_v41, 1  ;;  %6633 = vst.msk [vmem:[#allocation3 + $0x109] sm:$0xff] %vm3689_vm5, %v6547_v29  ;;  %v7906_v26 = vmul.f32 %v14481_v44, %v14949_v53  ;;  %v7907_v8 = vmul.f32 %v14481_v44, %v14960_v28 }
 0x4f2   : > { %v8108_v30 = vadd.f32 %v8011_v21, %v7863_v10  ;;  %v7698_v48 = vrot.slane %v7592_v32, 2  ;;  %v7699_v4 = vrot.slane %v7593_v52, 2  ;;  %v7305_v19 = vadd.f32 %v7273_v61, %v7236_v7  ;;  %v14992_v52 = vld [vmem:[#allocation3 + $0xb8] sm:$0x3]  ;;  %v14997_v7 = vld [vmem:[%s16227_s19 + $0x3] ss:$0 sm:$0xff] }
 0x4f3   : > { %v7455_v6 = vsel %vm1108_vm2, %v7453_v36, %v7454_v16  ;;  %v8151_v39 = vmul.f32 %v14493_v40, %v14949_v53  ;;  %v8012_v51 = vrot.slane %v7906_v26, 1  ;;  %v8152_v21 = vmul.f32 %v14493_v40, %v14960_v28  ;;  %v15004_v36 = vld [vmem:[%s16227_s19 + $0x4] ss:$0 sm:$0xff] }
 0x4f4   : > { %v8353_v25 = vadd.f32 %v8256_v38, %v8108_v30  ;;  %v7700_v2 = vsel %vm1354_vm3, %v7698_v48, %v7699_v4  ;;  %v7550_v47 = vadd.f32 %v7455_v6, %v7305_v19  ;;  %v8013_v54 = vrot.slane %v7907_v8, 1 }
 0x4f5   : > { %v8257_v14 = vrot.slane %v8151_v39, 2  ;;  %v6715_v61 = vmul.f32 %v14907_v42, %v14750_v56  ;;  %v8258_v41 = vrot.slane %v8152_v21, 2  ;;  %v6790_v29 = vmul.f32 %v14868_v20, %v14777_v50 }
 0x4f6   : > { %v8392_v18 = vmul.f32 %v14527_v15, %v8353_v25  ;;  %v7035_v38 = vmul.f32 %v14875_v12, %v14777_v50  ;;  %v7795_v10 = vadd.f32 %v7700_v2, %v7550_v47  ;;  %v8014_v32 = vsel %vm1108_vm2, %v8012_v51, %v8013_v54 }
 0x4f7   : > { %v7274_v56 = vmul.f32 %v14997_v7, %v14844_v62  ;;  %v7349_v50 = vmul.f32 %v15004_v36, %v14883_v35  ;;  %v8259_v48 = vsel %vm1354_vm3, %v8257_v14, %v8258_v41  ;;  %v6897_v26 = vrot.slane %v6790_v29, 1 }
 0x4f8   : > { %v8431_v30 = vadd.f32 %v14540_v43, %v8392_v18  ;;  %v7142_v19 = vrot.slane %v7035_v38, 2  ;;  %v7864_v6 = vadd.f32 %v7832_v0, %v7795_v10  ;;  %v7594_v39 = vmul.f32 %v14965_v9, %v14883_v35 }
 0x4f9   : > { %v7456_v8 = vrot.slane %v7349_v50, 1  ;;  %v7833_v25 = vmul.f32 %v14464_v49, %v14960_v28  ;;  %v9688_v2 = vpop.f32.mrf.mxu1  ;;  %v6898_v21 = vsel %vm1108_vm2, %v6895_v57, %v6897_v26  ;;  %v7908_v0 = vmul.f32 %v14481_v44, %v14992_v52 }
 0x4fa   : > { %v8463_v51 = vmax.f32 %v8431_v30, 0.0  ;;  %v7143_v47 = vsel %vm1354_vm3, %v7140_v59, %v7142_v19  ;;  %v6447_v14 = vmul.f32 %v14914_v3, %v9688_v2  ;;  %v8109_v18 = vadd.f32 %v8014_v32, %v7864_v6 }
 0x4fb   : > { %v6992_v29 = vadd.f32 %v6898_v21, %v6715_v61  ;;  %v7457_v38 = vsel %vm1108_vm2, %v7454_v16, %v7456_v8  ;;  %v6368_v49 = vpop.f32.mrf.mxu1  ;;  %v7701_v50 = vrot.slane %v7594_v39, 2  ;;  %v8015_v30 = vrot.slane %v7908_v0, 1 }
 0x4fc   : > { %v8495_v10 = vmin.f32 %v8463_v51, 6.0  ;;  %v8153_v58 = vmul.f32 %v14493_v40, %v14992_v52  ;;  %v6486_v57 = vadd.f32 %v14931_v60, %v6447_v14  ;;  %v6446_v23 = vmul.f32 %v14914_v3, %v6368_v49  ;;  %v15053_v49 = vld [vmem:[#allocation3 + $0xc0] sm:$0xff] }
 0x4fd   : > { %v8354_v59 = vadd.f32 %v8259_v48, %v8109_v18  ;;  %v7237_v26 = vadd.f32 %v7143_v47, %v6992_v29  ;;  %v7702_v44 = vsel %vm1354_vm3, %v7699_v4, %v7701_v50  ;;  %v8016_v61 = vsel %vm1108_vm2, %v8013_v54, %v8015_v30 }
 0x4fe   : > { %9738 = vmatmul.mubr.msk.f32.gmra.mxu0 %vm3689_vm5, %v8495_v10  ;;  %v8260_v16 = vrot.slane %v8153_v58, 2  ;;  %v6716_v32 = vmul.f32 %v14907_v42, %v14837_v63  ;;  %v6518_v19 = vmax.f32 %v6486_v57, 0.0  ;;  %v6485_v6 = vadd.f32 %v14931_v60, %v6446_v23  ;;  %v15066_v57 = vld [vmem:[#allocation3 + $0xc8] sm:$0xff] }
 0x4ff   : > { %v8393_v40 = vmul.f32 %v14527_v15, %v8354_v59  ;;  %v7306_v8 = vadd.f32 %v7274_v56, %v7237_v26  ;;  %v6791_v48 = vmul.f32 %v14868_v20, %v14837_v63  ;;  %v15040_v4 = vmul.f32 %v14868_v20, %v14844_v62 }
 0x500   : > { %v8261_v39 = vsel %vm1354_vm3, %v8258_v41, %v8260_v16  ;;  %v7036_v54 = vmul.f32 %v14875_v12, %v14837_v63  ;;  %v6550_v2 = vmin.f32 %v6518_v19, 6.0  ;;  %v6517_v51 = vmax.f32 %v6485_v6, 0.0 }
 0x501   : > { %v8432_v21 = vadd.f32 %v14540_v43, %v8393_v40  ;;  %v7551_v47 = vadd.f32 %v7457_v38, %v7306_v8  ;;  %v6899_v0 = vrot.slane %v6791_v48, 1  ;;  %v6900_v15 = vrot.slane %v15040_v4, 1 }
 0x502   : > { %v15048_v41 = vmul.f32 %v14875_v12, %v14844_v62  ;;  %v7144_v56 = vrot.slane %v7036_v54, 2  ;;  %6636 = vst.msk [vmem:[#allocation3 + $0x129] sm:$0xff] %vm3689_vm5, %v6550_v2  ;;  %v6549_v14 = vmin.f32 %v6517_v51, 6.0  ;;  %v7275_v63 = vmul.f32 %v14997_v7, %v14949_v53  ;;  %v15086_v2 = vld [vmem:[%s16227_s19 + $0x7] ss:$0 sm:$0xff] }
 0x503   : > { %v8464_v18 = vmax.f32 %v8432_v21, 0.0  ;;  %v7796_v29 = vadd.f32 %v7702_v44, %v7551_v47  ;;  %v6901_v43 = vsel %vm1108_vm2, %v6899_v0, %v6900_v15  ;;  %v7350_v10 = vmul.f32 %v15004_v36, %v14949_v53  ;;  %v15095_v0 = vld [vmem:[%s16227_s19 + $0x8] ss:$0 sm:$0xff] }
 0x504   : > { %v7145_v38 = vrot.slane %v15048_v41, 2  ;;  %v15063_v50 = vmul.f32 %v15004_v36, %v14960_v28  ;;  %6635 = vst.msk [vmem:[#allocation3 + $0x121] sm:$0xff] %vm3689_vm5, %v6549_v14  ;;  %v6993_v23 = vadd.f32 %v6901_v43, %v6716_v32  ;;  %v7595_v59 = vmul.f32 %v14965_v9, %v14949_v53 }
 0x505   : > { %v8496_v30 = vmin.f32 %v8464_v18, 6.0  ;;  %v7865_v58 = vadd.f32 %v7833_v25, %v7796_v29  ;;  %v7458_v44 = vrot.slane %v7350_v10, 1  ;;  %v7596_v19 = vmul.f32 %v14965_v9, %v14960_v28  ;;  %v15078_v25 = vld [vmem:[%s16227_s19 + $0x6] ss:$0 sm:$0xff] }
 0x506   : > { %v7146_v26 = vsel %vm1354_vm3, %v7144_v56, %v7145_v38  ;;  %v7459_v16 = vrot.slane %v15063_v50, 1  ;;  %v7703_v8 = vrot.slane %v7595_v59, 2  ;;  %v7834_v32 = vmul.f32 %v15078_v25, %v15053_v49 }
 0x507   : > { %9740 = vmatprep.mubr.msk.f32.mxu0 %vm3689_vm5, %v8496_v30  ;;  %v8110_v6 = vadd.f32 %v8016_v61, %v7865_v58  ;;  %v7238_v40 = vadd.f32 %v7146_v26, %v6993_v23  ;;  %v7704_v54 = vrot.slane %v7596_v19, 2  ;;  %v7909_v61 = vmul.f32 %v15086_v2, %v15053_v49  ;;  %v15123_v26 = vld [vmem:[%s16229_s21] ss:$0 sm:$0xff] }
 0x508   : > { %v7460_v48 = vsel %vm1108_vm2, %v7458_v44, %v7459_v16  ;;  %v7910_v51 = vmul.f32 %v15086_v2, %v15066_v57  ;;  %v8154_v41 = vmul.f32 %v15095_v0, %v15053_v49  ;;  %v15101_v56 = vmul.f32 %v15095_v0, %v15066_v57 }
 0x509   : > { %v8355_v21 = vadd.f32 %v8261_v39, %v8110_v6  ;;  %v7307_v47 = vadd.f32 %v7275_v63, %v7238_v40  ;;  %v7705_v14 = vsel %vm1354_vm3, %v7703_v8, %v7704_v54  ;;  %v8017_v18 = vrot.slane %v7909_v61, 1  ;;  %v15109_v63 = vld [vmem:[%s16228_s20] ss:$0 sm:$0xff] }
 0x50a   : > { %v8018_v29 = vrot.slane %v7910_v51, 1  ;;  %v6717_v39 = vmul.f32 %v14907_v42, %v14844_v62  ;;  %v8262_v50 = vrot.slane %v8154_v41, 2  ;;  %v8263_v30 = vrot.slane %v15101_v56, 2  ;;  %v15127_v40 = vld [vmem:[#allocation3 + $0xd0] sm:$0x3] }
 0x50b   : > { %v8394_v43 = vmul.f32 %v15109_v63, %v8355_v21  ;;  %v7552_v10 = vadd.f32 %v7460_v48, %v7307_v47  ;;  %v6793_v23 = vmul.f32 %v14868_v20, %v14883_v35  ;;  %v7038_v59 = vmul.f32 %v14875_v12, %v14883_v35 }
 0x50c   : > { %v8019_v58 = vsel %vm1108_vm2, %v8017_v18, %v8018_v29  ;;  %v7276_v62 = vmul.f32 %v14997_v7, %v14960_v28  ;;  %v8264_v6 = vsel %vm1354_vm3, %v8262_v50, %v8263_v30  ;;  %v7352_v8 = vmul.f32 %v15004_v36, %v14992_v52 }
 0x50d   : > { %v8433_v44 = vadd.f32 %v15123_v26, %v8394_v43  ;;  %v7797_v19 = vadd.f32 %v7705_v14, %v7552_v10  ;;  %v9691_v48 = vpop.f32.mrf.mxu1  ;;  %v6902_v35 = vrot.slane %v6793_v23, 1  ;;  %v7147_v61 = vrot.slane %v7038_v59, 2 }
 0x50e   : > { %v7597_v51 = vmul.f32 %v14965_v9, %v14992_v52  ;;  %v7835_v21 = vmul.f32 %v15078_v25, %v15066_v57  ;;  %v6449_v47 = vmul.f32 %v14914_v3, %v9691_v48  ;;  %v7461_v14 = vrot.slane %v7352_v8, 1 }
 0x50f   : > { %v8465_v41 = vmax.f32 %v8433_v44, 0.0  ;;  %v7866_v56 = vadd.f32 %v7834_v32, %v7797_v19  ;;  %v6378_v18 = vpop.f32.mrf.mxu1  ;;  %v6903_v43 = vsel %vm1108_vm2, %v6900_v15, %v6902_v35  ;;  %v7148_v10 = vsel %vm1354_vm3, %v7145_v38, %v7147_v61 }
 0x510   : > { %v7706_v50 = vrot.slane %v7597_v51, 2  ;;  %v7911_v23 = vmul.f32 %v15086_v2, %v15127_v40  ;;  %v6488_v59 = vadd.f32 %v14931_v60, %v6449_v47  ;;  %v6448_v17 = vmul.f32 %v14914_v3, %v6378_v18 }
 0x511   : > { %v8497_v33 = vmin.f32 %v8465_v41, 6.0  ;;  %v8111_v48 = vadd.f32 %v8019_v58, %v7866_v56  ;;  %v6994_v44 = vadd.f32 %v6903_v43, %v6717_v39  ;;  %v7462_v32 = vsel %vm1108_vm2, %v7459_v16, %v7461_v14 }
 0x512   : > { %v7707_v19 = vsel %vm1354_vm3, %v7704_v54, %v7706_v50  ;;  %v8020_v4 = vrot.slane %v7911_v23, 1  ;;  %v6520_v8 = vmax.f32 %v6488_v59, 0.0  ;;  %v6487_v15 = vadd.f32 %v14931_v60, %v6448_v17 }
 0x513   : > { %9741 = vmatmul.mubr.msk.f32.gmra.mxu0 %vm3689_vm5, %v8497_v33  ;;  %v8356_v38 = vadd.f32 %v8264_v6, %v8111_v48  ;;  %v8156_v35 = vmul.f32 %v15095_v0, %v15127_v40  ;;  %v7239_v61 = vadd.f32 %v7148_v10, %v6994_v44  ;;  %v6718_v39 = vmul.f32 %v14907_v42, %v14949_v53 }
 0x514   : > { %v8021_v51 = vsel %vm1108_vm2, %v8018_v29, %v8020_v4  ;;  %v6794_v16 = vmul.f32 %v14868_v20, %v14949_v53  ;;  %v6552_v54 = vmin.f32 %v6520_v8, 6.0  ;;  %v6519_v58 = vmax.f32 %v6487_v15, 0.0  ;;  %v15178_v4 = vld [vmem:[#allocation3 + $0xd8] sm:$0xff] }
 0x515   : > { %v8395_v47 = vmul.f32 %v15109_v63, %v8356_v38  ;;  %v8265_v17 = vrot.slane %v8156_v35, 2  ;;  %v7308_v41 = vadd.f32 %v7276_v62, %v7239_v61  ;;  %v15158_v33 = vmul.f32 %v14868_v20, %v14960_v28 }
 0x516   : > { %v6904_v6 = vrot.slane %v6794_v16, 1  ;;  %v7039_v29 = vmul.f32 %v14875_v12, %v14949_v53  ;;  %6638 = vst.msk [vmem:[#allocation3 + $0x141] sm:$0xff] %vm3689_vm5, %v6552_v54  ;;  %v6551_v56 = vmin.f32 %v6519_v58, 6.0  ;;  %v15167_v43 = vmul.f32 %v14875_v12, %v14960_v28 }
 0x517   : > { %v8434_v14 = vadd.f32 %v15123_v26, %v8395_v47  ;;  %v8266_v18 = vsel %vm1354_vm3, %v8263_v30, %v8265_v17  ;;  %v7553_v62 = vadd.f32 %v7462_v32, %v7308_v41  ;;  %v6905_v10 = vrot.slane %v15158_v33, 1  ;;  %v15180_v32 = vld [vmem:[#allocation3 + $0xe0] sm:$0xff] }
 0x518   : > { %v7149_v50 = vrot.slane %v7039_v29, 2  ;;  %v7277_v23 = vmul.f32 %v14997_v7, %v15053_v49  ;;  %6637 = vst.msk [vmem:[#allocation3 + $0x139] sm:$0xff] %vm3689_vm5, %v6551_v56  ;;  %v7150_v59 = vrot.slane %v15167_v43, 2  ;;  %v7353_v48 = vmul.f32 %v15004_v36, %v15053_v49 }
 0x519   : > { %v8466_v53 = vmax.f32 %v8434_v14, 0.0  ;;  %v7354_v30 = vmul.f32 %v15004_v36, %v15066_v57  ;;  %v7798_v44 = vadd.f32 %v7707_v19, %v7553_v62  ;;  %v6906_v8 = vsel %vm1108_vm2, %v6904_v6, %v6905_v10 }
 0x51a   : > { %v7598_v15 = vmul.f32 %v14965_v9, %v15053_v49  ;;  %v7599_v38 = vmul.f32 %v14965_v9, %v15066_v57  ;;  %v6995_v61 = vadd.f32 %v6906_v8, %v6718_v39  ;;  %v7151_v16 = vsel %vm1354_vm3, %v7149_v50, %v7150_v59 }
 0x51b   : > { %v8498_v35 = vmin.f32 %v8466_v53, 6.0  ;;  %v7463_v54 = vrot.slane %v7353_v48, 1  ;;  %v7867_v58 = vadd.f32 %v7835_v21, %v7798_v44  ;;  %v7464_v47 = vrot.slane %v7354_v30, 1 }
 0x51c   : > { %v7708_v19 = vrot.slane %v7598_v15, 2  ;;  %v7709_v17 = vrot.slane %v7599_v38, 2  ;;  %v7240_v41 = vadd.f32 %v7151_v16, %v6995_v61  ;;  %v7836_v33 = vmul.f32 %v15078_v25, %v15178_v4 }
 0x51d   : > { %9743 = vmatprep.mubr.msk.f32.mxu0 %vm3689_vm5, %v8498_v35  ;;  %v7912_v6 = vmul.f32 %v15086_v2, %v15178_v4  ;;  %v15195_v29 = vmul.f32 %v15086_v2, %v15180_v32  ;;  %v8112_v39 = vadd.f32 %v8021_v51, %v7867_v58  ;;  %v7465_v56 = vsel %vm1108_vm2, %v7463_v54, %v7464_v47 }
 0x51e   : > { %v7710_v21 = vsel %vm1354_vm3, %v7708_v19, %v7709_v17  ;;  %v8157_v14 = vmul.f32 %v15095_v0, %v15178_v4  ;;  %v7309_v43 = vadd.f32 %v7277_v23, %v7240_v41  ;;  %v15204_v53 = vmul.f32 %v15095_v0, %v15180_v32 }
 0x51f   : > { %v8022_v62 = vrot.slane %v7912_v6, 1  ;;  %v8023_v50 = vrot.slane %v15195_v29, 1  ;;  %v8357_v48 = vadd.f32 %v8266_v18, %v8112_v39  ;;  %v6719_v51 = vmul.f32 %v14907_v42, %v14960_v28 }
 0x520   : > { %v8267_v30 = vrot.slane %v8157_v14, 2  ;;  %v6796_v44 = vmul.f32 %v14868_v20, %v14992_v52  ;;  %v7554_v8 = vadd.f32 %v7465_v56, %v7309_v43  ;;  %v8268_v23 = vrot.slane %v15204_v53, 2  ;;  %v15227_v53 = vld [vmem:[#allocation3 + $0xe8] sm:$0x3] }
 0x521   : > { %v8024_v15 = vsel %vm1108_vm2, %v8022_v62, %v8023_v50  ;;  %v7041_v38 = vmul.f32 %v14875_v12, %v14992_v52  ;;  %v9694_v35 = vpop.f32.mrf.mxu1  ;;  %v8396_v61 = vmul.f32 %v15109_v63, %v8357_v48  ;;  %v7278_v18 = vmul.f32 %v14997_v7, %v15066_v57 }
 0x522   : > { %v6907_v16 = vrot.slane %v6796_v44, 1  ;;  %v7355_v28 = vmul.f32 %v15004_v36, %v15127_v40  ;;  %v6451_v54 = vmul.f32 %v14914_v3, %v9694_v35  ;;  %v7799_v58 = vadd.f32 %v7710_v21, %v7554_v8 }
 0x523   : > { %v8269_v19 = vsel %vm1354_vm3, %v8267_v30, %v8268_v23  ;;  %v7152_v41 = vrot.slane %v7041_v38, 2  ;;  %v6388_v6 = vpop.f32.mrf.mxu1  ;;  %v8435_v29 = vadd.f32 %v15123_v26, %v8396_v61  ;;  %v7600_v56 = vmul.f32 %v14965_v9, %v15127_v40 }
 0x524   : > { %v6908_v52 = vsel %vm1108_vm2, %v6905_v10, %v6907_v16  ;;  %v7466_v39 = vrot.slane %v7355_v28, 1  ;;  %v6490_v14 = vadd.f32 %v14931_v60, %v6451_v54  ;;  %v6450_v43 = vmul.f32 %v14914_v3, %v6388_v6 }
 0x525   : > { %v7868_v62 = vadd.f32 %v7836_v33, %v7799_v58  ;;  %v6996_v21 = vadd.f32 %v6908_v52, %v6719_v51  ;;  %v8467_v48 = vmax.f32 %v8435_v29, 0.0  ;;  %v7153_v30 = vsel %vm1354_vm3, %v7150_v59, %v7152_v41 }
 0x526   : > { %v7467_v44 = vsel %vm1108_vm2, %v7464_v47, %v7466_v39  ;;  %v7711_v8 = vrot.slane %v7600_v56, 2  ;;  %v6522_v38 = vmax.f32 %v6490_v14, 0.0  ;;  %v6489_v10 = vadd.f32 %v14931_v60, %v6450_v43 }
 0x527   : > { %v8113_v35 = vadd.f32 %v8024_v15, %v7868_v62  ;;  %v7241_v61 = vadd.f32 %v7153_v30, %v6996_v21  ;;  %v8499_v16 = vmin.f32 %v8467_v48, 6.0  ;;  %v7837_v33 = vmul.f32 %v15078_v25, %v15180_v32 }
 0x528   : > { %v7712_v28 = vsel %vm1354_vm3, %v7709_v17, %v7711_v8  ;;  %v7914_v51 = vmul.f32 %v15086_v2, %v15227_v53  ;;  %v6554_v54 = vmin.f32 %v6522_v38, 6.0  ;;  %v6521_v58 = vmax.f32 %v6489_v10, 0.0 }
 0x529   : > { %v8358_v59 = vadd.f32 %v8269_v19, %v8113_v35  ;;  %v7310_v41 = vadd.f32 %v7278_v18, %v7241_v61  ;;  %9744 = vmatmul.mubr.msk.f32.gmra.mxu0 %vm3689_vm5, %v8499_v16  ;;  %v8159_v15 = vmul.f32 %v15095_v0, %v15227_v53  ;;  %v6720_v6 = vmul.f32 %v14907_v42, %v15053_v49  ;;  %v15265_v35 = vld [vmem:[#allocation3 + $0xf0] sm:$0xff] }
 0x52a   : > { %v8025_v47 = vrot.slane %v7914_v51, 1  ;;  %v6797_v17 = vmul.f32 %v14868_v20, %v15053_v49  ;;  %6640 = vst.msk [vmem:[#allocation3 + $0x159] sm:$0xff] %vm3689_vm5, %v6554_v54  ;;  %v6553_v29 = vmin.f32 %v6521_v58, 6.0  ;;  %v15248_v18 = vmul.f32 %v14868_v20, %v15066_v57 }
 0x52b   : > { %v8397_v52 = vmul.f32 %v15109_v63, %v8358_v59  ;;  %v7555_v39 = vadd.f32 %v7467_v44, %v7310_v41  ;;  %v8270_v56 = vrot.slane %v8159_v15, 2  ;;  %v7042_v43 = vmul.f32 %v14875_v12, %v15053_v49 }
 0x52c   : > { %v8026_v19 = vsel %vm1108_vm2, %v8023_v50, %v8025_v47  ;;  %v6909_v14 = vrot.slane %v6797_v17, 1  ;;  %6639 = vst.msk [vmem:[#allocation3 + $0x151] sm:$0xff] %vm3689_vm5, %v6553_v29  ;;  %v6910_v48 = vrot.slane %v15248_v18, 1  ;;  %v15258_v30 = vmul.f32 %v14875_v12, %v15066_v57 }
 0x52d   : > { %v8436_v62 = vadd.f32 %v15123_v26, %v8397_v52  ;;  %v7800_v21 = vadd.f32 %v7712_v28, %v7555_v39  ;;  %v8271_v44 = vsel %vm1354_vm3, %v8268_v23, %v8270_v56  ;;  %v7154_v8 = vrot.slane %v7042_v43, 2  ;;  %v15269_v28 = vld [vmem:[#allocation3 + $0xf8] sm:$0xff] }
 0x52e   : > { %v7279_v50 = vmul.f32 %v14997_v7, %v15178_v4  ;;  %v7356_v49 = vmul.f32 %v15004_v36, %v15178_v4  ;;  %v6911_v61 = vsel %vm1108_vm2, %v6909_v14, %v6910_v48  ;;  %v7155_v16 = vrot.slane %v15258_v30, 2 }
 0x52f   : > { %v8468_v38 = vmax.f32 %v8436_v62, 0.0  ;;  %v7869_v10 = vadd.f32 %v7837_v33, %v7800_v21  ;;  %v6997_v51 = vadd.f32 %v6911_v61, %v6720_v6  ;;  %v15273_v23 = vmul.f32 %v15004_v36, %v15180_v32 }
 0x530   : > { %v7468_v54 = vrot.slane %v7356_v49, 1  ;;  %v7601_v58 = vmul.f32 %v14965_v9, %v15178_v4  ;;  %v7156_v33 = vsel %vm1354_vm3, %v7154_v8, %v7155_v16  ;;  %v7602_v47 = vmul.f32 %v14965_v9, %v15180_v32 }
 0x531   : > { %v8500_v59 = vmin.f32 %v8468_v38, 6.0  ;;  %v8114_v41 = vadd.f32 %v8026_v19, %v7869_v10  ;;  %v7242_v15 = vadd.f32 %v7156_v33, %v6997_v51  ;;  %v7469_v17 = vrot.slane %v15273_v23, 1 }
 0x532   : > { %v7713_v29 = vrot.slane %v7601_v58, 2  ;;  %v7838_v6 = vmul.f32 %v15078_v25, %v15265_v35  ;;  %v7714_v39 = vrot.slane %v7602_v47, 2  ;;  %v7915_v18 = vmul.f32 %v15086_v2, %v15265_v35 }
 0x533   : > { %9746 = vmatprep.mubr.msk.f32.mxu0 %vm3689_vm5, %v8500_v59  ;;  %v8359_v52 = vadd.f32 %v8271_v44, %v8114_v41  ;;  %v15288_v19 = vmul.f32 %v15086_v2, %v15269_v28  ;;  %v7311_v56 = vadd.f32 %v7279_v50, %v7242_v15  ;;  %v7470_v14 = vsel %vm1108_vm2, %v7468_v54, %v7469_v17 }
 0x534   : > { %v8160_v43 = vmul.f32 %v15095_v0, %v15265_v35  ;;  %v15295_v62 = vmul.f32 %v15095_v0, %v15269_v28  ;;  %v9697_v21 = vpop.f32.mrf.mxu1  ;;  %v7715_v44 = vsel %vm1354_vm3, %v7713_v29, %v7714_v39  ;;  %v8027_v8 = vrot.slane %v7915_v18, 1 }
 0x535   : > { %v8398_v30 = vmul.f32 %v15109_v63, %v8359_v52  ;;  %v8028_v49 = vrot.slane %v15288_v19, 1  ;;  %v6453_v38 = vmul.f32 %v14914_v3, %v9697_v21  ;;  %v7556_v50 = vadd.f32 %v7470_v14, %v7311_v56  ;;  %v15318_v21 = vld [vmem:[#allocation3 + $0x100] sm:$0x3] }
 0x536   : > { %v8272_v10 = vrot.slane %v8160_v43, 2  ;;  %v8273_v61 = vrot.slane %v15295_v62, 2  ;;  %v6398_v51 = vpop.f32.mrf.mxu1  ;;  %v6721_v58 = vmul.f32 %v14907_v42, %v15066_v57  ;;  %v6799_v59 = vmul.f32 %v14868_v20, %v15127_v40 }
 0x537   : > { %v8437_v23 = vadd.f32 %v15123_v26, %v8398_v30  ;;  %v8029_v54 = vsel %vm1108_vm2, %v8027_v8, %v8028_v49  ;;  %v6492_v41 = vadd.f32 %v14931_v60, %v6453_v38  ;;  %v6452_v33 = vmul.f32 %v14914_v3, %v6398_v51 }
 0x538   : > { %v7801_v47 = vadd.f32 %v7715_v44, %v7556_v50  ;;  %v8274_v15 = vsel %vm1354_vm3, %v8272_v10, %v8273_v61  ;;  %v6912_v52 = vrot.slane %v6799_v59, 1  ;;  %v7044_v18 = vmul.f32 %v14875_v12, %v15127_v40 }
 0x539   : > { %v8469_v29 = vmax.f32 %v8437_v23, 0.0  ;;  %v7280_v19 = vmul.f32 %v14997_v7, %v15180_v32  ;;  %v6524_v56 = vmax.f32 %v6492_v41, 0.0  ;;  %v6491_v57 = vadd.f32 %v14931_v60, %v6452_v33 }
 0x53a   : > { %v7870_v14 = vadd.f32 %v7838_v6, %v7801_v47  ;;  %v7358_v43 = vmul.f32 %v15004_v36, %v15227_v53  ;;  %v6913_v30 = vsel %vm1108_vm2, %v6910_v48, %v6912_v52  ;;  %v7157_v44 = vrot.slane %v7044_v18, 2 }
 0x53b   : > { %v8501_v62 = vmin.f32 %v8469_v29, 6.0  ;;  %v7603_v8 = vmul.f32 %v14965_v9, %v15227_v53  ;;  %v6556_v40 = vmin.f32 %v6524_v56, 6.0  ;;  %v6523_v38 = vmax.f32 %v6491_v57, 0.0 }
 0x53c   : > { %v8115_v50 = vadd.f32 %v8029_v54, %v7870_v14  ;;  %v6998_v10 = vadd.f32 %v6913_v30, %v6721_v58  ;;  %v7158_v6 = vsel %vm1354_vm3, %v7155_v16, %v7157_v44  ;;  %v7471_v51 = vrot.slane %v7358_v43, 1 }
 0x53d   : > { %9747 = vmatmul.mubr.msk.f32.gmra.mxu0 %vm3689_vm5, %v8501_v62  ;;  %v7716_v23 = vrot.slane %v7603_v8, 2  ;;  %v7839_v59 = vmul.f32 %v15078_v25, %v15269_v28  ;;  %6642 = vst.msk [vmem:[#allocation3 + $0x171] sm:$0xff] %vm3689_vm5, %v6556_v40  ;;  %v6555_v48 = vmin.f32 %v6523_v38, 6.0  ;;  %v7917_v47 = vmul.f32 %v15086_v2, %v15318_v21 }
 0x53e   : > { %v8360_v41 = vadd.f32 %v8274_v15, %v8115_v50  ;;  %v7243_v33 = vadd.f32 %v7158_v6, %v6998_v10  ;;  %v7472_v54 = vsel %vm1108_vm2, %v7469_v17, %v7471_v51  ;;  %v8162_v16 = vmul.f32 %v15095_v0, %v15318_v21 }
 0x53f   : > { %v7717_v58 = vsel %vm1354_vm3, %v7714_v39, %v7716_v23  ;;  %v6722_v29 = vmul.f32 %v14907_v42, %v15178_v4  ;;  %6641 = vst.msk [vmem:[#allocation3 + $0x169] sm:$0xff] %vm3689_vm5, %v6555_v48  ;;  %v8030_v15 = vrot.slane %v7917_v47, 1  ;;  %v6800_v56 = vmul.f32 %v14868_v20, %v15178_v4  ;;  %v15361_v23 = vld [vmem:[#allocation3 + $0x110] sm:$0xff] }
 0x540   : > { %v8399_v52 = vmul.f32 %v15109_v63, %v8360_v41  ;;  %v7312_v18 = vadd.f32 %v7280_v19, %v7243_v33  ;;  %v8275_v57 = vrot.slane %v8162_v16, 2  ;;  %v15342_v17 = vmul.f32 %v14868_v20, %v15180_v32 }
 0x541   : > { %v7045_v39 = vmul.f32 %v14875_v12, %v15178_v4  ;;  %v15348_v14 = vmul.f32 %v14875_v12, %v15180_v32  ;;  %v8031_v19 = vsel %vm1108_vm2, %v8028_v49, %v8030_v15  ;;  %v6914_v30 = vrot.slane %v6800_v56, 1  ;;  %v15355_v4 = vld [vmem:[#allocation3 + $0x108] sm:$0xff] }
 0x542   : > { %v8438_v43 = vadd.f32 %v15123_v26, %v8399_v52  ;;  %v7557_v62 = vadd.f32 %v7472_v54, %v7312_v18  ;;  %v8276_v44 = vsel %vm1354_vm3, %v8273_v61, %v8275_v57  ;;  %v6915_v8 = vrot.slane %v15342_v17, 1 }
 0x543   : > { %v7159_v40 = vrot.slane %v7045_v39, 2  ;;  %v7160_v38 = vrot.slane %v15348_v14, 2  ;;  %v7281_v6 = vmul.f32 %v14997_v7, %v15265_v35  ;;  %v7359_v51 = vmul.f32 %v15004_v36, %v15265_v35  ;;  %v15441_v14 = vld [vmem:[%s16227_s19 + $0x1] ss:$0 sm:$0xff] }
 0x544   : > { %v8470_v50 = vmax.f32 %v8438_v43, 0.0  ;;  %v7802_v10 = vadd.f32 %v7717_v58, %v7557_v62  ;;  %v6916_v49 = vsel %vm1108_vm2, %v6914_v30, %v6915_v8  ;;  %v15371_v48 = vmul.f32 %v15004_v36, %v15269_v28 }
 0x545   : > { %v7161_v61 = vsel %vm1354_vm3, %v7159_v40, %v7160_v38  ;;  %v7604_v41 = vmul.f32 %v14965_v9, %v15265_v35  ;;  %v6999_v54 = vadd.f32 %v6916_v49, %v6722_v29  ;;  %v7473_v58 = vrot.slane %v7359_v51, 1 }
 0x546   : > { %v8502_v33 = vmin.f32 %v8470_v50, 6.0  ;;  %v7871_v47 = vadd.f32 %v7839_v59, %v7802_v10  ;;  %v7474_v16 = vrot.slane %v15371_v48, 1  ;;  %v15378_v52 = vmul.f32 %v14965_v9, %v15269_v28  ;;  %v15458_v48 = vld [vmem:[%s16227_s19 + $0x2] ss:$0 sm:$0xff] }
 0x547   : > { %v7718_v18 = vrot.slane %v7604_v41, 2  ;;  %v7840_v15 = vmul.f32 %v15078_v25, %v15355_v4  ;;  %v9700_v56 = vpop.f32.mrf.mxu1  ;;  %v7244_v39 = vadd.f32 %v7161_v61, %v6999_v54  ;;  %v7918_v59 = vmul.f32 %v15086_v2, %v15355_v4 }
 0x548   : > { %9749 = vmatprep.mubr.msk.f32.mxu0 %vm3689_vm5, %v8502_v33  ;;  %v8116_v57 = vadd.f32 %v8031_v19, %v7871_v47  ;;  %v15387_v29 = vmul.f32 %v15086_v2, %v15361_v23  ;;  %v6455_v43 = vmul.f32 %v14914_v3, %v9700_v56  ;;  %v7475_v62 = vsel %vm1108_vm2, %v7473_v58, %v7474_v16 }
 0x549   : > { %v7719_v30 = vrot.slane %v15378_v52, 2  ;;  %v8163_v40 = vmul.f32 %v15095_v0, %v15355_v4  ;;  %v6408_v19 = vpop.f32.mrf.mxu1  ;;  %v7313_v10 = vadd.f32 %v7281_v6, %v7244_v39  ;;  %v8032_v51 = vrot.slane %v7918_v59, 1 }
 0x54a   : > { %v8361_v50 = vadd.f32 %v8276_v44, %v8116_v57  ;;  %v8033_v49 = vrot.slane %v15387_v29, 1  ;;  %v6494_v61 = vadd.f32 %v14931_v60, %v6455_v43  ;;  %v6454_v41 = vmul.f32 %v14914_v3, %v6408_v19 }
 0x54b   : > { %v7720_v33 = vsel %vm1354_vm3, %v7718_v18, %v7719_v30  ;;  %v8164_v47 = vmul.f32 %v15095_v0, %v15361_v23  ;;  %v7558_v58 = vadd.f32 %v7475_v62, %v7313_v10  ;;  %v8277_v56 = vrot.slane %v8163_v40, 2  ;;  %v15415_v10 = vld [vmem:[#allocation3 + $0x118] sm:$0x3] }
 0x54c   : > { %v8400_v54 = vmul.f32 %v15109_v63, %v8361_v50  ;;  %v8034_v52 = vsel %vm1108_vm2, %v8032_v51, %v8033_v49  ;;  %v6526_v44 = vmax.f32 %v6494_v61, 0.0  ;;  %v6493_v6 = vadd.f32 %v14931_v60, %v6454_v41 }
 0x54d   : > { %v8278_v57 = vrot.slane %v8164_v47, 2  ;;  %v6723_v39 = vmul.f32 %v14907_v42, %v15180_v32  ;;  %v7803_v59 = vadd.f32 %v7720_v33, %v7558_v58  ;;  %v6802_v18 = vmul.f32 %v14868_v20, %v15227_v53 }
 0x54e   : > { %v8439_v3 = vadd.f32 %v15123_v26, %v8400_v54  ;;  %v7047_v29 = vmul.f32 %v14875_v12, %v15227_v53  ;;  %v6558_v43 = vmin.f32 %v6526_v44, 6.0  ;;  %v6525_v62 = vmax.f32 %v6493_v6, 0.0 }
 0x54f   : > { %v8279_v40 = vsel %vm1354_vm3, %v8277_v56, %v8278_v57  ;;  %v7282_v60 = vmul.f32 %v14997_v7, %v15269_v28  ;;  %v7872_v50 = vadd.f32 %v7840_v15, %v7803_v59  ;;  %v6917_v32 = vrot.slane %v6802_v18, 1 }
 0x550   : > { %v8471_v19 = vmax.f32 %v8439_v3, 0.0  ;;  %v7162_v51 = vrot.slane %v7047_v29, 2  ;;  %6644 = vst.msk [vmem:[#allocation3 + $0x189] sm:$0xff] %vm3689_vm5, %v6558_v43  ;;  %v6557_v61 = vmin.f32 %v6525_v62, 6.0  ;;  %v7361_v20 = vmul.f32 %v15004_v36, %v15318_v21 }
 0x551   : > { %v7606_v12 = vmul.f32 %v14965_v9, %v15318_v21  ;;  %v7841_v53 = vmul.f32 %v15078_v25, %v15361_v23  ;;  %v8117_v33 = vadd.f32 %v8034_v52, %v7872_v50  ;;  %v6918_v15 = vsel %vm1108_vm2, %v6915_v8, %v6917_v32 }
 0x552   : > { %v8503_v41 = vmin.f32 %v8471_v19, 6.0  ;;  %v7163_v47 = vsel %vm1354_vm3, %v7160_v38, %v7162_v51  ;;  %6643 = vst.msk [vmem:[#allocation3 + $0x181] sm:$0xff] %vm3689_vm5, %v6557_v61  ;;  %v7000_v54 = vadd.f32 %v6918_v15, %v6723_v39  ;;  %v7476_v58 = vrot.slane %v7361_v20, 1 }
 0x553   : > { %v7721_v56 = vrot.slane %v7606_v12, 2  ;;  %v7920_v44 = vmul.f32 %v15086_v2, %v15415_v10  ;;  %v8362_v6 = vadd.f32 %v8279_v40, %v8117_v33  ;;  %v8165_v17 = vmul.f32 %v15095_v0, %v15415_v10  ;;  %v15474_v12 = vld [vmem:[#allocation3 + $0x120] sm:$0xff] }
 0x554   : > { %9750 = vmatmul.mubr.msk.f32.gmra.mxu0 %vm3689_vm5, %v8503_v41  ;;  %v6724_v8 = vmul.f32 %v14907_v42, %v15265_v35  ;;  %v6803_v38 = vmul.f32 %v15441_v14, %v15265_v35  ;;  %v7245_v52 = vadd.f32 %v7163_v47, %v7000_v54  ;;  %v7477_v39 = vsel %vm1108_vm2, %v7474_v16, %v7476_v58  ;;  %v15481_v47 = vld [vmem:[#allocation3 + $0x128] sm:$0xff] }
 0x555   : > { %v7722_v3 = vsel %vm1354_vm3, %v7719_v30, %v7721_v56  ;;  %v8035_v59 = vrot.slane %v7920_v44, 1  ;;  %v8401_v18 = vmul.f32 %v15109_v63, %v8362_v6  ;;  %v8280_v29 = vrot.slane %v8165_v17, 2 }
 0x556   : > { %v15452_v42 = vmul.f32 %v15441_v14, %v15269_v28  ;;  %v6919_v43 = vrot.slane %v6803_v38, 1  ;;  %v7314_v62 = vadd.f32 %v7282_v60, %v7245_v52  ;;  %v7048_v16 = vmul.f32 %v15458_v48, %v15265_v35 }
 0x557   : > { %v8036_v40 = vsel %vm1108_vm2, %v8033_v49, %v8035_v59  ;;  %v15464_v30 = vmul.f32 %v15458_v48, %v15269_v28  ;;  %v8440_v19 = vadd.f32 %v15123_v26, %v8401_v18  ;;  %v8281_v50 = vsel %vm1354_vm3, %v8278_v57, %v8280_v29 }
 0x558   : > { %v6920_v60 = vrot.slane %v15452_v42, 1  ;;  %v7283_v49 = vmul.f32 %v14997_v7, %v15355_v4  ;;  %v7559_v32 = vadd.f32 %v7477_v39, %v7314_v62  ;;  %v7164_v51 = vrot.slane %v7048_v16, 2 }
 0x559   : > { %v7165_v61 = vrot.slane %v15464_v30, 2  ;;  %v7362_v35 = vmul.f32 %v15004_v36, %v15355_v4  ;;  %v8472_v20 = vmax.f32 %v8440_v19, 0.0  ;;  %v7363_v57 = vmul.f32 %v15004_v36, %v15361_v23 }
 0x55a   : > { %v6921_v41 = vsel %vm1108_vm2, %v6919_v43, %v6920_v60  ;;  %v7607_v33 = vmul.f32 %v14965_v9, %v15355_v4  ;;  %v7804_v15 = vadd.f32 %v7722_v3, %v7559_v32  ;;  %v7608_v17 = vmul.f32 %v14965_v9, %v15361_v23 }
 0x55b   : > { %v7001_v54 = vadd.f32 %v6921_v41, %v6724_v8  ;;  %v7166_v58 = vsel %vm1354_vm3, %v7164_v51, %v7165_v61  ;;  %v7478_v56 = vrot.slane %v7362_v35, 1  ;;  %v8504_v44 = vmin.f32 %v8472_v20, 6.0  ;;  %v15502_v51 = vld [vmem:[%s16227_s19] ss:$0 sm:$0xff] }
 0x55c   : > { %v7479_v6 = vrot.slane %v7363_v57, 1  ;;  %v7723_v38 = vrot.slane %v7607_v33, 2  ;;  %v7873_v52 = vadd.f32 %v7841_v53, %v7804_v15  ;;  %v7842_v59 = vmul.f32 %v15078_v25, %v15474_v12  ;;  %v15509_v33 = vld [vmem:[#allocation3 + $0x130] sm:$0x3] }
 0x55d   : > { %v7246_v39 = vadd.f32 %v7166_v58, %v7001_v54  ;;  %v7921_v3 = vmul.f32 %v15086_v2, %v15474_v12  ;;  %9752 = vmatprep.mubr.msk.f32.mxu0 %vm3689_vm5, %v8504_v44  ;;  %v7724_v18 = vrot.slane %v7608_v17, 2  ;;  %v7922_v29 = vmul.f32 %v15086_v2, %v15481_v47 }
 0x55e   : > { %v7480_v8 = vsel %vm1108_vm2, %v7478_v56, %v7479_v6  ;;  %v8166_v42 = vmul.f32 %v15095_v0, %v15474_v12  ;;  %v8118_v43 = vadd.f32 %v8036_v40, %v7873_v52  ;;  %v8167_v16 = vmul.f32 %v15095_v0, %v15481_v47 }
 0x55f   : > { %v7315_v53 = vadd.f32 %v7283_v49, %v7246_v39  ;;  %v8037_v62 = vrot.slane %v7921_v3, 1  ;;  %v7725_v30 = vsel %vm1354_vm3, %v7723_v38, %v7724_v18  ;;  %v8038_v19 = vrot.slane %v7922_v29, 1 }
 0x560   : > { %v8282_v32 = vrot.slane %v8166_v42, 2  ;;  %v6725_v35 = vmul.f32 %v15502_v51, %v15269_v28  ;;  %v8363_v20 = vadd.f32 %v8281_v50, %v8118_v43  ;;  %v8283_v40 = vrot.slane %v8167_v16, 2 }
 0x561   : > { %v7560_v41 = vadd.f32 %v7480_v8, %v7315_v53  ;;  %v6805_v49 = vmul.f32 %v15441_v14, %v15318_v21  ;;  %v8039_v57 = vsel %vm1108_vm2, %v8037_v62, %v8038_v19  ;;  %v7050_v15 = vmul.f32 %v15458_v48, %v15318_v21 }
 0x562   : > { %v7284_v54 = vmul.f32 %v14997_v7, %v15361_v23  ;;  %v7364_v58 = vmul.f32 %v15004_v36, %v15415_v10  ;;  %v8402_v28 = vmul.f32 %v15109_v63, %v8363_v20  ;;  %v8284_v56 = vsel %vm1354_vm3, %v8282_v32, %v8283_v40 }
 0x563   : > { %v7805_v50 = vadd.f32 %v7725_v30, %v7560_v41  ;;  %v6922_v44 = vrot.slane %v6805_v49, 1  ;;  %v7167_v17 = vrot.slane %v7050_v15, 2  ;;  %v7609_v52 = vmul.f32 %v14965_v9, %v15415_v10 }
 0x564   : > { %v7481_v38 = vrot.slane %v7364_v58, 1  ;;  %v7843_v21 = vmul.f32 %v15078_v25, %v15481_v47  ;;  %v8441_v39 = vadd.f32 %v15123_v26, %v8402_v28  ;;  %v7923_v36 = vmul.f32 %v15086_v2, %v15509_v33 }
 0x565   : > { %v7874_v3 = vadd.f32 %v7842_v59, %v7805_v50  ;;  %v6923_v8 = vsel %vm1108_vm2, %v6920_v60, %v6922_v44  ;;  %v7168_v42 = vsel %vm1354_vm3, %v7165_v61, %v7167_v17  ;;  %v7726_v53 = vrot.slane %v7609_v52, 2 }
 0x566   : > { %v7002_v29 = vadd.f32 %v6923_v8, %v6725_v35  ;;  %v7482_v43 = vsel %vm1108_vm2, %v7479_v6, %v7481_v38  ;;  %v8473_v62 = vmax.f32 %v8441_v39, 0.0  ;;  %v8040_v9 = vrot.slane %v7923_v36, 1  ;;  %v15561_v38 = vld [vmem:[#allocation3 + $0x138] sm:$0xff]  ;;  %v15569_v39 = vld [vmem:[%s16227_s19 + $0x5] ss:$0 sm:$0xff] }
 0x567   : > { %v8119_v16 = vadd.f32 %v8039_v57, %v7874_v3  ;;  %v8168_v30 = vmul.f32 %v15095_v0, %v15509_v33  ;;  %v7727_v59 = vsel %vm1354_vm3, %v7724_v18, %v7726_v53  ;;  %v6726_v60 = vmul.f32 %v15502_v51, %v15355_v4  ;;  %v15576_v53 = vld [vmem:[#allocation3 + $0x140] sm:$0xff] }
 0x568   : > { %v7247_v32 = vadd.f32 %v7168_v42, %v7002_v29  ;;  %v6806_v35 = vmul.f32 %v15441_v14, %v15355_v4  ;;  %v8505_v20 = vmin.f32 %v8473_v62, 6.0  ;;  %v8041_v6 = vsel %vm1108_vm2, %v8038_v19, %v8040_v9 }
 0x569   : > { %v8364_v61 = vadd.f32 %v8284_v56, %v8119_v16  ;;  %v8285_v41 = vrot.slane %v8168_v30, 2  ;;  %v15539_v57 = vmul.f32 %v15441_v14, %v15361_v23  ;;  %v7051_v18 = vmul.f32 %v15458_v48, %v15355_v4  ;;  %v15556_v4 = vld [vmem:[%s16227_s19 + $0x4] ss:$0 sm:$0xff] }
 0x56a   : > { %v7316_v49 = vadd.f32 %v7284_v54, %v7247_v32  ;;  %v6924_v15 = vrot.slane %v6806_v35, 1  ;;  %9753 = vmatmul.mubr.msk.f32.gmra.mxu0 %vm3689_vm5, %v8505_v20  ;;  %v15548_v50 = vmul.f32 %v15458_v48, %v15361_v23  ;;  %v7285_v19 = vmul.f32 %v14997_v7, %v15474_v12 }
 0x56b   : > { %v8403_v58 = vmul.f32 %v15109_v63, %v8364_v61  ;;  %v8286_v28 = vsel %vm1354_vm3, %v8283_v40, %v8285_v41  ;;  %v6925_v56 = vrot.slane %v15539_v57, 1  ;;  %v7169_v44 = vrot.slane %v7051_v18, 2 }
 0x56c   : > { %v7561_v54 = vadd.f32 %v7482_v43, %v7316_v49  ;;  %v7365_v17 = vmul.f32 %v15556_v4, %v15474_v12  ;;  %v7170_v52 = vrot.slane %v15548_v50, 2  ;;  %v7366_v7 = vmul.f32 %v15556_v4, %v15481_v47 }
 0x56d   : > { %v8442_v40 = vadd.f32 %v15123_v26, %v8403_v58  ;;  %v7610_v3 = vmul.f32 %v15569_v39, %v15474_v12  ;;  %v6926_v36 = vsel %vm1108_vm2, %v6924_v15, %v6925_v56  ;;  %v7611_v42 = vmul.f32 %v15569_v39, %v15481_v47 }
 0x56e   : > { %v7806_v8 = vadd.f32 %v7727_v59, %v7561_v54  ;;  %v7483_v29 = vrot.slane %v7365_v17, 1  ;;  %v7003_v62 = vadd.f32 %v6926_v36, %v6726_v60  ;;  %v7171_v16 = vsel %vm1354_vm3, %v7169_v44, %v7170_v52 }
 0x56f   : > { %v8474_v43 = vmax.f32 %v8442_v40, 0.0  ;;  %v7484_v9 = vrot.slane %v7366_v7, 1  ;;  %v7728_v32 = vrot.slane %v7610_v3, 2  ;;  %v7729_v35 = vrot.slane %v7611_v42, 2 }
 0x570   : > { %v7875_v30 = vadd.f32 %v7843_v21, %v7806_v8  ;;  %v7844_v20 = vmul.f32 %v15078_v25, %v15561_v38  ;;  %v7248_v61 = vadd.f32 %v7171_v16, %v7003_v62  ;;  %v7924_v49 = vmul.f32 %v15086_v2, %v15561_v38 }
 0x571   : > { %v8506_v59 = vmin.f32 %v8474_v43, 6.0  ;;  %v7485_v41 = vsel %vm1108_vm2, %v7483_v29, %v7484_v9  ;;  %v7730_v15 = vsel %vm1354_vm3, %v7728_v32, %v7729_v35  ;;  %v7925_v60 = vmul.f32 %v15086_v2, %v15576_v53 }
 0x572   : > { %v8120_v57 = vadd.f32 %v8041_v6, %v7875_v30  ;;  %v8169_v21 = vmul.f32 %v15095_v0, %v15561_v38  ;;  %v7317_v18 = vadd.f32 %v7285_v19, %v7248_v61  ;;  %v8042_v58 = vrot.slane %v7924_v49, 1  ;;  %v15601_v19 = vld [vmem:[%s16227_s19 + $0x3] ss:$0 sm:$0xff] }
 0x573   : > { %9755 = vmatprep.mubr.msk.f32.mxu0 %vm3689_vm5, %v8506_v59  ;;  %v8170_v50 = vmul.f32 %v15095_v0, %v15576_v53  ;;  %v6727_v54 = vmul.f32 %v15502_v51, %v15361_v23  ;;  %v8043_v6 = vrot.slane %v7925_v60, 1  ;;  %v6808_v40 = vmul.f32 %v15441_v14, %v15415_v10 }
 0x574   : > { %v8365_v44 = vadd.f32 %v8286_v28, %v8120_v57  ;;  %v8287_v17 = vrot.slane %v8169_v21, 2  ;;  %v7562_v7 = vadd.f32 %v7485_v41, %v7317_v18  ;;  %v7053_v8 = vmul.f32 %v15458_v48, %v15415_v10  ;;  %v15610_v10 = vld [vmem:[#allocation3 + $0x148] sm:$0x3] }
 0x575   : > { %v8288_v3 = vrot.slane %v8170_v50, 2  ;;  %v7286_v36 = vmul.f32 %v15601_v19, %v15481_v47  ;;  %v8044_v28 = vsel %vm1108_vm2, %v8042_v58, %v8043_v6  ;;  %v6927_v29 = vrot.slane %v6808_v40, 1 }
 0x576   : > { %v8404_v23 = vmul.f32 %v15109_v63, %v8365_v44  ;;  %v7367_v42 = vmul.f32 %v15556_v4, %v15509_v33  ;;  %v7807_v43 = vadd.f32 %v7730_v15, %v7562_v7  ;;  %v7172_v16 = vrot.slane %v7053_v8, 2 }
 0x577   : > { %v8289_v62 = vsel %vm1354_vm3, %v8287_v17, %v8288_v3  ;;  %v7612_v30 = vmul.f32 %v15569_v39, %v15509_v33  ;;  %v6928_v59 = vsel %vm1108_vm2, %v6925_v56, %v6927_v29  ;;  %v7845_v41 = vmul.f32 %v15078_v25, %v15576_v53 }
 0x578   : > { %v8443_v32 = vadd.f32 %v15123_v26, %v8404_v23  ;;  %v7486_v61 = vrot.slane %v7367_v42, 1  ;;  %v7876_v49 = vadd.f32 %v7844_v20, %v7807_v43  ;;  %v7004_v57 = vadd.f32 %v6928_v59, %v6727_v54 }
 0x579   : > { %v7173_v15 = vsel %vm1354_vm3, %v7170_v52, %v7172_v16  ;;  %v7731_v60 = vrot.slane %v7612_v30, 2  ;;  %v7926_v58 = vmul.f32 %v15086_v2, %v15610_v10  ;;  %v8171_v50 = vmul.f32 %v15095_v0, %v15610_v10 }
 0x57a   : > { %v8475_v21 = vmax.f32 %v8443_v32, 0.0  ;;  %v7487_v18 = vsel %vm1108_vm2, %v7484_v9, %v7486_v61  ;;  %v8121_v44 = vadd.f32 %v8044_v28, %v7876_v49  ;;  %v7249_v56 = vadd.f32 %v7173_v15, %v7004_v57  ;;  %v15659_v61 = vld [vmem:[#allocation3 + $0x158] sm:$0xff] }
 0x57b   : > { %v7732_v17 = vsel %vm1354_vm3, %v7729_v35, %v7731_v60  ;;  %v6728_v25 = vmul.f32 %v15502_v51, %v15474_v12  ;;  %v8045_v54 = vrot.slane %v7926_v58, 1  ;;  %v8290_v52 = vrot.slane %v8171_v50, 2 }
 0x57c   : > { %v8507_v20 = vmin.f32 %v8475_v21, 6.0  ;;  %v6809_v40 = vmul.f32 %v15441_v14, %v15474_v12  ;;  %v8366_v9 = vadd.f32 %v8289_v62, %v8121_v44  ;;  %v7318_v7 = vadd.f32 %v7286_v36, %v7249_v56  ;;  %v15671_v56 = vld [vmem:[%s16227_s19 + $0x6] ss:$0 sm:$0xff] }
 0x57d   : > { %v15631_v2 = vmul.f32 %v15441_v14, %v15481_v47  ;;  %v7054_v0 = vmul.f32 %v15458_v48, %v15474_v12  ;;  %v8046_v35 = vsel %vm1108_vm2, %v8043_v6, %v8045_v54  ;;  %v8291_v8 = vsel %vm1354_vm3, %v8288_v3, %v8290_v52 }
 0x57e   : > { %9756 = vmatmul.mubr.msk.f32.gmra.mxu0 %vm3689_vm5, %v8507_v20  ;;  %v6929_v23 = vrot.slane %v6809_v40, 1  ;;  %v15640_v28 = vmul.f32 %v15458_v48, %v15481_v47  ;;  %v8405_v36 = vmul.f32 %v15109_v63, %v8366_v9  ;;  %v7563_v29 = vadd.f32 %v7487_v18, %v7318_v7  ;;  %v15654_v63 = vld [vmem:[#allocation3 + $0x150] sm:$0xff] }
 0x57f   : > { %v6930_v42 = vrot.slane %v15631_v2, 1  ;;  %v7174_v43 = vrot.slane %v7054_v0, 2  ;;  %v7287_v12 = vmul.f32 %v15601_v19, %v15561_v38  ;;  %v7368_v6 = vmul.f32 %v15556_v4, %v15561_v38  ;;  %v15687_v2 = vld [vmem:[%s16227_s19 + $0x8] ss:$0 sm:$0xff] }
 0x580   : > { %v7175_v62 = vrot.slane %v15640_v28, 2  ;;  %v15651_v3 = vmul.f32 %v15556_v4, %v15576_v53  ;;  %v8444_v16 = vadd.f32 %v15123_v26, %v8405_v36  ;;  %v7808_v30 = vadd.f32 %v7732_v17, %v7563_v29 }
 0x581   : > { %v6931_v32 = vsel %vm1108_vm2, %v6929_v23, %v6930_v42  ;;  %v7613_v59 = vmul.f32 %v15569_v39, %v15561_v38  ;;  %v7488_v15 = vrot.slane %v7368_v6, 1  ;;  %v7614_v18 = vmul.f32 %v15569_v39, %v15576_v53 }
 0x582   : > { %v7005_v49 = vadd.f32 %v6931_v32, %v6728_v25  ;;  %v7176_v57 = vsel %vm1354_vm3, %v7174_v43, %v7175_v62  ;;  %v7489_v60 = vrot.slane %v15651_v3, 1  ;;  %v8476_v21 = vmax.f32 %v8444_v16, 0.0  ;;  %v15678_v25 = vld [vmem:[%s16227_s19 + $0x7] ss:$0 sm:$0xff] }
 0x583   : > { %v7877_v26 = vadd.f32 %v7845_v41, %v7808_v30  ;;  %v7733_v58 = vrot.slane %v7613_v59, 2  ;;  %v7846_v17 = vmul.f32 %v15671_v56, %v15654_v63  ;;  %v7927_v41 = vmul.f32 %v15678_v25, %v15654_v63  ;;  %v15702_v30 = vld [vmem:[%s16228_s20] ss:$0 sm:$0xff]  ;;  %v15706_v59 = vld [vmem:[#allocation3 + $0x160] sm:$0x3] }
 0x584   : > { %v7250_v50 = vadd.f32 %v7176_v57, %v7005_v49  ;;  %v7490_v44 = vsel %vm1108_vm2, %v7488_v15, %v7489_v60  ;;  %v8508_v20 = vmin.f32 %v8476_v21, 6.0  ;;  %v7734_v52 = vrot.slane %v7614_v18, 2  ;;  %v15718_v18 = vld [vmem:[%s16229_s21] ss:$0 sm:$0xff] }
 0x585   : > { %v8122_v54 = vadd.f32 %v8046_v35, %v7877_v26  ;;  %v7928_v40 = vmul.f32 %v15678_v25, %v15659_v61  ;;  %v8047_v7 = vrot.slane %v7927_v41, 1  ;;  %v8172_v0 = vmul.f32 %v15687_v2, %v15654_v63 }
 0x586   : > { %v7319_v9 = vadd.f32 %v7287_v12, %v7250_v50  ;;  %v8173_v23 = vmul.f32 %v15687_v2, %v15659_v61  ;;  %9758 = vmatprep.mubr.msk.f32.mxu0 %vm3689_vm5, %v8508_v20  ;;  %v7735_v36 = vsel %vm1354_vm3, %v7733_v58, %v7734_v52  ;;  %v6729_v43 = vmul.f32 %v15502_v51, %v15481_v47 }
 0x587   : > { %v8367_v35 = vadd.f32 %v8291_v8, %v8122_v54  ;;  %v8048_v29 = vrot.slane %v7928_v40, 1  ;;  %v8292_v6 = vrot.slane %v8172_v0, 2  ;;  %v6811_v16 = vmul.f32 %v15441_v14, %v15509_v33 }
 0x588   : > { %v7564_v12 = vadd.f32 %v7490_v44, %v7319_v9  ;;  %v8293_v3 = vrot.slane %v8173_v23, 2  ;;  %v7056_v47 = vmul.f32 %v15458_v48, %v15509_v33  ;;  %v7288_v49 = vmul.f32 %v15601_v19, %v15576_v53 }
 0x589   : > { %v8406_v32 = vmul.f32 %v15702_v30, %v8367_v35  ;;  %v8049_v8 = vsel %vm1108_vm2, %v8047_v7, %v8048_v29  ;;  %v6932_v21 = vrot.slane %v6811_v16, 1  ;;  %v7370_v26 = vmul.f32 %v15556_v4, %v15610_v10 }
 0x58a   : > { %v7809_v57 = vadd.f32 %v7735_v36, %v7564_v12  ;;  %v8294_v15 = vsel %vm1354_vm3, %v8292_v6, %v8293_v3  ;;  %v7177_v50 = vrot.slane %v7056_v47, 2  ;;  %v7615_v33 = vmul.f32 %v15569_v39, %v15610_v10 }
 0x58b   : > { %v8445_v58 = vadd.f32 %v15718_v18, %v8406_v32  ;;  %v7847_v44 = vmul.f32 %v15671_v56, %v15659_v61  ;;  %v6933_v20 = vsel %vm1108_vm2, %v6930_v42, %v6932_v21  ;;  %v7491_v54 = vrot.slane %v7370_v26, 1 }
 0x58c   : > { %v7878_v41 = vadd.f32 %v7846_v17, %v7809_v57  ;;  %v7929_v40 = vmul.f32 %v15678_v25, %v15706_v59  ;;  %v7006_v7 = vadd.f32 %v6933_v20, %v6729_v43  ;;  %v7178_v0 = vsel %vm1354_vm3, %v7175_v62, %v7177_v50 }
 0x58d   : > { %v8477_v9 = vmax.f32 %v8445_v58, 0.0  ;;  %v7736_v23 = vrot.slane %v7615_v33, 2  ;;  %v7492_v36 = vsel %vm1108_vm2, %v7489_v60, %v7491_v54  ;;  %v8174_v17 = vmul.f32 %v15687_v2, %v15706_v59 }
 0x58e   : > { %v8123_v35 = vadd.f32 %v8049_v8, %v7878_v41  ;;  %v8050_v12 = vrot.slane %v7929_v40, 1  ;;  %v7251_v42 = vadd.f32 %v7178_v0, %v7006_v7  ;;  %v6730_v32 = vmul.f32 %v15502_v51, %v15561_v38 }
 0x58f   : > { %v8509_v6 = vmin.f32 %v8477_v9, 6.0  ;;  %v7737_v16 = vsel %vm1354_vm3, %v7734_v52, %v7736_v23  ;;  %v8295_v47 = vrot.slane %v8174_v17, 2  ;;  %v6812_v62 = vmul.f32 %v15441_v14, %v15561_v38 }
 0x590   : > { %v8368_v43 = vadd.f32 %v8294_v15, %v8123_v35  ;;  %v8051_v28 = vsel %vm1108_vm2, %v8048_v29, %v8050_v12  ;;  %v7320_v60 = vadd.f32 %v7288_v49, %v7251_v42  ;;  %v6813_v8 = vmul.f32 %v15441_v14, %v15576_v53  ;;  %v15767_v35 = vld [vmem:[#allocation3 + $0x170] sm:$0xff] }
 0x591   : > { %9759 = vmatmul.mubr.msk.f32.gmra.mxu0 %vm3689_vm5, %v8509_v6  ;;  %v7057_v57 = vmul.f32 %v15458_v48, %v15561_v38  ;;  %v15747_v52 = vmul.f32 %v15458_v48, %v15576_v53  ;;  %v8296_v29 = vsel %vm1354_vm3, %v8293_v3, %v8295_v47  ;;  %v6934_v21 = vrot.slane %v6812_v62, 1  ;;  %v15755_v38 = vld [vmem:[#allocation3 + $0x168] sm:$0xff] }
 0x592   : > { %v8407_v15 = vmul.f32 %v15702_v30, %v8368_v43  ;;  %v7289_v26 = vmul.f32 %v15601_v19, %v15654_v63  ;;  %v7565_v58 = vadd.f32 %v7492_v36, %v7320_v60  ;;  %v6935_v49 = vrot.slane %v6813_v8, 1 }
 0x593   : > { %v7179_v50 = vrot.slane %v7057_v57, 2  ;;  %v7180_v33 = vrot.slane %v15747_v52, 2  ;;  %v7371_v20 = vmul.f32 %v15556_v4, %v15654_v63  ;;  %v7372_v54 = vmul.f32 %v15556_v4, %v15659_v61 }
 0x594   : > { %v8446_v41 = vadd.f32 %v15718_v18, %v8407_v15  ;;  %v7616_v3 = vmul.f32 %v15569_v39, %v15654_v63  ;;  %v7810_v40 = vadd.f32 %v7737_v16, %v7565_v58  ;;  %v6936_v9 = vsel %vm1108_vm2, %v6934_v21, %v6935_v49 }
 0x595   : > { %v7181_v7 = vsel %vm1354_vm3, %v7179_v50, %v7180_v33  ;;  %v7617_v0 = vmul.f32 %v15569_v39, %v15659_v61  ;;  %v7007_v36 = vadd.f32 %v6936_v9, %v6730_v32  ;;  %v7493_v12 = vrot.slane %v7371_v20, 1 }
 0x596   : > { %v8478_v23 = vmax.f32 %v8446_v41, 0.0  ;;  %v7494_v17 = vrot.slane %v7372_v54, 1  ;;  %v7879_v6 = vadd.f32 %v7847_v44, %v7810_v40  ;;  %v7738_v42 = vrot.slane %v7616_v3, 2 }
 0x597   : > { %v7739_v43 = vrot.slane %v7617_v0, 2  ;;  %v7848_v47 = vmul.f32 %v15671_v56, %v15755_v38  ;;  %v7252_v62 = vadd.f32 %v7181_v7, %v7007_v36  ;;  %v7930_v8 = vmul.f32 %v15678_v25, %v15755_v38 }
 0x598   : > { %v8510_v16 = vmin.f32 %v8478_v23, 6.0  ;;  %v7495_v60 = vsel %vm1108_vm2, %v7493_v12, %v7494_v17  ;;  %v8124_v57 = vadd.f32 %v8051_v28, %v7879_v6  ;;  %v7931_v32 = vmul.f32 %v15678_v25, %v15767_v35  ;;  %v15795_v12 = vld [vmem:[#allocation3 + $0x178] sm:$0x3] }
 0x599   : > { %v7740_v52 = vsel %vm1354_vm3, %v7738_v42, %v7739_v43  ;;  %v8175_v44 = vmul.f32 %v15687_v2, %v15755_v38  ;;  %v7321_v15 = vadd.f32 %v7289_v26, %v7252_v62  ;;  %v8052_v21 = vrot.slane %v7930_v8, 1 }
 0x59a   : > { %9761 = vmatprep.mubr.msk.f32.mxu0 %vm3689_vm5, %v8510_v16  ;;  %v8176_v58 = vmul.f32 %v15687_v2, %v15767_v35  ;;  %v6731_v50 = vmul.f32 %v15502_v51, %v15576_v53  ;;  %v8369_v41 = vadd.f32 %v8296_v29, %v8124_v57  ;;  %v8053_v28 = vrot.slane %v7931_v32, 1 }
 0x59b   : > { %v8297_v20 = vrot.slane %v8175_v44, 2  ;;  %v6814_v54 = vmul.f32 %v15441_v14, %v15610_v10  ;;  %v7566_v3 = vadd.f32 %v7495_v60, %v7321_v15  ;;  %v7059_v9 = vmul.f32 %v15458_v48, %v15610_v10 }
 0x59c   : > { %v8298_v40 = vrot.slane %v8176_v58, 2  ;;  %v7290_v26 = vmul.f32 %v15601_v19, %v15659_v61  ;;  %v8408_v7 = vmul.f32 %v15702_v30, %v8369_v41  ;;  %v8054_v0 = vsel %vm1108_vm2, %v8052_v21, %v8053_v28 }
 0x59d   : > { %v6937_v23 = vrot.slane %v6814_v54, 1  ;;  %v7373_v53 = vmul.f32 %v15556_v4, %v15706_v59  ;;  %v7811_v29 = vadd.f32 %v7740_v52, %v7566_v3  ;;  %v7182_v6 = vrot.slane %v7059_v9, 2 }
 0x59e   : > { %v8299_v36 = vsel %vm1354_vm3, %v8297_v20, %v8298_v40  ;;  %v7618_v10 = vmul.f32 %v15569_v39, %v15706_v59  ;;  %v8447_v42 = vadd.f32 %v15718_v18, %v8408_v7  ;;  %v7849_v60 = vmul.f32 %v15671_v56, %v15767_v35 }
 0x59f   : > { %v6938_v16 = vsel %vm1108_vm2, %v6935_v49, %v6937_v23  ;;  %v7496_v62 = vrot.slane %v7373_v53, 1  ;;  %v7880_v8 = vadd.f32 %v7848_v47, %v7811_v29  ;;  %v7183_v52 = vsel %vm1354_vm3, %v7180_v33, %v7182_v6 }
 0x5a0   : > { %v7008_v57 = vadd.f32 %v6938_v16, %v6731_v50  ;;  %v7741_v32 = vrot.slane %v7618_v10, 2  ;;  %v8479_v44 = vmax.f32 %v8447_v42, 0.0  ;;  %v7932_v21 = vmul.f32 %v15678_v25, %v15795_v12 }
 0x5a1   : > { %v7497_v15 = vsel %vm1108_vm2, %v7494_v17, %v7496_v62  ;;  %v8177_v58 = vmul.f32 %v15687_v2, %v15795_v12  ;;  %v8125_v41 = vadd.f32 %v8054_v0, %v7880_v8  ;;  %v6732_v47 = vmul.f32 %v15502_v51, %v15654_v63  ;;  %v15837_v8 = vld [vmem:[#allocation3 + $0x180] sm:$0xff] }
 0x5a2   : > { %v7253_v49 = vadd.f32 %v7183_v52, %v7008_v57  ;;  %v7742_v20 = vsel %vm1354_vm3, %v7739_v43, %v7741_v32  ;;  %v8511_v50 = vmin.f32 %v8479_v44, 6.0  ;;  %v8055_v54 = vrot.slane %v7932_v21, 1  ;;  %v15842_v32 = vld [vmem:[#allocation3 + $0x188] sm:$0xff] }
 0x5a3   : > { %v8300_v33 = vrot.slane %v8177_v58, 2  ;;  %v6815_v3 = vmul.f32 %v15441_v14, %v15654_v63  ;;  %v8370_v17 = vadd.f32 %v8299_v36, %v8125_v41  ;;  %v15816_v7 = vmul.f32 %v15441_v14, %v15659_v61 }
 0x5a4   : > { %v7322_v9 = vadd.f32 %v7290_v26, %v7253_v49  ;;  %v7060_v0 = vmul.f32 %v15458_v48, %v15654_v63  ;;  %9762 = vmatmul.mubr.msk.f32.gmra.mxu0 %vm3689_vm5, %v8511_v50  ;;  %v8056_v43 = vsel %vm1108_vm2, %v8053_v28, %v8055_v54  ;;  %v15825_v29 = vmul.f32 %v15458_v48, %v15659_v61 }
 0x5a5   : > { %v8301_v23 = vsel %vm1354_vm3, %v8298_v40, %v8300_v33  ;;  %v6939_v53 = vrot.slane %v6815_v3, 1  ;;  %v8409_v26 = vmul.f32 %v15702_v30, %v8370_v17  ;;  %v6940_v6 = vrot.slane %v15816_v7, 1 }
 0x5a6   : > { %v7567_v36 = vadd.f32 %v7497_v15, %v7322_v9  ;;  %v7184_v10 = vrot.slane %v7060_v0, 2  ;;  %v7185_v42 = vrot.slane %v15825_v29, 2  ;;  %v7291_v63 = vmul.f32 %v15601_v19, %v15755_v38 }
 0x5a7   : > { %v7374_v28 = vmul.f32 %v15556_v4, %v15755_v38  ;;  %v7375_v40 = vmul.f32 %v15556_v4, %v15767_v35  ;;  %v8448_v16 = vadd.f32 %v15718_v18, %v8409_v26  ;;  %v6941_v57 = vsel %vm1108_vm2, %v6939_v53, %v6940_v6 }
 0x5a8   : > { %v7812_v62 = vadd.f32 %v7742_v20, %v7567_v36  ;;  %v7619_v52 = vmul.f32 %v15569_v39, %v15755_v38  ;;  %v7009_v44 = vadd.f32 %v6941_v57, %v6732_v47  ;;  %v7186_v15 = vsel %vm1354_vm3, %v7184_v10, %v7185_v42 }
 0x5a9   : > { %v7498_v21 = vrot.slane %v7374_v28, 1  ;;  %v7499_v58 = vrot.slane %v7375_v40, 1  ;;  %v8480_v41 = vmax.f32 %v8448_v16, 0.0  ;;  %v7620_v50 = vmul.f32 %v15569_v39, %v15767_v35 }
 0x5aa   : > { %v7881_v49 = vadd.f32 %v7849_v60, %v7812_v62  ;;  %v7743_v20 = vrot.slane %v7619_v52, 2  ;;  %v7254_v54 = vadd.f32 %v7186_v15, %v7009_v44  ;;  %v7850_v3 = vmul.f32 %v15671_v56, %v15837_v8  ;;  %v15866_v44 = vld [vmem:[#allocation3 + $0x190] sm:$0x3] }
 0x5ab   : > { %v7500_v33 = vsel %vm1108_vm2, %v7498_v21, %v7499_v58  ;;  %v7933_v17 = vmul.f32 %v15678_v25, %v15837_v8  ;;  %v8512_v47 = vmin.f32 %v8480_v41, 6.0  ;;  %v7744_v7 = vrot.slane %v7620_v50, 2  ;;  %v15875_v50 = vpop.f32.mrf.mxu0 }
 0x5ac   : > { %v8126_v9 = vadd.f32 %v8056_v43, %v7881_v49  ;;  %v7934_v0 = vmul.f32 %v15678_v25, %v15842_v32  ;;  %v7323_v60 = vadd.f32 %v7291_v63, %v7254_v54  ;;  %v8178_v29 = vmul.f32 %v15687_v2, %v15837_v8 }
 0x5ad   : > { %v8057_v53 = vrot.slane %v7933_v17, 1  ;;  %v8179_v26 = vmul.f32 %v15687_v2, %v15842_v32  ;;  %9764 = vmatprep.mubr.msk.f32.mxu0 %vm3689_vm5, %v8512_v47  ;;  %v7745_v10 = vsel %vm1354_vm3, %v7743_v20, %v7744_v7  ;;  %v6733_v43 = vmul.f32 %v15502_v51, %v15659_v61 }
 0x5ae   : > { %v8371_v36 = vadd.f32 %v8301_v23, %v8126_v9  ;;  %v8058_v28 = vrot.slane %v7934_v0, 1  ;;  %v7568_v40 = vadd.f32 %v7500_v33, %v7323_v60  ;;  %v8302_v16 = vrot.slane %v8178_v29, 2 }
 0x5af   : > { %v8303_v62 = vrot.slane %v8179_v26, 2  ;;  %v6817_v63 = vmul.f32 %v15441_v14, %v15706_v59  ;;  %v7062_v23 = vmul.f32 %v15458_v48, %v15706_v59  ;;  %v7292_v15 = vmul.f32 %v15601_v19, %v15767_v35 }
 0x5b0   : > { %v8410_v57 = vmul.f32 %v15702_v30, %v8371_v36  ;;  %v8059_v52 = vsel %vm1108_vm2, %v8057_v53, %v8058_v28  ;;  %v7813_v21 = vadd.f32 %v7745_v10, %v7568_v40  ;;  %v7376_v49 = vmul.f32 %v15556_v4, %v15795_v12 }
 0x5b1   : > { %v8304_v61 = vsel %vm1354_vm3, %v8302_v16, %v8303_v62  ;;  %v6942_v41 = vrot.slane %v6817_v63, 1  ;;  %v7187_v54 = vrot.slane %v7062_v23, 2  ;;  %v7621_v33 = vmul.f32 %v15569_v39, %v15795_v12  ;;  %v15889_v63 = vpop.f32.mrf.mxu0 }
 0x5b2   : > { %v8449_v20 = vadd.f32 %v15718_v18, %v8410_v57  ;;  %v7851_v59 = vmul.f32 %v15671_v56, %v15842_v32  ;;  %v7882_v17 = vadd.f32 %v7850_v3, %v7813_v21  ;;  %v7501_v9 = vrot.slane %v7376_v49, 1 }
 0x5b3   : > { %v6943_v47 = vsel %vm1108_vm2, %v6940_v6, %v6942_v41  ;;  %v7935_v0 = vmul.f32 %v15678_v25, %v15866_v44  ;;  %v7188_v29 = vsel %vm1354_vm3, %v7185_v42, %v7187_v54  ;;  %v7746_v26 = vrot.slane %v7621_v33, 2 }
 0x5b4   : > { %v8481_v60 = vmax.f32 %v8449_v20, 0.0  ;;  %v7010_v53 = vadd.f32 %v6943_v47, %v6733_v43  ;;  %v8127_v36 = vadd.f32 %v8059_v52, %v7882_v17  ;;  %v7502_v10 = vsel %vm1108_vm2, %v7499_v58, %v7501_v9  ;;  %v15897_v52 = vpop.f32.mrf.mxu0 }
 0x5b5   : > { %v8060_v40 = vrot.slane %v7935_v0, 1  ;;  %v8180_v16 = vmul.f32 %v15687_v2, %v15866_v44  ;;  %v7747_v57 = vsel %vm1354_vm3, %v7744_v7, %v7746_v26  ;;  %v6734_v23 = vmul.f32 %v15502_v51, %v15755_v38  ;;  %v6696_v0 = vld [vmem:[#allocation3 + $0x198] sm:$0xff] }
 0x5b6   : > { %v8513_v3 = vmin.f32 %v8481_v60, 6.0  ;;  %v7255_v6 = vadd.f32 %v7188_v29, %v7010_v53  ;;  %v8372_v43 = vadd.f32 %v8304_v61, %v8127_v36  ;;  %v6818_v58 = vmul.f32 %v15441_v14, %v15755_v38  ;;  %v15925_v29 = vpop.f32.mrf.mxu0 }
 0x5b7   : > { %v8061_v42 = vsel %vm1108_vm2, %v8058_v28, %v8060_v40  ;;  %v8305_v21 = vrot.slane %v8180_v16, 2  ;;  %v15902_v49 = vmul.f32 %v15441_v14, %v15767_v35  ;;  %v7063_v7 = vmul.f32 %v15458_v48, %v15755_v38 }
 0x5b8   : > { %9765 = vmatmul.mubr.msk.f32.gmra.mxu0 %vm3689_vm5, %v8513_v3  ;;  %v7324_v41 = vadd.f32 %v7292_v15, %v7255_v6  ;;  %v15908_v61 = vmul.f32 %v15458_v48, %v15767_v35  ;;  %v8411_v28 = vmul.f32 %v15702_v30, %v8372_v43  ;;  %v6944_v54 = vrot.slane %v6818_v58, 1  ;;  %v6697_v3 = vld [vmem:[#allocation3 + $0x1a0] sm:$0xff]  ;;  %v15934_v58 = vpop.f32.mrf.mxu0 }
 0x5b9   : > { %v8306_v20 = vsel %vm1354_vm3, %v8303_v62, %v8305_v21  ;;  %v7293_v33 = vmul.f32 %v15601_v19, %v15837_v8  ;;  %v6945_v17 = vrot.slane %v15902_v49, 1  ;;  %v7189_v47 = vrot.slane %v7063_v7, 2 }
 0x5ba   : > { %v7569_v15 = vadd.f32 %v7502_v10, %v7324_v41  ;;  %v7190_v9 = vrot.slane %v15908_v61, 2  ;;  %v8450_v38 = vadd.f32 %v15718_v18, %v8411_v28  ;;  %v7377_v60 = vmul.f32 %v15556_v4, %v15837_v8 }
 0x5bb   : > { %v15921_v53 = vmul.f32 %v15556_v4, %v15842_v32  ;;  %v7622_v62 = vmul.f32 %v15569_v39, %v15837_v8  ;;  %v6946_v36 = vsel %vm1108_vm2, %v6944_v54, %v6945_v17  ;;  %v15931_v40 = vmul.f32 %v15569_v39, %v15842_v32 }
 0x5bc   : > { %v7814_v26 = vadd.f32 %v7747_v57, %v7569_v15  ;;  %v7191_v10 = vsel %vm1354_vm3, %v7189_v47, %v7190_v9  ;;  %v8482_v16 = vmax.f32 %v8450_v38, 0.0  ;;  %v7011_v6 = vadd.f32 %v6946_v36, %v6734_v23 }
 0x5bd   : > { %v7503_v43 = vrot.slane %v7377_v60, 1  ;;  %v7504_v21 = vrot.slane %v15921_v53, 1  ;;  %v7748_v41 = vrot.slane %v7622_v62, 2  ;;  %v7749_v57 = vrot.slane %v15931_v40, 2 }
 0x5be   : > { %v7883_v8 = vadd.f32 %v7851_v59, %v7814_v26  ;;  %v7852_v49 = vmul.f32 %v15671_v56, %v6696_v0  ;;  %v8514_v7 = vmin.f32 %v8482_v16, 6.0  ;;  %v7256_v61 = vadd.f32 %v7191_v10, %v7011_v6  ;;  %v8712_v26 = vpop.f32.mrf.mxu0 }
 0x5bf   : > { %v7505_v28 = vsel %vm1108_vm2, %v7503_v43, %v7504_v21  ;;  %v7936_v54 = vmul.f32 %v15678_v25, %v6696_v0  ;;  %v7750_v23 = vsel %vm1354_vm3, %v7748_v41, %v7749_v57  ;;  %v7937_v47 = vmul.f32 %v15678_v25, %v6697_v3 }
 0x5c0   : > { %v8128_v15 = vadd.f32 %v8061_v42, %v7883_v8  ;;  %v8181_v38 = vmul.f32 %v15687_v2, %v6696_v0  ;;  %9767 = vmatprep.mubr.msk.f32.mxu0 %vm3689_vm5, %v8514_v7  ;;  %v7325_v59 = vadd.f32 %v7293_v33, %v7256_v61  ;;  %v8182_v53 = vmul.f32 %v15687_v2, %v6697_v3  ;;  %v9736_v43 = vpop.f32.mrf.mxu0  ;;  %v6698_v7 = vld [vmem:[#allocation3 + $0x1a8] sm:$0x3] }
 0x5c1   : > { %v8062_v60 = vrot.slane %v7936_v54, 1  ;;  %v6735_v62 = vmul.f32 %v15502_v51, %v15767_v35  ;;  %v8063_v10 = vrot.slane %v7937_v47, 1  ;;  %v6820_v42 = vmul.f32 %v15441_v14, %v15795_v12 }
 0x5c2   : > { %v8373_v36 = vadd.f32 %v8306_v20, %v8128_v15  ;;  %v8307_v40 = vrot.slane %v8181_v38, 2  ;;  %v7570_v16 = vadd.f32 %v7505_v28, %v7325_v59  ;;  %v8308_v6 = vrot.slane %v8182_v53, 2 }
 0x5c3   : > { %v7065_v0 = vmul.f32 %v15458_v48, %v15795_v12  ;;  %v7294_v33 = vmul.f32 %v15601_v19, %v15842_v32  ;;  %v8064_v51 = vsel %vm1108_vm2, %v8062_v60, %v8063_v10  ;;  %v6947_v35 = vrot.slane %v6820_v42, 1 }
 0x5c4   : > { %v8412_v8 = vmul.f32 %v15702_v30, %v8373_v36  ;;  %v7379_v20 = vmul.f32 %v15556_v4, %v15866_v44  ;;  %v7815_v41 = vadd.f32 %v7750_v23, %v7570_v16  ;;  %v8309_v14 = vsel %vm1354_vm3, %v8307_v40, %v8308_v6  ;;  %v15967_v4 = vld [vmem:[%s16231_s23] ss:$0 sm:$0xff] }
 0x5c5   : > { %v7192_v61 = vrot.slane %v7065_v0, 2  ;;  %v7624_v48 = vmul.f32 %v15569_v39, %v15866_v44  ;;  %v6948_v19 = vsel %vm1108_vm2, %v6945_v17, %v6947_v35  ;;  %v7853_v28 = vmul.f32 %v15671_v56, %v6697_v3  ;;  %v8722_v39 = vpop.f32.mrf.mxu0  ;;  %v15976_v3 = vld [vmem:[%s16232_s24] ss:$0 sm:$0xff] }
 0x5c6   : > { %v8451_v12 = vadd.f32 %v15718_v18, %v8412_v8  ;;  %v7506_v32 = vrot.slane %v7379_v20, 1  ;;  %v7884_v54 = vadd.f32 %v7852_v49, %v7815_v41  ;;  %v7012_v15 = vadd.f32 %v6948_v19, %v6735_v62 }
 0x5c7   : > { %v7193_v23 = vsel %vm1354_vm3, %v7190_v9, %v7192_v61  ;;  %v7751_v47 = vrot.slane %v7624_v48, 2  ;;  %v7938_v17 = vmul.f32 %v15678_v25, %v6698_v7  ;;  %v8183_v56 = vmul.f32 %v15687_v2, %v6698_v7  ;;  %v9739_v16 = vpop.f32.mrf.mxu0 }
 0x5c8   : > { %v8483_v44 = vmax.f32 %v8451_v12, 0.0  ;;  %v7507_v38 = vsel %vm1108_vm2, %v7504_v21, %v7506_v32  ;;  %v8129_v59 = vadd.f32 %v8064_v51, %v7884_v54  ;;  %v7257_v60 = vadd.f32 %v7193_v23, %v7012_v15 }
 0x5c9   : > { %v7752_v49 = vsel %vm1354_vm3, %v7749_v57, %v7751_v47  ;;  %v8859_v9 = vmul.f32 %v15875_v50, %v15967_v4  ;;  %v8065_v21 = vrot.slane %v7938_v17, 1  ;;  %v8310_v62 = vrot.slane %v8183_v56, 2 }
 0x5ca   : > { %v8515_v53 = vmin.f32 %v8483_v44, 6.0  ;;  %v8858_v25 = vmul.f32 %v15967_v4, %v15889_v63  ;;  %v8374_v2 = vadd.f32 %v8309_v14, %v8129_v59  ;;  %v7326_v36 = vadd.f32 %v7294_v33, %v7257_v60 }
 0x5cb   : > { %v8898_v40 = vadd.f32 %v15976_v3, %v8859_v9  ;;  %v8861_v42 = vmul.f32 %v15897_v52, %v15967_v4  ;;  %v8066_v57 = vsel %vm1108_vm2, %v8063_v10, %v8065_v21  ;;  %v8311_v50 = vsel %vm1354_vm3, %v8308_v6, %v8310_v62 }
 0x5cc   : > { %9768 = vmatmul.mubr.msk.f32.gmra.mxu0 %vm3689_vm5, %v8515_v53  ;;  %v8897_v0 = vadd.f32 %v15976_v3, %v8858_v25  ;;  %v8860_v8 = vmul.f32 %v15967_v4, %v15925_v29  ;;  %v8413_v63 = vmul.f32 %v15702_v30, %v8374_v2  ;;  %v7571_v33 = vadd.f32 %v7507_v38, %v7326_v36  ;;  %v8732_v29 = vpop.f32.mrf.mxu0  ;;  %v16457_v36 = vld [vmem:[#allocation45_spill] sm:$0xff] }
 0x5cd   : > { %v8930_v51 = vadd.f32 %v8898_v40, %v14098_v5  ;;  %v8900_v35 = vadd.f32 %v15976_v3, %v8861_v42  ;;  %v8863_v10 = vmul.f32 %v15934_v58, %v15967_v4  ;;  %v8862_v6 = vmul.f32 %v15967_v4, %v8712_v26 }
 0x5ce   : > { %v8929_v52 = vadd.f32 %v8897_v0, %v14101_v24  ;;  %v8899_v20 = vadd.f32 %v15976_v3, %v8860_v8  ;;  %v8452_v41 = vadd.f32 %v15718_v18, %v8413_v63  ;;  %v7816_v14 = vadd.f32 %v7752_v49, %v7571_v33  ;;  %v16458_v8 = vld [vmem:[#allocation13_spill] sm:$0xff]  ;;  %v16459_v33 = vld [vmem:[#allocation44_spill] sm:$0xff] }
 0x5cf   : > { %8962 = vst.msk [vmem:[%s16003_s3 + $0x8] sm:$0xff] %vm3225_vm4, %v8930_v51  ;;  %v8932_v5 = vadd.f32 %v8900_v35, %v14126_v31  ;;  %v8865_v24 = vmul.f32 %v9736_v43, %v15967_v4  ;;  %v8902_v26 = vadd.f32 %v15976_v3, %v8863_v10  ;;  %v8901_v7 = vadd.f32 %v15976_v3, %v8862_v6 }
 0x5d0   : > { %8961 = vst.msk [vmem:[%s16003_s3] sm:$0xff] %vm3225_vm4, %v8929_v52  ;;  %v8931_v58 = vadd.f32 %v8899_v20, %v14105_v46  ;;  %v8864_v61 = vmul.f32 %v15967_v4, %v8722_v39  ;;  %v8484_v48 = vmax.f32 %v8452_v41, 0.0  ;;  %v7885_v12 = vadd.f32 %v7853_v28, %v7816_v14  ;;  %v16460_v41 = vld [vmem:[#allocation14_spill] sm:$0xff] }
 0x5d1   : > { %8964 = vst.msk [vmem:[%s16003_s3 + $0x18] sm:$0xff] %vm3225_vm4, %v8932_v5  ;;  %v8904_v31 = vadd.f32 %v15976_v3, %v8865_v24  ;;  %v8867_v43 = vmul.f32 %v9739_v16, %v15967_v4  ;;  %v8934_v46 = vadd.f32 %v8902_v26, %v14142_v22  ;;  %v8933_v19 = vadd.f32 %v8901_v7, %v14119_v1  ;;  %v16461_v24 = vld [vmem:[#allocation12_spill] sm:$0xff] }
 0x5d2   : > { %8963 = vst.msk [vmem:[%s16003_s3 + $0x10] sm:$0xff] %vm3225_vm4, %v8931_v58  ;;  %v8903_v32 = vadd.f32 %v15976_v3, %v8864_v61  ;;  %v8866_v54 = vmul.f32 %v15967_v4, %v8732_v29  ;;  %v8516_v15 = vmin.f32 %v8484_v48, 6.0  ;;  %v8130_v28 = vadd.f32 %v8066_v57, %v7885_v12  ;;  %v16462_v12 = vld [vmem:[#allocation16_spill] sm:$0xff] }
 0x5d3   : > { %v8936_v23 = vadd.f32 %v8904_v31, %v14157_v45  ;;  %v8906_v47 = vadd.f32 %v15976_v3, %v8867_v43  ;;  %v9742_v39 = vpop.f32.mrf.mxu0  ;;  %8966 = vst.msk [vmem:[%s16003_s3 + $0x28] sm:$0xff] %vm3225_vm4, %v8934_v46  ;;  %8965 = vst.msk [vmem:[%s16003_s3 + $0x20] sm:$0xff] %vm3225_vm4, %v8933_v19  ;;  %v16463_v46 = vld [vmem:[#allocation15_spill] sm:$0xff] }
 0x5d4   : > { %v8935_v1 = vadd.f32 %v8903_v32, %v14136_v11  ;;  %v8905_v22 = vadd.f32 %v15976_v3, %v8866_v54  ;;  %v8869_v44 = vmul.f32 %v9742_v39, %v15967_v4  ;;  %9770 = vmatprep.mubr.msk.f32.mxu0 %vm3689_vm5, %v8516_v15  ;;  %v8375_v38 = vadd.f32 %v8311_v50, %v8130_v28 }
 0x5d5   : > { %8968 = vst.msk [vmem:[%s16003_s3 + $0x38] sm:$0xff] %vm3225_vm4, %v8936_v23  ;;  %v8938_v45 = vadd.f32 %v8906_v47, %v14170_v13  ;;  %v8742_v17 = vpop.f32.mrf.mxu0  ;;  %v16464_v47 = vld [vmem:[#allocation18_spill] sm:$0xff] }
 0x5d6   : > { %8967 = vst.msk [vmem:[%s16003_s3 + $0x30] sm:$0xff] %vm3225_vm4, %v8935_v1  ;;  %v8937_v56 = vadd.f32 %v8905_v22, %v14151_v34  ;;  %v8908_v11 = vadd.f32 %v15976_v3, %v8869_v44  ;;  %v8868_v59 = vmul.f32 %v15967_v4, %v8742_v17  ;;  %v8414_v60 = vmul.f32 %v15702_v30, %v8375_v38  ;;  %v16465_v22 = vld [vmem:[#allocation17_spill] sm:$0xff] }
 0x5d7   : > { %8970 = vst.msk [vmem:[%s16003_s3 + $0x48] sm:$0xff] %vm3225_vm4, %v8938_v45 }
 0x5d8   : > { %8969 = vst.msk [vmem:[%s16003_s3 + $0x40] sm:$0xff] %vm3225_vm4, %v8937_v56  ;;  %v8940_v49 = vadd.f32 %v8908_v11, %v14178_v27  ;;  %v8907_v13 = vadd.f32 %v15976_v3, %v8868_v59  ;;  %v8453_v9 = vadd.f32 %v15718_v18, %v8414_v60  ;;  %v16466_v59 = vld [vmem:[#allocation20_spill] sm:$0xff] }
 0x5da   : > { %8972 = vst.msk [vmem:[%s16003_s3 + $0x58] sm:$0xff] %vm3225_vm4, %v8940_v49  ;;  %v8939_v34 = vadd.f32 %v8907_v13, %v14165_v37  ;;  %v8485_v53 = vmax.f32 %v8453_v9, 0.0  ;;  %v16467_v13 = vld [vmem:[#allocation19_spill] sm:$0xff] }
 0x5dc   : > { %8971 = vst.msk [vmem:[%s16003_s3 + $0x50] sm:$0xff] %vm3225_vm4, %v8939_v34  ;;  %v8517_v30 = vmin.f32 %v8485_v53, 6.0 }
 0x5de   : > { %9771 = vmatmul.mubr.msk.f32.gmra.mxu0 %vm3689_vm5, %v8517_v30 }
 0x5e9   : > { %v9745_v21 = vpop.f32.mrf.mxu0 }
 0x5ea   : > { %v8871_v62 = vmul.f32 %v9745_v21, %v15967_v4 }
 0x5eb   : > { %v8752_v27 = vpop.f32.mrf.mxu0 }
 0x5ec   : > { %v8910_v25 = vadd.f32 %v15976_v3, %v8871_v62  ;;  %v8870_v18 = vmul.f32 %v15967_v4, %v8752_v27  ;;  %v16468_v27 = vld [vmem:[#allocation22_spill] sm:$0xff] }
 0x5ee   : > { %v8942_v2 = vadd.f32 %v8910_v25, %v14190_v55  ;;  %v8909_v37 = vadd.f32 %v15976_v3, %v8870_v18 }
 0x5f0   : > { %8974 = vst.msk [vmem:[%s16003_s3 + $0x68] sm:$0xff] %vm3225_vm4, %v8942_v2  ;;  %v8941_v40 = vadd.f32 %v8909_v37, %v16457_v36  ;;  %v16469_v2 = vld [vmem:[#allocation21_spill] sm:$0xff] }
 0x5f2   : > { %8973 = vst.msk [vmem:[%s16003_s3 + $0x60] sm:$0xff] %vm3225_vm4, %v8941_v40 }
 0x5fd   : > { %v9748_v42 = vpop.f32.mrf.mxu0 }
 0x5fe   : > { %v8873_v16 = vmul.f32 %v9748_v42, %v15967_v4 }
 0x5ff   : > { %v8762_v57 = vpop.f32.mrf.mxu0 }
 0x600   : > { %v8912_v50 = vadd.f32 %v15976_v3, %v8873_v16  ;;  %v8872_v0 = vmul.f32 %v15967_v4, %v8762_v57 }
 0x602   : > { %v8944_v55 = vadd.f32 %v8912_v50, %v16458_v8  ;;  %v8911_v63 = vadd.f32 %v15976_v3, %v8872_v0  ;;  %v16470_v50 = vld [vmem:[#allocation24_spill] sm:$0xff] }
 0x604   : > { %8976 = vst.msk [vmem:[%s16003_s3 + $0x78] sm:$0xff] %vm3225_vm4, %v8944_v55  ;;  %v8943_v51 = vadd.f32 %v8911_v63, %v16459_v33  ;;  %v16471_v55 = vld [vmem:[#allocation23_spill] sm:$0xff] }
 0x606   : > { %8975 = vst.msk [vmem:[%s16003_s3 + $0x70] sm:$0xff] %vm3225_vm4, %v8943_v51 }
 0x614   : > { %v9751_v35 = vpop.f32.mrf.mxu0 }
 0x615   : > { %v8875_v52 = vmul.f32 %v9751_v35, %v15967_v4 }
 0x616   : > { %v8772_v20 = vpop.f32.mrf.mxu0 }
 0x617   : > { %v8914_v10 = vadd.f32 %v15976_v3, %v8875_v52  ;;  %v8874_v6 = vmul.f32 %v15967_v4, %v8772_v20 }
 0x619   : > { %v8946_v14 = vadd.f32 %v8914_v10, %v16460_v41  ;;  %v8913_v5 = vadd.f32 %v15976_v3, %v8874_v6  ;;  %v16472_v10 = vld [vmem:[#allocation26_spill] sm:$0xff] }
 0x61b   : > { %8978 = vst.msk [vmem:[%s16003_s3 + $0x88] sm:$0xff] %vm3225_vm4, %v8946_v14  ;;  %v8945_v29 = vadd.f32 %v8913_v5, %v16461_v24  ;;  %v16473_v14 = vld [vmem:[#allocation25_spill] sm:$0xff] }
 0x61d   : > { %8977 = vst.msk [vmem:[%s16003_s3 + $0x80] sm:$0xff] %vm3225_vm4, %v8945_v29 }
 0x62a   : > { %v9754_v58 = vpop.f32.mrf.mxu0 }
 0x62b   : > { %v8877_v26 = vmul.f32 %v9754_v58, %v15967_v4 }
 0x62c   : > { %v8782_v7 = vpop.f32.mrf.mxu0 }
 0x62d   : > { %v8916_v61 = vadd.f32 %v15976_v3, %v8877_v26  ;;  %v8876_v48 = vmul.f32 %v15967_v4, %v8782_v7 }
 0x62f   : > { %v8948_v31 = vadd.f32 %v8916_v61, %v16462_v12  ;;  %v8915_v43 = vadd.f32 %v15976_v3, %v8876_v48  ;;  %v16474_v61 = vld [vmem:[#allocation27_spill] sm:$0xff] }
 0x631   : > { %8980 = vst.msk [vmem:[%s16003_s3 + $0x98] sm:$0xff] %vm3225_vm4, %v8948_v31  ;;  %v8947_v19 = vadd.f32 %v8915_v43, %v16463_v46  ;;  %v16475_v31 = vld [vmem:[#allocation28_spill] sm:$0xff] }
 0x633   : > { %8979 = vst.msk [vmem:[%s16003_s3 + $0x90] sm:$0xff] %vm3225_vm4, %v8947_v19 }
 0x63e   : > { %v9757_v32 = vpop.f32.mrf.mxu0 }
 0x63f   : > { %v8879_v54 = vmul.f32 %v9757_v32, %v15967_v4 }
 0x640   : > { %v8792_v15 = vpop.f32.mrf.mxu0 }
 0x641   : > { %v8918_v28 = vadd.f32 %v15976_v3, %v8879_v54  ;;  %v8878_v23 = vmul.f32 %v15967_v4, %v8792_v15 }
 0x643   : > { %v8950_v39 = vadd.f32 %v8918_v28, %v16464_v47  ;;  %v8917_v1 = vadd.f32 %v15976_v3, %v8878_v23 }
 0x645   : > { %8982 = vst.msk [vmem:[%s16003_s3 + $0xa8] sm:$0xff] %vm3225_vm4, %v8950_v39  ;;  %v8949_v44 = vadd.f32 %v8917_v1, %v16465_v22 }
 0x647   : > { %8981 = vst.msk [vmem:[%s16003_s3 + $0xa0] sm:$0xff] %vm3225_vm4, %v8949_v44 }
 0x651   : > { %v9760_v38 = vpop.f32.mrf.mxu0 }
 0x652   : > { %v8881_v45 = vmul.f32 %v9760_v38, %v15967_v4 }
 0x653   : > { %v8802_v17 = vpop.f32.mrf.mxu0 }
 0x654   : > { %v8920_v56 = vadd.f32 %v15976_v3, %v8881_v45  ;;  %v8880_v11 = vmul.f32 %v15967_v4, %v8802_v17 }
 0x656   : > { %v8952_v60 = vadd.f32 %v8920_v56, %v16466_v59  ;;  %v8919_v49 = vadd.f32 %v15976_v3, %v8880_v11 }
 0x658   : > { %8984 = vst.msk [vmem:[%s16003_s3 + $0xb8] sm:$0xff] %vm3225_vm4, %v8952_v60  ;;  %v8951_v9 = vadd.f32 %v8919_v49, %v16467_v13 }
 0x65a   : > { %8983 = vst.msk [vmem:[%s16003_s3 + $0xb0] sm:$0xff] %vm3225_vm4, %v8951_v9 }
 0x664   : > { %v9763_v34 = vpop.f32.mrf.mxu0 }
 0x665   : > { %v8883_v53 = vmul.f32 %v9763_v34, %v15967_v4 }
 0x666   : > { %v8812_v30 = vpop.f32.mrf.mxu0 }
 0x667   : > { %v8922_v21 = vadd.f32 %v15976_v3, %v8883_v53  ;;  %v8882_v62 = vmul.f32 %v15967_v4, %v8812_v30 }
 0x669   : > { %v8954_v25 = vadd.f32 %v8922_v21, %v16468_v27  ;;  %v8921_v18 = vadd.f32 %v15976_v3, %v8882_v62 }
 0x66b   : > { %8986 = vst.msk [vmem:[%s16003_s3 + $0xc8] sm:$0xff] %vm3225_vm4, %v8954_v25  ;;  %v8953_v37 = vadd.f32 %v8921_v18, %v16469_v2 }
 0x66d   : > { %8985 = vst.msk [vmem:[%s16003_s3 + $0xc0] sm:$0xff] %vm3225_vm4, %v8953_v37 }
 0x678   : > { %v9766_v36 = vpop.f32.mrf.mxu0 }
 0x679   : > { %v8885_v40 = vmul.f32 %v9766_v36, %v15967_v4 }
 0x67a   : > { %v8822_v42 = vpop.f32.mrf.mxu0 }
 0x67b   : > { %v8924_v16 = vadd.f32 %v15976_v3, %v8885_v40  ;;  %v8884_v57 = vmul.f32 %v15967_v4, %v8822_v42 }
 0x67d   : > { %v8956_v0 = vadd.f32 %v8924_v16, %v16470_v50  ;;  %v8923_v8 = vadd.f32 %v15976_v3, %v8884_v57 }
 0x67f   : > { %8988 = vst.msk [vmem:[%s16003_s3 + $0xd8] sm:$0xff] %vm3225_vm4, %v8956_v0  ;;  %v8955_v63 = vadd.f32 %v8923_v8, %v16471_v55 }
 0x681   : > { %8987 = vst.msk [vmem:[%s16003_s3 + $0xd0] sm:$0xff] %vm3225_vm4, %v8955_v63 }
 0x68c   : > { %v9769_v33 = vpop.f32.mrf.mxu0 }
 0x68d   : > { %v8887_v51 = vmul.f32 %v9769_v33, %v15967_v4 }
 0x68e   : > { %v8832_v35 = vpop.f32.mrf.mxu0 }
 0x68f   : > { %v8926_v52 = vadd.f32 %v15976_v3, %v8887_v51  ;;  %v8886_v20 = vmul.f32 %v15967_v4, %v8832_v35 }
 0x691   : > { %v8958_v6 = vadd.f32 %v8926_v52, %v16472_v10  ;;  %v8925_v41 = vadd.f32 %v15976_v3, %v8886_v20 }
 0x693   : > { %8990 = vst.msk [vmem:[%s16003_s3 + $0xe8] sm:$0xff] %vm3225_vm4, %v8958_v6  ;;  %v8957_v5 = vadd.f32 %v8925_v41, %v16473_v14 }
 0x695   : > { %8989 = vst.msk [vmem:[%s16003_s3 + $0xe0] sm:$0xff] %vm3225_vm4, %v8957_v5 }
 0x69e   : > { %v9772_v24 = vpop.f32.mrf.mxu0 }
 0x69f   : > { %v8889_v29 = vmul.f32 %v9772_v24, %v15967_v4 }
 0x6a0   : > { %v8842_v58 = vpop.f32.mrf.mxu0 }
 0x6a1   : > { %v8928_v26 = vadd.f32 %v15976_v3, %v8889_v29  ;;  %v8888_v7 = vmul.f32 %v15967_v4, %v8842_v58 }
 0x6a3   : > { %v8960_v48 = vadd.f32 %v8928_v26, %v16474_v61  ;;  %v8927_v12 = vadd.f32 %v15976_v3, %v8888_v7 }
 0x6a5   : > { %8992 = vst.msk [vmem:[%s16003_s3 + $0xf8] sm:$0xff] %vm3225_vm4, %v8960_v48  ;;  %v8959_v4 = vadd.f32 %v8927_v12, %v16475_v31 }
 0x6a7   : > { %8991 = vst.msk [vmem:[%s16003_s3 + $0xf0] sm:$0xff] %vm3225_vm4, %v8959_v4 }
 0x6a8   : > { %9900 = shalt.err (!%p9897_p3)
}
 0x6a9   : > { %s9901_s0 = scalar_lea.hbm %s16157_s28, 4096  ;;  %s9905_s29 = scalar_lea.hbm %s16233_s25, 8192 }
 0x6aa   : > { %p9902_p4 = scmp.ne.s32.totalorder %s16157_s28, %s9901_s0  ;;  %p9906_p9 = scmp.lt.s32.totalorder %s16157_s28, %s16233_s25 }
 0x6ab   : > { %p9907_p10 = scmp.lt.s32.totalorder %s9905_s29, %s9901_s0 }
 0x6ac   : > { %p9903_p7 = pnand %p9902_p4, %p10121_p5 }
 0x6ad   : > { %p9908_p11 = por %p9907_p10, %p9906_p9 }
 0x6ae   : > { %p9904_p8 = pneg %p9903_p7 }
 0x6b0   : > { %p9909_p12 = pnand %p9908_p11, %p9904_p8 }
 0x6b2   : > { %9912 = shalt.err (!%p9909_p12)
}
 0x6b3   : > { %s9951_s1 = smov 128   ;;  %s9952_s8 = smov 8  }
 0x6b4   : > { %9775 = dma.vmem_to_hbm [thread:$0]  (%p10121_p5), %s16159_s6, 4096, %s16157_s28, %s16168_s7, %s9951_s1, %s9951_s1, %s9952_s8  }
 0x6b5 PF: > { %s16476_s9 = sld [smem:[#allocation7_spill]]  ;;  %p9781_p13 = scmp.ge.s32.totalorder %s9947_s30, 2 }
 0x6b7   : > { %p9778_p0 = pnand %p9781_p13, %p10125_p6 }
 0x6b9   : > { %p9779_p1 = pneg %p9778_p0 }
 0x6bb   : > { %s9022_s3 = sand.u32 1, %s16476_s9  }
 0x6bc   : > { %s9023_s10 = scalar_lea.sflag [#allocation5], %s9022_s3 }
 0x6bd   : > { %9930 = dma.done.wait (%p9779_p1), %s9023_s10, 4096  }
 0x6be   : > { %9932 = vsyncadd (%p9779_p1), %s9023_s10, 4294963200  ;;  %s16478_s30 = sld [smem:[#allocation9_spill]]  ;;  %s16481_s29 = smov %s9939_s2 }
 0x6bf   : > { %s16479_s11 = sld [smem:[#allocation8_spill]] }
 0x6c0   : > { %s16480_s6 = sld [smem:[#allocation10_spill]] }
 0x6c4   : > { %p35_p2 = scmp.ge.s32.totalorder %s16478_s30, 4  }
 0x6c5   : > { %s16482_s2 = smov %s16479_s11 }
 0x6c6   :  { %37 = sbr.rel (!%p35_p2) target bundleno = 16 (0x10), region = 157 }
 0x6cb   :  { %9028 = vsyncpa [#allocation5], 1 }
 0x6cc   :  { %9030 = vsyncpa [#allocation5 + $0x1], 1 }

</bundles_post_ra>
